<compile_context>
chip_gen: v5e
topology: v5e:2x2
jax: 0.10.0
libtpu: 0.0.40
codegen_flags: <defaults>
</compile_context>

<pallas_src>
import jax
import jax.numpy as jnp
from jax import lax
from jax.experimental import pallas as pl
from jax.experimental.pallas import tpu as pltpu

ALPHA = 10.0  # SOMLayer default Student's-t alpha

# Explicit scoped-VMEM target: >= the scoped default on v5e/v6e/v7x and well
# below v7x's 64 MiB physical VMEM.  Block tiles are sized against this budget.
_VMEM_LIMIT_BYTES = 32 * 1024 * 1024
_VMEM_HEADROOM_BYTES = 6 * 1024 * 1024   # compiler-internal scratch headroom


def _round_up(n, m):
    return ((n + m - 1) // m) * m


# ---------------------------------------------------------------------------
# Footprint-derived tile selection
# ---------------------------------------------------------------------------
def _pick_row_tile(N, per_row_bytes, budget_bytes):
    """Largest row tile whose double-buffered in/out blocks fit `budget_bytes`
    while keeping padded-row waste under ~25%.  Tiles are multiples of 16 so a
    bf16 output block never violates sublane packing."""
    tm, n_pad = 16, _round_up(N, 16)
    for cand in (1024, 512, 256, 128, 64, 32, 16):
        if 2 * cand * per_row_bytes > budget_bytes:     # 2 = double buffering
            continue
        cand_pad = _round_up(N, cand)
        if cand_pad - N <= max(cand_pad // 4, 8):       # cap padding waste
            tm, n_pad = cand, cand_pad
            break
    # Keep >= 2 blocks on the parallel axis when possible (v7x has 2 TCs).
    if n_pad // tm < 2 and tm > 16:
        tm //= 2
        n_pad = _round_up(N, tm)
    return tm, n_pad


def _pick_batch_tile(B, T, G, HP, budget_bytes):
    """Batch tile for the LSTM kernel: as large as possible (fills the MXU M
    dimension and shrinks the number of serial grid steps) subject to the
    double-buffered block footprint and keeping >= 2 parallel blocks."""
    B_pad = _round_up(B, 8)
    tb = 8
    for cand in (128, 64, 32, 16, 8):
        if B_pad % cand == 0:
            tb = cand
            break
    per_batch_row = T * (2 * G + 4 * HP)          # bf16 gx in + f32 h out
    while tb > 8 and 2 * tb * per_batch_row > budget_bytes:
        tb //= 2
    if B_pad // tb < 2 and tb > 8:                # give both v7x TCs a block
        tb //= 2
    return tb, B_pad


# ---------------------------------------------------------------------------
# Kernel 1: encoder + reparameterize + decoder + SOM + LSTM input projection
# ---------------------------------------------------------------------------
def _vae_som_kernel(x_ref, eps_ref,
                    w1_ref, b1_ref, w2_ref, b2_ref,
                    wml_ref, bml_ref,
                    dw1_ref, db1_ref, dw2_ref, db2_ref, dwo_ref, dbo_ref,
                    ct_ref, csq_ref,
                    wih_ref, bih_ref,
                    slab_ref, gx_ref):
    tm, D = x_ref.shape
    L = eps_ref.shape[1]
    K = ct_ref.shape[1]
    LP, DP, KP = _round_up(L, 128), _round_up(D, 128), _round_up(K, 128)

    x = x_ref[...]

    # --- Encoder MLP (mu/logvar heads fused into one [hidden, 2L] matmul) ---
    h = jnp.maximum(
        jnp.dot(x, w1_ref[...], preferred_element_type=jnp.float32) + b1_ref[...], 0.0)
    h = jnp.maximum(
        jnp.dot(h, w2_ref[...], preferred_element_type=jnp.float32) + b2_ref[...], 0.0)
    ml = jnp.dot(h, wml_ref[...], preferred_element_type=jnp.float32) + bml_ref[...]
    mu = ml[:, :L]
    logvar = ml[:, L:]

    # --- Reparameterize: z = mu + eps * exp(0.5 * logvar) ---
    z = mu + eps_ref[...] * jnp.exp(0.5 * logvar)

    # --- Decoder MLP ---
    dh = jnp.maximum(
        jnp.dot(z, dw1_ref[...], preferred_element_type=jnp.float32) + db1_ref[...], 0.0)
    dh = jnp.maximum(
        jnp.dot(dh, dw2_ref[...], preferred_element_type=jnp.float32) + db2_ref[...], 0.0)
    xrec = jnp.dot(dh, dwo_ref[...], preferred_element_type=jnp.float32) + dbo_ref[...]

    # --- SOM soft assignment (Student's t).  Centers arrive pre-transposed
    #     [L, K] with precomputed squared norms [1, K].
    cross = jnp.dot(z, ct_ref[...], preferred_element_type=jnp.float32)       # [tm, K]
    z_sq = jnp.sum(z * z, axis=-1, keepdims=True)                             # [tm, 1]
    dist_sq = jnp.maximum(z_sq + csq_ref[...] - 2.0 * cross, 0.0)
    u = 1.0 + dist_sq * (1.0 / ALPHA)
    if ALPHA == 10.0:
        # u^(-(alpha+1)/2) = u^-5.5 = rsqrt(u)^11: one EUP rsqrt + VPU multiplies.
        r = lax.rsqrt(u)
        r2 = r * r
        r4 = r2 * r2
        sim = r4 * r4 * r2 * r
    else:
        # General-alpha fallback so a changed ALPHA cannot silently give wrong
        # soft assignments.
        sim = u ** (-(ALPHA + 1.0) / 2.0)
    # Normalize with the EUP approximate reciprocal (free slot) instead of a divide.
    sa = sim * pl.reciprocal(jnp.sum(sim, axis=-1, keepdims=True), approx=True)

    def pad_lanes(a, width):
        gap = width - a.shape[-1]
        if gap == 0:
            return a
        return jnp.concatenate([a, jnp.zeros((a.shape[0], gap), a.dtype)], axis=-1)

    # --- Field-aligned (128-lane) packed slab: every field starts at a
    #     128-lane offset, total width is a multiple of 128, one full-width
    #     unmasked store (no masked vst.msk, no lane-crossing concat of the
    #     narrow fields at non-aligned offsets).
    slab_ref[...] = jnp.concatenate(
        [pad_lanes(mu, LP), pad_lanes(logvar, LP), pad_lanes(z, LP),
         pad_lanes(xrec, DP), pad_lanes(sa, KP)], axis=-1)

    # --- LSTM gate pre-activations, stored bf16 (dominant HBM intermediate). ---
    gx_ref[...] = (jnp.dot(z, wih_ref[...], preferred_element_type=jnp.float32)
                   + bih_ref[...]).astype(gx_ref.dtype)


def vae_som_forward(x_flat, eps_flat, weights, slab_cols, gate_cols):
    """Runs kernel 1 over fat row tiles.

    Returns (slab[N, slab_cols] f32, gx[N, gate_cols] bf16)."""
    N, D = x_flat.shape
    L = eps_flat.shape[1]

    # Footprint-derived tile: per-row bytes of the double-buffered row blocks
    # (f32 x/eps/slab + bf16 gx); weights are charged at 2 buffers.
    weight_bytes = sum(int(w.size) * w.dtype.itemsize for w in weights)
    per_row_bytes = 4 * (D + L + slab_cols) + 2 * gate_cols
    budget = max(_VMEM_LIMIT_BYTES - 2 * weight_bytes - _VMEM_HEADROOM_BYTES,
                 4 * 1024 * 1024)
    tm, N_pad = _pick_row_tile(N, per_row_bytes, budget)

    if N_pad != N:
        pad = N_pad - N
        x_flat = jnp.pad(x_flat, ((0, pad), (0, 0)))
        eps_flat = jnp.pad(eps_flat, ((0, pad), (0, 0)))

    row = lambda cols: pl.BlockSpec((tm, cols), lambda i: (i, 0))
    full = lambda a: pl.BlockSpec(a.shape, lambda i: (0, 0))
    # NOTE: the 16 weight operands are grid-invariant (fetched once); single
    # buffering them (pipeline_mode=pl.Buffered(1)) would halve their VMEM, but
    # they are tiny next to the row tiles, so the standard double-buffered
    # pipeline is kept and their 2x footprint is charged to `budget` above.

    slab, gx = pl.pallas_call(
        _vae_som_kernel,
        grid=(N_pad // tm,),
        in_specs=[row(D), row(L)] + [full(w) for w in weights],
        out_specs=[row(slab_cols), row(gate_cols)],
        out_shape=(jax.ShapeDtypeStruct((N_pad, slab_cols), jnp.float32),
                   jax.ShapeDtypeStruct((N_pad, gate_cols), jnp.bfloat16)),
        compiler_params=pltpu.CompilerParams(
            dimension_semantics=("parallel",),
            vmem_limit_bytes=_VMEM_LIMIT_BYTES),
    )(x_flat, eps_flat, *weights)
    return slab[:N], gx[:N]


# ---------------------------------------------------------------------------
# Kernel 2: LSTM recurrence only (pack/pad masking), gridded over batch tiles
# ---------------------------------------------------------------------------
def _lstm_kernel(gx_ref, len_ref, whh_ref, out_ref):
    tb, T, _ = gx_ref.shape
    HP = whh_ref.shape[0]

    # Hoisted loads: read once, close over values inside the loop.
    w_hh = whh_ref[...]                       # [HP, 4*HP] f32
    lens = len_ref[...]                       # [tb, 1] int32

    # sigmoid(v) = 0.5*tanh(0.5*v) + 0.5 : tanh runs on the (otherwise idle)
    # EUP slot instead of a multi-op VPU divide chain on the serial path.
    def sigmoid(v):
        return 0.5 * jnp.tanh(0.5 * v) + 0.5

    def step(t, carry):
        h, c = carry
        # Input projection was precomputed (kernel 1, bf16); upcast then add.
        gates = (gx_ref[:, t, :].astype(jnp.float32)
                 + jnp.dot(h, w_hh, preferred_element_type=jnp.float32))
        # Padded gate layout is i | f | o | g, each its own 128-lane-aligned
        # HP block: one wide sigmoid over the three sigmoid gates + one tanh.
        s = sigmoid(gates[:, :3 * HP])
        i_g = s[:, 0 * HP:1 * HP]
        f_g = s[:, 1 * HP:2 * HP]
        o_g = s[:, 2 * HP:3 * HP]
        g_g = jnp.tanh(gates[:, 3 * HP:])
        c_new = f_g * c + i_g * g_g
        h_new = o_g * jnp.tanh(c_new)
        # pad_packed_sequence zeroes lstm_out at t >= lengths[b]; the output
        # Linear (applied in the wrapper) then only contributes its bias there.
        out_ref[:, t, :] = h_new * (t < lens).astype(jnp.float32)
        return (h_new, c_new)

    h0 = jnp.zeros((tb, HP), jnp.float32)
    c0 = jnp.zeros((tb, HP), jnp.float32)
    # Full unroll keeps every gx_ref[:, t, :] index static; for long sequences
    # fall back to a partial unroll to limit instruction-stream / vreg pressure.
    lax.fori_loop(0, T, step, (h0, c0), unroll=True if T <= 64 else 8)


def lstm_hidden_states(gx, len2d, whh_pad, tb):
    """gx: [B_pad, T, 4*HP] bf16 batch-first precomputed gate inputs
    -> masked hidden states h [B_pad, T, HP] f32 (no HBM transpose anywhere)."""
    B_pad, T, G = gx.shape
    HP = whh_pad.shape[0]
    return pl.pallas_call(
        _lstm_kernel,
        grid=(B_pad // tb,),
        in_specs=[pl.BlockSpec((tb, T, G), lambda i: (i, 0, 0)),
                  pl.BlockSpec((tb, 1), lambda i: (i, 0)),
                  pl.BlockSpec(whh_pad.shape, lambda i: (0, 0))],
        out_specs=pl.BlockSpec((tb, T, HP), lambda i: (i, 0, 0)),
        out_shape=jax.ShapeDtypeStruct((B_pad, T, HP), jnp.float32),
        compiler_params=pltpu.CompilerParams(
            dimension_semantics=("parallel",),
            vmem_limit_bytes=_VMEM_LIMIT_BYTES),
    )(gx, len2d, whh_pad)


# ---------------------------------------------------------------------------
# Derived / re-laid-out weights
# ---------------------------------------------------------------------------
def _pad_gate_cols(w, H, HP):
    """Scatter the 4 PyTorch-order gate blocks (i|f|g|o), each H wide, into
    128-lane-aligned HP blocks reordered as i|f|o|g so the three sigmoid gates
    form one contiguous slice and tanh a single slice."""
    rows = w.shape[0]
    out = jnp.zeros((rows, 4 * HP), w.dtype)
    for slot, src in enumerate((0, 1, 3, 2)):   # dest i|f|o|g <- src i|f|g|o
        out = out.at[:, slot * HP:slot * HP + H].set(w[:, src * H:(src + 1) * H])
    return out


# ---------------------------------------------------------------------------
# Full TemporalDPSOM forward
# ---------------------------------------------------------------------------
def temporal_dpsom_forward(x, lengths, eps, params):
    B, T, D = x.shape
    L = params['e_wmu'].shape[1]
    K = params['centers'].shape[0]
    H = params['w_hh'].shape[0]
    HP = _round_up(H, 128)                    # pad hidden to 128 lanes per gate
    G = 4 * HP
    LP, DP, KP = _round_up(L, 128), _round_up(D, 128), _round_up(K, 128)
    SLAB = 3 * LP + DP + KP                   # 128-multiple, field-aligned slab

    # ---- derived weight layouts (cheap; constant-folded under jit) ----
    wml = jnp.concatenate([params['e_wmu'], params['e_wlv']], axis=1)   # [hidden, 2L]
    bml = jnp.concatenate([params['e_bmu'], params['e_blv']], axis=1)   # [1, 2L]
    centers = params['centers']
    ct = centers.T                                                       # [L, K]
    csq = jnp.sum(centers * centers, axis=1, keepdims=True).T            # [1, K]
    wih_pad = _pad_gate_cols(params['w_ih'], H, HP)                      # [L, G]
    whh_pad = jnp.zeros((HP, G), jnp.float32).at[:H].set(
        _pad_gate_cols(params['w_hh'], H, HP))                           # [HP, G]
    b_pad = _pad_gate_cols(params['b_lstm'], H, HP)                      # [1, G]
    wout_pad = jnp.zeros((HP, L), jnp.float32).at[:H].set(params['w_out'])

    weights = [params['e_w1'], params['e_b1'], params['e_w2'], params['e_b2'],
               wml, bml,
               params['d_w1'], params['d_b1'], params['d_w2'], params['d_b2'],
               params['d_wo'], params['d_bo'],
               ct, csq, wih_pad, b_pad]

    # ---- kernel 1: fused VAE + SOM + LSTM input projection ----
    N = B * T
    x_flat = x.reshape(N, D)
    eps_flat = eps.reshape(N, L)
    slab, gates_x = vae_som_forward(x_flat, eps_flat, weights, SLAB, G)

    mu = slab[:, 0:L].reshape(B, T, L)
    logvar = slab[:, LP:LP + L].reshape(B, T, L)
    z = slab[:, 2 * LP:2 * LP + L].reshape(B, T, L)
    x_recon = slab[:, 3 * LP:3 * LP + D].reshape(B, T, D)
    soft_assign = slab[:, 3 * LP + DP:3 * LP + DP + K].reshape(B, T, K)

    # ---- kernel 2: LSTM recurrence on precomputed gate inputs ----
    # gx stays batch-first: [B*T, G] -> [B, T, G] is a free reshape (no HBM
    # transpose of the largest intermediate).
    gx = gates_x.reshape(B, T, G)
    whh_bytes = HP * G * 4
    k2_budget = max(_VMEM_LIMIT_BYTES - 2 * whh_bytes - _VMEM_HEADROOM_BYTES,
                    2 * 1024 * 1024)
    tb, B_pad = _pick_batch_tile(B, T, G, HP, k2_budget)
    len2d = lengths.astype(jnp.int32).reshape(B, 1)
    if B_pad != B:
        gx = jnp.pad(gx, ((0, B_pad - B), (0, 0), (0, 0)))
        len2d = jnp.pad(len2d, ((0, B_pad - B), (0, 0)))   # len 0 -> all-zero rows
    h_masked = lstm_hidden_states(gx, len2d, whh_pad, tb)  # [B_pad, T, HP]

    # Output Linear hoisted out of the recurrence: one batched matmul.
    z_pred = jnp.einsum('bth,hl->btl', h_masked[:B], wout_pad) + params['b_out']

    # TODO(synk): assumes max(lengths) == T (PyTorch pad_packed_sequence would
    # otherwise shrink the time axis of lstm_out / z_pred to max(lengths)).
    return (x_recon, mu, logvar, z, soft_assign, z_pred)


# ---------------------------------------------------------------------------
# Pure-JAX reference (mirrors the PyTorch forward) for correctness checking
# ---------------------------------------------------------------------------
def _reference_forward(x, lengths, eps, params):
    B, T, D = x.shape
    L = params['e_wmu'].shape[1]
    H = params['w_hh'].shape[0]

    xf = x.reshape(B * T, D)
    h = jax.nn.relu(xf @ params['e_w1'] + params['e_b1'])
    h = jax.nn.relu(h @ params['e_w2'] + params['e_b2'])
    mu = h @ params['e_wmu'] + params['e_bmu']
    logvar = h @ params['e_wlv'] + params['e_blv']
    z = mu + eps.reshape(B * T, L) * jnp.exp(0.5 * logvar)

    d = jax.nn.relu(z @ params['d_w1'] + params['d_b1'])
    d = jax.nn.relu(d @ params['d_w2'] + params['d_b2'])
    xrec = d @ params['d_wo'] + params['d_bo']

    c = params['centers']
    dist = jnp.sum((z[:, None, :] - c[None, :, :]) ** 2, axis=-1)
    sim = (1.0 + dist / ALPHA) ** (-(ALPHA + 1.0) / 2.0)
    sa = sim / jnp.sum(sim, axis=1, keepdims=True)

    zb = z.reshape(B, T, L)

    def step(carry, inputs):
        h_prev, c_prev = carry
        zt, t = inputs
        gates = zt @ params['w_ih'] + h_prev @ params['w_hh'] + params['b_lstm']
        i_g = jax.nn.sigmoid(gates[:, 0 * H:1 * H])
        f_g = jax.nn.sigmoid(gates[:, 1 * H:2 * H])
        g_g = jnp.tanh(gates[:, 2 * H:3 * H])
        o_g = jax.nn.sigmoid(gates[:, 3 * H:4 * H])
        c_new = f_g * c_prev + i_g * g_g
        h_new = o_g * jnp.tanh(c_new)
        out = h_new * (t < lengths)[:, None].astype(jnp.float32)
        return (h_new, c_new), out

    h0 = jnp.zeros((B, H), jnp.float32)
    c0 = jnp.zeros((B, H), jnp.float32)
    _, outs = lax.scan(step, (h0, c0),
                       (jnp.swapaxes(zb, 0, 1), jnp.arange(T, dtype=jnp.int32)))
    lstm_out = jnp.swapaxes(outs, 0, 1)                      # [B, T, H]
    z_pred = lstm_out @ params['w_out'] + params['b_out']

    return (xrec.reshape(B, T, D), mu.reshape(B, T, L), logvar.reshape(B, T, L),
            zb, sa.reshape(B, T, -1), z_pred)


# ---------------------------------------------------------------------------
# Deterministic parameter init (shapes from the PyTorch module's __init__)
# ---------------------------------------------------------------------------
def init_params(key, input_dim, hidden_dim, latent_dim, num_nodes, lstm_hidden_dim):
    keys = iter(jax.random.split(key, 32))

    def lin(fan_in, fan_out):
        bound = 1.0 / float(fan_in) ** 0.5
        W = jax.random.uniform(next(keys), (fan_in, fan_out), jnp.float32, -bound, bound)
        b = jax.random.uniform(next(keys), (1, fan_out), jnp.float32, -bound, bound)
        return W, b

    p = {}
    # Encoder
    p['e_w1'], p['e_b1'] = lin(input_dim, hidden_dim)
    p['e_w2'], p['e_b2'] = lin(hidden_dim, hidden_dim)
    p['e_wmu'], p['e_bmu'] = lin(hidden_dim, latent_dim)
    p['e_wlv'], p['e_blv'] = lin(hidden_dim, latent_dim)
    # Decoder
    p['d_w1'], p['d_b1'] = lin(latent_dim, hidden_dim)
    p['d_w2'], p['d_b2'] = lin(hidden_dim, hidden_dim)
    p['d_wo'], p['d_bo'] = lin(hidden_dim, input_dim)
    # SOM centers ~ randn
    p['centers'] = jax.random.normal(next(keys), (num_nodes, latent_dim), jnp.float32)
    # LSTM (PyTorch gate order i, f, g, o); bias_ih + bias_hh folded together
    p['w_ih'], b_ih = lin(latent_dim, 4 * lstm_hidden_dim)
    p['w_hh'], b_hh = lin(lstm_hidden_dim, 4 * lstm_hidden_dim)
    p['b_lstm'] = b_ih + b_hh
    # lstm_output Linear
    p['w_out'], p['b_out'] = lin(lstm_hidden_dim, latent_dim)
    return p


if __name__ == "__main__":
    batch, T = 2, 8
    input_dim, hidden_dim, latent_dim = 16, 32, 8
    grid_size = (4, 4)
    num_nodes = grid_size[0] * grid_size[1]      # 16
    lstm_hidden_dim = 32

    key = jax.random.PRNGKey(0)
    k_x, k_eps, k_p = jax.random.split(key, 3)

    x = jax.random.normal(k_x, (batch, T, input_dim), jnp.float32)
    lengths = jnp.array([T, T - 2], dtype=jnp.int32)   # max(lengths) == T
    eps = jax.random.normal(k_eps, (batch, T, latent_dim), jnp.float32)

    params = init_params(k_p, input_dim, hidden_dim, latent_dim, num_nodes,
                         lstm_hidden_dim)

    fwd = jax.jit(temporal_dpsom_forward)
    outs = fwd(x, lengths, eps, params)
    jax.block_until_ready(outs)

    x_recon, mu, logvar, z, soft_assign, z_pred = outs
    assert x_recon.shape == (batch, T, input_dim)
    assert mu.shape == logvar.shape == z.shape == (batch, T, latent_dim)
    assert soft_assign.shape == (batch, T, num_nodes)
    assert z_pred.shape == (batch, T, latent_dim)

    # Loose-tolerance check against a pure-JAX reference (bf16 gate cache,
    # approximate reciprocal and MXU default f32 precision all add small noise;
    # layout/gate-order bugs would show up as O(1) errors).
    refs = _reference_forward(x, lengths, eps, params)
    names = ("x_recon", "mu", "logvar", "z", "soft_assign", "z_pred")
    for name, got, want in zip(names, outs, refs):
        assert jnp.allclose(got, want, atol=5e-2, rtol=5e-2), (
            f"{name} mismatch: max abs err "
            f"{float(jnp.max(jnp.abs(got - want))):.4f}")

    print("KERNEL_OK")
</pallas_src>

<mosaic_0001>
module attributes {stable_mosaic.version = 11 : i64} {
  func.func @_vae_som_kernel(%arg0: i32, %arg1: memref<16x16xf32, #tpu.memory_space<vmem>>, %arg2: memref<16x8xf32, #tpu.memory_space<vmem>>, %arg3: memref<16x32xf32, #tpu.memory_space<vmem>>, %arg4: memref<1x32xf32, #tpu.memory_space<vmem>>, %arg5: memref<32x32xf32, #tpu.memory_space<vmem>>, %arg6: memref<1x32xf32, #tpu.memory_space<vmem>>, %arg7: memref<32x16xf32, #tpu.memory_space<vmem>>, %arg8: memref<1x16xf32, #tpu.memory_space<vmem>>, %arg9: memref<8x32xf32, #tpu.memory_space<vmem>>, %arg10: memref<1x32xf32, #tpu.memory_space<vmem>>, %arg11: memref<32x32xf32, #tpu.memory_space<vmem>>, %arg12: memref<1x32xf32, #tpu.memory_space<vmem>>, %arg13: memref<32x16xf32, #tpu.memory_space<vmem>>, %arg14: memref<1x16xf32, #tpu.memory_space<vmem>>, %arg15: memref<8x16xf32, #tpu.memory_space<vmem>>, %arg16: memref<1x16xf32, #tpu.memory_space<vmem>>, %arg17: memref<8x512xf32, #tpu.memory_space<vmem>>, %arg18: memref<1x512xf32, #tpu.memory_space<vmem>>, %arg19: memref<16x640xf32, #tpu.memory_space<vmem>>, %arg20: memref<16x512xbf16, #tpu.memory_space<vmem>>) attributes {dimension_semantics = [#tpu.dimension_semantics<parallel>], iteration_bounds = array<i64: 1>, scalar_prefetch = 0 : i64, scratch_operands = 0 : i64, tpu.core_type = #tpu.core_type<tc>, window_params = [{transform_indices = @transform_0, window_bounds = array<i64: 16, 16>}, {transform_indices = @transform_1, window_bounds = array<i64: 16, 8>}, {pipeline_mode = #tpu.pipeline_mode<synchronous>, transform_indices = @transform_2, window_bounds = array<i64: 16, 32>}, {pipeline_mode = #tpu.pipeline_mode<synchronous>, transform_indices = @transform_3, window_bounds = array<i64: 1, 32>}, {pipeline_mode = #tpu.pipeline_mode<synchronous>, transform_indices = @transform_4, window_bounds = array<i64: 32, 32>}, {pipeline_mode = #tpu.pipeline_mode<synchronous>, transform_indices = @transform_5, window_bounds = array<i64: 1, 32>}, {pipeline_mode = #tpu.pipeline_mode<synchronous>, transform_indices = @transform_6, window_bounds = array<i64: 32, 16>}, {pipeline_mode = #tpu.pipeline_mode<synchronous>, transform_indices = @transform_7, window_bounds = array<i64: 1, 16>}, {pipeline_mode = #tpu.pipeline_mode<synchronous>, transform_indices = @transform_8, window_bounds = array<i64: 8, 32>}, {pipeline_mode = #tpu.pipeline_mode<synchronous>, transform_indices = @transform_9, window_bounds = array<i64: 1, 32>}, {pipeline_mode = #tpu.pipeline_mode<synchronous>, transform_indices = @transform_10, window_bounds = array<i64: 32, 32>}, {pipeline_mode = #tpu.pipeline_mode<synchronous>, transform_indices = @transform_11, window_bounds = array<i64: 1, 32>}, {pipeline_mode = #tpu.pipeline_mode<synchronous>, transform_indices = @transform_12, window_bounds = array<i64: 32, 16>}, {pipeline_mode = #tpu.pipeline_mode<synchronous>, transform_indices = @transform_13, window_bounds = array<i64: 1, 16>}, {pipeline_mode = #tpu.pipeline_mode<synchronous>, transform_indices = @transform_14, window_bounds = array<i64: 8, 16>}, {pipeline_mode = #tpu.pipeline_mode<synchronous>, transform_indices = @transform_15, window_bounds = array<i64: 1, 16>}, {pipeline_mode = #tpu.pipeline_mode<synchronous>, transform_indices = @transform_16, window_bounds = array<i64: 8, 512>}, {pipeline_mode = #tpu.pipeline_mode<synchronous>, transform_indices = @transform_17, window_bounds = array<i64: 1, 512>}, {transform_indices = @transform_18, window_bounds = array<i64: 16, 640>}, {transform_indices = @transform_19, window_bounds = array<i64: 16, 512>}]} {
    %c0 = arith.constant 0 : index
    %c0_0 = arith.constant 0 : index
    %0 = vector.load %arg1[%c0, %c0_0] : memref<16x16xf32, #tpu.memory_space<vmem>>, vector<16x16xf32>
    %c0_1 = arith.constant 0 : index
    %c0_2 = arith.constant 0 : index
    %1 = vector.load %arg3[%c0_1, %c0_2] : memref<16x32xf32, #tpu.memory_space<vmem>>, vector<16x32xf32>
    %cst = arith.constant dense<0.000000e+00> : vector<16x32xf32>
    %2 = tpu.matmul %0, %1, %cst {dimension_numbers = #tpu.dot_dimension_numbers<[1], [0], [0], [1], [0, 0, 1, 1], [], []>} : vector<16x16xf32>, vector<16x32xf32>, vector<16x32xf32> -> vector<16x32xf32>
    %c0_3 = arith.constant 0 : index
    %c0_4 = arith.constant 0 : index
    %3 = vector.load %arg4[%c0_3, %c0_4] : memref<1x32xf32, #tpu.memory_space<vmem>>, vector<1x32xf32>
    %4 = vector.broadcast %3 : vector<1x32xf32> to vector<16x32xf32>
    %5 = arith.addf %2, %4 : vector<16x32xf32>
    %cst_5 = arith.constant 0.000000e+00 : f32
    %6 = vector.broadcast %cst_5 : f32 to vector<16x32xf32>
    %7 = arith.maximumf %5, %6 : vector<16x32xf32>
    %c0_6 = arith.constant 0 : index
    %c0_7 = arith.constant 0 : index
    %8 = vector.load %arg5[%c0_6, %c0_7] : memref<32x32xf32, #tpu.memory_space<vmem>>, vector<32x32xf32>
    %cst_8 = arith.constant dense<0.000000e+00> : vector<16x32xf32>
    %9 = tpu.matmul %7, %8, %cst_8 {dimension_numbers = #tpu.dot_dimension_numbers<[1], [0], [0], [1], [0, 0, 1, 1], [], []>} : vector<16x32xf32>, vector<32x32xf32>, vector<16x32xf32> -> vector<16x32xf32>
    %c0_9 = arith.constant 0 : index
    %c0_10 = arith.constant 0 : index
    %10 = vector.load %arg6[%c0_9, %c0_10] : memref<1x32xf32, #tpu.memory_space<vmem>>, vector<1x32xf32>
    %11 = vector.broadcast %10 : vector<1x32xf32> to vector<16x32xf32>
    %12 = arith.addf %9, %11 : vector<16x32xf32>
    %cst_11 = arith.constant 0.000000e+00 : f32
    %13 = vector.broadcast %cst_11 : f32 to vector<16x32xf32>
    %14 = arith.maximumf %12, %13 : vector<16x32xf32>
    %c0_12 = arith.constant 0 : index
    %c0_13 = arith.constant 0 : index
    %15 = vector.load %arg7[%c0_12, %c0_13] : memref<32x16xf32, #tpu.memory_space<vmem>>, vector<32x16xf32>
    %cst_14 = arith.constant dense<0.000000e+00> : vector<16x16xf32>
    %16 = tpu.matmul %14, %15, %cst_14 {dimension_numbers = #tpu.dot_dimension_numbers<[1], [0], [0], [1], [0, 0, 1, 1], [], []>} : vector<16x32xf32>, vector<32x16xf32>, vector<16x16xf32> -> vector<16x16xf32>
    %c0_15 = arith.constant 0 : index
    %c0_16 = arith.constant 0 : index
    %17 = vector.load %arg8[%c0_15, %c0_16] : memref<1x16xf32, #tpu.memory_space<vmem>>, vector<1x16xf32>
    %18 = vector.broadcast %17 : vector<1x16xf32> to vector<16x16xf32>
    %19 = arith.addf %16, %18 : vector<16x16xf32>
    %20 = vector.extract_strided_slice %19 {offsets = [0, 0], sizes = [16, 8], strides = [1, 1]} : vector<16x16xf32> to vector<16x8xf32>
    %21 = vector.extract_strided_slice %19 {offsets = [0, 8], sizes = [16, 8], strides = [1, 1]} : vector<16x16xf32> to vector<16x8xf32>
    %c0_17 = arith.constant 0 : index
    %c0_18 = arith.constant 0 : index
    %22 = vector.load %arg2[%c0_17, %c0_18] : memref<16x8xf32, #tpu.memory_space<vmem>>, vector<16x8xf32>
    %cst_19 = arith.constant 5.000000e-01 : f32
    %23 = vector.broadcast %cst_19 : f32 to vector<16x8xf32>
    %24 = arith.mulf %23, %21 : vector<16x8xf32>
    %25 = math.exp %24 : vector<16x8xf32>
    %26 = arith.mulf %22, %25 : vector<16x8xf32>
    %27 = arith.addf %20, %26 : vector<16x8xf32>
    %c0_20 = arith.constant 0 : index
    %c0_21 = arith.constant 0 : index
    %28 = vector.load %arg9[%c0_20, %c0_21] : memref<8x32xf32, #tpu.memory_space<vmem>>, vector<8x32xf32>
    %cst_22 = arith.constant dense<0.000000e+00> : vector<16x32xf32>
    %29 = tpu.matmul %27, %28, %cst_22 {dimension_numbers = #tpu.dot_dimension_numbers<[1], [0], [0], [1], [0, 0, 1, 1], [], []>} : vector<16x8xf32>, vector<8x32xf32>, vector<16x32xf32> -> vector<16x32xf32>
    %c0_23 = arith.constant 0 : index
    %c0_24 = arith.constant 0 : index
    %30 = vector.load %arg10[%c0_23, %c0_24] : memref<1x32xf32, #tpu.memory_space<vmem>>, vector<1x32xf32>
    %31 = vector.broadcast %30 : vector<1x32xf32> to vector<16x32xf32>
    %32 = arith.addf %29, %31 : vector<16x32xf32>
    %cst_25 = arith.constant 0.000000e+00 : f32
    %33 = vector.broadcast %cst_25 : f32 to vector<16x32xf32>
    %34 = arith.maximumf %32, %33 : vector<16x32xf32>
    %c0_26 = arith.constant 0 : index
    %c0_27 = arith.constant 0 : index
    %35 = vector.load %arg11[%c0_26, %c0_27] : memref<32x32xf32, #tpu.memory_space<vmem>>, vector<32x32xf32>
    %cst_28 = arith.constant dense<0.000000e+00> : vector<16x32xf32>
    %36 = tpu.matmul %34, %35, %cst_28 {dimension_numbers = #tpu.dot_dimension_numbers<[1], [0], [0], [1], [0, 0, 1, 1], [], []>} : vector<16x32xf32>, vector<32x32xf32>, vector<16x32xf32> -> vector<16x32xf32>
    %c0_29 = arith.constant 0 : index
    %c0_30 = arith.constant 0 : index
    %37 = vector.load %arg12[%c0_29, %c0_30] : memref<1x32xf32, #tpu.memory_space<vmem>>, vector<1x32xf32>
    %38 = vector.broadcast %37 : vector<1x32xf32> to vector<16x32xf32>
    %39 = arith.addf %36, %38 : vector<16x32xf32>
    %cst_31 = arith.constant 0.000000e+00 : f32
    %40 = vector.broadcast %cst_31 : f32 to vector<16x32xf32>
    %41 = arith.maximumf %39, %40 : vector<16x32xf32>
    %c0_32 = arith.constant 0 : index
    %c0_33 = arith.constant 0 : index
    %42 = vector.load %arg13[%c0_32, %c0_33] : memref<32x16xf32, #tpu.memory_space<vmem>>, vector<32x16xf32>
    %cst_34 = arith.constant dense<0.000000e+00> : vector<16x16xf32>
    %43 = tpu.matmul %41, %42, %cst_34 {dimension_numbers = #tpu.dot_dimension_numbers<[1], [0], [0], [1], [0, 0, 1, 1], [], []>} : vector<16x32xf32>, vector<32x16xf32>, vector<16x16xf32> -> vector<16x16xf32>
    %c0_35 = arith.constant 0 : index
    %c0_36 = arith.constant 0 : index
    %44 = vector.load %arg14[%c0_35, %c0_36] : memref<1x16xf32, #tpu.memory_space<vmem>>, vector<1x16xf32>
    %45 = vector.broadcast %44 : vector<1x16xf32> to vector<16x16xf32>
    %46 = arith.addf %43, %45 : vector<16x16xf32>
    %c0_37 = arith.constant 0 : index
    %c0_38 = arith.constant 0 : index
    %47 = vector.load %arg15[%c0_37, %c0_38] : memref<8x16xf32, #tpu.memory_space<vmem>>, vector<8x16xf32>
    %cst_39 = arith.constant dense<0.000000e+00> : vector<16x16xf32>
    %48 = tpu.matmul %27, %47, %cst_39 {dimension_numbers = #tpu.dot_dimension_numbers<[1], [0], [0], [1], [0, 0, 1, 1], [], []>} : vector<16x8xf32>, vector<8x16xf32>, vector<16x16xf32> -> vector<16x16xf32>
    %49 = arith.mulf %27, %27 : vector<16x8xf32>
    %cst_40 = arith.constant dense<0.000000e+00> : vector<16xf32>
    %50 = vector.multi_reduction <add>, %49, %cst_40 [1] : vector<16x8xf32> to vector<16xf32>
    %51 = vector.shape_cast %50 : vector<16xf32> to vector<16x1xf32>
    %c0_41 = arith.constant 0 : index
    %c0_42 = arith.constant 0 : index
    %52 = vector.load %arg16[%c0_41, %c0_42] : memref<1x16xf32, #tpu.memory_space<vmem>>, vector<1x16xf32>
    %53 = vector.broadcast %51 : vector<16x1xf32> to vector<16x16xf32>
    %54 = vector.broadcast %52 : vector<1x16xf32> to vector<16x16xf32>
    %55 = arith.addf %53, %54 : vector<16x16xf32>
    %cst_43 = arith.constant 2.000000e+00 : f32
    %56 = vector.broadcast %cst_43 : f32 to vector<16x16xf32>
    %57 = arith.mulf %56, %48 : vector<16x16xf32>
    %58 = arith.subf %55, %57 : vector<16x16xf32>
    %cst_44 = arith.constant 0.000000e+00 : f32
    %59 = vector.broadcast %cst_44 : f32 to vector<16x16xf32>
    %60 = arith.maximumf %58, %59 : vector<16x16xf32>
    %cst_45 = arith.constant 1.000000e-01 : f32
    %61 = vector.broadcast %cst_45 : f32 to vector<16x16xf32>
    %62 = arith.mulf %60, %61 : vector<16x16xf32>
    %cst_46 = arith.constant 1.000000e+00 : f32
    %63 = vector.broadcast %cst_46 : f32 to vector<16x16xf32>
    %64 = arith.addf %63, %62 : vector<16x16xf32>
    %65 = math.rsqrt %64 : vector<16x16xf32>
    %66 = arith.mulf %65, %65 : vector<16x16xf32>
    %67 = arith.mulf %66, %66 : vector<16x16xf32>
    %68 = arith.mulf %67, %67 : vector<16x16xf32>
    %69 = arith.mulf %68, %66 : vector<16x16xf32>
    %70 = arith.mulf %69, %65 : vector<16x16xf32>
    %cst_47 = arith.constant dense<0.000000e+00> : vector<16xf32>
    %71 = vector.multi_reduction <add>, %70, %cst_47 [1] : vector<16x16xf32> to vector<16xf32>
    %72 = vector.shape_cast %71 : vector<16xf32> to vector<16x1xf32>
    %73 = tpu.reciprocal %72 {approx = true} : vector<16x1xf32> -> vector<16x1xf32>
    %74 = vector.broadcast %73 : vector<16x1xf32> to vector<16x16xf32>
    %75 = arith.mulf %70, %74 : vector<16x16xf32>
    %cst_48 = arith.constant 0.000000e+00 : f32
    %76 = vector.broadcast %cst_48 : f32 to vector<16x120xf32>
    %77 = tpu.concatenate %20, %76 in 1 : vector<16x8xf32>, vector<16x120xf32> -> vector<16x128xf32>
    %cst_49 = arith.constant 0.000000e+00 : f32
    %78 = vector.broadcast %cst_49 : f32 to vector<16x120xf32>
    %79 = tpu.concatenate %21, %78 in 1 : vector<16x8xf32>, vector<16x120xf32> -> vector<16x128xf32>
    %cst_50 = arith.constant 0.000000e+00 : f32
    %80 = vector.broadcast %cst_50 : f32 to vector<16x120xf32>
    %81 = tpu.concatenate %27, %80 in 1 : vector<16x8xf32>, vector<16x120xf32> -> vector<16x128xf32>
    %cst_51 = arith.constant 0.000000e+00 : f32
    %82 = vector.broadcast %cst_51 : f32 to vector<16x112xf32>
    %83 = tpu.concatenate %46, %82 in 1 : vector<16x16xf32>, vector<16x112xf32> -> vector<16x128xf32>
    %cst_52 = arith.constant 0.000000e+00 : f32
    %84 = vector.broadcast %cst_52 : f32 to vector<16x112xf32>
    %85 = tpu.concatenate %75, %84 in 1 : vector<16x16xf32>, vector<16x112xf32> -> vector<16x128xf32>
    %86 = tpu.concatenate %77, %79, %81, %83, %85 in 1 : vector<16x128xf32>, vector<16x128xf32>, vector<16x128xf32>, vector<16x128xf32>, vector<16x128xf32> -> vector<16x640xf32>
    %c0_53 = arith.constant 0 : index
    %c0_54 = arith.constant 0 : index
    %87 = vector.load %arg19[%c0_53, %c0_54] : memref<16x640xf32, #tpu.memory_space<vmem>>, vector<16x640xf32>
    tpu.vector_store %arg19[%c0_53, %c0_54], %86 {strides = array<i32>} : memref<16x640xf32, #tpu.memory_space<vmem>>, vector<16x640xf32>,
    %c0_55 = arith.constant 0 : index
    %c0_56 = arith.constant 0 : index
    %88 = vector.load %arg17[%c0_55, %c0_56] : memref<8x512xf32, #tpu.memory_space<vmem>>, vector<8x512xf32>
    %cst_57 = arith.constant dense<0.000000e+00> : vector<16x512xf32>
    %89 = tpu.matmul %27, %88, %cst_57 {dimension_numbers = #tpu.dot_dimension_numbers<[1], [0], [0], [1], [0, 0, 1, 1], [], []>} : vector<16x8xf32>, vector<8x512xf32>, vector<16x512xf32> -> vector<16x512xf32>
    %c0_58 = arith.constant 0 : index
    %c0_59 = arith.constant 0 : index
    %90 = vector.load %arg18[%c0_58, %c0_59] : memref<1x512xf32, #tpu.memory_space<vmem>>, vector<1x512xf32>
    %91 = vector.broadcast %90 : vector<1x512xf32> to vector<16x512xf32>
    %92 = arith.addf %89, %91 : vector<16x512xf32>
    %93 = arith.truncf %92 : vector<16x512xf32> to vector<16x512xbf16>
    %c0_60 = arith.constant 0 : index
    %c0_61 = arith.constant 0 : index
    %94 = vector.load %arg20[%c0_60, %c0_61] : memref<16x512xbf16, #tpu.memory_space<vmem>>, vector<16x512xbf16>
    tpu.vector_store %arg20[%c0_60, %c0_61], %93 {strides = array<i32>} : memref<16x512xbf16, #tpu.memory_space<vmem>>, vector<16x512xbf16>,
    return
  }
  func.func @transform_0(%arg0: i32) -> (i32, i32) {
    %c0_i32 = arith.constant 0 : i32
    %c0_i32_0 = arith.constant 0 : i32
    return %arg0, %c0_i32 : i32, i32
  }
  func.func @transform_1(%arg0: i32) -> (i32, i32) {
    %c0_i32 = arith.constant 0 : i32
    %c0_i32_0 = arith.constant 0 : i32
    return %arg0, %c0_i32 : i32, i32
  }
  func.func @transform_2(%arg0: i32) -> (i32, i32) {
    %c0_i32 = arith.constant 0 : i32
    %c0_i32_0 = arith.constant 0 : i32
    %c0_i32_1 = arith.constant 0 : i32
    return %c0_i32, %c0_i32_0 : i32, i32
  }
  func.func @transform_3(%arg0: i32) -> (i32, i32) {
    %c0_i32 = arith.constant 0 : i32
    %c0_i32_0 = arith.constant 0 : i32
    %c0_i32_1 = arith.constant 0 : i32
    return %c0_i32, %c0_i32_0 : i32, i32
  }
  func.func @transform_4(%arg0: i32) -> (i32, i32) {
    %c0_i32 = arith.constant 0 : i32
    %c0_i32_0 = arith.constant 0 : i32
    %c0_i32_1 = arith.constant 0 : i32
    return %c0_i32, %c0_i32_0 : i32, i32
  }
  func.func @transform_5(%arg0: i32) -> (i32, i32) {
    %c0_i32 = arith.constant 0 : i32
    %c0_i32_0 = arith.constant 0 : i32
    %c0_i32_1 = arith.constant 0 : i32
    return %c0_i32, %c0_i32_0 : i32, i32
  }
  func.func @transform_6(%arg0: i32) -> (i32, i32) {
    %c0_i32 = arith.constant 0 : i32
    %c0_i32_0 = arith.constant 0 : i32
    %c0_i32_1 = arith.constant 0 : i32
    return %c0_i32, %c0_i32_0 : i32, i32
  }
  func.func @transform_7(%arg0: i32) -> (i32, i32) {
    %c0_i32 = arith.constant 0 : i32
    %c0_i32_0 = arith.constant 0 : i32
    %c0_i32_1 = arith.constant 0 : i32
    return %c0_i32, %c0_i32_0 : i32, i32
  }
  func.func @transform_8(%arg0: i32) -> (i32, i32) {
    %c0_i32 = arith.constant 0 : i32
    %c0_i32_0 = arith.constant 0 : i32
    %c0_i32_1 = arith.constant 0 : i32
    return %c0_i32, %c0_i32_0 : i32, i32
  }
  func.func @transform_9(%arg0: i32) -> (i32, i32) {
    %c0_i32 = arith.constant 0 : i32
    %c0_i32_0 = arith.constant 0 : i32
    %c0_i32_1 = arith.constant 0 : i32
    return %c0_i32, %c0_i32_0 : i32, i32
  }
  func.func @transform_10(%arg0: i32) -> (i32, i32) {
    %c0_i32 = arith.constant 0 : i32
    %c0_i32_0 = arith.constant 0 : i32
    %c0_i32_1 = arith.constant 0 : i32
    return %c0_i32, %c0_i32_0 : i32, i32
  }
  func.func @transform_11(%arg0: i32) -> (i32, i32) {
    %c0_i32 = arith.constant 0 : i32
    %c0_i32_0 = arith.constant 0 : i32
    %c0_i32_1 = arith.constant 0 : i32
    return %c0_i32, %c0_i32_0 : i32, i32
  }
  func.func @transform_12(%arg0: i32) -> (i32, i32) {
    %c0_i32 = arith.constant 0 : i32
    %c0_i32_0 = arith.constant 0 : i32
    %c0_i32_1 = arith.constant 0 : i32
    return %c0_i32, %c0_i32_0 : i32, i32
  }
  func.func @transform_13(%arg0: i32) -> (i32, i32) {
    %c0_i32 = arith.constant 0 : i32
    %c0_i32_0 = arith.constant 0 : i32
    %c0_i32_1 = arith.constant 0 : i32
    return %c0_i32, %c0_i32_0 : i32, i32
  }
  func.func @transform_14(%arg0: i32) -> (i32, i32) {
    %c0_i32 = arith.constant 0 : i32
    %c0_i32_0 = arith.constant 0 : i32
    %c0_i32_1 = arith.constant 0 : i32
    return %c0_i32, %c0_i32_0 : i32, i32
  }
  func.func @transform_15(%arg0: i32) -> (i32, i32) {
    %c0_i32 = arith.constant 0 : i32
    %c0_i32_0 = arith.constant 0 : i32
    %c0_i32_1 = arith.constant 0 : i32
    return %c0_i32, %c0_i32_0 : i32, i32
  }
  func.func @transform_16(%arg0: i32) -> (i32, i32) {
    %c0_i32 = arith.constant 0 : i32
    %c0_i32_0 = arith.constant 0 : i32
    %c0_i32_1 = arith.constant 0 : i32
    return %c0_i32, %c0_i32_0 : i32, i32
  }
  func.func @transform_17(%arg0: i32) -> (i32, i32) {
    %c0_i32 = arith.constant 0 : i32
    %c0_i32_0 = arith.constant 0 : i32
    %c0_i32_1 = arith.constant 0 : i32
    return %c0_i32, %c0_i32_0 : i32, i32
  }
  func.func @transform_18(%arg0: i32) -> (i32, i32) {
    %c0_i32 = arith.constant 0 : i32
    %c0_i32_0 = arith.constant 0 : i32
    return %arg0, %c0_i32 : i32, i32
  }
  func.func @transform_19(%arg0: i32) -> (i32, i32) {
    %c0_i32 = arith.constant 0 : i32
    %c0_i32_0 = arith.constant 0 : i32
    return %arg0, %c0_i32 : i32, i32
  }
}

module attributes {stable_mosaic.version = 11 : i64} {
  func.func @_lstm_kernel(%arg0: i32, %arg1: memref<8x8x512xbf16, #tpu.memory_space<vmem>>, %arg2: memref<8x1xi32, #tpu.memory_space<vmem>>, %arg3: memref<128x512xf32, #tpu.memory_space<vmem>>, %arg4: memref<8x8x128xf32, #tpu.memory_space<vmem>>) attributes {dimension_semantics = [#tpu.dimension_semantics<parallel>], iteration_bounds = array<i64: 1>, scalar_prefetch = 0 : i64, scratch_operands = 0 : i64, tpu.core_type = #tpu.core_type<tc>, window_params = [{transform_indices = @transform_0, window_bounds = array<i64: 8, 8, 512>}, {transform_indices = @transform_1, window_bounds = array<i64: 8, 1>}, {pipeline_mode = #tpu.pipeline_mode<synchronous>, transform_indices = @transform_2, window_bounds = array<i64: 128, 512>}, {transform_indices = @transform_3, window_bounds = array<i64: 8, 8, 128>}]} {
    %c0 = arith.constant 0 : index
    %c0_0 = arith.constant 0 : index
    %0 = vector.load %arg3[%c0, %c0_0] : memref<128x512xf32, #tpu.memory_space<vmem>>, vector<128x512xf32>
    %c0_1 = arith.constant 0 : index
    %c0_2 = arith.constant 0 : index
    %1 = vector.load %arg2[%c0_1, %c0_2] : memref<8x1xi32, #tpu.memory_space<vmem>>, vector<8x1xi32>
    %cst = arith.constant 0.000000e+00 : f32
    %2 = vector.broadcast %cst : f32 to vector<8x128xf32>
    %cst_3 = arith.constant 0.000000e+00 : f32
    %3 = vector.broadcast %cst_3 : f32 to vector<8x128xf32>
    %c0_i32 = arith.constant 0 : i32
    %c0_4 = arith.constant 0 : index
    %4 = arith.index_cast %c0_i32 : i32 to index
    %c0_5 = arith.constant 0 : index
    %5 = vector.load %arg1[%c0_4, %4, %c0_5] : memref<8x8x512xbf16, #tpu.memory_space<vmem>>, vector<8x1x512xbf16>
    %6 = vector.shape_cast %5 : vector<8x1x512xbf16> to vector<8x512xbf16>
    %7 = arith.extf %6 : vector<8x512xbf16> to vector<8x512xf32>
    %cst_6 = arith.constant dense<0.000000e+00> : vector<8x512xf32>
    %8 = tpu.matmul %2, %0, %cst_6 {dimension_numbers = #tpu.dot_dimension_numbers<[1], [0], [0], [1], [0, 0, 1, 1], [], []>} : vector<8x128xf32>, vector<128x512xf32>, vector<8x512xf32> -> vector<8x512xf32>
    %9 = arith.addf %7, %8 : vector<8x512xf32>
    %10 = vector.extract_strided_slice %9 {offsets = [0, 0], sizes = [8, 384], strides = [1, 1]} : vector<8x512xf32> to vector<8x384xf32>
    %cst_7 = arith.constant 5.000000e-01 : f32
    %11 = vector.broadcast %cst_7 : f32 to vector<8x384xf32>
    %12 = arith.mulf %11, %10 : vector<8x384xf32>
    %13 = math.tanh %12 : vector<8x384xf32>
    %cst_8 = arith.constant 5.000000e-01 : f32
    %14 = vector.broadcast %cst_8 : f32 to vector<8x384xf32>
    %15 = arith.mulf %14, %13 : vector<8x384xf32>
    %cst_9 = arith.constant 5.000000e-01 : f32
    %16 = vector.broadcast %cst_9 : f32 to vector<8x384xf32>
    %17 = arith.addf %15, %16 : vector<8x384xf32>
    %18 = vector.extract_strided_slice %17 {offsets = [0, 0], sizes = [8, 128], strides = [1, 1]} : vector<8x384xf32> to vector<8x128xf32>
    %19 = vector.extract_strided_slice %17 {offsets = [0, 128], sizes = [8, 128], strides = [1, 1]} : vector<8x384xf32> to vector<8x128xf32>
    %20 = vector.extract_strided_slice %17 {offsets = [0, 256], sizes = [8, 128], strides = [1, 1]} : vector<8x384xf32> to vector<8x128xf32>
    %21 = vector.extract_strided_slice %9 {offsets = [0, 384], sizes = [8, 128], strides = [1, 1]} : vector<8x512xf32> to vector<8x128xf32>
    %22 = math.tanh %21 : vector<8x128xf32>
    %23 = arith.mulf %19, %3 : vector<8x128xf32>
    %24 = arith.mulf %18, %22 : vector<8x128xf32>
    %25 = arith.addf %23, %24 : vector<8x128xf32>
    %26 = math.tanh %25 : vector<8x128xf32>
    %27 = arith.mulf %20, %26 : vector<8x128xf32>
    %28 = vector.broadcast %c0_i32 : i32 to vector<8x1xi32>
    %29 = arith.cmpi slt, %28, %1 : vector<8x1xi32>
    %30 = arith.extui %29 : vector<8x1xi1> to vector<8x1xi32>
    %31 = arith.sitofp %30 : vector<8x1xi32> to vector<8x1xf32>
    %32 = vector.broadcast %31 : vector<8x1xf32> to vector<8x128xf32>
    %33 = arith.mulf %27, %32 : vector<8x128xf32>
    %c0_10 = arith.constant 0 : index
    %34 = arith.index_cast %c0_i32 : i32 to index
    %c0_11 = arith.constant 0 : index
    %35 = vector.load %arg4[%c0_10, %34, %c0_11] : memref<8x8x128xf32, #tpu.memory_space<vmem>>, vector<8x1x128xf32>
    %36 = vector.shape_cast %35 : vector<8x1x128xf32> to vector<8x128xf32>
    %37 = vector.shape_cast %33 : vector<8x128xf32> to vector<8x1x128xf32>
    tpu.vector_store %arg4[%c0_10, %34, %c0_11], %37 {strides = array<i32>} : memref<8x8x128xf32, #tpu.memory_space<vmem>>, vector<8x1x128xf32>,
    %c1_i32 = arith.constant 1 : i32
    %c0_12 = arith.constant 0 : index
    %38 = arith.index_cast %c1_i32 : i32 to index
    %c0_13 = arith.constant 0 : index
    %39 = vector.load %arg1[%c0_12, %38, %c0_13] : memref<8x8x512xbf16, #tpu.memory_space<vmem>>, vector<8x1x512xbf16>
    %40 = vector.shape_cast %39 : vector<8x1x512xbf16> to vector<8x512xbf16>
    %41 = arith.extf %40 : vector<8x512xbf16> to vector<8x512xf32>
    %cst_14 = arith.constant dense<0.000000e+00> : vector<8x512xf32>
    %42 = tpu.matmul %27, %0, %cst_14 {dimension_numbers = #tpu.dot_dimension_numbers<[1], [0], [0], [1], [0, 0, 1, 1], [], []>} : vector<8x128xf32>, vector<128x512xf32>, vector<8x512xf32> -> vector<8x512xf32>
    %43 = arith.addf %41, %42 : vector<8x512xf32>
    %44 = vector.extract_strided_slice %43 {offsets = [0, 0], sizes = [8, 384], strides = [1, 1]} : vector<8x512xf32> to vector<8x384xf32>
    %cst_15 = arith.constant 5.000000e-01 : f32
    %45 = vector.broadcast %cst_15 : f32 to vector<8x384xf32>
    %46 = arith.mulf %45, %44 : vector<8x384xf32>
    %47 = math.tanh %46 : vector<8x384xf32>
    %cst_16 = arith.constant 5.000000e-01 : f32
    %48 = vector.broadcast %cst_16 : f32 to vector<8x384xf32>
    %49 = arith.mulf %48, %47 : vector<8x384xf32>
    %cst_17 = arith.constant 5.000000e-01 : f32
    %50 = vector.broadcast %cst_17 : f32 to vector<8x384xf32>
    %51 = arith.addf %49, %50 : vector<8x384xf32>
    %52 = vector.extract_strided_slice %51 {offsets = [0, 0], sizes = [8, 128], strides = [1, 1]} : vector<8x384xf32> to vector<8x128xf32>
    %53 = vector.extract_strided_slice %51 {offsets = [0, 128], sizes = [8, 128], strides = [1, 1]} : vector<8x384xf32> to vector<8x128xf32>
    %54 = vector.extract_strided_slice %51 {offsets = [0, 256], sizes = [8, 128], strides = [1, 1]} : vector<8x384xf32> to vector<8x128xf32>
    %55 = vector.extract_strided_slice %43 {offsets = [0, 384], sizes = [8, 128], strides = [1, 1]} : vector<8x512xf32> to vector<8x128xf32>
    %56 = math.tanh %55 : vector<8x128xf32>
    %57 = arith.mulf %53, %25 : vector<8x128xf32>
    %58 = arith.mulf %52, %56 : vector<8x128xf32>
    %59 = arith.addf %57, %58 : vector<8x128xf32>
    %60 = math.tanh %59 : vector<8x128xf32>
    %61 = arith.mulf %54, %60 : vector<8x128xf32>
    %62 = vector.broadcast %c1_i32 : i32 to vector<8x1xi32>
    %63 = arith.cmpi slt, %62, %1 : vector<8x1xi32>
    %64 = arith.extui %63 : vector<8x1xi1> to vector<8x1xi32>
    %65 = arith.sitofp %64 : vector<8x1xi32> to vector<8x1xf32>
    %66 = vector.broadcast %65 : vector<8x1xf32> to vector<8x128xf32>
    %67 = arith.mulf %61, %66 : vector<8x128xf32>
    %c0_18 = arith.constant 0 : index
    %68 = arith.index_cast %c1_i32 : i32 to index
    %c0_19 = arith.constant 0 : index
    %69 = vector.load %arg4[%c0_18, %68, %c0_19] : memref<8x8x128xf32, #tpu.memory_space<vmem>>, vector<8x1x128xf32>
    %70 = vector.shape_cast %69 : vector<8x1x128xf32> to vector<8x128xf32>
    %71 = vector.shape_cast %67 : vector<8x128xf32> to vector<8x1x128xf32>
    tpu.vector_store %arg4[%c0_18, %68, %c0_19], %71 {strides = array<i32>} : memref<8x8x128xf32, #tpu.memory_space<vmem>>, vector<8x1x128xf32>,
    %c2_i32 = arith.constant 2 : i32
    %c0_20 = arith.constant 0 : index
    %72 = arith.index_cast %c2_i32 : i32 to index
    %c0_21 = arith.constant 0 : index
    %73 = vector.load %arg1[%c0_20, %72, %c0_21] : memref<8x8x512xbf16, #tpu.memory_space<vmem>>, vector<8x1x512xbf16>
    %74 = vector.shape_cast %73 : vector<8x1x512xbf16> to vector<8x512xbf16>
    %75 = arith.extf %74 : vector<8x512xbf16> to vector<8x512xf32>
    %cst_22 = arith.constant dense<0.000000e+00> : vector<8x512xf32>
    %76 = tpu.matmul %61, %0, %cst_22 {dimension_numbers = #tpu.dot_dimension_numbers<[1], [0], [0], [1], [0, 0, 1, 1], [], []>} : vector<8x128xf32>, vector<128x512xf32>, vector<8x512xf32> -> vector<8x512xf32>
    %77 = arith.addf %75, %76 : vector<8x512xf32>
    %78 = vector.extract_strided_slice %77 {offsets = [0, 0], sizes = [8, 384], strides = [1, 1]} : vector<8x512xf32> to vector<8x384xf32>
    %cst_23 = arith.constant 5.000000e-01 : f32
    %79 = vector.broadcast %cst_23 : f32 to vector<8x384xf32>
    %80 = arith.mulf %79, %78 : vector<8x384xf32>
    %81 = math.tanh %80 : vector<8x384xf32>
    %cst_24 = arith.constant 5.000000e-01 : f32
    %82 = vector.broadcast %cst_24 : f32 to vector<8x384xf32>
    %83 = arith.mulf %82, %81 : vector<8x384xf32>
    %cst_25 = arith.constant 5.000000e-01 : f32
    %84 = vector.broadcast %cst_25 : f32 to vector<8x384xf32>
    %85 = arith.addf %83, %84 : vector<8x384xf32>
    %86 = vector.extract_strided_slice %85 {offsets = [0, 0], sizes = [8, 128], strides = [1, 1]} : vector<8x384xf32> to vector<8x128xf32>
    %87 = vector.extract_strided_slice %85 {offsets = [0, 128], sizes = [8, 128], strides = [1, 1]} : vector<8x384xf32> to vector<8x128xf32>
    %88 = vector.extract_strided_slice %85 {offsets = [0, 256], sizes = [8, 128], strides = [1, 1]} : vector<8x384xf32> to vector<8x128xf32>
    %89 = vector.extract_strided_slice %77 {offsets = [0, 384], sizes = [8, 128], strides = [1, 1]} : vector<8x512xf32> to vector<8x128xf32>
    %90 = math.tanh %89 : vector<8x128xf32>
    %91 = arith.mulf %87, %59 : vector<8x128xf32>
    %92 = arith.mulf %86, %90 : vector<8x128xf32>
    %93 = arith.addf %91, %92 : vector<8x128xf32>
    %94 = math.tanh %93 : vector<8x128xf32>
    %95 = arith.mulf %88, %94 : vector<8x128xf32>
    %96 = vector.broadcast %c2_i32 : i32 to vector<8x1xi32>
    %97 = arith.cmpi slt, %96, %1 : vector<8x1xi32>
    %98 = arith.extui %97 : vector<8x1xi1> to vector<8x1xi32>
    %99 = arith.sitofp %98 : vector<8x1xi32> to vector<8x1xf32>
    %100 = vector.broadcast %99 : vector<8x1xf32> to vector<8x128xf32>
    %101 = arith.mulf %95, %100 : vector<8x128xf32>
    %c0_26 = arith.constant 0 : index
    %102 = arith.index_cast %c2_i32 : i32 to index
    %c0_27 = arith.constant 0 : index
    %103 = vector.load %arg4[%c0_26, %102, %c0_27] : memref<8x8x128xf32, #tpu.memory_space<vmem>>, vector<8x1x128xf32>
    %104 = vector.shape_cast %103 : vector<8x1x128xf32> to vector<8x128xf32>
    %105 = vector.shape_cast %101 : vector<8x128xf32> to vector<8x1x128xf32>
    tpu.vector_store %arg4[%c0_26, %102, %c0_27], %105 {strides = array<i32>} : memref<8x8x128xf32, #tpu.memory_space<vmem>>, vector<8x1x128xf32>,
    %c3_i32 = arith.constant 3 : i32
    %c0_28 = arith.constant 0 : index
    %106 = arith.index_cast %c3_i32 : i32 to index
    %c0_29 = arith.constant 0 : index
    %107 = vector.load %arg1[%c0_28, %106, %c0_29] : memref<8x8x512xbf16, #tpu.memory_space<vmem>>, vector<8x1x512xbf16>
    %108 = vector.shape_cast %107 : vector<8x1x512xbf16> to vector<8x512xbf16>
    %109 = arith.extf %108 : vector<8x512xbf16> to vector<8x512xf32>
    %cst_30 = arith.constant dense<0.000000e+00> : vector<8x512xf32>
    %110 = tpu.matmul %95, %0, %cst_30 {dimension_numbers = #tpu.dot_dimension_numbers<[1], [0], [0], [1], [0, 0, 1, 1], [], []>} : vector<8x128xf32>, vector<128x512xf32>, vector<8x512xf32> -> vector<8x512xf32>
    %111 = arith.addf %109, %110 : vector<8x512xf32>
    %112 = vector.extract_strided_slice %111 {offsets = [0, 0], sizes = [8, 384], strides = [1, 1]} : vector<8x512xf32> to vector<8x384xf32>
    %cst_31 = arith.constant 5.000000e-01 : f32
    %113 = vector.broadcast %cst_31 : f32 to vector<8x384xf32>
    %114 = arith.mulf %113, %112 : vector<8x384xf32>
    %115 = math.tanh %114 : vector<8x384xf32>
    %cst_32 = arith.constant 5.000000e-01 : f32
    %116 = vector.broadcast %cst_32 : f32 to vector<8x384xf32>
    %117 = arith.mulf %116, %115 : vector<8x384xf32>
    %cst_33 = arith.constant 5.000000e-01 : f32
    %118 = vector.broadcast %cst_33 : f32 to vector<8x384xf32>
    %119 = arith.addf %117, %118 : vector<8x384xf32>
    %120 = vector.extract_strided_slice %119 {offsets = [0, 0], sizes = [8, 128], strides = [1, 1]} : vector<8x384xf32> to vector<8x128xf32>
    %121 = vector.extract_strided_slice %119 {offsets = [0, 128], sizes = [8, 128], strides = [1, 1]} : vector<8x384xf32> to vector<8x128xf32>
    %122 = vector.extract_strided_slice %119 {offsets = [0, 256], sizes = [8, 128], strides = [1, 1]} : vector<8x384xf32> to vector<8x128xf32>
    %123 = vector.extract_strided_slice %111 {offsets = [0, 384], sizes = [8, 128], strides = [1, 1]} : vector<8x512xf32> to vector<8x128xf32>
    %124 = math.tanh %123 : vector<8x128xf32>
    %125 = arith.mulf %121, %93 : vector<8x128xf32>
    %126 = arith.mulf %120, %124 : vector<8x128xf32>
    %127 = arith.addf %125, %126 : vector<8x128xf32>
    %128 = math.tanh %127 : vector<8x128xf32>
    %129 = arith.mulf %122, %128 : vector<8x128xf32>
    %130 = vector.broadcast %c3_i32 : i32 to vector<8x1xi32>
    %131 = arith.cmpi slt, %130, %1 : vector<8x1xi32>
    %132 = arith.extui %131 : vector<8x1xi1> to vector<8x1xi32>
    %133 = arith.sitofp %132 : vector<8x1xi32> to vector<8x1xf32>
    %134 = vector.broadcast %133 : vector<8x1xf32> to vector<8x128xf32>
    %135 = arith.mulf %129, %134 : vector<8x128xf32>
    %c0_34 = arith.constant 0 : index
    %136 = arith.index_cast %c3_i32 : i32 to index
    %c0_35 = arith.constant 0 : index
    %137 = vector.load %arg4[%c0_34, %136, %c0_35] : memref<8x8x128xf32, #tpu.memory_space<vmem>>, vector<8x1x128xf32>
    %138 = vector.shape_cast %137 : vector<8x1x128xf32> to vector<8x128xf32>
    %139 = vector.shape_cast %135 : vector<8x128xf32> to vector<8x1x128xf32>
    tpu.vector_store %arg4[%c0_34, %136, %c0_35], %139 {strides = array<i32>} : memref<8x8x128xf32, #tpu.memory_space<vmem>>, vector<8x1x128xf32>,
    %c4_i32 = arith.constant 4 : i32
    %c0_36 = arith.constant 0 : index
    %140 = arith.index_cast %c4_i32 : i32 to index
    %c0_37 = arith.constant 0 : index
    %141 = vector.load %arg1[%c0_36, %140, %c0_37] : memref<8x8x512xbf16, #tpu.memory_space<vmem>>, vector<8x1x512xbf16>
    %142 = vector.shape_cast %141 : vector<8x1x512xbf16> to vector<8x512xbf16>
    %143 = arith.extf %142 : vector<8x512xbf16> to vector<8x512xf32>
    %cst_38 = arith.constant dense<0.000000e+00> : vector<8x512xf32>
    %144 = tpu.matmul %129, %0, %cst_38 {dimension_numbers = #tpu.dot_dimension_numbers<[1], [0], [0], [1], [0, 0, 1, 1], [], []>} : vector<8x128xf32>, vector<128x512xf32>, vector<8x512xf32> -> vector<8x512xf32>
    %145 = arith.addf %143, %144 : vector<8x512xf32>
    %146 = vector.extract_strided_slice %145 {offsets = [0, 0], sizes = [8, 384], strides = [1, 1]} : vector<8x512xf32> to vector<8x384xf32>
    %cst_39 = arith.constant 5.000000e-01 : f32
    %147 = vector.broadcast %cst_39 : f32 to vector<8x384xf32>
    %148 = arith.mulf %147, %146 : vector<8x384xf32>
    %149 = math.tanh %148 : vector<8x384xf32>
    %cst_40 = arith.constant 5.000000e-01 : f32
    %150 = vector.broadcast %cst_40 : f32 to vector<8x384xf32>
    %151 = arith.mulf %150, %149 : vector<8x384xf32>
    %cst_41 = arith.constant 5.000000e-01 : f32
    %152 = vector.broadcast %cst_41 : f32 to vector<8x384xf32>
    %153 = arith.addf %151, %152 : vector<8x384xf32>
    %154 = vector.extract_strided_slice %153 {offsets = [0, 0], sizes = [8, 128], strides = [1, 1]} : vector<8x384xf32> to vector<8x128xf32>
    %155 = vector.extract_strided_slice %153 {offsets = [0, 128], sizes = [8, 128], strides = [1, 1]} : vector<8x384xf32> to vector<8x128xf32>
    %156 = vector.extract_strided_slice %153 {offsets = [0, 256], sizes = [8, 128], strides = [1, 1]} : vector<8x384xf32> to vector<8x128xf32>
    %157 = vector.extract_strided_slice %145 {offsets = [0, 384], sizes = [8, 128], strides = [1, 1]} : vector<8x512xf32> to vector<8x128xf32>
    %158 = math.tanh %157 : vector<8x128xf32>
    %159 = arith.mulf %155, %127 : vector<8x128xf32>
    %160 = arith.mulf %154, %158 : vector<8x128xf32>
    %161 = arith.addf %159, %160 : vector<8x128xf32>
    %162 = math.tanh %161 : vector<8x128xf32>
    %163 = arith.mulf %156, %162 : vector<8x128xf32>
    %164 = vector.broadcast %c4_i32 : i32 to vector<8x1xi32>
    %165 = arith.cmpi slt, %164, %1 : vector<8x1xi32>
    %166 = arith.extui %165 : vector<8x1xi1> to vector<8x1xi32>
    %167 = arith.sitofp %166 : vector<8x1xi32> to vector<8x1xf32>
    %168 = vector.broadcast %167 : vector<8x1xf32> to vector<8x128xf32>
    %169 = arith.mulf %163, %168 : vector<8x128xf32>
    %c0_42 = arith.constant 0 : index
    %170 = arith.index_cast %c4_i32 : i32 to index
    %c0_43 = arith.constant 0 : index
    %171 = vector.load %arg4[%c0_42, %170, %c0_43] : memref<8x8x128xf32, #tpu.memory_space<vmem>>, vector<8x1x128xf32>
    %172 = vector.shape_cast %171 : vector<8x1x128xf32> to vector<8x128xf32>
    %173 = vector.shape_cast %169 : vector<8x128xf32> to vector<8x1x128xf32>
    tpu.vector_store %arg4[%c0_42, %170, %c0_43], %173 {strides = array<i32>} : memref<8x8x128xf32, #tpu.memory_space<vmem>>, vector<8x1x128xf32>,
    %c5_i32 = arith.constant 5 : i32
    %c0_44 = arith.constant 0 : index
    %174 = arith.index_cast %c5_i32 : i32 to index
    %c0_45 = arith.constant 0 : index
    %175 = vector.load %arg1[%c0_44, %174, %c0_45] : memref<8x8x512xbf16, #tpu.memory_space<vmem>>, vector<8x1x512xbf16>
    %176 = vector.shape_cast %175 : vector<8x1x512xbf16> to vector<8x512xbf16>
    %177 = arith.extf %176 : vector<8x512xbf16> to vector<8x512xf32>
    %cst_46 = arith.constant dense<0.000000e+00> : vector<8x512xf32>
    %178 = tpu.matmul %163, %0, %cst_46 {dimension_numbers = #tpu.dot_dimension_numbers<[1], [0], [0], [1], [0, 0, 1, 1], [], []>} : vector<8x128xf32>, vector<128x512xf32>, vector<8x512xf32> -> vector<8x512xf32>
    %179 = arith.addf %177, %178 : vector<8x512xf32>
    %180 = vector.extract_strided_slice %179 {offsets = [0, 0], sizes = [8, 384], strides = [1, 1]} : vector<8x512xf32> to vector<8x384xf32>
    %cst_47 = arith.constant 5.000000e-01 : f32
    %181 = vector.broadcast %cst_47 : f32 to vector<8x384xf32>
    %182 = arith.mulf %181, %180 : vector<8x384xf32>
    %183 = math.tanh %182 : vector<8x384xf32>
    %cst_48 = arith.constant 5.000000e-01 : f32
    %184 = vector.broadcast %cst_48 : f32 to vector<8x384xf32>
    %185 = arith.mulf %184, %183 : vector<8x384xf32>
    %cst_49 = arith.constant 5.000000e-01 : f32
    %186 = vector.broadcast %cst_49 : f32 to vector<8x384xf32>
    %187 = arith.addf %185, %186 : vector<8x384xf32>
    %188 = vector.extract_strided_slice %187 {offsets = [0, 0], sizes = [8, 128], strides = [1, 1]} : vector<8x384xf32> to vector<8x128xf32>
    %189 = vector.extract_strided_slice %187 {offsets = [0, 128], sizes = [8, 128], strides = [1, 1]} : vector<8x384xf32> to vector<8x128xf32>
    %190 = vector.extract_strided_slice %187 {offsets = [0, 256], sizes = [8, 128], strides = [1, 1]} : vector<8x384xf32> to vector<8x128xf32>
    %191 = vector.extract_strided_slice %179 {offsets = [0, 384], sizes = [8, 128], strides = [1, 1]} : vector<8x512xf32> to vector<8x128xf32>
    %192 = math.tanh %191 : vector<8x128xf32>
    %193 = arith.mulf %189, %161 : vector<8x128xf32>
    %194 = arith.mulf %188, %192 : vector<8x128xf32>
    %195 = arith.addf %193, %194 : vector<8x128xf32>
    %196 = math.tanh %195 : vector<8x128xf32>
    %197 = arith.mulf %190, %196 : vector<8x128xf32>
    %198 = vector.broadcast %c5_i32 : i32 to vector<8x1xi32>
    %199 = arith.cmpi slt, %198, %1 : vector<8x1xi32>
    %200 = arith.extui %199 : vector<8x1xi1> to vector<8x1xi32>
    %201 = arith.sitofp %200 : vector<8x1xi32> to vector<8x1xf32>
    %202 = vector.broadcast %201 : vector<8x1xf32> to vector<8x128xf32>
    %203 = arith.mulf %197, %202 : vector<8x128xf32>
    %c0_50 = arith.constant 0 : index
    %204 = arith.index_cast %c5_i32 : i32 to index
    %c0_51 = arith.constant 0 : index
    %205 = vector.load %arg4[%c0_50, %204, %c0_51] : memref<8x8x128xf32, #tpu.memory_space<vmem>>, vector<8x1x128xf32>
    %206 = vector.shape_cast %205 : vector<8x1x128xf32> to vector<8x128xf32>
    %207 = vector.shape_cast %203 : vector<8x128xf32> to vector<8x1x128xf32>
    tpu.vector_store %arg4[%c0_50, %204, %c0_51], %207 {strides = array<i32>} : memref<8x8x128xf32, #tpu.memory_space<vmem>>, vector<8x1x128xf32>,
    %c6_i32 = arith.constant 6 : i32
    %c0_52 = arith.constant 0 : index
    %208 = arith.index_cast %c6_i32 : i32 to index
    %c0_53 = arith.constant 0 : index
    %209 = vector.load %arg1[%c0_52, %208, %c0_53] : memref<8x8x512xbf16, #tpu.memory_space<vmem>>, vector<8x1x512xbf16>
    %210 = vector.shape_cast %209 : vector<8x1x512xbf16> to vector<8x512xbf16>
    %211 = arith.extf %210 : vector<8x512xbf16> to vector<8x512xf32>
    %cst_54 = arith.constant dense<0.000000e+00> : vector<8x512xf32>
    %212 = tpu.matmul %197, %0, %cst_54 {dimension_numbers = #tpu.dot_dimension_numbers<[1], [0], [0], [1], [0, 0, 1, 1], [], []>} : vector<8x128xf32>, vector<128x512xf32>, vector<8x512xf32> -> vector<8x512xf32>
    %213 = arith.addf %211, %212 : vector<8x512xf32>
    %214 = vector.extract_strided_slice %213 {offsets = [0, 0], sizes = [8, 384], strides = [1, 1]} : vector<8x512xf32> to vector<8x384xf32>
    %cst_55 = arith.constant 5.000000e-01 : f32
    %215 = vector.broadcast %cst_55 : f32 to vector<8x384xf32>
    %216 = arith.mulf %215, %214 : vector<8x384xf32>
    %217 = math.tanh %216 : vector<8x384xf32>
    %cst_56 = arith.constant 5.000000e-01 : f32
    %218 = vector.broadcast %cst_56 : f32 to vector<8x384xf32>
    %219 = arith.mulf %218, %217 : vector<8x384xf32>
    %cst_57 = arith.constant 5.000000e-01 : f32
    %220 = vector.broadcast %cst_57 : f32 to vector<8x384xf32>
    %221 = arith.addf %219, %220 : vector<8x384xf32>
    %222 = vector.extract_strided_slice %221 {offsets = [0, 0], sizes = [8, 128], strides = [1, 1]} : vector<8x384xf32> to vector<8x128xf32>
    %223 = vector.extract_strided_slice %221 {offsets = [0, 128], sizes = [8, 128], strides = [1, 1]} : vector<8x384xf32> to vector<8x128xf32>
    %224 = vector.extract_strided_slice %221 {offsets = [0, 256], sizes = [8, 128], strides = [1, 1]} : vector<8x384xf32> to vector<8x128xf32>
    %225 = vector.extract_strided_slice %213 {offsets = [0, 384], sizes = [8, 128], strides = [1, 1]} : vector<8x512xf32> to vector<8x128xf32>
    %226 = math.tanh %225 : vector<8x128xf32>
    %227 = arith.mulf %223, %195 : vector<8x128xf32>
    %228 = arith.mulf %222, %226 : vector<8x128xf32>
    %229 = arith.addf %227, %228 : vector<8x128xf32>
    %230 = math.tanh %229 : vector<8x128xf32>
    %231 = arith.mulf %224, %230 : vector<8x128xf32>
    %232 = vector.broadcast %c6_i32 : i32 to vector<8x1xi32>
    %233 = arith.cmpi slt, %232, %1 : vector<8x1xi32>
    %234 = arith.extui %233 : vector<8x1xi1> to vector<8x1xi32>
    %235 = arith.sitofp %234 : vector<8x1xi32> to vector<8x1xf32>
    %236 = vector.broadcast %235 : vector<8x1xf32> to vector<8x128xf32>
    %237 = arith.mulf %231, %236 : vector<8x128xf32>
    %c0_58 = arith.constant 0 : index
    %238 = arith.index_cast %c6_i32 : i32 to index
    %c0_59 = arith.constant 0 : index
    %239 = vector.load %arg4[%c0_58, %238, %c0_59] : memref<8x8x128xf32, #tpu.memory_space<vmem>>, vector<8x1x128xf32>
    %240 = vector.shape_cast %239 : vector<8x1x128xf32> to vector<8x128xf32>
    %241 = vector.shape_cast %237 : vector<8x128xf32> to vector<8x1x128xf32>
    tpu.vector_store %arg4[%c0_58, %238, %c0_59], %241 {strides = array<i32>} : memref<8x8x128xf32, #tpu.memory_space<vmem>>, vector<8x1x128xf32>,
    %c7_i32 = arith.constant 7 : i32
    %c0_60 = arith.constant 0 : index
    %242 = arith.index_cast %c7_i32 : i32 to index
    %c0_61 = arith.constant 0 : index
    %243 = vector.load %arg1[%c0_60, %242, %c0_61] : memref<8x8x512xbf16, #tpu.memory_space<vmem>>, vector<8x1x512xbf16>
    %244 = vector.shape_cast %243 : vector<8x1x512xbf16> to vector<8x512xbf16>
    %245 = arith.extf %244 : vector<8x512xbf16> to vector<8x512xf32>
    %cst_62 = arith.constant dense<0.000000e+00> : vector<8x512xf32>
    %246 = tpu.matmul %231, %0, %cst_62 {dimension_numbers = #tpu.dot_dimension_numbers<[1], [0], [0], [1], [0, 0, 1, 1], [], []>} : vector<8x128xf32>, vector<128x512xf32>, vector<8x512xf32> -> vector<8x512xf32>
    %247 = arith.addf %245, %246 : vector<8x512xf32>
    %248 = vector.extract_strided_slice %247 {offsets = [0, 0], sizes = [8, 384], strides = [1, 1]} : vector<8x512xf32> to vector<8x384xf32>
    %cst_63 = arith.constant 5.000000e-01 : f32
    %249 = vector.broadcast %cst_63 : f32 to vector<8x384xf32>
    %250 = arith.mulf %249, %248 : vector<8x384xf32>
    %251 = math.tanh %250 : vector<8x384xf32>
    %cst_64 = arith.constant 5.000000e-01 : f32
    %252 = vector.broadcast %cst_64 : f32 to vector<8x384xf32>
    %253 = arith.mulf %252, %251 : vector<8x384xf32>
    %cst_65 = arith.constant 5.000000e-01 : f32
    %254 = vector.broadcast %cst_65 : f32 to vector<8x384xf32>
    %255 = arith.addf %253, %254 : vector<8x384xf32>
    %256 = vector.extract_strided_slice %255 {offsets = [0, 0], sizes = [8, 128], strides = [1, 1]} : vector<8x384xf32> to vector<8x128xf32>
    %257 = vector.extract_strided_slice %255 {offsets = [0, 128], sizes = [8, 128], strides = [1, 1]} : vector<8x384xf32> to vector<8x128xf32>
    %258 = vector.extract_strided_slice %255 {offsets = [0, 256], sizes = [8, 128], strides = [1, 1]} : vector<8x384xf32> to vector<8x128xf32>
    %259 = vector.extract_strided_slice %247 {offsets = [0, 384], sizes = [8, 128], strides = [1, 1]} : vector<8x512xf32> to vector<8x128xf32>
    %260 = math.tanh %259 : vector<8x128xf32>
    %261 = arith.mulf %257, %229 : vector<8x128xf32>
    %262 = arith.mulf %256, %260 : vector<8x128xf32>
    %263 = arith.addf %261, %262 : vector<8x128xf32>
    %264 = math.tanh %263 : vector<8x128xf32>
    %265 = arith.mulf %258, %264 : vector<8x128xf32>
    %266 = vector.broadcast %c7_i32 : i32 to vector<8x1xi32>
    %267 = arith.cmpi slt, %266, %1 : vector<8x1xi32>
    %268 = arith.extui %267 : vector<8x1xi1> to vector<8x1xi32>
    %269 = arith.sitofp %268 : vector<8x1xi32> to vector<8x1xf32>
    %270 = vector.broadcast %269 : vector<8x1xf32> to vector<8x128xf32>
    %271 = arith.mulf %265, %270 : vector<8x128xf32>
    %c0_66 = arith.constant 0 : index
    %272 = arith.index_cast %c7_i32 : i32 to index
    %c0_67 = arith.constant 0 : index
    %273 = vector.load %arg4[%c0_66, %272, %c0_67] : memref<8x8x128xf32, #tpu.memory_space<vmem>>, vector<8x1x128xf32>
    %274 = vector.shape_cast %273 : vector<8x1x128xf32> to vector<8x128xf32>
    %275 = vector.shape_cast %271 : vector<8x128xf32> to vector<8x1x128xf32>
    tpu.vector_store %arg4[%c0_66, %272, %c0_67], %275 {strides = array<i32>} : memref<8x8x128xf32, #tpu.memory_space<vmem>>, vector<8x1x128xf32>,
    %c8_i32 = arith.constant 8 : i32
    return
  }
  func.func @transform_0(%arg0: i32) -> (i32, i32, i32) {
    %c0_i32 = arith.constant 0 : i32
    %c0_i32_0 = arith.constant 0 : i32
    %c0_i32_1 = arith.constant 0 : i32
    return %arg0, %c0_i32, %c0_i32_0 : i32, i32, i32
  }
  func.func @transform_1(%arg0: i32) -> (i32, i32) {
    %c0_i32 = arith.constant 0 : i32
    %c0_i32_0 = arith.constant 0 : i32
    return %arg0, %c0_i32 : i32, i32
  }
  func.func @transform_2(%arg0: i32) -> (i32, i32) {
    %c0_i32 = arith.constant 0 : i32
    %c0_i32_0 = arith.constant 0 : i32
    %c0_i32_1 = arith.constant 0 : i32
    return %c0_i32, %c0_i32_0 : i32, i32
  }
  func.func @transform_3(%arg0: i32) -> (i32, i32, i32) {
    %c0_i32 = arith.constant 0 : i32
    %c0_i32_0 = arith.constant 0 : i32
    %c0_i32_1 = arith.constant 0 : i32
    return %arg0, %c0_i32, %c0_i32_0 : i32, i32, i32
  }
}

</mosaic_0001>

<bundles_post_ra>
// kernel: temporal_dpsom_forward.2
= control target key start
LH: loop header
LB: loop body
LE: loop exit
PB: predicated region body
PF: predicated region fallthrough
CT: control target
= control target key end

     0   :  { %vm69_vm0 = vcmask 130048   ;;  %vm109_vm1 = vcmask 261120   ;;  %vm203_vm2 = vcmask 64512   ;;  %s908_s2 = inlined_call_operand.vmem [shape: f32[16,32], index: 2, kind: input, shape index: {}]   ;;  %s909_s0 = inlined_call_operand.vmem [shape: f32[16,16], index: 0, kind: input, shape index: {}]   ;;  %s910_s4 = inlined_call_operand.vmem [shape: f32[32,32], index: 4, kind: input, shape index: {}]   ;;  %s911_s3 = inlined_call_operand.vmem [shape: f32[1,32], index: 3, kind: input, shape index: {}]   ;;  %s912_s5 = inlined_call_operand.vmem [shape: f32[1,32], index: 5, kind: input, shape index: {}]   ;;  %s913_s6 = inlined_call_operand.vmem [shape: f32[32,16], index: 6, kind: input, shape index: {}]   ;;  %s914_s7 = inlined_call_operand.vmem [shape: f32[1,16], index: 7, kind: input, shape index: {}]   ;;  %s915_s18 = inlined_call_operand.vmem [shape: f32[16,640], index: 18, kind: output, shape index: {0}]   ;;  %s916_s15 = inlined_call_operand.vmem [shape: f32[1,16], index: 15, kind: input, shape index: {}]   ;;  %s917_s8 = inlined_call_operand.vmem [shape: f32[8,32], index: 8, kind: input, shape index: {}]   ;;  %s918_s14 = inlined_call_operand.vmem [shape: f32[8,16], index: 14, kind: input, shape index: {}]   ;;  %s919_s16 = inlined_call_operand.vmem [shape: f32[8,512], index: 16, kind: input, shape index: {}]   ;;  %s920_s1 = inlined_call_operand.vmem [shape: f32[16,8], index: 1, kind: input, shape index: {}]   ;;  %s921_s9 = inlined_call_operand.vmem [shape: f32[1,32], index: 9, kind: input, shape index: {}]   ;;  %s922_s11 = inlined_call_operand.vmem [shape: f32[1,32], index: 11, kind: input, shape index: {}]   ;;  %s923_s10 = inlined_call_operand.vmem [shape: f32[32,32], index: 10, kind: input, shape index: {}]   ;;  %s924_s12 = inlined_call_operand.vmem [shape: f32[32,16], index: 12, kind: input, shape index: {}]   ;;  %s925_s13 = inlined_call_operand.vmem [shape: f32[1,16], index: 13, kind: input, shape index: {}]   ;;  %s926_s17 = inlined_call_operand.vmem [shape: f32[1,512], index: 17, kind: input, shape index: {}]   ;;  %s927_s19 = inlined_call_operand.vmem [shape: bf16[16,512], index: 19, kind: output, shape index: {1}]  }
   0x1   :  { %931 = sst [smem:[#allocation2_spill]] %s908_s2  ;;  %v144_v8 = vld [vmem:[%s913_s6 + $0x18] sm:$0xff]  ;;  %v143_v16 = vld [vmem:[%s913_s6 + $0x10] sm:$0xff]  ;;  %v142_v17 = vld [vmem:[%s913_s6 + $0x8] sm:$0xff] }
   0x2   :  { %932 = sst [smem:[#allocation3_spill]] %s909_s0  ;;  %v141_v18 = vld [vmem:[%s913_s6] sm:$0xff]  ;;  %s595_s0 = smov 120   ;;  %v430_v42 = vld [vmem:[%s919_s16 + $0x18] sm:$0xff]  ;;  %v179_v50 = vld [vmem:[%s920_s1 + $0x8] sm:$0xff] }
   0x3   :  { %933 = sst [smem:[#allocation4_spill]] %s910_s4  ;;  %v577_v19 = vld [vmem:[%s912_s5] ss:$0 sm:$0xff]  ;;  %v238_v59 = vld [vmem:[%s923_s10 + $0x18] sm:$0xff]  ;;  %v237_v60 = vld [vmem:[%s923_s10 + $0x10] sm:$0xff] }
   0x4   :  { %934 = sst [smem:[#allocation5_spill]] %s911_s3  ;;  %v578_v26 = vld [vmem:[%s914_s7] ss:$0 sm:$0xff]  ;;  %v236_v61 = vld [vmem:[%s923_s10 + $0x8] sm:$0xff] }
   0x5   :  { %s935_s20 = sld [smem:[#allocation2_spill]]  ;;  %v198_v39 = vld [vmem:[%s917_s8] sm:$0xff] }
   0x6   :  { %s936_s23 = sld [smem:[#allocation3_spill]]  ;;  %v311_v40 = vld [vmem:[%s918_s14] sm:$0xff]  ;;  %225 = vmatpush.msra.mxu3 %v198_v39 }
   0x7   :  { %s937_s3 = sld [smem:[#allocation4_spill]]  ;;  %v427_v41 = vld [vmem:[%s919_s16] sm:$0xff] }
   0x8   :  { %s938_s24 = sld [smem:[#allocation5_spill]]  ;;  %v178_v43 = vld [vmem:[%s920_s1] sm:$0xff]  ;;  %261 = vmatpush.msrb.mxu3 %v238_v59 }
   0x9   :  { %v235_v62 = vld [vmem:[%s923_s10] sm:$0xff] }
   0xa   :  { %262 = vmatpush.msrb.mxu3 %v237_v60  ;;  %v579_v63 = vld [vmem:[%s916_s15] ss:$0 sm:$0xff] }
   0xb   :  { %v64_v0 = vld [vmem:[%s935_s20 + $0x8] sm:$0xff]  ;;  %v63_v1 = vld [vmem:[%s935_s20] sm:$0xff] }
   0xc   :  { %90 = vmatpush.msra.mxu0 %v64_v0  ;;  %v61_v2 = vld [vmem:[%s936_s23] sm:$0xff]  ;;  %v62_v4 = vld [vmem:[%s936_s23 + $0x8] sm:$0xff]  ;;  %263 = vmatpush.msrb.mxu3 %v236_v61 }
   0xd   :  { %v104_v3 = vld [vmem:[%s937_s3 + $0x18] sm:$0xff]  ;;  %v103_v5 = vld [vmem:[%s937_s3 + $0x10] sm:$0xff]  ;;  %v102_v6 = vld [vmem:[%s937_s3 + $0x8] sm:$0xff] }
   0xe   :  { %128 = vmatpush.msra.mxu1 %v104_v3  ;;  %571 = vmatpush.msra.mxu2 %v104_v3  ;;  %v101_v7 = vld [vmem:[%s937_s3] sm:$0xff] }
   0xf   :  { %91 = vmatpush.msra.mxu0 %v63_v1  ;;  %v576_v9 = vld [vmem:[%s938_s24] ss:$0 sm:$0xff]  ;;  %264 = vmatpush.msrb.mxu3 %v235_v62 }
  0x10   :  { %549 = vmatmul.msk.f32.vlgmr.msra.gmra.mxu0 %vm69_vm0, %v61_v2  ;;  %129 = vmatpush.msra.mxu1 %v103_v5  ;;  %v428_v2 = vld [vmem:[%s919_s16 + $0x8] sm:$0xff]  ;;  %v581_v59 = vld [vmem:[%s922_s11] ss:$0 sm:$0xff] }
  0x11   :  { %572 = vmatpush.msra.mxu2 %v103_v5 }
  0x12   :  { %130 = vmatpush.msra.mxu1 %v102_v6 }
  0x13   :  { %573 = vmatpush.msra.mxu2 %v102_v6  ;;  %v580_v6 = vld [vmem:[%s921_s9] ss:$0 sm:$0xff] }
  0x14   :  { %131 = vmatpush.msra.mxu1 %v101_v7 }
  0x15   :  { %574 = vmatpush.msra.mxu2 %v101_v7 }
  0x16   :  { %327 = vmatpush.msrb.mxu1 %v311_v40 }
  0x17   :  { %167 = vmatpush.msrb.mxu2 %v144_v8 }
  0x18   :  { %550 = vmatmul.msk.f32.gmra.mxu0 %vm69_vm0, %v62_v4 }
  0x19   :  { %168 = vmatpush.msrb.mxu2 %v143_v16 }
  0x1b   :  { %169 = vmatpush.msrb.mxu2 %v142_v17 }
  0x1d   :  { %170 = vmatpush.msrb.mxu2 %v141_v18 }
  0x8d   :  { %v93_v10 = vpop.f32.mrf.mxu0 }
  0x8e   :  { %v94_v11 = vadd.f32 %v576_v9, %v93_v10 }
  0x90   :  { %v99_v12 = vmax.f32 %v94_v11, 0.0 }
  0x92   :  { %551 = vmatmul.msk.f32.vlgmr.msra.gmra.mxu1 %vm109_vm1, %v99_v12 }
  0x93   :  { %525 = vmatpush.msra.mxu1 %v430_v42 }
  0x95   :  { %v96_v13 = vpop.f32.mrf.mxu0 }
  0x96   :  { %v97_v14 = vadd.f32 %v576_v9, %v96_v13 }
  0x98   :  { %v100_v15 = vmax.f32 %v97_v14, 0.0 }
  0x9a   :  { %552 = vmatmul.msk.f32.vlgmr.msra.gmra.mxu2 %vm109_vm1, %v100_v15 }
  0x9b   :  { %456 = vmatpush.msra.mxu2 %v427_v41 }
 0x10f   :  { %v133_v20 = vpop.f32.mrf.mxu1 }
 0x110   :  { %v134_v21 = vadd.f32 %v577_v19, %v133_v20 }
 0x112   :  { %v139_v22 = vmax.f32 %v134_v21, 0.0 }
 0x114   :  { %553 = vmatmul.msk.f32.vlgmr.msrb.gmra.mxu2 %vm109_vm1, %v139_v22 }
 0x11d   :  { %v136_v23 = vpop.f32.mrf.mxu2 }
 0x11e   :  { %v137_v24 = vadd.f32 %v577_v19, %v136_v23 }
 0x120   :  { %v140_v25 = vmax.f32 %v137_v24, 0.0 }
 0x122   :  { %554 = vmatmul.msk.f32.gmra.mxu2 %vm109_vm1, %v140_v25 }
 0x197   :  { %v172_v27 = vpop.f32.mrf.mxu2 }
 0x198   :  { %v173_v28 = vadd.f32 %v578_v26, %v172_v27  ;;  %v276_v27 = vld [vmem:[%s924_s12 + $0x10] sm:$0xff] }
 0x19a   :  { %v399_v29 = vsel %vm203_vm2, %v173_v28, 0.0  ;;  %v180_v30 = vmul.f32 0.5, %v173_v28 }
 0x19b   :  { %417 = vst [vmem:[%s915_s18] sm:$0xff] %v399_v29 }
 0x19c   :  { %v182_v31 = vmul.f32 1.442695, %v180_v30 }
 0x19e   :  { %583 = vpow2.f32 %v182_v31 }
 0x1a4   :  { %v584_v32 = vpop.eup %583 }
 0x1a5   :  { %v175_v33 = vpop.f32.mrf.mxu2  ;;  %188 = vrot.lane.b32.xlu0 %v584_v32, %s595_s0 }
 0x1a6   :  { %v176_v34 = vadd.f32 %v578_v26, %v175_v33  ;;  %v277_v26 = vld [vmem:[%s924_s12 + $0x18] sm:$0xff] }
 0x1a7   :  { %300 = vmatpush.msrb.mxu0 %v277_v26 }
 0x1a8   :  { %v181_v35 = vmul.f32 0.5, %v176_v34  ;;  %v400_v36 = vsel %vm203_vm2, %v176_v34, 0.0 }
 0x1a9   :  { %422 = vst [vmem:[%s915_s18 + $0x28] sm:$0xff] %v400_v36  ;;  %301 = vmatpush.msrb.mxu0 %v276_v27 }
 0x1aa   :  { %v184_v37 = vmul.f32 1.442695, %v181_v35 }
 0x1ac   :  { %585 = vpow2.f32 %v184_v37 }
 0x1b2   :  { %v586_v38 = vpop.eup %585 }
 0x1b3   :  { %190 = vrot.lane.b32.xlu0 %v586_v38, %s595_s0 }
 0x1bb   :  { %403 = vrot.lane.b32.xlu0 %v173_v28, %s595_s0 }
 0x217   :  { %v189_v44 = vpop.permute.xlu0 %188 }
 0x218   :  { %v194_v45 = vmul.f32 %v189_v44, %v178_v43 }
 0x21a   :  { %v773_v46 = vadd.f32 %v194_v45, %v173_v28 }
 0x21c   :  { %v411_v47 = vsel %vm203_vm2, %v773_v46, 0.0  ;;  %555 = vmatmul.msk.f32.vlgmr.msra.gmra.mxu3 %vm203_vm2, %v773_v46  ;;  %561 = vmatmul.msk.f32.vlgmr.msrb.gmra.mxu1 %vm203_vm2, %v773_v46  ;;  %v335_v48 = vmul.f32 %v773_v46, %v773_v46 }
 0x21d   :  { %419 = vst [vmem:[%s915_s18 + $0x10] sm:$0xff] %v411_v47  ;;  %563 = vmatmul.msk.f32.vlgmr.msra.gmra.mxu2 %vm203_vm2, %v773_v46  ;;  %479 = vmatpush.msra.mxu3 %v428_v2  ;;  %v431_v2 = vld [vmem:[%s926_s17] sm:$0xf] }
 0x21e   :  { %v337_v49 = vsel %vm203_vm2, %v335_v48, 0.0 }
 0x21f   :  { %338 = vadd.xlane.f32.xlu1 %v337_v49 }
 0x225   :  { %v191_v51 = vpop.permute.xlu0 %190 }
 0x226   :  { %v195_v52 = vmul.f32 %v191_v51, %v179_v50 }
 0x228   :  { %v792_v53 = vadd.f32 %v195_v52, %v176_v34 }
 0x22a   :  { %v412_v54 = vsel %vm203_vm2, %v792_v53, 0.0  ;;  %556 = vmatmul.msk.f32.gmra.mxu3 %vm203_vm2, %v792_v53  ;;  %562 = vmatmul.msk.f32.gmra.mxu1 %vm203_vm2, %v792_v53  ;;  %v336_v55 = vmul.f32 %v792_v53, %v792_v53 }
 0x22b   :  { %424 = vst [vmem:[%s915_s18 + $0x38] sm:$0xff] %v412_v54  ;;  %564 = vmatmul.msk.f32.gmra.mxu2 %vm203_vm2, %v792_v53 }
 0x22c   :  { %v340_v56 = vsel %vm203_vm2, %v336_v55, 0.0 }
 0x22d   :  { %341 = vadd.xlane.f32.xlu1 %v340_v56  ;;  %v404_v57 = vpop.permute.xlu0 %403  ;;  %v275_v56 = vld [vmem:[%s924_s12 + $0x8] sm:$0xff] }
 0x22e   :  { %v409_v58 = vsel %vm203_vm2, %v404_v57, 0.0  ;;  %302 = vmatpush.msrb.mxu0 %v275_v56  ;;  %v274_v57 = vld [vmem:[%s924_s12] sm:$0xff] }
 0x22f   :  { %418 = vst [vmem:[%s915_s18 + $0x8] sm:$0xff] %v409_v58  ;;  %v429_v58 = vld [vmem:[%s919_s16 + $0x10] sm:$0xff] }
 0x230   :  { %303 = vmatpush.msrb.mxu0 %v274_v57 }
 0x232   :  { %569 = vmatmul.msk.f32.vlgmr.msra.gmra.mxu1 %vm203_vm2, %v773_v46  ;;  %502 = vmatpush.msra.mxu0 %v429_v58 }
 0x23a   :  { %570 = vmatmul.msk.f32.gmra.mxu1 %vm203_vm2, %v792_v53 }
 0x246   :  { %405 = vrot.lane.b32.xlu1 %v176_v34, %s595_s0 }
 0x292   :  { %v339_v0 = vpop.xlane.xlu1 %338 }
 0x293   :  { %v347_v3 = vadd.f32 %v579_v63, %v339_v0 }
 0x299   :  { %v329_v1 = vpop.f32.mrf.mxu1 }
 0x29a   :  { %v349_v4 = vmul.f32 2.0, %v329_v1 }
 0x29c   :  { %v351_v5 = vsub.f32 %v347_v3, %v349_v4  ;;  %v433_v4 = vperm.slane %v431_v2, 0 }
 0x29e   :  { %v353_v7 = vmax.f32 %v351_v5, 0.0  ;;  %v434_v5 = vperm.slane %v431_v2, 1 }
 0x29f   :  { %v227_v8 = vpop.f32.mrf.mxu3 }
 0x2a0   :  { %v355_v9 = vmul.f32 0.1, %v353_v7  ;;  %v228_v10 = vadd.f32 %v580_v6, %v227_v8  ;;  %v342_v13 = vpop.xlane.xlu1 %341  ;;  %v458_v7 = vpop.f32.mrf.mxu2 }
 0x2a1   :  { %v348_v15 = vadd.f32 %v579_v63, %v342_v13 }
 0x2a2   :  { %v357_v11 = vadd.f32 1.0, %v355_v9  ;;  %v233_v12 = vmax.f32 %v228_v10, 0.0  ;;  %v459_v10 = vadd.f32 %v458_v7, %v433_v4 }
 0x2a4   :  { %587 = vrsqrt.f32 %v357_v11  ;;  %557 = vmatmul.msk.f32.vlgmr.msrb.gmra.mxu3 %vm109_vm1, %v233_v12  ;;  %vm365_vm4 = vweird.f32 %v357_v11 }
 0x2a7   :  { %v332_v14 = vpop.f32.mrf.mxu1 }
 0x2a8   :  { %v350_v16 = vmul.f32 2.0, %v332_v14 }
 0x2aa   :  { %v588_v17 = vpop.eup %587  ;;  %v352_v18 = vsub.f32 %v348_v15, %v350_v16 }
 0x2ab   :  { %v360_v19 = vmul.f32 %v588_v17, %v357_v11  ;;  %vm366_vm3 = vweird.f32 %v588_v17 }
 0x2ac   :  { %v354_v20 = vmax.f32 %v352_v18, 0.0  ;;  %vm367_vm5 = vmor %vm365_vm4, %vm366_vm3 }
 0x2ad   :  { %v230_v21 = vpop.f32.mrf.mxu3  ;;  %v361_v22 = vmul.f32 %v588_v17, %v360_v19 }
 0x2ae   :  { %v356_v23 = vmul.f32 0.1, %v354_v20  ;;  %v231_v24 = vadd.f32 %v580_v6, %v230_v21  ;;  %v461_v15 = vpop.f32.mrf.mxu2 }
 0x2af   :  { %v362_v25 = vmul.f32 0.5, %v361_v22 }
 0x2b0   :  { %v358_v28 = vadd.f32 1.0, %v356_v23  ;;  %v234_v29 = vmax.f32 %v231_v24, 0.0 }
 0x2b1   :  { %v363_v30 = vsub.f32 1.5, %v362_v25 }
 0x2b2   :  { %589 = vrsqrt.f32 %v358_v28  ;;  %558 = vmatmul.msk.f32.gmra.mxu3 %vm109_vm1, %v234_v29  ;;  %vm375_vm7 = vweird.f32 %v358_v28  ;;  %v436_v29 = vperm.slane %v431_v2, 3 }
 0x2b3   :  { %v364_v31 = vmul.f32 %v588_v17, %v363_v30  ;;  %v435_v30 = vperm.slane %v431_v2, 2 }
 0x2b5   :  { %v368_v32 = vsel %vm367_vm5, %v588_v17, %v364_v31  ;;  %v462_v17 = vadd.f32 %v461_v15, %v433_v4 }
 0x2b6   :  { %v379_v33 = vmul.f32 %v368_v32, %v368_v32 }
 0x2b8   :  { %v590_v34 = vpop.eup %589  ;;  %v406_v35 = vpop.permute.xlu1 %405  ;;  %v381_v36 = vmul.f32 %v379_v33, %v379_v33 }
 0x2b9   :  { %v370_v37 = vmul.f32 %v590_v34, %v358_v28  ;;  %v410_v38 = vsel %vm203_vm2, %v406_v35, 0.0  ;;  %vm376_vm6 = vweird.f32 %v590_v34  ;;  %v527_v28 = vpop.f32.mrf.mxu1 }
 0x2ba   :  { %423 = vst [vmem:[%s915_s18 + $0x30] sm:$0xff] %v410_v38  ;;  %565 = vmatmul.msk.f32.vlgmr.msra.gmra.mxu3 %vm203_vm2, %v773_v46  ;;  %v383_v39 = vmul.f32 %v381_v36, %v381_v36  ;;  %vm377_vm8 = vmor %vm375_vm7, %vm376_vm6 }
 0x2bb   :  { %v371_v40 = vmul.f32 %v590_v34, %v370_v37 }
 0x2bc   :  { %v385_v41 = vmul.f32 %v383_v39, %v379_v33 }
 0x2bd   :  { %v372_v42 = vmul.f32 0.5, %v371_v40 }
 0x2be   :  { %v387_v43 = vmul.f32 %v385_v41, %v368_v32  ;;  %v528_v32 = vadd.f32 %v527_v28, %v436_v29 }
 0x2bf   :  { %v373_v44 = vsub.f32 1.5, %v372_v42 }
 0x2c0   :  { %v389_v45 = vsel %vm69_vm0, %v387_v43, 0.0 }
 0x2c1   :  { %390 = vadd.xlane.f32.xlu2 %v389_v45  ;;  %v374_v47 = vmul.f32 %v590_v34, %v373_v44  ;;  %v530_v35 = vpop.f32.mrf.mxu1 }
 0x2c2   :  { %566 = vmatmul.msk.f32.gmra.mxu3 %vm203_vm2, %v792_v53  ;;  %v531_v37 = vadd.f32 %v530_v35, %v436_v29 }
 0x2c3   :  { %v378_v48 = vsel %vm377_vm8, %v590_v34, %v374_v47 }
 0x2c4   :  { %v380_v49 = vmul.f32 %v378_v48, %v378_v48 }
 0x2c6   :  { %v382_v50 = vmul.f32 %v380_v49, %v380_v49 }
 0x2c8   :  { %v384_v51 = vmul.f32 %v382_v50, %v382_v50 }
 0x2ca   :  { %v386_v52 = vmul.f32 %v384_v51, %v380_v49 }
 0x2cc   :  { %v388_v54 = vmul.f32 %v386_v52, %v378_v48 }
 0x2ce   :  { %v392_v55 = vsel %vm69_vm0, %v388_v54, 0.0 }
 0x2cf   :  { %393 = vadd.xlane.f32.xlu2 %v392_v55 }
 0x327   :  { %v266_v60 = vpop.f32.mrf.mxu3 }
 0x328   :  { %v267_v61 = vadd.f32 %v581_v59, %v266_v60 }
 0x32a   :  { %v272_v62 = vmax.f32 %v267_v61, 0.0 }
 0x32c   :  { %559 = vmatmul.msk.f32.vlgmr.msrb.gmra.mxu0 %vm109_vm1, %v272_v62 }
 0x334   :  { %v391_v63 = vpop.xlane.xlu2 %390 }
 0x335   :  { %591 = vrcp.f32 %v391_v63  ;;  %v269_v0 = vpop.f32.mrf.mxu3 }
 0x336   :  { %v270_v1 = vadd.f32 %v581_v59, %v269_v0 }
 0x338   :  { %v273_v3 = vmax.f32 %v270_v1, 0.0 }
 0x33a   :  { %560 = vmatmul.msk.f32.gmra.mxu0 %vm109_vm1, %v273_v3 }
 0x33b   :  { %v592_v6 = vpop.eup %591 }
 0x33c   :  { %v397_v8 = vmul.f32 %v592_v6, %v387_v43 }
 0x33d   :  { %v481_v9 = vpop.f32.mrf.mxu3 }
 0x33e   :  { %v415_v11 = vsel %vm69_vm0, %v397_v8, 0.0  ;;  %v482_v12 = vadd.f32 %v481_v9, %v434_v5 }
 0x33f   :  { %421 = vst [vmem:[%s915_s18 + $0x20] sm:$0xff] %v415_v11 }
 0x340   :  { %v533_v13 = vpack.c.bf16 %v482_v12, %v459_v10 }
 0x342   :  { %537 = vst [vmem:[%s927_s19] sm:$0xff] %v533_v13  ;;  %v394_v14 = vpop.xlane.xlu2 %393  ;;  %567 = vmatmul.msk.f32.vlgmr.msra.gmra.mxu0 %vm203_vm2, %v773_v46  ;;  %v582_v46 = vld [vmem:[%s925_s13] ss:$0 sm:$0xff] }
 0x343   :  { %593 = vrcp.f32 %v394_v14 }
 0x345   :  { %v484_v16 = vpop.f32.mrf.mxu3 }
 0x346   :  { %v485_v18 = vadd.f32 %v484_v16, %v434_v5 }
 0x348   :  { %v535_v19 = vpack.c.bf16 %v485_v18, %v462_v17 }
 0x349   :  { %v594_v20 = vpop.eup %593 }
 0x34a   :  { %v398_v21 = vmul.f32 %v594_v20, %v388_v54  ;;  %539 = vst [vmem:[%s927_s19 + $0x10] sm:$0xff] %v535_v19  ;;  %568 = vmatmul.msk.f32.gmra.mxu0 %vm203_vm2, %v792_v53 }
 0x34c   :  { %v416_v22 = vsel %vm69_vm0, %v398_v21, 0.0 }
 0x34d   :  { %426 = vst [vmem:[%s915_s18 + $0x48] sm:$0xff] %v416_v22 }
 0x3a9   :  { %v305_v23 = vpop.f32.mrf.mxu0 }
 0x3aa   :  { %v306_v24 = vadd.f32 %v582_v46, %v305_v23 }
 0x3ac   :  { %v413_v25 = vsel %vm69_vm0, %v306_v24, 0.0 }
 0x3ad   :  { %420 = vst [vmem:[%s915_s18 + $0x18] sm:$0xff] %v413_v25 }
 0x3b7   :  { %v308_v26 = vpop.f32.mrf.mxu0 }
 0x3b8   :  { %v309_v53 = vadd.f32 %v582_v46, %v308_v26 }
 0x3ba   :  { %v414_v27 = vsel %vm69_vm0, %v309_v53, 0.0 }
 0x3bb   :  { %425 = vst [vmem:[%s915_s18 + $0x40] sm:$0xff] %v414_v27 }
 0x3bf   :  { %v504_v31 = vpop.f32.mrf.mxu0 }
 0x3c0   :  { %v505_v33 = vadd.f32 %v504_v31, %v435_v30 }
 0x3c2   :  { %v534_v34 = vpack.c.bf16 %v528_v32, %v505_v33 }
 0x3c4   :  { %538 = vst [vmem:[%s927_s19 + $0x8] sm:$0xff] %v534_v34 }
 0x3c7   :  { %v507_v36 = vpop.f32.mrf.mxu0 }
 0x3c8   :  { %v508_v38 = vadd.f32 %v507_v36, %v435_v30 }
 0x3ca   :  { %v536_v39 = vpack.c.bf16 %v531_v37, %v508_v38 }
 0x3cc   :  { %540 = vst [vmem:[%s927_s19 + $0x18] sm:$0xff] %v536_v39 }

// kernel: temporal_dpsom_forward.3
= control target key start
LH: loop header
LB: loop body
LE: loop exit
PB: predicated region body
PF: predicated region fallthrough
CT: control target
= control target key end

     0   :  { %v8322_v62 = vmov 0.0   ;;  %vm542_vm2 = vcmask 1041409   ;;  %vm545_vm3 = vcmask 1042434   ;;  %vm548_vm4 = vcmask 1043459   ;;  %s8316_s2 = inlined_call_operand.vmem [shape: f32[128,512], index: 2, kind: input, shape index: {}]   ;;  %s8317_s1 = inlined_call_operand.vmem [shape: s32[8,1], index: 1, kind: input, shape index: {}]   ;;  %s8318_s0 = inlined_call_operand.vmem [shape: bf16[8,8,512], index: 0, kind: input, shape index: {}]   ;;  %s8319_s3 = inlined_call_operand.vmem [shape: f32[8,8,128], index: 3, kind: output, shape index: {}]  }
   0x1   :  { %v4559_v0 = vld [vmem:[%s8316_s2 + $0x1e0] sm:$0xff]  ;;  %v4564_v1 = vld [vmem:[%s8316_s2 + $0x1e8] sm:$0xff]  ;;  %v4569_v2 = vld [vmem:[%s8316_s2 + $0x1f8] sm:$0xff]  ;;  %vm551_vm5 = vcmask 1044484   ;;  %vm554_vm6 = vcmask 1045509   ;;  %vm557_vm7 = vcmask 1046534  }
   0x2   :  { %127 = vmatpush.msra.mxu0 %v4559_v0  ;;  %147 = vmatpush.msra.mxu1 %v4564_v1  ;;  %v4576_v3 = vld [vmem:[%s8316_s2 + $0x1c0] sm:$0xff]  ;;  %v4581_v4 = vld [vmem:[%s8316_s2 + $0x1c8] sm:$0xff]  ;;  %v4586_v5 = vld [vmem:[%s8316_s2 + $0x1d8] sm:$0xff]  ;;  %vm560_vm8 = vcmask 1047559  }
   0x3   :  { %187 = vmatpush.msra.mxu3 %v4569_v2  ;;  %v4592_v6 = vld [vmem:[%s8316_s2 + $0x1a0] sm:$0xff]  ;;  %v4597_v7 = vld [vmem:[%s8316_s2 + $0x1a8] sm:$0xff]  ;;  %v4604_v8 = vld [vmem:[%s8316_s2 + $0x1b8] sm:$0xff] }
   0x4   :  { %128 = vmatpush.msra.mxu0 %v4576_v3  ;;  %148 = vmatpush.msra.mxu1 %v4581_v4  ;;  %v4609_v9 = vld [vmem:[%s8316_s2 + $0x1f0] sm:$0xff]  ;;  %v4616_v10 = vld [vmem:[%s8316_s2 + $0x180] sm:$0xff]  ;;  %v4621_v11 = vld [vmem:[%s8316_s2 + $0x188] sm:$0xff] }
   0x5   :  { %188 = vmatpush.msra.mxu3 %v4586_v5  ;;  %167 = vmatpush.msra.mxu2 %v4609_v9  ;;  %v4626_v12 = vld [vmem:[%s8316_s2 + $0x1d0] sm:$0xff]  ;;  %v4633_v13 = vld [vmem:[%s8316_s2 + $0x198] sm:$0xff]  ;;  %v4645_v15 = vld [vmem:[%s8316_s2 + $0x160] sm:$0xff] }
   0x6   :  { %129 = vmatpush.msra.mxu0 %v4592_v6  ;;  %149 = vmatpush.msra.mxu1 %v4597_v7  ;;  %v4638_v14 = vld [vmem:[%s8316_s2 + $0x1b0] sm:$0xff]  ;;  %v4650_v16 = vld [vmem:[%s8316_s2 + $0x168] sm:$0xff]  ;;  %v4657_v17 = vld [vmem:[%s8316_s2 + $0x178] sm:$0xff] }
   0x7   :  { %189 = vmatpush.msra.mxu3 %v4604_v8  ;;  %168 = vmatpush.msra.mxu2 %v4626_v12  ;;  %v4662_v18 = vld [vmem:[%s8316_s2 + $0x190] sm:$0xff]  ;;  %v4669_v19 = vld [vmem:[%s8316_s2 + $0x140] sm:$0xff]  ;;  %v4674_v20 = vld [vmem:[%s8316_s2 + $0x148] sm:$0xff] }
   0x8   :  { %130 = vmatpush.msra.mxu0 %v4616_v10  ;;  %150 = vmatpush.msra.mxu1 %v4621_v11  ;;  %v4681_v21 = vld [vmem:[%s8316_s2 + $0x158] sm:$0xff]  ;;  %v4686_v22 = vld [vmem:[%s8316_s2 + $0x170] sm:$0xff]  ;;  %v4693_v23 = vld [vmem:[%s8316_s2 + $0x120] sm:$0xff] }
   0x9   :  { %190 = vmatpush.msra.mxu3 %v4633_v13  ;;  %169 = vmatpush.msra.mxu2 %v4638_v14  ;;  %v4698_v24 = vld [vmem:[%s8316_s2 + $0x128] sm:$0xff]  ;;  %v4705_v25 = vld [vmem:[%s8316_s2 + $0x138] sm:$0xff]  ;;  %v4710_v26 = vld [vmem:[%s8316_s2 + $0x150] sm:$0xff] }
   0xa   :  { %131 = vmatpush.msra.mxu0 %v4645_v15  ;;  %151 = vmatpush.msra.mxu1 %v4650_v16  ;;  %v4717_v27 = vld [vmem:[%s8316_s2 + $0x100] sm:$0xff]  ;;  %v4722_v28 = vld [vmem:[%s8316_s2 + $0x108] sm:$0xff]  ;;  %v4729_v29 = vld [vmem:[%s8316_s2 + $0x118] sm:$0xff] }
   0xb   :  { %191 = vmatpush.msra.mxu3 %v4657_v17  ;;  %170 = vmatpush.msra.mxu2 %v4662_v18  ;;  %v4734_v30 = vld [vmem:[%s8316_s2 + $0x130] sm:$0xff]  ;;  %v4741_v31 = vld [vmem:[%s8316_s2 + $0xe0] sm:$0xff]  ;;  %v4746_v32 = vld [vmem:[%s8316_s2 + $0xe8] sm:$0xff] }
   0xc   :  { %132 = vmatpush.msra.mxu0 %v4669_v19  ;;  %152 = vmatpush.msra.mxu1 %v4674_v20  ;;  %v4753_v33 = vld [vmem:[%s8316_s2 + $0xf8] sm:$0xff]  ;;  %v4758_v34 = vld [vmem:[%s8316_s2 + $0x110] sm:$0xff]  ;;  %v4765_v35 = vld [vmem:[%s8316_s2 + $0xc0] sm:$0xff] }
   0xd   :  { %192 = vmatpush.msra.mxu3 %v4681_v21  ;;  %171 = vmatpush.msra.mxu2 %v4686_v22  ;;  %v4770_v36 = vld [vmem:[%s8316_s2 + $0xc8] sm:$0xff]  ;;  %v4777_v37 = vld [vmem:[%s8316_s2 + $0xd8] sm:$0xff]  ;;  %v4782_v38 = vld [vmem:[%s8316_s2 + $0xf0] sm:$0xff] }
   0xe   :  { %133 = vmatpush.msra.mxu0 %v4693_v23  ;;  %153 = vmatpush.msra.mxu1 %v4698_v24  ;;  %v4789_v39 = vld [vmem:[%s8316_s2 + $0xa0] sm:$0xff]  ;;  %v4794_v40 = vld [vmem:[%s8316_s2 + $0xa8] sm:$0xff]  ;;  %v4801_v41 = vld [vmem:[%s8316_s2 + $0xb8] sm:$0xff] }
   0xf   :  { %193 = vmatpush.msra.mxu3 %v4705_v25  ;;  %172 = vmatpush.msra.mxu2 %v4710_v26  ;;  %v4806_v42 = vld [vmem:[%s8316_s2 + $0xd0] sm:$0xff]  ;;  %v4813_v43 = vld [vmem:[%s8316_s2 + $0x80] sm:$0xff]  ;;  %v4818_v44 = vld [vmem:[%s8316_s2 + $0x88] sm:$0xff] }
  0x10   :  { %134 = vmatpush.msra.mxu0 %v4717_v27  ;;  %154 = vmatpush.msra.mxu1 %v4722_v28  ;;  %v4825_v45 = vld [vmem:[%s8316_s2 + $0x98] sm:$0xff]  ;;  %v4830_v46 = vld [vmem:[%s8316_s2 + $0xb0] sm:$0xff]  ;;  %v4837_v47 = vld [vmem:[%s8316_s2 + $0x60] sm:$0xff] }
  0x11   :  { %194 = vmatpush.msra.mxu3 %v4729_v29  ;;  %173 = vmatpush.msra.mxu2 %v4734_v30  ;;  %v4842_v48 = vld [vmem:[%s8316_s2 + $0x68] sm:$0xff]  ;;  %v78_v49 = vld [vmem:[%s8317_s1] sm:$0xff]  ;;  %v4852_v50 = vld [vmem:[%s8316_s2 + $0x78] sm:$0xff] }
  0x12   :  { %135 = vmatpush.msra.mxu0 %v4741_v31  ;;  %155 = vmatpush.msra.mxu1 %v4746_v32  ;;  %v4857_v51 = vld [vmem:[%s8316_s2 + $0x90] sm:$0xff]  ;;  %v4864_v52 = vld [vmem:[%s8316_s2 + $0x40] sm:$0xff]  ;;  %v4869_v53 = vld [vmem:[%s8316_s2 + $0x48] sm:$0xff]  ;;  %vm447_vm0 = vcmp.gt.s32.totalorder %v78_v49, 0  ;;  %vm907_vm1 = vcmp.gt.s32.totalorder %v78_v49, 1 }
  0x13   :  { %195 = vmatpush.msra.mxu3 %v4753_v33  ;;  %174 = vmatpush.msra.mxu2 %v4758_v34  ;;  %v4876_v54 = vld [vmem:[%s8316_s2 + $0x58] sm:$0xff]  ;;  %v4881_v55 = vld [vmem:[%s8316_s2 + $0x70] sm:$0xff]  ;;  %v4888_v56 = vld [vmem:[%s8316_s2 + $0x20] sm:$0xff]  ;;  %v3667_v63 = vsel %vm447_vm0, 1.0, %v8322_v62  ;;  %v3668_v49 = vsel %vm907_vm1, 1.0, %v8322_v62 }
  0x14   :  { %136 = vmatpush.msra.mxu0 %v4765_v35  ;;  %156 = vmatpush.msra.mxu1 %v4770_v36  ;;  %8444 = vst [vmem:[#allocation2_spill] sm:$0xff] %v4876_v54  ;;  %v4893_v57 = vld [vmem:[%s8316_s2 + $0x28] sm:$0xff]  ;;  %v4900_v58 = vld [vmem:[%s8316_s2 + $0x38] sm:$0xff]  ;;  %v4905_v59 = vld [vmem:[%s8316_s2 + $0x50] sm:$0xff] }
  0x15   :  { %196 = vmatpush.msra.mxu3 %v4777_v37  ;;  %175 = vmatpush.msra.mxu2 %v4782_v38  ;;  %8445 = vst [vmem:[#allocation3_spill] sm:$0xff] %v4888_v56  ;;  %v4912_v60 = vld [vmem:[%s8316_s2] sm:$0xff]  ;;  %v4917_v61 = vld [vmem:[%s8316_s2 + $0x8] sm:$0xff]  ;;  %v4935_v62 = vld [vmem:[%s8316_s2 + $0x30] sm:$0xff] }
  0x16   :  { %137 = vmatpush.msra.mxu0 %v4789_v39  ;;  %157 = vmatpush.msra.mxu1 %v4794_v40  ;;  %8446 = vst [vmem:[#allocation4_spill] sm:$0xff] %v4893_v57 }
  0x17   :  { %197 = vmatpush.msra.mxu3 %v4801_v41  ;;  %176 = vmatpush.msra.mxu2 %v4806_v42  ;;  %8447 = vst [vmem:[#allocation5_spill] sm:$0xff] %v4912_v60 }
  0x18   :  { %138 = vmatpush.msra.mxu0 %v4813_v43  ;;  %158 = vmatpush.msra.mxu1 %v4818_v44  ;;  %8448 = vst [vmem:[#allocation6_spill] sm:$0xff] %v4917_v61 }
  0x19   :  { %198 = vmatpush.msra.mxu3 %v4825_v45  ;;  %177 = vmatpush.msra.mxu2 %v4830_v46 }
  0x1a   :  { %139 = vmatpush.msra.mxu0 %v4837_v47  ;;  %159 = vmatpush.msra.mxu1 %v4842_v48 }
  0x1b   :  { %199 = vmatpush.msra.mxu3 %v4852_v50  ;;  %178 = vmatpush.msra.mxu2 %v4857_v51 }
  0x1c   :  { %140 = vmatpush.msra.mxu0 %v4864_v52  ;;  %160 = vmatpush.msra.mxu1 %v4869_v53 }
  0x1d   :  { %200 = vmatpush.msra.mxu3 %v4876_v54  ;;  %179 = vmatpush.msra.mxu2 %v4881_v55  ;;  %v4926_v54 = vld [vmem:[%s8316_s2 + $0x18] sm:$0xff] }
  0x1e   :  { %141 = vmatpush.msra.mxu0 %v4888_v56  ;;  %161 = vmatpush.msra.mxu1 %v4893_v57  ;;  %v3678_v56 = vpack.i.bf16 %v3668_v49, %v3667_v63  ;;  %v8449_v57 = vmov 0.0   ;;  %v8451_v63 = vld [vmem:[#allocation3_spill] sm:$0xff]  ;;  %v8452_v49 = vld [vmem:[#allocation4_spill] sm:$0xff] }
  0x1f   :  { %201 = vmatpush.msra.mxu3 %v4900_v58  ;;  %180 = vmatpush.msra.mxu2 %v4905_v59 }
  0x20   :  { %142 = vmatpush.msra.mxu0 %v4912_v60  ;;  %162 = vmatpush.msra.mxu1 %v4917_v61  ;;  %v4944_v60 = vld [vmem:[%s8316_s2 + $0x10] sm:$0xff]  ;;  %v8332_v61 = vmov 0  }
  0x21   :  { %202 = vmatpush.msra.mxu3 %v4926_v54  ;;  %143 = vmatmul.f32.vlgmr.msra.gmra.mxu0 %v8449_v57 }
  0x22   :  { %163 = vmatmul.f32.vlgmr.msra.gmra.mxu1 %v8449_v57  ;;  %203 = vmatmul.f32.vlgmr.msra.gmra.mxu3 %v8449_v57 }
  0x23   :  { %181 = vmatpush.msra.mxu2 %v4935_v62  ;;  %3677 = vset.pattern.permute.xlu0 %v8332_v61  ;;  %v8453_v61 = vld [vmem:[#allocation5_spill] sm:$0xff] }
  0x24   :  { %3679 = vperm.xlu0 %3677, %v3678_v56   ;;  %563 = vmatpush.msrb.mxu0 %v4559_v0  ;;  %v8450_v56 = vld [vmem:[#allocation2_spill] sm:$0xff] }
  0x25   :  { %182 = vmatpush.msra.mxu2 %v4944_v60  ;;  %583 = vmatpush.msrb.mxu1 %v4564_v1 }
  0x26   :  { %183 = vmatmul.f32.vlgmr.msra.gmra.mxu2 %v8449_v57  ;;  %623 = vmatpush.msrb.mxu3 %v4569_v2  ;;  %v8454_v57 = vld [vmem:[#allocation6_spill] sm:$0xff] }
  0x27   :  { %603 = vmatpush.msrb.mxu2 %v4609_v9  ;;  %564 = vmatpush.msrb.mxu0 %v4576_v3 }
  0x28   :  { %584 = vmatpush.msrb.mxu1 %v4581_v4  ;;  %624 = vmatpush.msrb.mxu3 %v4586_v5 }
  0x29   :  { %604 = vmatpush.msrb.mxu2 %v4626_v12  ;;  %565 = vmatpush.msrb.mxu0 %v4592_v6 }
  0x2a   :  { %585 = vmatpush.msrb.mxu1 %v4597_v7  ;;  %625 = vmatpush.msrb.mxu3 %v4604_v8 }
  0x2b   :  { %605 = vmatpush.msrb.mxu2 %v4638_v14  ;;  %566 = vmatpush.msrb.mxu0 %v4616_v10 }
  0x2c   :  { %586 = vmatpush.msrb.mxu1 %v4621_v11  ;;  %626 = vmatpush.msrb.mxu3 %v4633_v13 }
  0x2d   :  { %606 = vmatpush.msrb.mxu2 %v4662_v18  ;;  %567 = vmatpush.msrb.mxu0 %v4645_v15 }
  0x2e   :  { %587 = vmatpush.msrb.mxu1 %v4650_v16  ;;  %627 = vmatpush.msrb.mxu3 %v4657_v17 }
  0x2f   :  { %607 = vmatpush.msrb.mxu2 %v4686_v22  ;;  %568 = vmatpush.msrb.mxu0 %v4669_v19 }
  0x30   :  { %588 = vmatpush.msrb.mxu1 %v4674_v20  ;;  %628 = vmatpush.msrb.mxu3 %v4681_v21 }
  0x31   :  { %608 = vmatpush.msrb.mxu2 %v4710_v26  ;;  %569 = vmatpush.msrb.mxu0 %v4693_v23 }
  0x32   :  { %589 = vmatpush.msrb.mxu1 %v4698_v24  ;;  %629 = vmatpush.msrb.mxu3 %v4705_v25 }
  0x33   :  { %609 = vmatpush.msrb.mxu2 %v4734_v30  ;;  %570 = vmatpush.msrb.mxu0 %v4717_v27 }
  0x34   :  { %590 = vmatpush.msrb.mxu1 %v4722_v28  ;;  %630 = vmatpush.msrb.mxu3 %v4729_v29 }
  0x35   :  { %610 = vmatpush.msrb.mxu2 %v4758_v34  ;;  %571 = vmatpush.msrb.mxu0 %v4741_v31 }
  0x36   :  { %591 = vmatpush.msrb.mxu1 %v4746_v32  ;;  %631 = vmatpush.msrb.mxu3 %v4753_v33 }
  0x37   :  { %611 = vmatpush.msrb.mxu2 %v4782_v38  ;;  %572 = vmatpush.msrb.mxu0 %v4765_v35 }
  0x38   :  { %592 = vmatpush.msrb.mxu1 %v4770_v36  ;;  %632 = vmatpush.msrb.mxu3 %v4777_v37 }
  0x39   :  { %612 = vmatpush.msrb.mxu2 %v4806_v42  ;;  %573 = vmatpush.msrb.mxu0 %v4789_v39 }
  0x3a   :  { %593 = vmatpush.msrb.mxu1 %v4794_v40  ;;  %633 = vmatpush.msrb.mxu3 %v4801_v41 }
  0x3b   :  { %613 = vmatpush.msrb.mxu2 %v4830_v46  ;;  %574 = vmatpush.msrb.mxu0 %v4813_v43 }
  0x3c   :  { %594 = vmatpush.msrb.mxu1 %v4818_v44  ;;  %634 = vmatpush.msrb.mxu3 %v4825_v45 }
  0x3d   :  { %614 = vmatpush.msrb.mxu2 %v4857_v51  ;;  %575 = vmatpush.msrb.mxu0 %v4837_v47 }
  0x3e   :  { %595 = vmatpush.msrb.mxu1 %v4842_v48  ;;  %635 = vmatpush.msrb.mxu3 %v4852_v50 }
  0x3f   :  { %615 = vmatpush.msrb.mxu2 %v4881_v55  ;;  %576 = vmatpush.msrb.mxu0 %v4864_v52 }
  0x40   :  { %596 = vmatpush.msrb.mxu1 %v4869_v53  ;;  %636 = vmatpush.msrb.mxu3 %v8450_v56 }
  0x41   :  { %616 = vmatpush.msrb.mxu2 %v4905_v59  ;;  %577 = vmatpush.msrb.mxu0 %v8451_v63 }
  0x42   :  { %597 = vmatpush.msrb.mxu1 %v8452_v49  ;;  %637 = vmatpush.msrb.mxu3 %v4900_v58 }
  0x43   :  { %617 = vmatpush.msrb.mxu2 %v4935_v62  ;;  %578 = vmatpush.msrb.mxu0 %v8453_v61 }
  0x44   :  { %598 = vmatpush.msrb.mxu1 %v8454_v57  ;;  %638 = vmatpush.msrb.mxu3 %v4926_v54 }
  0x45   :  { %618 = vmatpush.msrb.mxu2 %v4944_v60  ;;  %1016 = vmatpush.msra.mxu0 %v4559_v0  ;;  %v8455_v0 = vmov 0  }
  0x46   :  { %1036 = vmatpush.msra.mxu1 %v4564_v1  ;;  %1076 = vmatpush.msra.mxu3 %v4569_v2  ;;  %v5082_v1 = vld [vmem:[%s8318_s0] sm:$0x11]  ;;  %v5087_v2 = vld [vmem:[%s8318_s0 + $0x10] sm:$0x11] }
  0x47   :  { %1056 = vmatpush.msra.mxu2 %v4609_v9  ;;  %1017 = vmatpush.msra.mxu0 %v4576_v3  ;;  %v5092_v3 = vld [vmem:[%s8318_s0 + $0x20] sm:$0x11]  ;;  %v95_v9 = vunpack.c.l.bf16 %v5082_v1 }
  0x48   :  { %1037 = vmatpush.msra.mxu1 %v4581_v4  ;;  %1077 = vmatpush.msra.mxu3 %v4586_v5  ;;  %v5097_v4 = vld [vmem:[%s8318_s0 + $0x30] sm:$0x11]  ;;  %v5102_v5 = vld [vmem:[%s8318_s0 + $0x40] sm:$0x11] }
  0x49   :  { %1057 = vmatpush.msra.mxu2 %v4626_v12  ;;  %1018 = vmatpush.msra.mxu0 %v4592_v6  ;;  %v5107_v6 = vld [vmem:[%s8318_s0 + $0x50] sm:$0x11]  ;;  %v107_v12 = vunpack.c.l.bf16 %v5097_v4 }
  0x4a   :  { %1038 = vmatpush.msra.mxu1 %v4597_v7  ;;  %1078 = vmatpush.msra.mxu3 %v4604_v8  ;;  %v5112_v7 = vld [vmem:[%s8318_s0 + $0x60] sm:$0x11]  ;;  %v5117_v8 = vld [vmem:[%s8318_s0 + $0x70] sm:$0x11] }
  0x4b   :  { %1058 = vmatpush.msra.mxu2 %v4638_v14  ;;  %1019 = vmatpush.msra.mxu0 %v4616_v10  ;;  %v99_v10 = vunpack.c.l.bf16 %v5087_v2  ;;  %v5127_v14 = vld [vmem:[%s8318_s0 + $0x8] sm:$0x11] }
  0x4c   :  { %1039 = vmatpush.msra.mxu1 %v4621_v11  ;;  %1079 = vmatpush.msra.mxu3 %v4633_v13  ;;  %v103_v11 = vunpack.c.l.bf16 %v5092_v3  ;;  %v111_v13 = vunpack.c.l.bf16 %v5102_v5 }
  0x4d   :  { %1059 = vmatpush.msra.mxu2 %v4662_v18  ;;  %1020 = vmatpush.msra.mxu0 %v4645_v15  ;;  %v5132_v15 = vld [vmem:[%s8318_s0 + $0x18] sm:$0x11]  ;;  %v123_v18 = vunpack.c.l.bf16 %v5117_v8 }
  0x4e   :  { %1040 = vmatpush.msra.mxu1 %v4650_v16  ;;  %1080 = vmatpush.msra.mxu3 %v4657_v17  ;;  %v115_v16 = vunpack.c.l.bf16 %v5107_v6  ;;  %v119_v17 = vunpack.c.l.bf16 %v5112_v7 }
  0x4f   :  { %1060 = vmatpush.msra.mxu2 %v4686_v22  ;;  %1021 = vmatpush.msra.mxu0 %v4669_v19  ;;  %v96_v19 = vunpack.c.h.bf16 %v5082_v1  ;;  %v5151_v22 = vld [vmem:[%s8318_s0 + $0x48] sm:$0x11] }
  0x50   :  { %1041 = vmatpush.msra.mxu1 %v4674_v20  ;;  %1081 = vmatpush.msra.mxu3 %v4681_v21  ;;  %v5141_v20 = vld [vmem:[%s8318_s0 + $0x28] sm:$0x11]  ;;  %v5146_v21 = vld [vmem:[%s8318_s0 + $0x38] sm:$0x11] }
  0x51   :  { %1061 = vmatpush.msra.mxu2 %v4710_v26  ;;  %1022 = vmatpush.msra.mxu0 %v4693_v23  ;;  %v100_v23 = vunpack.c.h.bf16 %v5087_v2  ;;  %v112_v26 = vunpack.c.h.bf16 %v5102_v5 }
  0x52   :  { %1042 = vmatpush.msra.mxu1 %v4698_v24  ;;  %1082 = vmatpush.msra.mxu3 %v4705_v25  ;;  %v104_v24 = vunpack.c.h.bf16 %v5092_v3  ;;  %v108_v25 = vunpack.c.h.bf16 %v5097_v4 }
  0x53   :  { %1062 = vmatpush.msra.mxu2 %v4734_v30  ;;  %1023 = vmatpush.msra.mxu0 %v4717_v27  ;;  %v5160_v27 = vld [vmem:[%s8318_s0 + $0x58] sm:$0x11]  ;;  %v116_v30 = vunpack.c.h.bf16 %v5107_v6 }
  0x54   :  { %1043 = vmatpush.msra.mxu1 %v4722_v28  ;;  %1083 = vmatpush.msra.mxu3 %v4729_v29  ;;  %v5165_v28 = vld [vmem:[%s8318_s0 + $0x68] sm:$0x11]  ;;  %v5170_v29 = vld [vmem:[%s8318_s0 + $0x78] sm:$0x11] }
  0x55   :  { %1063 = vmatpush.msra.mxu2 %v4758_v34  ;;  %1024 = vmatpush.msra.mxu0 %v4741_v31  ;;  %v120_v31 = vunpack.c.h.bf16 %v5112_v7  ;;  %v102_v34 = vunpack.c.h.bf16 %v5132_v15 }
  0x56   :  { %1044 = vmatpush.msra.mxu1 %v4746_v32  ;;  %1084 = vmatpush.msra.mxu3 %v4753_v33  ;;  %v124_v32 = vunpack.c.h.bf16 %v5117_v8  ;;  %v98_v33 = vunpack.c.h.bf16 %v5127_v14  ;;  %v125_v8 = vunpack.c.l.bf16 %v5170_v29 }
  0x57   :  { %1064 = vmatpush.msra.mxu2 %v4782_v38  ;;  %1025 = vmatpush.msra.mxu0 %v4765_v35  ;;  %v106_v35 = vunpack.c.h.bf16 %v5141_v20 }
  0x58   :  { %1045 = vmatpush.msra.mxu1 %v4770_v36  ;;  %1085 = vmatpush.msra.mxu3 %v4777_v37  ;;  %v110_v36 = vunpack.c.h.bf16 %v5146_v21  ;;  %v114_v37 = vunpack.c.h.bf16 %v5151_v22 }
  0x59   :  { %1065 = vmatpush.msra.mxu2 %v4806_v42  ;;  %1026 = vmatpush.msra.mxu0 %v4789_v39  ;;  %v118_v39 = vunpack.c.h.bf16 %v5160_v27  ;;  %v126_v42 = vunpack.c.h.bf16 %v5170_v29 }
  0x5a   :  { %1046 = vmatpush.msra.mxu1 %v4794_v40  ;;  %1086 = vmatpush.msra.mxu3 %v4801_v41  ;;  %v97_v40 = vunpack.c.l.bf16 %v5127_v14  ;;  %v122_v41 = vunpack.c.h.bf16 %v5165_v28 }
  0x5b   :  { %1066 = vmatpush.msra.mxu2 %v4830_v46  ;;  %1027 = vmatpush.msra.mxu0 %v4813_v43 }
  0x5c   :  { %1047 = vmatpush.msra.mxu1 %v4818_v44  ;;  %1087 = vmatpush.msra.mxu3 %v4825_v45 }
  0x5d   :  { %1067 = vmatpush.msra.mxu2 %v4857_v51  ;;  %1028 = vmatpush.msra.mxu0 %v4837_v47 }
  0x5e   :  { %1048 = vmatpush.msra.mxu1 %v4842_v48  ;;  %1088 = vmatpush.msra.mxu3 %v4852_v50 }
  0x5f   :  { %1068 = vmatpush.msra.mxu2 %v4881_v55  ;;  %1029 = vmatpush.msra.mxu0 %v4864_v52 }
  0x60   :  { %1049 = vmatpush.msra.mxu1 %v4869_v53  ;;  %1089 = vmatpush.msra.mxu3 %v8450_v56 }
  0x61   :  { %1069 = vmatpush.msra.mxu2 %v4905_v59  ;;  %1030 = vmatpush.msra.mxu0 %v8451_v63 }
  0x62   :  { %1050 = vmatpush.msra.mxu1 %v8452_v49  ;;  %1090 = vmatpush.msra.mxu3 %v4900_v58  ;;  %v101_v49 = vunpack.c.l.bf16 %v5132_v15 }
  0x63   :  { %1070 = vmatpush.msra.mxu2 %v4935_v62  ;;  %1031 = vmatpush.msra.mxu0 %v8453_v61 }
  0x64   :  { %1051 = vmatpush.msra.mxu1 %v8454_v57  ;;  %1091 = vmatpush.msra.mxu3 %v4926_v54 }
  0x65   :  { %1071 = vmatpush.msra.mxu2 %v4944_v60  ;;  %3688 = vset.pattern.permute.xlu1 %v8455_v0 }
  0x9e   :  { %v144_v38 = vpop.f32.mrf.mxu0 }
  0x9f   :  { %v211_v43 = vrot.slane %v144_v38, 1  ;;  %v215_v44 = vrot.slane %v144_v38, 2  ;;  %v219_v45 = vrot.slane %v144_v38, 3  ;;  %v223_v46 = vrot.slane %v144_v38, 4  ;;  %v164_v61 = vpop.f32.mrf.mxu1 }
  0xa0   :  { %v227_v47 = vrot.slane %v144_v38, 5  ;;  %v231_v48 = vrot.slane %v144_v38, 6  ;;  %v235_v50 = vrot.slane %v144_v38, 7  ;;  %v271_v51 = vadd.f32 %v144_v38, %v95_v9 }
  0xa1   :  { %v275_v52 = vadd.f32 %v211_v43, %v99_v10  ;;  %v279_v53 = vadd.f32 %v215_v44, %v103_v11  ;;  %v283_v54 = vadd.f32 %v219_v45, %v107_v12  ;;  %v287_v55 = vadd.f32 %v223_v46, %v111_v13 }
  0xa2   :  { %v291_v57 = vadd.f32 %v227_v47, %v115_v16  ;;  %v295_v58 = vadd.f32 %v231_v48, %v119_v17  ;;  %v299_v59 = vadd.f32 %v235_v50, %v123_v18  ;;  %v303_v60 = vmul.f32 0.5, %v271_v51 }
  0xa3   :  { %v306_v62 = vmul.f32 0.5, %v275_v52  ;;  %v309_v56 = vmul.f32 0.5, %v279_v53  ;;  %v312_v63 = vmul.f32 0.5, %v283_v54  ;;  %v315_v0 = vmul.f32 0.5, %v287_v55 }
  0xa4   :  { %v318_v1 = vmul.f32 0.5, %v291_v57  ;;  %v321_v2 = vmul.f32 0.5, %v295_v58  ;;  %3699 = vtanh.f32 %v303_v60  ;;  %v212_v3 = vrot.slane %v164_v61, 1 }
  0xa5   :  { %3701 = vtanh.f32 %v306_v62  ;;  %v216_v4 = vrot.slane %v164_v61, 2  ;;  %v220_v5 = vrot.slane %v164_v61, 3  ;;  %v324_v6 = vmul.f32 0.5, %v299_v59  ;;  %v5194_v7 = vpop.f32.mrf.mxu3 }
  0xa6   :  { %3703 = vtanh.f32 %v309_v56  ;;  %v224_v9 = vrot.slane %v164_v61, 4  ;;  %v228_v10 = vrot.slane %v164_v61, 5  ;;  %v232_v11 = vrot.slane %v164_v61, 6 }
  0xa7   :  { %3705 = vtanh.f32 %v312_v63  ;;  %v272_v12 = vadd.f32 %v164_v61, %v96_v19  ;;  %v276_v13 = vadd.f32 %v212_v3, %v100_v23  ;;  %v236_v16 = vrot.slane %v164_v61, 7 }
  0xa8   :  { %3707 = vtanh.f32 %v315_v0  ;;  %v280_v17 = vadd.f32 %v216_v4, %v104_v24  ;;  %v284_v18 = vadd.f32 %v220_v5, %v108_v25  ;;  %v288_v38 = vadd.f32 %v224_v9, %v112_v26 }
  0xa9   :  { %3709 = vtanh.f32 %v318_v1  ;;  %v105_v43 = vunpack.c.l.bf16 %v5141_v20  ;;  %v109_v44 = vunpack.c.l.bf16 %v5146_v21  ;;  %v292_v46 = vadd.f32 %v228_v10, %v116_v30 }
  0xaa   :  { %v3700_v45 = vpop.eup %3699  ;;  %3711 = vtanh.f32 %v321_v2  ;;  %v304_v47 = vmul.f32 0.5, %v272_v12  ;;  %v307_v48 = vmul.f32 0.5, %v276_v13  ;;  %v296_v19 = vadd.f32 %v232_v11, %v120_v31 }
  0xab   :  { %v3702_v50 = vpop.eup %3701  ;;  %v310_v23 = vmul.f32 0.5, %v280_v17  ;;  %v113_v51 = vunpack.c.l.bf16 %v5151_v22  ;;  %v117_v24 = vunpack.c.l.bf16 %v5160_v27  ;;  %3713 = vtanh.f32 %v324_v6 }
  0xac   :  { %v3704_v25 = vpop.eup %3703  ;;  %v300_v26 = vadd.f32 %v236_v16, %v124_v32  ;;  %v313_v52 = vmul.f32 0.5, %v284_v18  ;;  %v121_v53 = vunpack.c.l.bf16 %v5165_v28  ;;  %v351_v54 = vmul.f32 0.5, %v3700_v45 }
  0xad   :  { %v3706_v30 = vpop.eup %3705  ;;  %v354_v55 = vmul.f32 0.5, %v3702_v50  ;;  %v316_v57 = vmul.f32 0.5, %v288_v38  ;;  %3715 = vtanh.f32 %v304_v47  ;;  %v357_v58 = vmul.f32 0.5, %v3704_v25  ;;  %v5224_v25 = vpop.f32.mrf.mxu2 }
  0xae   :  { %v3708_v31 = vpop.eup %3707  ;;  %v360_v59 = vmul.f32 0.5, %v3706_v30  ;;  %v319_v60 = vmul.f32 0.5, %v292_v46  ;;  %3717 = vtanh.f32 %v307_v48  ;;  %v322_v56 = vmul.f32 0.5, %v296_v19 }
  0xaf   :  { %v3710_v61 = vpop.eup %3709  ;;  %v363_v62 = vmul.f32 0.5, %v3708_v31  ;;  %3719 = vtanh.f32 %v310_v23  ;;  %v325_v0 = vmul.f32 0.5, %v300_v26  ;;  %v214_v1 = vrot.slane %v5194_v7, 1 }
  0xb0   :  { %v3712_v32 = vpop.eup %3711  ;;  %v366_v63 = vmul.f32 0.5, %v3710_v61  ;;  %3721 = vtanh.f32 %v313_v52  ;;  %v5198_v2 = vadd.f32 0.5, %v351_v54  ;;  %v5200_v3 = vadd.f32 0.5, %v354_v55 }
  0xb1   :  { %3723 = vtanh.f32 %v316_v57  ;;  %v218_v4 = vrot.slane %v5194_v7, 2  ;;  %v5203_v5 = vpop.eup %3713  ;;  %v5205_v6 = vadd.f32 0.5, %v357_v58  ;;  %v5207_v9 = vadd.f32 0.5, %v360_v59 }
  0xb2   :  { %3725 = vtanh.f32 %v319_v60  ;;  %v222_v10 = vrot.slane %v5194_v7, 3  ;;  %v369_v12 = vmul.f32 0.5, %v3712_v32  ;;  %v5210_v13 = vadd.f32 0.5, %v363_v62 }
  0xb3   :  { %v3716_v11 = vpop.eup %3715  ;;  %v226_v16 = vrot.slane %v5194_v7, 4  ;;  %v274_v17 = vadd.f32 %v5194_v7, %v98_v33  ;;  %v5216_v38 = vadd.f32 0.5, %v366_v63  ;;  %v230_v46 = vrot.slane %v5194_v7, 5 }
  0xb4   :  { %v3718_v18 = vpop.eup %3717  ;;  %v352_v45 = vmul.f32 0.5, %v3716_v11  ;;  %v278_v47 = vadd.f32 %v214_v1, %v102_v34  ;;  %3727 = vtanh.f32 %v322_v56  ;;  %v234_v19 = vrot.slane %v5194_v7, 6 }
  0xb5   :  { %v3720_v48 = vpop.eup %3719  ;;  %v355_v50 = vmul.f32 0.5, %v3718_v18  ;;  %v282_v23 = vadd.f32 %v218_v4, %v106_v35  ;;  %3729 = vtanh.f32 %v325_v0  ;;  %v286_v30 = vadd.f32 %v222_v10, %v110_v36 }
  0xb6   :  { %v3722_v33 = vpop.eup %3721  ;;  %v358_v26 = vmul.f32 0.5, %v3720_v48  ;;  %v376_v52 = vadd.f32 0.5, %v352_v45  ;;  %v238_v57 = vrot.slane %v5194_v7, 7  ;;  %3731 = vtanh.f32 %v274_v17 }
  0xb7   :  { %v3724_v54 = vpop.eup %3723  ;;  %v361_v55 = vmul.f32 0.5, %v3722_v33  ;;  %v379_v34 = vadd.f32 0.5, %v355_v50  ;;  %v290_v35 = vadd.f32 %v226_v16, %v114_v37  ;;  %3733 = vtanh.f32 %v278_v47 }
  0xb8   :  { %v3726_v31 = vpop.eup %3725  ;;  %v364_v58 = vmul.f32 0.5, %v3724_v54  ;;  %v213_v59 = vrot.slane %v5224_v25, 1  ;;  %v5232_v60 = vadd.f32 0.5, %v369_v12  ;;  %v382_v61 = vadd.f32 0.5, %v358_v26 }
  0xb9   :  { %3735 = vtanh.f32 %v282_v23  ;;  %v217_v36 = vrot.slane %v5224_v25, 2  ;;  %v407_v62 = vmul.f32 0.0, %v376_v52  ;;  %v294_v56 = vadd.f32 %v230_v46, %v118_v39 }
  0xba   :  { %3737 = vtanh.f32 %v286_v30  ;;  %v221_v32 = vrot.slane %v5224_v25, 3  ;;  %v3728_v63 = vpop.eup %3727  ;;  %v367_v0 = vmul.f32 0.5, %v3726_v31  ;;  %v385_v1 = vadd.f32 0.5, %v361_v55 }
  0xbb   :  { %v408_v37 = vmul.f32 0.0, %v379_v34  ;;  %v225_v4 = vrot.slane %v5224_v25, 4  ;;  %v3730_v10 = vpop.eup %3729  ;;  %v388_v11 = vadd.f32 0.5, %v364_v58  ;;  %3739 = vtanh.f32 %v290_v35 }
  0xbc   :  { %v273_v12 = vadd.f32 %v5224_v25, %v97_v40  ;;  %v277_v16 = vadd.f32 %v213_v59, %v101_v49  ;;  %v3732_v39 = vpop.eup %3731  ;;  %v409_v17 = vmul.f32 0.0, %v382_v61  ;;  %v229_v18 = vrot.slane %v5224_v25, 5  ;;  %v5273_v59 = vpop.permute.xlu0 %3679 }
  0xbd   :  { %v281_v45 = vadd.f32 %v217_v36, %v105_v43  ;;  %v285_v46 = vadd.f32 %v221_v32, %v109_v44  ;;  %v3734_v47 = vpop.eup %3733  ;;  %3741 = vtanh.f32 %v294_v56  ;;  %v289_v14 = vadd.f32 %v225_v4, %v113_v51 }
  0xbe   :  { %v305_v48 = vmul.f32 0.5, %v273_v12  ;;  %v308_v40 = vmul.f32 0.5, %v277_v16  ;;  %v391_v15 = vadd.f32 0.5, %v367_v0  ;;  %v410_v49 = vmul.f32 0.0, %v385_v1 }
  0xbf   :  { %v3736_v50 = vpop.eup %3735  ;;  %v311_v23 = vmul.f32 0.5, %v281_v45  ;;  %v314_v33 = vmul.f32 0.5, %v285_v46  ;;  %v411_v52 = vmul.f32 0.0, %v388_v11  ;;  %v415_v20 = vmul.f32 %v3732_v39, %v5198_v2 }
  0xc0   :  { %v3738_v26 = vpop.eup %3737  ;;  %3743 = vtanh.f32 %v305_v48  ;;  %v233_v21 = vrot.slane %v5224_v25, 6  ;;  %v416_v43 = vmul.f32 %v3734_v47, %v5200_v3  ;;  %v237_v22 = vrot.slane %v5224_v25, 7 }
  0xc1   :  { %3745 = vtanh.f32 %v308_v40  ;;  %v293_v44 = vadd.f32 %v229_v18, %v117_v24  ;;  %v3740_v51 = vpop.eup %3739  ;;  %v417_v30 = vmul.f32 %v3736_v50, %v5205_v6  ;;  %v317_v55 = vmul.f32 0.5, %v289_v14 }
  0xc2   :  { %3747 = vtanh.f32 %v311_v23  ;;  %v297_v54 = vadd.f32 %v233_v21, %v121_v53  ;;  %v301_v2 = vadd.f32 %v237_v22, %v125_v8  ;;  %v370_v3 = vmul.f32 0.5, %v3728_v63 }
  0xc3   :  { %3749 = vtanh.f32 %v314_v33  ;;  %v320_v34 = vmul.f32 0.5, %v293_v44  ;;  %v3742_v31 = vpop.eup %3741  ;;  %v298_v27 = vadd.f32 %v234_v19, %v122_v41  ;;  %v373_v6 = vmul.f32 0.5, %v3730_v10 }
  0xc4   :  { %v323_v24 = vmul.f32 0.5, %v297_v54  ;;  %3751 = vtanh.f32 %v317_v55  ;;  %v5266_v25 = vadd.f32 %v415_v20, %v407_v62  ;;  %v302_v53 = vadd.f32 %v238_v57, %v126_v42 }
  0xc5   :  { %v326_v58 = vmul.f32 0.5, %v301_v2  ;;  %3753 = vtanh.f32 %v320_v34  ;;  %v418_v35 = vmul.f32 %v3738_v26, %v5207_v9  ;;  %v372_v28 = vmul.f32 0.5, %v5203_v5 }
  0xc6   :  { %v3744_v8 = vpop.eup %3743  ;;  %3755 = vtanh.f32 %v323_v24  ;;  %v394_v41 = vadd.f32 0.5, %v370_v3  ;;  %v5276_v61 = vadd.f32 %v416_v43, %v408_v37  ;;  %v397_v36 = vadd.f32 0.5, %v373_v6 }
  0xc7   :  { %v3746_v19 = vpop.eup %3745  ;;  %3757 = vtanh.f32 %v326_v58  ;;  %v419_v29 = vmul.f32 %v3740_v51, %v5210_v13  ;;  %v353_v42 = vmul.f32 0.5, %v3744_v8  ;;  %v412_v57 = vmul.f32 0.0, %v391_v15 }
  0xc8   :  { %v3748_v7 = vpop.eup %3747  ;;  %3759 = vtanh.f32 %v298_v27  ;;  %v420_v62 = vmul.f32 %v3742_v31, %v5216_v38  ;;  %v356_v56 = vmul.f32 0.5, %v3746_v19  ;;  %v5281_v32 = vunpack.i.l.bf16 %v5273_v59 }
  0xc9   :  { %v3750_v9 = vpop.eup %3749  ;;  %3761 = vtanh.f32 %v302_v53  ;;  %v5283_v5 = vadd.f32 %v417_v30, %v409_v17  ;;  %v359_v0 = vmul.f32 0.5, %v3748_v7  ;;  %v396_v1 = vadd.f32 0.5, %v372_v28 }
  0xca   :  { %v3752_v63 = vpop.eup %3751  ;;  %v413_v37 = vmul.f32 0.0, %v394_v41  ;;  %v5285_v4 = vadd.f32 %v418_v35, %v410_v49  ;;  %v362_v10 = vmul.f32 0.5, %v3750_v9  ;;  %v414_v11 = vmul.f32 0.0, %v397_v36 }
  0xcb   :  { %v3754_v13 = vpop.eup %3753  ;;  %v5287_v12 = vadd.f32 %v419_v29, %v411_v52  ;;  %3763 = vtanh.f32 %v5266_v25  ;;  %v377_v16 = vadd.f32 0.5, %v353_v42  ;;  %v365_v39 = vmul.f32 0.5, %v3752_v63 }
  0xcc   :  { %v3756_v38 = vpop.eup %3755  ;;  %v5290_v18 = vadd.f32 %v420_v62, %v412_v57  ;;  %3765 = vtanh.f32 %v5276_v61  ;;  %v380_v45 = vadd.f32 0.5, %v356_v56  ;;  %v368_v46 = vmul.f32 0.5, %v3754_v13 }
  0xcd   :  { %v3758_v17 = vpop.eup %3757  ;;  %v371_v47 = vmul.f32 0.5, %v3756_v38  ;;  %3767 = vtanh.f32 %v5283_v5  ;;  %v383_v40 = vadd.f32 0.5, %v359_v0  ;;  %v454_v50 = vrot.slane %v5281_v32, 1 }
  0xce   :  { %v3760_v14 = vpop.eup %3759  ;;  %v374_v48 = vmul.f32 0.5, %v3758_v17  ;;  %3769 = vtanh.f32 %v5285_v4  ;;  %v386_v49 = vadd.f32 0.5, %v362_v10  ;;  %v455_v33 = vrot.slane %v5281_v32, 2 }
  0xcf   :  { %v3762_v15 = vpop.eup %3761  ;;  %v421_v23 = vmul.f32 %v3760_v14, %v5232_v60  ;;  %3771 = vtanh.f32 %v5287_v12  ;;  %v389_v26 = vadd.f32 0.5, %v365_v39  ;;  %v456_v20 = vrot.slane %v5281_v32, 3 }
  0xd0   :  { %v422_v52 = vmul.f32 %v3762_v15, %v396_v1  ;;  %3773 = vtanh.f32 %v5290_v18  ;;  %v392_v43 = vadd.f32 0.5, %v368_v46  ;;  %v395_v22 = vadd.f32 0.5, %v371_v47  ;;  %v5364_v15 = vld [vmem:[%s8316_s2 + $0x1f8] sm:$0xff] }
  0xd1   :  { %v3764_v21 = vpop.eup %3763  ;;  %v5301_v44 = vadd.f32 %v421_v23, %v413_v37  ;;  %v457_v51 = vrot.slane %v5281_v32, 4  ;;  %v398_v54 = vadd.f32 0.5, %v374_v48  ;;  %v458_v2 = vrot.slane %v5281_v32, 5  ;;  %v5346_v48 = vld [vmem:[%s8316_s2 + $0x1e0] sm:$0xff]  ;;  %v5376_v23 = vld [vmem:[%s8316_s2 + $0x1c8] sm:$0xff] }
  0xd2   :  { %v3766_v30 = vpop.eup %3765  ;;  %v5304_v60 = vadd.f32 %v422_v52, %v414_v11  ;;  %v439_v55 = vmul.f32 %v3764_v21, %v377_v16  ;;  %v459_v31 = vrot.slane %v5281_v32, 6  ;;  %v460_v0 = vrot.slane %v5281_v32, 7  ;;  %v5394_v52 = vld [vmem:[%s8316_s2 + $0x1a0] sm:$0xff]  ;;  %v5406_v21 = vld [vmem:[%s8316_s2 + $0x1b0] sm:$0xff] }
  0xd3   :  { %v3768_v34 = vpop.eup %3767  ;;  %3775 = vtanh.f32 %v5301_v44  ;;  %v440_v3 = vmul.f32 %v3766_v30, %v380_v45  ;;  %8456 = vst [vmem:[#allocation2_spill] sm:$0xff] %v5406_v21  ;;  %v5430_v30 = vld [vmem:[%s8316_s2 + $0x190] sm:$0xff] }
  0xd4   :  { %v3770_v27 = vpop.eup %3769  ;;  %3777 = vtanh.f32 %v5304_v60  ;;  %v441_v24 = vmul.f32 %v3768_v34, %v383_v40  ;;  %v469_v6 = vmul.f32 %v5281_v32, %v439_v55  ;;  %v5352_v40 = vld [vmem:[%s8316_s2 + $0x1e8] sm:$0xff]  ;;  %8460 = vst [vmem:[#allocation6_spill] sm:$0xff] %v5430_v30  ;;  %v5454_v34 = vld [vmem:[%s8316_s2 + $0x170] sm:$0xff] }
  0xd5   :  { %v3772_v53 = vpop.eup %3771  ;;  %v442_v58 = vmul.f32 %v3770_v27, %v386_v49  ;;  %v470_v8 = vmul.f32 %v454_v50, %v440_v3  ;;  %v541_v35 = vrot.slane %v440_v3, 7  ;;  %v5358_v50 = vld [vmem:[%s8316_s2 + $0x1f0] sm:$0xff]  ;;  %v5370_v49 = vld [vmem:[%s8316_s2 + $0x1c0] sm:$0xff]  ;;  %8464 = vst [vmem:[#allocation10_spill] sm:$0xff] %v5454_v34  ;;  %v5460_v3 = vld [vmem:[%s8316_s2 + $0x178] sm:$0xff] }
  0xd6   :  { %v3774_v28 = vpop.eup %3773  ;;  %v443_v41 = vmul.f32 %v3772_v53, %v389_v26  ;;  %v471_v19 = vmul.f32 %v455_v33, %v441_v24  ;;  %477 = vst [vmem:[%s8319_s3] sm:$0x1] %v469_v6  ;;  %v544_v36 = vrot.slane %v441_v24, 6  ;;  %v5382_v33 = vld [vmem:[%s8316_s2 + $0x1d0] sm:$0xff]  ;;  %v5388_v26 = vld [vmem:[%s8316_s2 + $0x1d8] sm:$0xff]  ;;  %v5472_v27 = vld [vmem:[%s8316_s2 + $0x148] sm:$0xff] }
  0xd7   :  { %v444_v29 = vmul.f32 %v3774_v28, %v392_v43  ;;  %v472_v7 = vmul.f32 %v456_v20, %v442_v58  ;;  %478 = vst [vmem:[%s8319_s3 + $0x8] sm:$0x1] %v470_v8  ;;  %v543_v42 = vsel %vm542_vm2, %v541_v35, %v439_v55  ;;  %v547_v57 = vrot.slane %v442_v58, 5  ;;  %v5400_v20 = vld [vmem:[%s8316_s2 + $0x1a8] sm:$0xff]  ;;  %v5412_v43 = vld [vmem:[%s8316_s2 + $0x1b8] sm:$0xff]  ;;  %v5442_v55 = vld [vmem:[%s8316_s2 + $0x160] sm:$0xff] }
  0xd8   :  { %v473_v62 = vmul.f32 %v457_v51, %v443_v41  ;;  %479 = vst [vmem:[%s8319_s3 + $0x10] sm:$0x1] %v471_v19  ;;  %v546_v9 = vsel %vm545_vm3, %v544_v36, %v543_v42  ;;  %v550_v56 = vrot.slane %v443_v41, 4  ;;  %v5424_v51 = vld [vmem:[%s8316_s2 + $0x188] sm:$0xff]  ;;  %v5478_v24 = vld [vmem:[%s8316_s2 + $0x150] sm:$0xff]  ;;  %v5484_v6 = vld [vmem:[%s8316_s2 + $0x158] sm:$0xff] }
  0xd9   :  { %v3776_v63 = vpop.eup %3775  ;;  %v474_v1 = vmul.f32 %v458_v2, %v444_v29  ;;  %480 = vst [vmem:[%s8319_s3 + $0x18] sm:$0x1] %v472_v7  ;;  %v549_v37 = vsel %vm548_vm4, %v547_v57, %v546_v9  ;;  %v553_v13 = vrot.slane %v444_v29, 3  ;;  %v5448_v2 = vld [vmem:[%s8316_s2 + $0x168] sm:$0xff]  ;;  %v5490_v53 = vld [vmem:[%s8316_s2 + $0x120] sm:$0xff]  ;;  %v5502_v8 = vld [vmem:[%s8316_s2 + $0x130] sm:$0xff] }
  0xda   :  { %v3778_v10 = vpop.eup %3777  ;;  %v445_v11 = vmul.f32 %v3776_v63, %v395_v22  ;;  %481 = vst [vmem:[%s8319_s3 + $0x20] sm:$0x1] %v473_v62  ;;  %v552_v38 = vsel %vm551_vm5, %v550_v56, %v549_v37  ;;  %v5418_v22 = vld [vmem:[%s8316_s2 + $0x180] sm:$0xff]  ;;  %v5496_v58 = vld [vmem:[%s8316_s2 + $0x128] sm:$0xff]  ;;  %v5508_v35 = vld [vmem:[%s8316_s2 + $0x138] sm:$0xff] }
  0xdb   :  { %v446_v16 = vmul.f32 %v3778_v10, %v398_v54  ;;  %482 = vst [vmem:[%s8319_s3 + $0x28] sm:$0x1] %v474_v1  ;;  %v555_v32 = vsel %vm554_vm6, %v553_v13, %v552_v38  ;;  %v5436_v54 = vld [vmem:[%s8316_s2 + $0x198] sm:$0xff]  ;;  %v5514_v28 = vld [vmem:[%s8316_s2 + $0x100] sm:$0xff]  ;;  %v5520_v41 = vld [vmem:[%s8316_s2 + $0x108] sm:$0xff] }
  0xdc   :  { %v475_v39 = vmul.f32 %v459_v31, %v445_v11  ;;  %v556_v17 = vrot.slane %v445_v11, 2  ;;  %8457 = vst [vmem:[#allocation3_spill] sm:$0xff] %v5412_v43  ;;  %v5466_v31 = vld [vmem:[%s8316_s2 + $0x140] sm:$0xff]  ;;  %v5526_v19 = vld [vmem:[%s8316_s2 + $0x110] sm:$0xff]  ;;  %v5532_v36 = vld [vmem:[%s8316_s2 + $0x118] sm:$0xff] }
  0xdd   :  { %v476_v45 = vmul.f32 %v460_v0, %v446_v16  ;;  %v559_v46 = vrot.slane %v446_v16, 1  ;;  %8458 = vst [vmem:[#allocation4_spill] sm:$0xff] %v5418_v22  ;;  %v5538_v29 = vld [vmem:[%s8316_s2 + $0xe0] sm:$0xff]  ;;  %v5544_v7 = vld [vmem:[%s8316_s2 + $0xe8] sm:$0xff]  ;;  %v5550_v42 = vld [vmem:[%s8316_s2 + $0xf0] sm:$0xff] }
  0xde   :  { %483 = vst [vmem:[%s8319_s3 + $0x30] sm:$0x1] %v475_v39  ;;  %v558_v47 = vsel %vm557_vm7, %v556_v17, %v555_v32  ;;  %v5556_v57 = vld [vmem:[%s8316_s2 + $0xf8] sm:$0xff]  ;;  %v5562_v62 = vld [vmem:[%s8316_s2 + $0xc0] sm:$0xff]  ;;  %v5568_v9 = vld [vmem:[%s8316_s2 + $0xc8] sm:$0xff] }
  0xdf   :  { %484 = vst [vmem:[%s8319_s3 + $0x38] sm:$0x1] %v476_v45  ;;  %v561_v14 = vsel %vm560_vm8, %v559_v46, %v558_v47  ;;  %v5574_v56 = vld [vmem:[%s8316_s2 + $0xd0] sm:$0xff]  ;;  %v5580_v63 = vld [vmem:[%s8316_s2 + $0xd8] sm:$0xff]  ;;  %v5586_v0 = vld [vmem:[%s8316_s2 + $0xa0] sm:$0xff] }
  0xe0   :  { %579 = vmatmul.f32.vlgmr.msrb.gmra.mxu0 %v561_v14  ;;  %599 = vmatmul.f32.vlgmr.msrb.gmra.mxu1 %v561_v14  ;;  %8459 = vst [vmem:[#allocation5_spill] sm:$0xff] %v5424_v51  ;;  %v5592_v1 = vld [vmem:[%s8316_s2 + $0xa8] sm:$0xff]  ;;  %v5598_v37 = vld [vmem:[%s8316_s2 + $0xb0] sm:$0xff]  ;;  %v5604_v13 = vld [vmem:[%s8316_s2 + $0xb8] sm:$0xff] }
  0xe1   :  { %619 = vmatmul.f32.vlgmr.msrb.gmra.mxu2 %v561_v14  ;;  %639 = vmatmul.f32.vlgmr.msrb.gmra.mxu3 %v561_v14  ;;  %8461 = vst [vmem:[#allocation7_spill] sm:$0xff] %v5436_v54  ;;  %v5610_v10 = vld [vmem:[%s8316_s2 + $0x80] sm:$0xff]  ;;  %v5616_v11 = vld [vmem:[%s8316_s2 + $0x88] sm:$0xff]  ;;  %v5622_v38 = vld [vmem:[%s8316_s2 + $0x90] sm:$0xff] }
  0xe2   :  { %1469 = vmatpush.msrb.mxu0 %v5346_v48  ;;  %1489 = vmatpush.msrb.mxu1 %v5352_v40  ;;  %8462 = vst [vmem:[#allocation8_spill] sm:$0xff] %v5442_v55  ;;  %v5628_v16 = vld [vmem:[%s8316_s2 + $0x98] sm:$0xff]  ;;  %v5634_v32 = vld [vmem:[%s8316_s2 + $0x60] sm:$0xff]  ;;  %v5640_v39 = vld [vmem:[%s8316_s2 + $0x68] sm:$0xff] }
  0xe3   :  { %1509 = vmatpush.msrb.mxu2 %v5358_v50  ;;  %1529 = vmatpush.msrb.mxu3 %v5364_v15  ;;  %8463 = vst [vmem:[#allocation9_spill] sm:$0xff] %v5448_v2  ;;  %v5646_v17 = vld [vmem:[%s8316_s2 + $0x70] sm:$0xff]  ;;  %v5652_v45 = vld [vmem:[%s8316_s2 + $0x78] sm:$0xff]  ;;  %v5658_v46 = vld [vmem:[%s8316_s2 + $0x40] sm:$0xff] }
  0xe4   :  { %1470 = vmatpush.msrb.mxu0 %v5370_v49  ;;  %1490 = vmatpush.msrb.mxu1 %v5376_v23  ;;  %8465 = vst [vmem:[#allocation11_spill] sm:$0xff] %v5460_v3  ;;  %v5664_v47 = vld [vmem:[%s8316_s2 + $0x48] sm:$0xff]  ;;  %v5670_v14 = vld [vmem:[%s8316_s2 + $0x50] sm:$0xff] }
  0xe5   :  { %1510 = vmatpush.msrb.mxu2 %v5382_v33  ;;  %1530 = vmatpush.msrb.mxu3 %v5388_v26  ;;  %8466 = vst [vmem:[#allocation12_spill] sm:$0xff] %v5466_v31 }
  0xe6   :  { %1471 = vmatpush.msrb.mxu0 %v5394_v52  ;;  %1491 = vmatpush.msrb.mxu1 %v5400_v20  ;;  %8467 = vst [vmem:[#allocation13_spill] sm:$0xff] %v5472_v27 }
  0xe7   :  { %1511 = vmatpush.msrb.mxu2 %v5406_v21  ;;  %1531 = vmatpush.msrb.mxu3 %v5412_v43  ;;  %8468 = vst [vmem:[#allocation14_spill] sm:$0xff] %v5478_v24 }
  0xe8   :  { %1472 = vmatpush.msrb.mxu0 %v5418_v22  ;;  %1492 = vmatpush.msrb.mxu1 %v5424_v51  ;;  %8469 = vst [vmem:[#allocation15_spill] sm:$0xff] %v5484_v6 }
  0xe9   :  { %1512 = vmatpush.msrb.mxu2 %v5430_v30  ;;  %1532 = vmatpush.msrb.mxu3 %v5436_v54  ;;  %8470 = vst [vmem:[#allocation16_spill] sm:$0xff] %v5490_v53 }
  0xea   :  { %1473 = vmatpush.msrb.mxu0 %v5442_v55  ;;  %1493 = vmatpush.msrb.mxu1 %v5448_v2  ;;  %8471 = vst [vmem:[#allocation17_spill] sm:$0xff] %v5496_v58 }
  0xeb   :  { %1513 = vmatpush.msrb.mxu2 %v5454_v34  ;;  %1533 = vmatpush.msrb.mxu3 %v5460_v3  ;;  %8472 = vst [vmem:[#allocation18_spill] sm:$0xff] %v5502_v8 }
  0xec   :  { %1474 = vmatpush.msrb.mxu0 %v5466_v31  ;;  %1494 = vmatpush.msrb.mxu1 %v5472_v27  ;;  %8473 = vst [vmem:[#allocation19_spill] sm:$0xff] %v5508_v35 }
  0xed   :  { %1514 = vmatpush.msrb.mxu2 %v5478_v24  ;;  %1534 = vmatpush.msrb.mxu3 %v5484_v6  ;;  %8474 = vst [vmem:[#allocation20_spill] sm:$0xff] %v5514_v28 }
  0xee   :  { %1475 = vmatpush.msrb.mxu0 %v5490_v53  ;;  %1495 = vmatpush.msrb.mxu1 %v5496_v58  ;;  %8475 = vst [vmem:[#allocation21_spill] sm:$0xff] %v5520_v41 }
  0xef   :  { %1515 = vmatpush.msrb.mxu2 %v5502_v8  ;;  %1535 = vmatpush.msrb.mxu3 %v5508_v35  ;;  %8476 = vst [vmem:[#allocation22_spill] sm:$0xff] %v5526_v19 }
  0xf0   :  { %1476 = vmatpush.msrb.mxu0 %v5514_v28  ;;  %1496 = vmatpush.msrb.mxu1 %v5520_v41  ;;  %8477 = vst [vmem:[#allocation23_spill] sm:$0xff] %v5532_v36 }
  0xf1   :  { %1516 = vmatpush.msrb.mxu2 %v5526_v19  ;;  %1536 = vmatpush.msrb.mxu3 %v5532_v36  ;;  %8478 = vst [vmem:[#allocation24_spill] sm:$0xff] %v5538_v29 }
  0xf2   :  { %1477 = vmatpush.msrb.mxu0 %v5538_v29  ;;  %8479 = vst [vmem:[#allocation25_spill] sm:$0xff] %v5544_v7  ;;  %1497 = vmatpush.msrb.mxu1 %v5544_v7 }
  0xf3   :  { %8480 = vst [vmem:[#allocation26_spill] sm:$0xff] %v5550_v42  ;;  %1517 = vmatpush.msrb.mxu2 %v5550_v42  ;;  %1537 = vmatpush.msrb.mxu3 %v5556_v57 }
  0xf4   :  { %8481 = vst [vmem:[#allocation27_spill] sm:$0xff] %v5556_v57  ;;  %1478 = vmatpush.msrb.mxu0 %v5562_v62  ;;  %1498 = vmatpush.msrb.mxu1 %v5568_v9 }
  0xf5   :  { %8482 = vst [vmem:[#allocation28_spill] sm:$0xff] %v5562_v62  ;;  %1518 = vmatpush.msrb.mxu2 %v5574_v56  ;;  %1538 = vmatpush.msrb.mxu3 %v5580_v63 }
  0xf6   :  { %8483 = vst [vmem:[#allocation29_spill] sm:$0xff] %v5568_v9  ;;  %1479 = vmatpush.msrb.mxu0 %v5586_v0  ;;  %1499 = vmatpush.msrb.mxu1 %v5592_v1  ;;  %v5786_v9 = vld [vmem:[%s8318_s0 + $0x18] sm:$0x11] }
  0xf7   :  { %8484 = vst [vmem:[#allocation30_spill] sm:$0xff] %v5574_v56  ;;  %1519 = vmatpush.msrb.mxu2 %v5598_v37  ;;  %1539 = vmatpush.msrb.mxu3 %v5604_v13  ;;  %v5800_v56 = vld [vmem:[%s8318_s0 + $0x28] sm:$0x11] }
  0xf8   :  { %8485 = vst [vmem:[#allocation31_spill] sm:$0xff] %v5580_v63  ;;  %1480 = vmatpush.msrb.mxu0 %v5610_v10  ;;  %1500 = vmatpush.msrb.mxu1 %v5616_v11 }
  0xf9   :  { %8486 = vst [vmem:[#allocation32_spill] sm:$0xff] %v5586_v0  ;;  %1520 = vmatpush.msrb.mxu2 %v5622_v38  ;;  %1540 = vmatpush.msrb.mxu3 %v5628_v16 }
  0xfa   :  { %8487 = vst [vmem:[#allocation33_spill] sm:$0xff] %v5592_v1  ;;  %1481 = vmatpush.msrb.mxu0 %v5634_v32  ;;  %1501 = vmatpush.msrb.mxu1 %v5640_v39 }
  0xfb   :  { %8488 = vst [vmem:[#allocation34_spill] sm:$0xff] %v5598_v37  ;;  %1521 = vmatpush.msrb.mxu2 %v5646_v17  ;;  %1541 = vmatpush.msrb.mxu3 %v5652_v45 }
  0xfc   :  { %8489 = vst [vmem:[#allocation35_spill] sm:$0xff] %v5604_v13  ;;  %1482 = vmatpush.msrb.mxu0 %v5658_v46  ;;  %1502 = vmatpush.msrb.mxu1 %v5664_v47  ;;  %v5805_v13 = vld [vmem:[%s8318_s0 + $0x38] sm:$0x11] }
  0xfd   :  { %8490 = vst [vmem:[#allocation36_spill] sm:$0xff] %v5610_v10  ;;  %1522 = vmatpush.msrb.mxu2 %v5670_v14  ;;  %v5795_v10 = vld [vmem:[%s8318_s0 + $0x8] sm:$0x11] }
  0xfe   :  { %8491 = vst [vmem:[#allocation37_spill] sm:$0xff] %v5616_v11 }
  0xff   :  { %8492 = vst [vmem:[#allocation38_spill] sm:$0xff] %v5622_v38  ;;  %v5764_v38 = vld [vmem:[%s8318_s0 + $0x60] sm:$0x11] }
 0x100   :  { %8493 = vst [vmem:[#allocation39_spill] sm:$0xff] %v5628_v16  ;;  %v5759_v16 = vld [vmem:[%s8318_s0 + $0x50] sm:$0x11]  ;;  %v525_v57 = vunpack.c.l.bf16 %v5764_v38  ;;  %v526_v41 = vunpack.c.h.bf16 %v5764_v38 }
 0x101   :  { %8494 = vst [vmem:[#allocation40_spill] sm:$0xff] %v5634_v32  ;;  %v521_v62 = vunpack.c.l.bf16 %v5759_v16  ;;  %v522_v19 = vunpack.c.h.bf16 %v5759_v16 }
 0x102   :  { %8495 = vst [vmem:[#allocation41_spill] sm:$0xff] %v5640_v39  ;;  %v5753_v39 = vunpack.i.h.bf16 %v5273_v59  ;;  %v5772_v59 = vld [vmem:[%s8318_s0 + $0x70] sm:$0x11] }
 0x103   :  { %8496 = vst [vmem:[#allocation42_spill] sm:$0xff] %v5646_v17  ;;  %v5745_v17 = vld [vmem:[%s8318_s0 + $0x30] sm:$0x11]  ;;  %v529_v42 = vunpack.c.l.bf16 %v5772_v59 }
 0x104   :  { %8497 = vst [vmem:[#allocation43_spill] sm:$0xff] %v5652_v45  ;;  %v5676_v45 = vld [vmem:[%s8316_s2 + $0x58] sm:$0xff]  ;;  %v513_v0 = vunpack.c.l.bf16 %v5745_v17 }
 0x105   :  { %8498 = vst [vmem:[#allocation44_spill] sm:$0xff] %v5658_v46  ;;  %1542 = vmatpush.msrb.mxu3 %v5676_v45  ;;  %v5682_v46 = vld [vmem:[%s8316_s2 + $0x20] sm:$0xff] }
 0x106   :  { %8499 = vst [vmem:[#allocation45_spill] sm:$0xff] %v5664_v47  ;;  %1483 = vmatpush.msrb.mxu0 %v5682_v46  ;;  %v5688_v47 = vld [vmem:[%s8316_s2 + $0x28] sm:$0xff] }
 0x107   :  { %8500 = vst [vmem:[#allocation46_spill] sm:$0xff] %v5670_v14  ;;  %1503 = vmatpush.msrb.mxu1 %v5688_v47  ;;  %v5694_v14 = vld [vmem:[%s8316_s2 + $0x30] sm:$0xff] }
 0x108   :  { %8501 = vst [vmem:[#allocation47_spill] sm:$0xff] %v5676_v45  ;;  %1523 = vmatpush.msrb.mxu2 %v5694_v14  ;;  %v5700_v45 = vld [vmem:[%s8316_s2 + $0x38] sm:$0xff] }
 0x109   :  { %8502 = vst [vmem:[#allocation48_spill] sm:$0xff] %v5682_v46  ;;  %1543 = vmatpush.msrb.mxu3 %v5700_v45  ;;  %v5706_v46 = vld [vmem:[%s8316_s2] sm:$0xff] }
 0x10a   :  { %8503 = vst [vmem:[#allocation49_spill] sm:$0xff] %v5688_v47  ;;  %1484 = vmatpush.msrb.mxu0 %v5706_v46  ;;  %v5712_v47 = vld [vmem:[%s8316_s2 + $0x8] sm:$0xff] }
 0x10b   :  { %8504 = vst [vmem:[#allocation50_spill] sm:$0xff] %v5694_v14  ;;  %1504 = vmatpush.msrb.mxu1 %v5712_v47  ;;  %v5718_v14 = vld [vmem:[%s8316_s2 + $0x10] sm:$0xff] }
 0x10c   :  { %8505 = vst [vmem:[#allocation51_spill] sm:$0xff] %v5700_v45  ;;  %1524 = vmatpush.msrb.mxu2 %v5718_v14  ;;  %v5724_v45 = vld [vmem:[%s8316_s2 + $0x18] sm:$0xff] }
 0x10d   :  { %8506 = vst [vmem:[#allocation52_spill] sm:$0xff] %v5706_v46  ;;  %1544 = vmatpush.msrb.mxu3 %v5724_v45  ;;  %v5730_v46 = vld [vmem:[%s8318_s0] sm:$0x11] }
 0x10e   :  { %8507 = vst [vmem:[#allocation53_spill] sm:$0xff] %v5712_v47  ;;  %v5735_v47 = vld [vmem:[%s8318_s0 + $0x10] sm:$0x11]  ;;  %v501_v32 = vunpack.c.l.bf16 %v5730_v46  ;;  %v502_v11 = vunpack.c.h.bf16 %v5730_v46  ;;  %v504_v46 = vunpack.c.h.bf16 %v5795_v10 }
 0x10f   :  { %8508 = vst [vmem:[#allocation54_spill] sm:$0xff] %v5718_v14  ;;  %v5740_v14 = vld [vmem:[%s8318_s0 + $0x20] sm:$0x11]  ;;  %v505_v37 = vunpack.c.l.bf16 %v5735_v47  ;;  %v506_v7 = vunpack.c.h.bf16 %v5735_v47  ;;  %v514_v47 = vunpack.c.h.bf16 %v5745_v17 }
 0x110   :  { %8509 = vst [vmem:[#allocation55_spill] sm:$0xff] %v5724_v45  ;;  %v5750_v45 = vld [vmem:[%s8318_s0 + $0x40] sm:$0x11]  ;;  %v509_v1 = vunpack.c.l.bf16 %v5740_v14  ;;  %v510_v29 = vunpack.c.h.bf16 %v5740_v14 }
 0x111   :  { %v517_v63 = vunpack.c.l.bf16 %v5750_v45  ;;  %v518_v36 = vunpack.c.h.bf16 %v5750_v45 }
 0x15d   :  { %v580_v8 = vpop.f32.mrf.mxu0  ;;  %v600_v53 = vpop.f32.mrf.mxu1 }
 0x15e   :  { %v647_v17 = vrot.slane %v580_v8, 7  ;;  %v651_v6 = vrot.slane %v580_v8, 1  ;;  %v655_v45 = vrot.slane %v580_v8, 2  ;;  %v659_v24 = vrot.slane %v580_v8, 3 }
 0x15f   :  { %v663_v16 = vrot.slane %v580_v8, 4  ;;  %v667_v27 = vrot.slane %v580_v8, 5  ;;  %v671_v38 = vrot.slane %v580_v8, 6  ;;  %v711_v31 = vadd.f32 %v580_v8, %v505_v37 }
 0x160   :  { %v707_v28 = vadd.f32 %v647_v17, %v501_v32  ;;  %v715_v3 = vadd.f32 %v651_v6, %v509_v1  ;;  %v719_v35 = vadd.f32 %v655_v45, %v513_v0  ;;  %v723_v34 = vadd.f32 %v659_v24, %v517_v63 }
 0x161   :  { %v727_v2 = vadd.f32 %v663_v16, %v521_v62  ;;  %v731_v58 = vadd.f32 %v667_v27, %v525_v57  ;;  %v742_v55 = vmul.f32 0.5, %v711_v31  ;;  %v735_v54 = vadd.f32 %v671_v38, %v529_v42  ;;  %v5823_v31 = vld [vmem:[%s8318_s0 + $0x48] sm:$0x11]  ;;  %v5829_v57 = vld [vmem:[%s8318_s0 + $0x58] sm:$0x11] }
 0x162   :  { %v739_v14 = vmul.f32 0.5, %v707_v28  ;;  %v745_v30 = vmul.f32 0.5, %v715_v3  ;;  %v748_v51 = vmul.f32 0.5, %v719_v35  ;;  %v751_v22 = vmul.f32 0.5, %v723_v34 }
 0x163   :  { %v754_v43 = vmul.f32 0.5, %v727_v2  ;;  %v757_v21 = vmul.f32 0.5, %v731_v58  ;;  %3779 = vtanh.f32 %v742_v55  ;;  %v648_v8 = vrot.slane %v600_v53, 7 }
 0x164   :  { %3781 = vtanh.f32 %v739_v14  ;;  %v652_v37 = vrot.slane %v600_v53, 1  ;;  %v656_v6 = vrot.slane %v600_v53, 2  ;;  %v660_v24 = vrot.slane %v600_v53, 3 }
 0x165   :  { %3783 = vtanh.f32 %v745_v30  ;;  %v664_v62 = vrot.slane %v600_v53, 4  ;;  %v668_v27 = vrot.slane %v600_v53, 5  ;;  %v760_v28 = vmul.f32 0.5, %v735_v54 }
 0x166   :  { %3785 = vtanh.f32 %v748_v51  ;;  %v708_v3 = vadd.f32 %v648_v8, %v502_v11  ;;  %v712_v34 = vadd.f32 %v600_v53, %v506_v7  ;;  %v672_v2 = vrot.slane %v600_v53, 6  ;;  %v5831_v53 = vpop.f32.mrf.mxu2 }
 0x167   :  { %3787 = vtanh.f32 %v751_v22  ;;  %v716_v55 = vadd.f32 %v652_v37, %v510_v29  ;;  %v720_v58 = vadd.f32 %v656_v6, %v514_v47  ;;  %v724_v35 = vadd.f32 %v660_v24, %v518_v36 }
 0x168   :  { %3789 = vtanh.f32 %v754_v43  ;;  %v728_v42 = vadd.f32 %v664_v62, %v522_v19  ;;  %v519_v30 = vunpack.c.l.bf16 %v5823_v31  ;;  %v732_v54 = vadd.f32 %v668_v27, %v526_v41 }
 0x169   :  { %v3780_v63 = vpop.eup %3779  ;;  %3791 = vtanh.f32 %v757_v21  ;;  %v740_v51 = vmul.f32 0.5, %v708_v3  ;;  %v743_v0 = vmul.f32 0.5, %v712_v34  ;;  %v746_v22 = vmul.f32 0.5, %v716_v55 }
 0x16a   :  { %v3782_v7 = vpop.eup %3781  ;;  %v512_v43 = vunpack.c.h.bf16 %v5800_v56  ;;  %v516_v19 = vunpack.c.h.bf16 %v5805_v13  ;;  %3793 = vtanh.f32 %v760_v28  ;;  %v8510_v1 = vunpack.c.h.bf16 %v5772_v59 }
 0x16b   :  { %v3784_v29 = vpop.eup %3783  ;;  %v749_v32 = vmul.f32 0.5, %v720_v58  ;;  %v787_v47 = vmul.f32 0.5, %v3782_v7  ;;  %v790_v14 = vmul.f32 0.5, %v3780_v63  ;;  %v752_v17 = vmul.f32 0.5, %v724_v35 }
 0x16c   :  { %v736_v11 = vadd.f32 %v672_v2, %v8510_v1  ;;  %v3786_v41 = vpop.eup %3785  ;;  %3795 = vtanh.f32 %v740_v51  ;;  %v755_v16 = vmul.f32 0.5, %v728_v42  ;;  %v758_v38 = vmul.f32 0.5, %v732_v54 }
 0x16d   :  { %v3788_v45 = vpop.eup %3787  ;;  %3797 = vtanh.f32 %v743_v0  ;;  %v649_v8 = vrot.slane %v5831_v53, 7  ;;  %v793_v6 = vmul.f32 0.5, %v3784_v29  ;;  %v796_v24 = vmul.f32 0.5, %v3786_v41 }
 0x16e   :  { %v3790_v37 = vpop.eup %3789  ;;  %3799 = vtanh.f32 %v746_v22  ;;  %v653_v59 = vrot.slane %v5831_v53, 1  ;;  %v799_v27 = vmul.f32 0.5, %v3788_v45  ;;  %v761_v28 = vmul.f32 0.5, %v736_v11 }
 0x16f   :  { %v3792_v62 = vpop.eup %3791  ;;  %3801 = vtanh.f32 %v749_v32  ;;  %v657_v3 = vrot.slane %v5831_v53, 2  ;;  %v802_v34 = vmul.f32 0.5, %v3790_v37  ;;  %v5842_v2 = vadd.f32 0.5, %v787_v47 }
 0x170   :  { %v5844_v55 = vadd.f32 0.5, %v790_v14  ;;  %3803 = vtanh.f32 %v752_v17  ;;  %v5846_v58 = vpop.eup %3793  ;;  %v805_v35 = vmul.f32 0.5, %v3792_v62  ;;  %v8511_v42 = vunpack.c.l.bf16 %v5795_v10 }
 0x171   :  { %3805 = vtanh.f32 %v755_v16  ;;  %v8512_v54 = vunpack.c.l.bf16 %v5786_v9  ;;  %v5853_v7 = vadd.f32 0.5, %v793_v6  ;;  %v5855_v22 = vadd.f32 0.5, %v796_v24 }
 0x172   :  { %v709_v63 = vadd.f32 %v649_v8, %v8511_v42  ;;  %v3796_v0 = vpop.eup %3795  ;;  %3807 = vtanh.f32 %v758_v38  ;;  %v8513_v29 = vunpack.c.l.bf16 %v5800_v56  ;;  %v5859_v32 = vadd.f32 0.5, %v799_v27  ;;  %v5869_v27 = vpop.f32.mrf.mxu3 }
 0x173   :  { %v713_v51 = vadd.f32 %v5831_v53, %v8512_v54  ;;  %v3798_v11 = vpop.eup %3797  ;;  %v788_v41 = vmul.f32 0.5, %v3796_v0  ;;  %v661_v47 = vrot.slane %v5831_v53, 3  ;;  %v8514_v14 = vunpack.c.l.bf16 %v5805_v13 }
 0x174   :  { %v717_v1 = vadd.f32 %v653_v59, %v8513_v29  ;;  %v3800_v45 = vpop.eup %3799  ;;  %v5864_v16 = vadd.f32 0.5, %v802_v34  ;;  %v791_v8 = vmul.f32 0.5, %v3798_v11  ;;  %v741_v6 = vmul.f32 0.5, %v709_v63 }
 0x175   :  { %v721_v17 = vadd.f32 %v657_v3, %v8514_v14  ;;  %v3802_v38 = vpop.eup %3801  ;;  %v5867_v24 = vadd.f32 0.5, %v805_v35  ;;  %3809 = vtanh.f32 %v761_v28  ;;  %v794_v59 = vmul.f32 0.5, %v3800_v45 }
 0x176   :  { %v744_v62 = vmul.f32 0.5, %v713_v51  ;;  %v3804_v42 = vpop.eup %3803  ;;  %v797_v54 = vmul.f32 0.5, %v3802_v38  ;;  %v812_v0 = vadd.f32 0.5, %v788_v41  ;;  %v815_v29 = vadd.f32 0.5, %v791_v8 }
 0x177   :  { %v747_v3 = vmul.f32 0.5, %v717_v1  ;;  %v3806_v14 = vpop.eup %3805  ;;  %v800_v34 = vmul.f32 0.5, %v3804_v42  ;;  %v818_v21 = vadd.f32 0.5, %v794_v59  ;;  %v725_v11 = vadd.f32 %v661_v47, %v519_v30 }
 0x178   :  { %v750_v63 = vmul.f32 0.5, %v721_v17  ;;  %v3808_v37 = vpop.eup %3807  ;;  %v803_v35 = vmul.f32 0.5, %v3806_v14  ;;  %3811 = vtanh.f32 %v741_v6  ;;  %v650_v28 = vrot.slane %v5869_v27, 7 }
 0x179   :  { %v654_v51 = vrot.slane %v5869_v27, 1  ;;  %v806_v45 = vmul.f32 0.5, %v3808_v37  ;;  %v821_v36 = vadd.f32 0.5, %v797_v54  ;;  %3813 = vtanh.f32 %v744_v62 }
 0x17a   :  { %v658_v41 = vrot.slane %v5869_v27, 2  ;;  %v8515_v1 = vrot.slane %v5266_v25, 7  ;;  %v8516_v38 = vrot.slane %v5276_v61, 7  ;;  %3815 = vtanh.f32 %v747_v3  ;;  %v498_v25 = vld [vmem:[%s8318_s0 + $0x68] sm:$0x11] }
 0x17b   :  { %v662_v47 = vrot.slane %v5869_v27, 3  ;;  %v3810_v17 = vpop.eup %3809  ;;  %v824_v6 = vadd.f32 0.5, %v800_v34  ;;  %v8517_v59 = vrot.slane %v5283_v5, 7  ;;  %3817 = vtanh.f32 %v750_v63 }
 0x17c   :  { %v5878_v8 = vmul.f32 %v8515_v1, %v812_v0  ;;  %v5882_v30 = vmul.f32 %v8516_v38, %v815_v29  ;;  %v666_v62 = vrot.slane %v5869_v27, 4  ;;  %v827_v42 = vadd.f32 0.5, %v803_v35 }
 0x17d   :  { %v5887_v37 = vmul.f32 %v8517_v59, %v818_v21  ;;  %v710_v61 = vadd.f32 %v650_v28, %v504_v46  ;;  %v8518_v54 = vunpack.c.h.bf16 %v5786_v9  ;;  %v718_v5 = vadd.f32 %v654_v51, %v512_v43  ;;  %v500_v21 = vld [vmem:[%s8318_s0 + $0x78] sm:$0x11] }
 0x17e   :  { %v5903_v29 = vadd.f32 0.5, %v806_v45  ;;  %v8519_v3 = vrot.slane %v5285_v4, 7  ;;  %v670_v10 = vrot.slane %v5869_v27, 5  ;;  %v722_v9 = vadd.f32 %v658_v41, %v516_v19  ;;  %v3812_v46 = vpop.eup %3811 }
 0x17f   :  { %v714_v0 = vadd.f32 %v5869_v27, %v8518_v54  ;;  %v8520_v34 = vunpack.c.h.bf16 %v5823_v31  ;;  %3819 = vtanh.f32 %v710_v61  ;;  %v523_v43 = vunpack.c.l.bf16 %v5829_v57  ;;  %v3814_v35 = vpop.eup %3813 }
 0x180   :  { %v5907_v14 = vmul.f32 %v8519_v3, %v821_v36  ;;  %v527_v63 = vunpack.c.l.bf16 %v498_v25  ;;  %v674_v28 = vrot.slane %v5869_v27, 6  ;;  %v8521_v4 = vunpack.c.h.bf16 %v5829_v57  ;;  %v3816_v45 = vpop.eup %3815 }
 0x181   :  { %v726_v56 = vadd.f32 %v662_v47, %v8520_v34  ;;  %3821 = vtanh.f32 %v714_v0  ;;  %v531_v51 = vunpack.c.l.bf16 %v500_v21  ;;  %v528_v13 = vunpack.c.h.bf16 %v498_v25  ;;  %v3818_v41 = vpop.eup %3817 }
 0x182   :  { %v730_v36 = vadd.f32 %v666_v62, %v8521_v4  ;;  %3823 = vtanh.f32 %v718_v5  ;;  %v669_v19 = vrot.slane %v5831_v53, 5  ;;  %v673_v31 = vrot.slane %v5831_v53, 6 }
 0x183   :  { %3825 = vtanh.f32 %v722_v9  ;;  %v532_v1 = vunpack.c.h.bf16 %v500_v21  ;;  %v8522_v38 = vrot.slane %v5831_v53, 4  ;;  %v753_v59 = vmul.f32 0.5, %v725_v11 }
 0x184   :  { %v789_v27 = vmul.f32 0.5, %v3812_v46  ;;  %3827 = vtanh.f32 %v726_v56  ;;  %v733_v57 = vadd.f32 %v669_v19, %v527_v63  ;;  %v737_v62 = vadd.f32 %v673_v31, %v531_v51 }
 0x185   :  { %v729_v47 = vadd.f32 %v8522_v38, %v523_v43  ;;  %v8523_v61 = vrot.slane %v5287_v12, 7  ;;  %v792_v0 = vmul.f32 0.5, %v3814_v35  ;;  %3829 = vtanh.f32 %v730_v36  ;;  %v3820_v5 = vpop.eup %3819 }
 0x186   :  { %v734_v3 = vadd.f32 %v670_v10, %v528_v13  ;;  %v759_v34 = vmul.f32 0.5, %v733_v57  ;;  %v762_v4 = vmul.f32 0.5, %v737_v62  ;;  %3831 = vtanh.f32 %v753_v59 }
 0x187   :  { %v871_v54 = vmul.f32 %v8523_v61, %v824_v6  ;;  %v756_v25 = vmul.f32 0.5, %v729_v47  ;;  %v3822_v21 = vpop.eup %3821  ;;  %v875_v53 = vmul.f32 %v3820_v5, %v5842_v2  ;;  %v738_v9 = vadd.f32 %v674_v28, %v532_v1 }
 0x188   :  { %v809_v11 = vmul.f32 0.5, %v3810_v17  ;;  %v3824_v46 = vpop.eup %3823  ;;  %v813_v56 = vadd.f32 0.5, %v789_v27  ;;  %v876_v43 = vmul.f32 %v3822_v21, %v5844_v55  ;;  %v795_v12 = vmul.f32 0.5, %v3816_v45 }
 0x189   :  { %3833 = vtanh.f32 %v756_v25  ;;  %v3826_v6 = vpop.eup %3825  ;;  %v877_v63 = vmul.f32 %v3824_v46, %v5853_v7  ;;  %v5928_v10 = vadd.f32 %v875_v53, %v5878_v8  ;;  %v808_v35 = vmul.f32 0.5, %v5846_v58 }
 0x18a   :  { %3835 = vtanh.f32 %v759_v34  ;;  %v3828_v36 = vpop.eup %3827  ;;  %v878_v2 = vmul.f32 %v3826_v6, %v5855_v22  ;;  %v5933_v17 = vadd.f32 %v876_v43, %v5882_v30  ;;  %v8524_v55 = vrot.slane %v5290_v18, 7 }
 0x18b   :  { %3837 = vtanh.f32 %v762_v4  ;;  %v3830_v51 = vpop.eup %3829  ;;  %v798_v45 = vmul.f32 0.5, %v3818_v41  ;;  %v833_v13 = vadd.f32 0.5, %v809_v11  ;;  %v879_v7 = vmul.f32 %v3828_v36, %v5859_v32 }
 0x18c   :  { %3839 = vtanh.f32 %v734_v3  ;;  %v872_v28 = vmul.f32 %v8524_v55, %v827_v42  ;;  %v3832_v8 = vpop.eup %3831  ;;  %v880_v19 = vmul.f32 %v3830_v51, %v5864_v16  ;;  %v5940_v58 = vadd.f32 %v877_v63, %v5887_v37  ;;  %v4403_v63 = vld [vmem:[%s8317_s1] sm:$0xff] }
 0x18d   :  { %3841 = vtanh.f32 %v738_v9  ;;  %v5943_v22 = vadd.f32 %v878_v2, %v5907_v14  ;;  %v816_v18 = vadd.f32 0.5, %v792_v0  ;;  %v801_v42 = vmul.f32 0.5, %v3832_v8 }
 0x18e   :  { %3843 = vtanh.f32 %v5928_v10  ;;  %v5946_v31 = vadd.f32 %v879_v7, %v871_v54  ;;  %v832_v1 = vadd.f32 0.5, %v808_v35  ;;  %v5949_v38 = vadd.f32 %v880_v19, %v872_v28 }
 0x18f   :  { %v3834_v30 = vpop.eup %3833  ;;  %3845 = vtanh.f32 %v5933_v17  ;;  %v819_v14 = vadd.f32 0.5, %v795_v12  ;;  %v8525_v47 = vrot.slane %v5301_v44, 7  ;;  %v822_v57 = vadd.f32 0.5, %v798_v45 }
 0x190   :  { %v3836_v41 = vpop.eup %3835  ;;  %v804_v32 = vmul.f32 0.5, %v3834_v30  ;;  %3847 = vtanh.f32 %v5940_v58  ;;  %v8526_v62 = vrot.slane %v5304_v60, 7  ;;  %v914_v54 = vrot.slane %v5753_v39, 7 }
 0x191   :  { %v3838_v16 = vpop.eup %3837  ;;  %v807_v37 = vmul.f32 0.5, %v3836_v41  ;;  %v873_v59 = vmul.f32 %v8525_v47, %v5903_v29  ;;  %3849 = vtanh.f32 %v5943_v22  ;;  %v825_v25 = vadd.f32 0.5, %v801_v42 }
 0x192   :  { %v3840_v27 = vpop.eup %3839  ;;  %v874_v61 = vmul.f32 %v8526_v62, %v833_v13  ;;  %3851 = vtanh.f32 %v5946_v31  ;;  %v915_v44 = vrot.slane %v5753_v39, 1  ;;  %v810_v3 = vmul.f32 0.5, %v3838_v16 }
 0x193   :  { %v3842_v0 = vpop.eup %3841  ;;  %v881_v5 = vmul.f32 %v3840_v27, %v5867_v24  ;;  %3853 = vtanh.f32 %v5949_v38  ;;  %v828_v34 = vadd.f32 0.5, %v804_v32  ;;  %v916_v21 = vrot.slane %v5753_v39, 2 }
 0x194   :  { %v3844_v29 = vpop.eup %3843  ;;  %v882_v4 = vmul.f32 %v3842_v0, %v832_v1  ;;  %v831_v53 = vadd.f32 0.5, %v807_v37  ;;  %v917_v46 = vrot.slane %v5753_v39, 3  ;;  %v918_v6 = vrot.slane %v5753_v39, 4 }
 0x195   :  { %v3846_v60 = vpop.eup %3845  ;;  %v5964_v9 = vadd.f32 %v881_v5, %v873_v59  ;;  %v899_v11 = vmul.f32 %v3844_v29, %v813_v56  ;;  %vm1360_vm9 = vcmp.gt.s32.totalorder %v4403_v63, 2  ;;  %vm1813_vm10 = vcmp.gt.s32.totalorder %v4403_v63, 3  ;;  %v8543_v63 = vld [vmem:[#allocation17_spill] sm:$0xff] }
 0x196   :  { %v3848_v43 = vpop.eup %3847  ;;  %v5967_v12 = vadd.f32 %v882_v4, %v874_v61  ;;  %v900_v24 = vmul.f32 %v3846_v60, %v816_v18  ;;  %v919_v18 = vrot.slane %v5753_v39, 5  ;;  %v8527_v37 = vmov 0.0  }
 0x197   :  { %v3850_v35 = vpop.eup %3849  ;;  %3855 = vtanh.f32 %v5964_v9  ;;  %v901_v36 = vmul.f32 %v3848_v43, %v819_v14  ;;  %v929_v2 = vmul.f32 %v914_v54, %v899_v11  ;;  %v1001_v55 = vrot.slane %v899_v11, 1  ;;  %v8528_v11 = vld [vmem:[#allocation2_spill] sm:$0xff] }
 0x198   :  { %v3852_v56 = vpop.eup %3851  ;;  %3857 = vtanh.f32 %v5967_v12  ;;  %v902_v28 = vmul.f32 %v3850_v35, %v822_v57  ;;  %v930_v51 = vmul.f32 %v5753_v39, %v900_v24  ;;  %v3669_v14 = vsel %vm1360_vm9, 1.0, %v8527_v37  ;;  %v8540_v43 = vld [vmem:[#allocation14_spill] sm:$0xff] }
 0x199   :  { %v3854_v45 = vpop.eup %3853  ;;  %v903_v13 = vmul.f32 %v3852_v56, %v825_v25  ;;  %v931_v7 = vmul.f32 %v915_v44, %v901_v36  ;;  %937 = vst [vmem:[%s8319_s3] sm:$0x2] %v929_v2  ;;  %v1002_v8 = vsel %vm542_vm2, %v900_v24, %v1001_v55  ;;  %v1003_v19 = vrot.slane %v901_v36, 7  ;;  %v8541_v24 = vld [vmem:[#allocation15_spill] sm:$0xff]  ;;  %v8544_v35 = vld [vmem:[#allocation18_spill] sm:$0xff]  ;;  %v8546_v2 = vld [vmem:[#allocation20_spill] sm:$0xff] }
 0x19a   :  { %v904_v30 = vmul.f32 %v3854_v45, %v828_v34  ;;  %v932_v42 = vmul.f32 %v916_v21, %v902_v28  ;;  %938 = vst [vmem:[%s8319_s3 + $0x8] sm:$0x2] %v930_v51  ;;  %v1005_v41 = vrot.slane %v902_v28, 6  ;;  %v3670_v57 = vsel %vm1813_vm10, 1.0, %v8527_v37  ;;  %v8545_v36 = vld [vmem:[#allocation19_spill] sm:$0xff]  ;;  %v8547_v55 = vld [vmem:[#allocation21_spill] sm:$0xff] }
 0x19b   :  { %v933_v32 = vmul.f32 %v917_v46, %v903_v13  ;;  %939 = vst [vmem:[%s8319_s3 + $0x10] sm:$0x2] %v931_v7  ;;  %v1004_v1 = vsel %vm545_vm3, %v1003_v19, %v1002_v8  ;;  %v1007_v16 = vrot.slane %v903_v13, 5  ;;  %v834_v61 = vadd.f32 0.5, %v810_v3  ;;  %v8539_v46 = vld [vmem:[#allocation13_spill] sm:$0xff]  ;;  %v8548_v56 = vld [vmem:[#allocation22_spill] sm:$0xff] }
 0x19c   :  { %v934_v47 = vmul.f32 %v918_v6, %v904_v30  ;;  %940 = vst [vmem:[%s8319_s3 + $0x18] sm:$0x2] %v932_v42  ;;  %v1006_v59 = vsel %vm548_vm4, %v1005_v41, %v1004_v1  ;;  %v1009_v27 = vrot.slane %v904_v30, 4  ;;  %v920_v54 = vrot.slane %v5753_v39, 6  ;;  %v8542_v6 = vld [vmem:[#allocation16_spill] sm:$0xff]  ;;  %v8549_v28 = vld [vmem:[#allocation23_spill] sm:$0xff] }
 0x19d   :  { %v3856_v62 = vpop.eup %3855  ;;  %941 = vst [vmem:[%s8319_s3 + $0x20] sm:$0x2] %v933_v32  ;;  %v1008_v0 = vsel %vm551_vm5, %v1007_v16, %v1006_v59  ;;  %v3683_v25 = vpack.i.bf16 %v3670_v57, %v3669_v14  ;;  %v8550_v51 = vld [vmem:[#allocation24_spill] sm:$0xff]  ;;  %v8551_v45 = vld [vmem:[#allocation25_spill] sm:$0xff]  ;;  %v8552_v13 = vld [vmem:[#allocation26_spill] sm:$0xff] }
 0x19e   :  { %v3858_v5 = vpop.eup %3857  ;;  %v905_v44 = vmul.f32 %v3856_v62, %v831_v53  ;;  %942 = vst [vmem:[%s8319_s3 + $0x28] sm:$0x2] %v934_v47  ;;  %v1010_v29 = vsel %vm554_vm6, %v1009_v27, %v1008_v0  ;;  %v8553_v7 = vld [vmem:[#allocation27_spill] sm:$0xff]  ;;  %v8554_v8 = vld [vmem:[#allocation28_spill] sm:$0xff]  ;;  %v8555_v19 = vld [vmem:[#allocation29_spill] sm:$0xff] }
 0x19f   :  { %v906_v34 = vmul.f32 %v3858_v5, %v834_v61  ;;  %3684 = vperm.xlu0 %3677, %v3683_v25   ;;  %v8556_v30 = vld [vmem:[#allocation30_spill] sm:$0xff]  ;;  %v8558_v42 = vld [vmem:[#allocation32_spill] sm:$0xff]  ;;  %v8559_v41 = vld [vmem:[#allocation33_spill] sm:$0xff] }
 0x1a0   :  { %v935_v3 = vmul.f32 %v919_v18, %v905_v44  ;;  %v1011_v4 = vrot.slane %v905_v44, 3  ;;  %v8557_v18 = vld [vmem:[#allocation31_spill] sm:$0xff]  ;;  %v8560_v32 = vld [vmem:[#allocation34_spill] sm:$0xff]  ;;  %v8562_v16 = vld [vmem:[#allocation36_spill] sm:$0xff] }
 0x1a1   :  { %v936_v39 = vmul.f32 %v920_v54, %v906_v34  ;;  %v1013_v21 = vrot.slane %v906_v34, 2  ;;  %v8561_v1 = vld [vmem:[#allocation35_spill] sm:$0xff]  ;;  %v8563_v14 = vld [vmem:[#allocation37_spill] sm:$0xff]  ;;  %v8564_v47 = vld [vmem:[#allocation38_spill] sm:$0xff] }
 0x1a2   :  { %943 = vst [vmem:[%s8319_s3 + $0x30] sm:$0x2] %v935_v3  ;;  %v1012_v60 = vsel %vm557_vm7, %v1011_v4, %v1010_v29  ;;  %v8565_v59 = vld [vmem:[#allocation39_spill] sm:$0xff]  ;;  %v8566_v27 = vld [vmem:[#allocation40_spill] sm:$0xff]  ;;  %v8567_v57 = vld [vmem:[#allocation41_spill] sm:$0xff] }
 0x1a3   :  { %944 = vst [vmem:[%s8319_s3 + $0x38] sm:$0x2] %v936_v39  ;;  %v1014_v53 = vsel %vm560_vm8, %v1013_v21, %v1012_v60  ;;  %v8568_v62 = vld [vmem:[#allocation42_spill] sm:$0xff]  ;;  %v8569_v61 = vld [vmem:[#allocation43_spill] sm:$0xff]  ;;  %v8570_v54 = vld [vmem:[#allocation44_spill] sm:$0xff] }
 0x1a4   :  { %1032 = vmatmul.f32.vlgmr.msra.gmra.mxu0 %v1014_v53  ;;  %1052 = vmatmul.f32.vlgmr.msra.gmra.mxu1 %v1014_v53  ;;  %v8571_v0 = vld [vmem:[#allocation45_spill] sm:$0xff]  ;;  %v8572_v25 = vld [vmem:[#allocation46_spill] sm:$0xff]  ;;  %v8573_v5 = vld [vmem:[#allocation47_spill] sm:$0xff] }
 0x1a5   :  { %1072 = vmatmul.f32.vlgmr.msra.gmra.mxu2 %v1014_v53  ;;  %1092 = vmatmul.f32.vlgmr.msra.gmra.mxu3 %v1014_v53  ;;  %v8574_v44 = vld [vmem:[#allocation48_spill] sm:$0xff]  ;;  %v8575_v29 = vld [vmem:[#allocation49_spill] sm:$0xff]  ;;  %v8576_v34 = vld [vmem:[#allocation50_spill] sm:$0xff] }
 0x1a6   :  { %1922 = vmatpush.msra.mxu0 %v5346_v48  ;;  %1942 = vmatpush.msra.mxu1 %v5352_v40  ;;  %v8529_v48 = vld [vmem:[#allocation3_spill] sm:$0xff]  ;;  %v8530_v40 = vld [vmem:[#allocation4_spill] sm:$0xff]  ;;  %v8579_v39 = vld [vmem:[#allocation53_spill] sm:$0xff] }
 0x1a7   :  { %1962 = vmatpush.msra.mxu2 %v5358_v50  ;;  %1982 = vmatpush.msra.mxu3 %v5364_v15  ;;  %v8531_v50 = vld [vmem:[#allocation5_spill] sm:$0xff]  ;;  %v8532_v15 = vld [vmem:[#allocation6_spill] sm:$0xff]  ;;  %v8577_v3 = vld [vmem:[#allocation51_spill] sm:$0xff] }
 0x1a8   :  { %1923 = vmatpush.msra.mxu0 %v5370_v49  ;;  %1943 = vmatpush.msra.mxu1 %v5376_v23  ;;  %v8533_v49 = vld [vmem:[#allocation7_spill] sm:$0xff]  ;;  %v8534_v23 = vld [vmem:[#allocation8_spill] sm:$0xff]  ;;  %v8580_v21 = vld [vmem:[#allocation54_spill] sm:$0xff] }
 0x1a9   :  { %1963 = vmatpush.msra.mxu2 %v5382_v33  ;;  %1983 = vmatpush.msra.mxu3 %v5388_v26  ;;  %v8535_v33 = vld [vmem:[#allocation9_spill] sm:$0xff]  ;;  %v8536_v26 = vld [vmem:[#allocation10_spill] sm:$0xff]  ;;  %v8578_v4 = vld [vmem:[#allocation52_spill] sm:$0xff] }
 0x1aa   :  { %1924 = vmatpush.msra.mxu0 %v5394_v52  ;;  %1944 = vmatpush.msra.mxu1 %v5400_v20  ;;  %v8537_v52 = vld [vmem:[#allocation11_spill] sm:$0xff]  ;;  %v8538_v20 = vld [vmem:[#allocation12_spill] sm:$0xff]  ;;  %v6080_v53 = vld [vmem:[%s8318_s0] sm:$0x22] }
 0x1ab   :  { %1964 = vmatpush.msra.mxu2 %v8528_v11  ;;  %1984 = vmatpush.msra.mxu3 %v8529_v48  ;;  %v8581_v60 = vld [vmem:[#allocation55_spill] sm:$0xff]  ;;  %v6085_v11 = vld [vmem:[%s8318_s0 + $0x10] sm:$0x22]  ;;  %v6090_v48 = vld [vmem:[%s8318_s0 + $0x20] sm:$0x22] }
 0x1ac   :  { %1925 = vmatpush.msra.mxu0 %v8530_v40  ;;  %1945 = vmatpush.msra.mxu1 %v8531_v50  ;;  %v6095_v40 = vld [vmem:[%s8318_s0 + $0x30] sm:$0x22]  ;;  %v6100_v50 = vld [vmem:[%s8318_s0 + $0x40] sm:$0x22] }
 0x1ad   :  { %1965 = vmatpush.msra.mxu2 %v8532_v15  ;;  %1985 = vmatpush.msra.mxu3 %v8533_v49  ;;  %v6105_v15 = vld [vmem:[%s8318_s0 + $0x50] sm:$0x22]  ;;  %v6110_v49 = vld [vmem:[%s8318_s0 + $0x60] sm:$0x22] }
 0x1ae   :  { %1926 = vmatpush.msra.mxu0 %v8534_v23  ;;  %1946 = vmatpush.msra.mxu1 %v8535_v33  ;;  %v6115_v23 = vld [vmem:[%s8318_s0 + $0x70] sm:$0x22]  ;;  %v1308_v33 = vrot.slane %v5946_v31, 7 }
 0x1af   :  { %1966 = vmatpush.msra.mxu2 %v8536_v26  ;;  %1986 = vmatpush.msra.mxu3 %v8537_v52  ;;  %v1309_v26 = vrot.slane %v5949_v38, 7 }
 0x1b0   :  { %1927 = vmatpush.msra.mxu0 %v8538_v20  ;;  %1947 = vmatpush.msra.mxu1 %v8539_v46  ;;  %v961_v20 = vunpack.c.l.bf16 %v6080_v53  ;;  %v965_v46 = vunpack.c.l.bf16 %v6085_v11 }
 0x1b1   :  { %1967 = vmatpush.msra.mxu2 %v8540_v43  ;;  %1987 = vmatpush.msra.mxu3 %v8541_v24  ;;  %v969_v43 = vunpack.c.l.bf16 %v6090_v48  ;;  %v973_v24 = vunpack.c.l.bf16 %v6095_v40 }
 0x1b2   :  { %1928 = vmatpush.msra.mxu0 %v8542_v6  ;;  %1948 = vmatpush.msra.mxu1 %v8543_v63  ;;  %v977_v6 = vunpack.c.l.bf16 %v6100_v50  ;;  %v981_v63 = vunpack.c.l.bf16 %v6105_v15 }
 0x1b3   :  { %1968 = vmatpush.msra.mxu2 %v8544_v35  ;;  %1988 = vmatpush.msra.mxu3 %v8545_v36  ;;  %v985_v35 = vunpack.c.l.bf16 %v6110_v49  ;;  %v989_v36 = vunpack.c.l.bf16 %v6115_v23 }
 0x1b4   :  { %1929 = vmatpush.msra.mxu0 %v8546_v2  ;;  %1949 = vmatpush.msra.mxu1 %v8547_v55  ;;  %v1304_v2 = vrot.slane %v5928_v10, 7  ;;  %v1305_v55 = vrot.slane %v5933_v17, 7  ;;  %v958_v10 = vld [vmem:[%s8318_s0 + $0x68] sm:$0x22] }
 0x1b5   :  { %1969 = vmatpush.msra.mxu2 %v8548_v56  ;;  %1989 = vmatpush.msra.mxu3 %v8549_v28  ;;  %v1306_v56 = vrot.slane %v5940_v58, 7  ;;  %v1307_v28 = vrot.slane %v5943_v22, 7 }
 0x1b6   :  { %1930 = vmatpush.msra.mxu0 %v8550_v51  ;;  %1950 = vmatpush.msra.mxu1 %v8551_v45  ;;  %v962_v51 = vunpack.c.h.bf16 %v6080_v53  ;;  %v966_v45 = vunpack.c.h.bf16 %v6085_v11 }
 0x1b7   :  { %1970 = vmatpush.msra.mxu2 %v8552_v13  ;;  %1990 = vmatpush.msra.mxu3 %v8553_v7  ;;  %v970_v13 = vunpack.c.h.bf16 %v6090_v48  ;;  %v974_v7 = vunpack.c.h.bf16 %v6095_v40  ;;  %v6150_v48 = vld [vmem:[%s8318_s0 + $0x8] sm:$0x22] }
 0x1b8   :  { %1931 = vmatpush.msra.mxu0 %v8554_v8  ;;  %1951 = vmatpush.msra.mxu1 %v8555_v19  ;;  %v978_v19 = vunpack.c.h.bf16 %v6100_v50 }
 0x1b9   :  { %1971 = vmatpush.msra.mxu2 %v8556_v30  ;;  %1991 = vmatpush.msra.mxu3 %v8557_v18  ;;  %v982_v30 = vunpack.c.h.bf16 %v6105_v15  ;;  %v986_v18 = vunpack.c.h.bf16 %v6110_v49 }
 0x1ba   :  { %1932 = vmatpush.msra.mxu0 %v8558_v42  ;;  %1952 = vmatpush.msra.mxu1 %v8559_v41  ;;  %v990_v42 = vunpack.c.h.bf16 %v6115_v23 }
 0x1bb   :  { %1972 = vmatpush.msra.mxu2 %v8560_v32  ;;  %1992 = vmatpush.msra.mxu3 %v8561_v1 }
 0x1bc   :  { %1933 = vmatpush.msra.mxu0 %v8562_v16  ;;  %1953 = vmatpush.msra.mxu1 %v8563_v14  ;;  %v6143_v14 = vld [vmem:[%s8318_s0 + $0x28] sm:$0x22] }
 0x1bd   :  { %1973 = vmatpush.msra.mxu2 %v8564_v47  ;;  %1993 = vmatpush.msra.mxu3 %v8565_v59 }
 0x1be   :  { %1934 = vmatpush.msra.mxu0 %v8566_v27  ;;  %1954 = vmatpush.msra.mxu1 %v8567_v57 }
 0x1bf   :  { %1974 = vmatpush.msra.mxu2 %v8568_v62  ;;  %1994 = vmatpush.msra.mxu3 %v8569_v61 }
 0x1c0   :  { %1935 = vmatpush.msra.mxu0 %v8570_v54  ;;  %1955 = vmatpush.msra.mxu1 %v8571_v0 }
 0x1c1   :  { %1975 = vmatpush.msra.mxu2 %v8572_v25  ;;  %1995 = vmatpush.msra.mxu3 %v8573_v5 }
 0x1c2   :  { %1936 = vmatpush.msra.mxu0 %v8574_v44  ;;  %1956 = vmatpush.msra.mxu1 %v8575_v29 }
 0x1c3   :  { %1976 = vmatpush.msra.mxu2 %v8576_v34  ;;  %1996 = vmatpush.msra.mxu3 %v8577_v3  ;;  %v971_v34 = vunpack.c.l.bf16 %v6143_v14 }
 0x1c4   :  { %1937 = vmatpush.msra.mxu0 %v8578_v4  ;;  %1957 = vmatpush.msra.mxu1 %v8579_v39 }
 0x1c5   :  { %1977 = vmatpush.msra.mxu2 %v8580_v21  ;;  %1997 = vmatpush.msra.mxu3 %v8581_v60  ;;  %v972_v21 = vunpack.c.h.bf16 %v6143_v14 }
 0x221   :  { %v1033_v8 = vpop.f32.mrf.mxu0  ;;  %v1053_v29 = vpop.f32.mrf.mxu1 }
 0x222   :  { %v1100_v41 = vrot.slane %v1033_v8, 6  ;;  %v1104_v32 = vrot.slane %v1033_v8, 7  ;;  %v1108_v1 = vrot.slane %v1033_v8, 1  ;;  %v1112_v16 = vrot.slane %v1033_v8, 2 }
 0x223   :  { %v1116_v47 = vrot.slane %v1033_v8, 3  ;;  %v1120_v59 = vrot.slane %v1033_v8, 4  ;;  %v1124_v27 = vrot.slane %v1033_v8, 5  ;;  %v1168_v57 = vadd.f32 %v1033_v8, %v969_v43 }
 0x224   :  { %v1160_v62 = vadd.f32 %v1100_v41, %v961_v20  ;;  %v1164_v61 = vadd.f32 %v1104_v32, %v965_v46  ;;  %v1172_v54 = vadd.f32 %v1108_v1, %v973_v24  ;;  %v1176_v0 = vadd.f32 %v1112_v16, %v977_v6  ;;  %v6156_v41 = vld [vmem:[%s8318_s0 + $0x18] sm:$0x22]  ;;  %v6166_v16 = vld [vmem:[%s8318_s0 + $0x48] sm:$0x22] }
 0x225   :  { %v1180_v25 = vadd.f32 %v1116_v47, %v981_v63  ;;  %v1184_v5 = vadd.f32 %v1120_v59, %v985_v35  ;;  %v1198_v44 = vmul.f32 0.5, %v1168_v57  ;;  %v1188_v60 = vadd.f32 %v1124_v27, %v989_v36  ;;  %v6161_v32 = vld [vmem:[%s8318_s0 + $0x38] sm:$0x22] }
 0x226   :  { %v1192_v3 = vmul.f32 0.5, %v1160_v62  ;;  %v1195_v4 = vmul.f32 0.5, %v1164_v61  ;;  %v1201_v39 = vmul.f32 0.5, %v1172_v54  ;;  %v1204_v53 = vmul.f32 0.5, %v1176_v0 }
 0x227   :  { %v1207_v11 = vmul.f32 0.5, %v1180_v25  ;;  %3859 = vtanh.f32 %v1198_v44  ;;  %v1101_v40 = vrot.slane %v1053_v29, 6  ;;  %v1105_v50 = vrot.slane %v1053_v29, 7 }
 0x228   :  { %3861 = vtanh.f32 %v1192_v3  ;;  %v1109_v15 = vrot.slane %v1053_v29, 1  ;;  %v1210_v20 = vmul.f32 0.5, %v1184_v5  ;;  %v1113_v46 = vrot.slane %v1053_v29, 2  ;;  %v6170_v54 = vpop.f32.mrf.mxu2 }
 0x229   :  { %3863 = vtanh.f32 %v1195_v4  ;;  %v1117_v43 = vrot.slane %v1053_v29, 3  ;;  %v1161_v24 = vadd.f32 %v1101_v40, %v962_v51  ;;  %v1165_v6 = vadd.f32 %v1105_v50, %v966_v45 }
 0x22a   :  { %3865 = vtanh.f32 %v1201_v39  ;;  %v963_v63 = vunpack.c.l.bf16 %v6150_v48  ;;  %v1213_v35 = vmul.f32 0.5, %v1188_v60  ;;  %v1169_v36 = vadd.f32 %v1053_v29, %v970_v13  ;;  %v6182_v39 = vld [vmem:[%s8318_s0 + $0x58] sm:$0x22] }
 0x22b   :  { %3867 = vtanh.f32 %v1204_v53  ;;  %v1173_v8 = vadd.f32 %v1109_v15, %v974_v7  ;;  %v1121_v1 = vrot.slane %v1053_v29, 4  ;;  %v1125_v51 = vrot.slane %v1053_v29, 5 }
 0x22c   :  { %3869 = vtanh.f32 %v1207_v11  ;;  %v1177_v45 = vadd.f32 %v1113_v46, %v978_v19  ;;  %v1181_v7 = vadd.f32 %v1117_v43, %v982_v30  ;;  %v1193_v47 = vmul.f32 0.5, %v1161_v24 }
 0x22d   :  { %v3860_v13 = vpop.eup %3859  ;;  %3871 = vtanh.f32 %v1210_v20  ;;  %v1196_v59 = vmul.f32 0.5, %v1165_v6  ;;  %v1199_v57 = vmul.f32 0.5, %v1169_v36  ;;  %v967_v62 = vunpack.c.l.bf16 %v6156_v41 }
 0x22e   :  { %v3862_v27 = vpop.eup %3861  ;;  %v975_v61 = vunpack.c.l.bf16 %v6161_v32  ;;  %v964_v19 = vunpack.c.h.bf16 %v6150_v48  ;;  %3873 = vtanh.f32 %v1213_v35  ;;  %v1202_v25 = vmul.f32 0.5, %v1173_v8 }
 0x22f   :  { %v3864_v0 = vpop.eup %3863  ;;  %v979_v5 = vunpack.c.l.bf16 %v6166_v16  ;;  %v968_v44 = vunpack.c.h.bf16 %v6156_v41  ;;  %v1185_v29 = vadd.f32 %v1121_v1, %v986_v18  ;;  %v1189_v3 = vadd.f32 %v1125_v51, %v990_v42 }
 0x230   :  { %v3866_v30 = vpop.eup %3865  ;;  %v1205_v4 = vmul.f32 0.5, %v1177_v45  ;;  %3875 = vtanh.f32 %v1193_v47  ;;  %v1208_v53 = vmul.f32 0.5, %v1181_v7  ;;  %v1102_v11 = vrot.slane %v6170_v54, 6 }
 0x231   :  { %v3868_v60 = vpop.eup %3867  ;;  %3877 = vtanh.f32 %v1196_v59  ;;  %v976_v40 = vunpack.c.h.bf16 %v6161_v32  ;;  %v1246_v49 = vmul.f32 0.5, %v3860_v13  ;;  %v1106_v23 = vrot.slane %v6170_v54, 7 }
 0x232   :  { %v3870_v50 = vpop.eup %3869  ;;  %3879 = vtanh.f32 %v1199_v57  ;;  %v980_v18 = vunpack.c.h.bf16 %v6166_v16  ;;  %v1240_v15 = vmul.f32 0.5, %v3862_v27  ;;  %v1243_v20 = vmul.f32 0.5, %v3864_v0 }
 0x233   :  { %v3872_v42 = vpop.eup %3871  ;;  %3881 = vtanh.f32 %v1202_v25  ;;  %v984_v46 = vunpack.c.h.bf16 %v6182_v39  ;;  %v1249_v43 = vmul.f32 0.5, %v3866_v30  ;;  %v1211_v24 = vmul.f32 0.5, %v1185_v29 }
 0x234   :  { %v1214_v6 = vmul.f32 0.5, %v1189_v3  ;;  %3883 = vtanh.f32 %v1205_v4  ;;  %v6189_v35 = vpop.eup %3873  ;;  %v1252_v36 = vmul.f32 0.5, %v3868_v60  ;;  %v1110_v8 = vrot.slane %v6170_v54, 1 }
 0x235   :  { %3885 = vtanh.f32 %v1208_v53  ;;  %v1162_v1 = vadd.f32 %v1102_v11, %v963_v63  ;;  %v1255_v45 = vmul.f32 0.5, %v3870_v50  ;;  %v1258_v13 = vmul.f32 0.5, %v3872_v42  ;;  %v6207_v50 = vpop.f32.mrf.mxu3 }
 0x236   :  { %v3876_v51 = vpop.eup %3875  ;;  %v6192_v7 = vadd.f32 0.5, %v1246_v49  ;;  %v1166_v47 = vadd.f32 %v1106_v23, %v967_v62  ;;  %v6194_v27 = vadd.f32 0.5, %v1240_v15  ;;  %v6196_v57 = vadd.f32 0.5, %v1243_v20 }
 0x237   :  { %v3878_v59 = vpop.eup %3877  ;;  %v1241_v0 = vmul.f32 0.5, %v3876_v51  ;;  %v1170_v25 = vadd.f32 %v6170_v54, %v971_v34  ;;  %v6201_v29 = vadd.f32 0.5, %v1249_v43  ;;  %3887 = vtanh.f32 %v1211_v24 }
 0x238   :  { %v3880_v30 = vpop.eup %3879  ;;  %v1244_v63 = vmul.f32 0.5, %v3878_v59  ;;  %v1114_v3 = vrot.slane %v6170_v54, 2  ;;  %v6204_v60 = vadd.f32 0.5, %v1252_v36  ;;  %v1118_v62 = vrot.slane %v6170_v54, 3 }
 0x239   :  { %v3882_v4 = vpop.eup %3881  ;;  %v1174_v53 = vadd.f32 %v1110_v8, %v975_v61  ;;  %v1194_v11 = vmul.f32 0.5, %v1162_v1  ;;  %v6209_v23 = vadd.f32 0.5, %v1255_v45  ;;  %v6211_v34 = vadd.f32 0.5, %v1258_v13 }
 0x23a   :  { %v3884_v49 = vpop.eup %3883  ;;  %v1247_v42 = vmul.f32 0.5, %v3880_v30  ;;  %v1197_v15 = vmul.f32 0.5, %v1166_v47  ;;  %3889 = vtanh.f32 %v1214_v6  ;;  %v1250_v43 = vmul.f32 0.5, %v3882_v4 }
 0x23b   :  { %v3886_v20 = vpop.eup %3885  ;;  %v1265_v24 = vadd.f32 0.5, %v1241_v0  ;;  %v1200_v51 = vmul.f32 0.5, %v1170_v25  ;;  %v1268_v36 = vadd.f32 0.5, %v1244_v63  ;;  %v1178_v59 = vadd.f32 %v1114_v3, %v979_v5 }
 0x23c   :  { %v1103_v61 = vrot.slane %v6207_v50, 6  ;;  %v1107_v8 = vrot.slane %v6207_v50, 7  ;;  %v1253_v1 = vmul.f32 0.5, %v3884_v49  ;;  %v1203_v45 = vmul.f32 0.5, %v1174_v53 }
 0x23d   :  { %3891 = vtanh.f32 %v1194_v11  ;;  %v1111_v13 = vrot.slane %v6207_v50, 1  ;;  %v3888_v30 = vpop.eup %3887  ;;  %v1256_v47 = vmul.f32 0.5, %v3886_v20  ;;  %v1271_v52 = vadd.f32 0.5, %v1247_v42 }
 0x23e   :  { %3893 = vtanh.f32 %v1197_v15  ;;  %v1115_v6 = vrot.slane %v6207_v50, 2  ;;  %v1274_v0 = vadd.f32 0.5, %v1250_v43  ;;  %v1320_v25 = vmul.f32 %v1304_v2, %v1265_v24 }
 0x23f   :  { %3895 = vtanh.f32 %v1200_v51  ;;  %v1119_v5 = vrot.slane %v6207_v50, 3  ;;  %v1321_v63 = vmul.f32 %v1305_v55, %v1268_v36  ;;  %v1163_v3 = vadd.f32 %v1103_v61, %v964_v19  ;;  %v960_v55 = vld [vmem:[%s8318_s0 + $0x78] sm:$0x22] }
 0x240   :  { %v1167_v4 = vadd.f32 %v1107_v8, %v968_v44  ;;  %v1171_v53 = vadd.f32 %v6207_v50, %v972_v21  ;;  %v3890_v2 = vpop.eup %3889  ;;  %v1259_v11 = vmul.f32 0.5, %v3888_v30  ;;  %v1277_v49 = vadd.f32 0.5, %v1253_v1 }
 0x241   :  { %3897 = vtanh.f32 %v1203_v45  ;;  %v1175_v17 = vadd.f32 %v1111_v13, %v976_v40  ;;  %v1280_v48 = vadd.f32 0.5, %v1256_v47  ;;  %v1322_v14 = vmul.f32 %v1306_v56, %v1271_v52 }
 0x242   :  { %v1179_v21 = vadd.f32 %v1115_v6, %v980_v18  ;;  %3899 = vtanh.f32 %v1163_v3  ;;  %v1183_v19 = vadd.f32 %v1119_v5, %v984_v46  ;;  %v983_v32 = vunpack.c.l.bf16 %v6182_v39 }
 0x243   :  { %v3892_v41 = vpop.eup %3891  ;;  %3901 = vtanh.f32 %v1167_v4  ;;  %v987_v44 = vunpack.c.l.bf16 %v958_v10  ;;  %v1123_v42 = vrot.slane %v6207_v50, 4  ;;  %v988_v15 = vunpack.c.h.bf16 %v958_v10 }
 0x244   :  { %v3894_v40 = vpop.eup %3893  ;;  %3903 = vtanh.f32 %v1171_v53  ;;  %v991_v20 = vunpack.c.l.bf16 %v960_v55  ;;  %v1122_v52 = vrot.slane %v6170_v54, 4  ;;  %v1126_v56 = vrot.slane %v6170_v54, 5 }
 0x245   :  { %v3896_v58 = vpop.eup %3895  ;;  %3905 = vtanh.f32 %v1175_v17  ;;  %v1182_v16 = vadd.f32 %v1118_v62, %v983_v32  ;;  %v1127_v18 = vrot.slane %v6207_v50, 5  ;;  %v992_v46 = vunpack.c.h.bf16 %v960_v55 }
 0x246   :  { %3907 = vtanh.f32 %v1179_v21  ;;  %v1206_v43 = vmul.f32 0.5, %v1178_v59  ;;  %v1186_v24 = vadd.f32 %v1122_v52, %v987_v44  ;;  %v1190_v51 = vadd.f32 %v1126_v56, %v991_v20 }
 0x247   :  { %v3898_v39 = vpop.eup %3897  ;;  %3909 = vtanh.f32 %v1183_v19  ;;  %v1209_v36 = vmul.f32 0.5, %v1182_v16  ;;  %v1283_v8 = vadd.f32 0.5, %v1259_v11  ;;  %v1323_v1 = vmul.f32 %v1307_v28, %v1274_v0 }
 0x248   :  { %v3900_v61 = vpop.eup %3899  ;;  %v1187_v45 = vadd.f32 %v1123_v42, %v988_v15  ;;  %3911 = vtanh.f32 %v1206_v43  ;;  %v1212_v62 = vmul.f32 0.5, %v1186_v24  ;;  %v1215_v50 = vmul.f32 0.5, %v1190_v51 }
 0x249   :  { %v3902_v13 = vpop.eup %3901  ;;  %v1328_v54 = vmul.f32 %v3900_v61, %v6194_v27  ;;  %3913 = vtanh.f32 %v1209_v36  ;;  %v1324_v59 = vmul.f32 %v1308_v33, %v1277_v49  ;;  %v1242_v47 = vmul.f32 0.5, %v3892_v41  ;;  %v6262_v33 = vpop.permute.xlu0 %3684 }
 0x24a   :  { %v3904_v30 = vpop.eup %3903  ;;  %v1329_v6 = vmul.f32 %v3902_v13, %v6196_v57  ;;  %v1191_v5 = vadd.f32 %v1127_v18, %v992_v46  ;;  %3915 = vtanh.f32 %v1212_v62  ;;  %v1262_v0 = vmul.f32 0.5, %v3890_v2 }
 0x24b   :  { %v3906_v3 = vpop.eup %3905  ;;  %v1330_v22 = vmul.f32 %v3904_v30, %v6192_v7  ;;  %v6257_v28 = vadd.f32 %v1328_v54, %v1320_v25  ;;  %v1245_v27 = vmul.f32 0.5, %v3894_v40  ;;  %3917 = vtanh.f32 %v1215_v50 }
 0x24c   :  { %v3908_v4 = vpop.eup %3907  ;;  %v1331_v53 = vmul.f32 %v3906_v3, %v6201_v29  ;;  %v6260_v10 = vadd.f32 %v1329_v6, %v1321_v63  ;;  %v1261_v57 = vmul.f32 0.5, %v6189_v35  ;;  %3919 = vtanh.f32 %v1187_v45 }
 0x24d   :  { %v3910_v31 = vpop.eup %3909  ;;  %v1325_v7 = vmul.f32 %v1309_v26, %v1280_v48  ;;  %v1332_v25 = vmul.f32 %v3908_v4, %v6204_v60  ;;  %v1248_v2 = vmul.f32 0.5, %v3896_v58  ;;  %3921 = vtanh.f32 %v1191_v5 }
 0x24e   :  { %v3912_v11 = vpop.eup %3911  ;;  %v1333_v49 = vmul.f32 %v3910_v31, %v6209_v23  ;;  %v6269_v29 = vadd.f32 %v1330_v22, %v1322_v14  ;;  %v1286_v17 = vadd.f32 0.5, %v1262_v0  ;;  %v6271_v55 = vadd.f32 %v1331_v53, %v1323_v1 }
 0x24f   :  { %v3914_v63 = vpop.eup %3913  ;;  %v6273_v21 = vadd.f32 %v1332_v25, %v1324_v59  ;;  %3923 = vtanh.f32 %v6257_v28  ;;  %v6277_v38 = vunpack.i.l.bf16 %v6262_v33  ;;  %v1251_v26 = vmul.f32 0.5, %v3898_v39 }
 0x250   :  { %v6279_v35 = vadd.f32 %v1333_v49, %v1325_v7  ;;  %3925 = vtanh.f32 %v6260_v10  ;;  %v3916_v60 = vpop.eup %3915  ;;  %v1311_v23 = vrot.slane %v5967_v12, 7  ;;  %v1254_v48 = vmul.f32 0.5, %v3912_v11 }
 0x251   :  { %v1285_v14 = vadd.f32 0.5, %v1261_v57  ;;  %3927 = vtanh.f32 %v6269_v29  ;;  %v3918_v41 = vpop.eup %3917  ;;  %v1266_v19 = vadd.f32 0.5, %v1242_v47  ;;  %v1257_v32 = vmul.f32 0.5, %v3914_v63 }
 0x252   :  { %v8582_v44 = vrot.slane %v5964_v9, 7  ;;  %3929 = vtanh.f32 %v6271_v55  ;;  %v3920_v42 = vpop.eup %3919  ;;  %v1269_v15 = vadd.f32 0.5, %v1245_v27  ;;  %v1272_v20 = vadd.f32 0.5, %v1248_v2 }
 0x253   :  { %v1327_v58 = vmul.f32 %v1311_v23, %v1286_v17  ;;  %3931 = vtanh.f32 %v6273_v21  ;;  %v3922_v52 = vpop.eup %3921  ;;  %v1275_v12 = vadd.f32 0.5, %v1251_v26  ;;  %v1334_v56 = vmul.f32 %v3920_v42, %v6211_v34 }
 0x254   :  { %v1326_v40 = vmul.f32 %v8582_v44, %v1283_v8  ;;  %3933 = vtanh.f32 %v6279_v35  ;;  %v1367_v16 = vrot.slane %v6277_v38, 6  ;;  %v1278_v46 = vadd.f32 0.5, %v1254_v48 }
 0x255   :  { %v3924_v18 = vpop.eup %3923  ;;  %v1335_v9 = vmul.f32 %v3922_v52, %v1285_v14  ;;  %v1368_v43 = vrot.slane %v6277_v38, 7  ;;  %v1369_v39 = vrot.slane %v6277_v38, 1  ;;  %v1260_v51 = vmul.f32 0.5, %v3916_v60 }
 0x256   :  { %v3926_v24 = vpop.eup %3925  ;;  %v1281_v36 = vadd.f32 0.5, %v1257_v32  ;;  %v6293_v61 = vadd.f32 %v1334_v56, %v1326_v40  ;;  %v1352_v8 = vmul.f32 %v3924_v18, %v1266_v19  ;;  %v1370_v13 = vrot.slane %v6277_v38, 2  ;;  %v6344_v56 = vld [vmem:[%s8316_s2 + $0x1e8] sm:$0xff]  ;;  %v6356_v18 = vld [vmem:[%s8316_s2 + $0x1f8] sm:$0xff] }
 0x257   :  { %v3928_v1 = vpop.eup %3927  ;;  %v6295_v45 = vadd.f32 %v1335_v9, %v1327_v58  ;;  %v1353_v34 = vmul.f32 %v3926_v24, %v1269_v15  ;;  %v1371_v54 = vrot.slane %v6277_v38, 3  ;;  %v1263_v0 = vmul.f32 0.5, %v3918_v41  ;;  %v6368_v9 = vld [vmem:[%s8316_s2 + $0x1c8] sm:$0xff]  ;;  %v6386_v24 = vld [vmem:[%s8316_s2 + $0x1a0] sm:$0xff] }
 0x258   :  { %v3930_v62 = vpop.eup %3929  ;;  %3935 = vtanh.f32 %v6293_v61  ;;  %v1354_v50 = vmul.f32 %v3928_v1, %v1272_v20  ;;  %v1382_v30 = vmul.f32 %v1367_v16, %v1352_v8  ;;  %v1454_v59 = vrot.slane %v1352_v8, 2  ;;  %v6350_v16 = vld [vmem:[%s8316_s2 + $0x1f0] sm:$0xff]  ;;  %8583 = vst [vmem:[#allocation2_spill] sm:$0xff] %v6386_v24  ;;  %v6404_v8 = vld [vmem:[%s8316_s2 + $0x1b8] sm:$0xff]  ;;  %v6410_v1 = vld [vmem:[%s8316_s2 + $0x180] sm:$0xff] }
 0x259   :  { %v3932_v47 = vpop.eup %3931  ;;  %3937 = vtanh.f32 %v6295_v45  ;;  %v1355_v6 = vmul.f32 %v3930_v62, %v1275_v12  ;;  %v1383_v5 = vmul.f32 %v1368_v43, %v1353_v34  ;;  %v1455_v3 = vrot.slane %v1353_v34, 1  ;;  %v6338_v12 = vld [vmem:[%s8316_s2 + $0x1e0] sm:$0xff]  ;;  %v6374_v43 = vld [vmem:[%s8316_s2 + $0x1d0] sm:$0xff]  ;;  %8586 = vst [vmem:[#allocation5_spill] sm:$0xff] %v6404_v8  ;;  %v6416_v34 = vld [vmem:[%s8316_s2 + $0x188] sm:$0xff] }
 0x25a   :  { %v3934_v22 = vpop.eup %3933  ;;  %v1356_v4 = vmul.f32 %v3932_v47, %v1278_v46  ;;  %v1384_v27 = vmul.f32 %v6277_v38, %v1354_v50  ;;  %1390 = vst [vmem:[%s8319_s3] sm:$0x4] %v1382_v30  ;;  %v1372_v25 = vrot.slane %v6277_v38, 4  ;;  %v1284_v63 = vadd.f32 0.5, %v1260_v51  ;;  %v6362_v46 = vld [vmem:[%s8316_s2 + $0x1c0] sm:$0xff]  ;;  %v6392_v51 = vld [vmem:[%s8316_s2 + $0x1a8] sm:$0xff]  ;;  %v6446_v30 = vld [vmem:[%s8316_s2 + $0x170] sm:$0xff] }
 0x25b   :  { %v1357_v53 = vmul.f32 %v3934_v22, %v1281_v36  ;;  %v1385_v31 = vmul.f32 %v1369_v39, %v1355_v6  ;;  %1391 = vst [vmem:[%s8319_s3 + $0x8] sm:$0x4] %v1383_v5  ;;  %v1456_v57 = vsel %vm542_vm2, %v1455_v3, %v1454_v59  ;;  %v1458_v7 = vrot.slane %v1355_v6, 7  ;;  %v6380_v39 = vld [vmem:[%s8316_s2 + $0x1d8] sm:$0xff]  ;;  %v6398_v36 = vld [vmem:[%s8316_s2 + $0x1b0] sm:$0xff]  ;;  %v6434_v62 = vld [vmem:[%s8316_s2 + $0x160] sm:$0xff] }
 0x25c   :  { %v1386_v11 = vmul.f32 %v1370_v13, %v1356_v4  ;;  %1392 = vst [vmem:[%s8319_s3 + $0x10] sm:$0x4] %v1384_v27  ;;  %v1457_v2 = vsel %vm545_vm3, %v1354_v50, %v1456_v57  ;;  %v1460_v49 = vrot.slane %v1356_v4, 6  ;;  %v1287_v48 = vadd.f32 0.5, %v1263_v0  ;;  %v6422_v13 = vld [vmem:[%s8316_s2 + $0x190] sm:$0xff]  ;;  %v6440_v50 = vld [vmem:[%s8316_s2 + $0x168] sm:$0xff] }
 0x25d   :  { %v1387_v17 = vmul.f32 %v1371_v54, %v1357_v53  ;;  %1393 = vst [vmem:[%s8319_s3 + $0x18] sm:$0x4] %v1385_v31  ;;  %v1459_v26 = vsel %vm548_vm4, %v1458_v7, %v1457_v2  ;;  %v1462_v60 = vrot.slane %v1357_v53, 5  ;;  %v1373_v14 = vrot.slane %v6277_v38, 5  ;;  %v6428_v54 = vld [vmem:[%s8316_s2 + $0x198] sm:$0xff]  ;;  %v6458_v47 = vld [vmem:[%s8316_s2 + $0x140] sm:$0xff] }
 0x25e   :  { %v3936_v23 = vpop.eup %3935  ;;  %1394 = vst [vmem:[%s8319_s3 + $0x20] sm:$0x4] %v1386_v11  ;;  %v1461_v41 = vsel %vm551_vm5, %v1460_v49, %v1459_v26  ;;  %v6452_v59 = vld [vmem:[%s8316_s2 + $0x178] sm:$0xff]  ;;  %v6464_v6 = vld [vmem:[%s8316_s2 + $0x148] sm:$0xff]  ;;  %v6470_v5 = vld [vmem:[%s8316_s2 + $0x150] sm:$0xff] }
 0x25f   :  { %v3938_v19 = vpop.eup %3937  ;;  %v1358_v32 = vmul.f32 %v3936_v23, %v1284_v63  ;;  %1395 = vst [vmem:[%s8319_s3 + $0x28] sm:$0x4] %v1387_v17  ;;  %v1463_v44 = vsel %vm554_vm6, %v1462_v60, %v1461_v41  ;;  %v6476_v3 = vld [vmem:[%s8316_s2 + $0x158] sm:$0xff]  ;;  %v6482_v22 = vld [vmem:[%s8316_s2 + $0x120] sm:$0xff]  ;;  %v6488_v0 = vld [vmem:[%s8316_s2 + $0x128] sm:$0xff] }
 0x260   :  { %v1359_v40 = vmul.f32 %v3938_v19, %v1287_v48  ;;  %8584 = vst [vmem:[#allocation3_spill] sm:$0xff] %v6392_v51  ;;  %v6494_v4 = vld [vmem:[%s8316_s2 + $0x130] sm:$0xff]  ;;  %v6500_v27 = vld [vmem:[%s8316_s2 + $0x138] sm:$0xff]  ;;  %v6506_v53 = vld [vmem:[%s8316_s2 + $0x100] sm:$0xff] }
 0x261   :  { %v1388_v42 = vmul.f32 %v1372_v25, %v1358_v32  ;;  %v1464_v15 = vrot.slane %v1358_v32, 4  ;;  %8585 = vst [vmem:[#allocation4_spill] sm:$0xff] %v6398_v36  ;;  %v6512_v31 = vld [vmem:[%s8316_s2 + $0x108] sm:$0xff]  ;;  %v6518_v57 = vld [vmem:[%s8316_s2 + $0x110] sm:$0xff]  ;;  %v6524_v7 = vld [vmem:[%s8316_s2 + $0x118] sm:$0xff] }
 0x262   :  { %v1389_v20 = vmul.f32 %v1373_v14, %v1359_v40  ;;  %v1466_v58 = vrot.slane %v1359_v40, 3  ;;  %8587 = vst [vmem:[#allocation6_spill] sm:$0xff] %v6410_v1  ;;  %v6530_v25 = vld [vmem:[%s8316_s2 + $0xe0] sm:$0xff]  ;;  %v6536_v11 = vld [vmem:[%s8316_s2 + $0xe8] sm:$0xff]  ;;  %v6542_v2 = vld [vmem:[%s8316_s2 + $0xf0] sm:$0xff] }
 0x263   :  { %1396 = vst [vmem:[%s8319_s3 + $0x30] sm:$0x4] %v1388_v42  ;;  %v1465_v38 = vsel %vm557_vm7, %v1464_v15, %v1463_v44  ;;  %v6548_v49 = vld [vmem:[%s8316_s2 + $0xf8] sm:$0xff]  ;;  %v6554_v63 = vld [vmem:[%s8316_s2 + $0xc0] sm:$0xff]  ;;  %v6560_v17 = vld [vmem:[%s8316_s2 + $0xc8] sm:$0xff] }
 0x264   :  { %1397 = vst [vmem:[%s8319_s3 + $0x38] sm:$0x4] %v1389_v20  ;;  %v1467_v52 = vsel %vm560_vm8, %v1466_v58, %v1465_v38  ;;  %v6566_v26 = vld [vmem:[%s8316_s2 + $0xd0] sm:$0xff]  ;;  %v6572_v60 = vld [vmem:[%s8316_s2 + $0xd8] sm:$0xff]  ;;  %v6578_v23 = vld [vmem:[%s8316_s2 + $0xa0] sm:$0xff] }
 0x265   :  { %1485 = vmatmul.f32.vlgmr.msrb.gmra.mxu0 %v1467_v52  ;;  %1505 = vmatmul.f32.vlgmr.msrb.gmra.mxu1 %v1467_v52  ;;  %8588 = vst [vmem:[#allocation7_spill] sm:$0xff] %v6416_v34  ;;  %v6584_v48 = vld [vmem:[%s8316_s2 + $0xa8] sm:$0xff]  ;;  %v6590_v14 = vld [vmem:[%s8316_s2 + $0xb0] sm:$0xff]  ;;  %v6596_v41 = vld [vmem:[%s8316_s2 + $0xb8] sm:$0xff] }
 0x266   :  { %1525 = vmatmul.f32.vlgmr.msrb.gmra.mxu2 %v1467_v52  ;;  %1545 = vmatmul.f32.vlgmr.msrb.gmra.mxu3 %v1467_v52  ;;  %8589 = vst [vmem:[#allocation8_spill] sm:$0xff] %v6422_v13  ;;  %v6602_v19 = vld [vmem:[%s8316_s2 + $0x80] sm:$0xff]  ;;  %v6608_v32 = vld [vmem:[%s8316_s2 + $0x88] sm:$0xff]  ;;  %v6614_v44 = vld [vmem:[%s8316_s2 + $0x90] sm:$0xff] }
 0x267   :  { %2375 = vmatpush.msrb.mxu0 %v6338_v12  ;;  %2395 = vmatpush.msrb.mxu1 %v6344_v56  ;;  %8590 = vst [vmem:[#allocation9_spill] sm:$0xff] %v6428_v54  ;;  %v6620_v40 = vld [vmem:[%s8316_s2 + $0x98] sm:$0xff]  ;;  %v6626_v42 = vld [vmem:[%s8316_s2 + $0x60] sm:$0xff]  ;;  %v6632_v15 = vld [vmem:[%s8316_s2 + $0x68] sm:$0xff] }
 0x268   :  { %2415 = vmatpush.msrb.mxu2 %v6350_v16  ;;  %2435 = vmatpush.msrb.mxu3 %v6356_v18  ;;  %8591 = vst [vmem:[#allocation10_spill] sm:$0xff] %v6434_v62  ;;  %v6638_v20 = vld [vmem:[%s8316_s2 + $0x70] sm:$0xff]  ;;  %v6644_v58 = vld [vmem:[%s8316_s2 + $0x78] sm:$0xff]  ;;  %v6650_v38 = vld [vmem:[%s8316_s2 + $0x40] sm:$0xff] }
 0x269   :  { %2376 = vmatpush.msrb.mxu0 %v6362_v46  ;;  %2396 = vmatpush.msrb.mxu1 %v6368_v9  ;;  %8592 = vst [vmem:[#allocation11_spill] sm:$0xff] %v6440_v50  ;;  %v6656_v52 = vld [vmem:[%s8316_s2 + $0x48] sm:$0xff] }
 0x26a   :  { %2416 = vmatpush.msrb.mxu2 %v6374_v43  ;;  %2436 = vmatpush.msrb.mxu3 %v6380_v39  ;;  %8593 = vst [vmem:[#allocation12_spill] sm:$0xff] %v6446_v30 }
 0x26b   :  { %2377 = vmatpush.msrb.mxu0 %v6386_v24  ;;  %2397 = vmatpush.msrb.mxu1 %v6392_v51  ;;  %8594 = vst [vmem:[#allocation13_spill] sm:$0xff] %v6452_v59 }
 0x26c   :  { %2417 = vmatpush.msrb.mxu2 %v6398_v36  ;;  %2437 = vmatpush.msrb.mxu3 %v6404_v8  ;;  %8595 = vst [vmem:[#allocation14_spill] sm:$0xff] %v6458_v47 }
 0x26d   :  { %2378 = vmatpush.msrb.mxu0 %v6410_v1  ;;  %2398 = vmatpush.msrb.mxu1 %v6416_v34  ;;  %8596 = vst [vmem:[#allocation15_spill] sm:$0xff] %v6464_v6 }
 0x26e   :  { %2418 = vmatpush.msrb.mxu2 %v6422_v13  ;;  %2438 = vmatpush.msrb.mxu3 %v6428_v54  ;;  %8597 = vst [vmem:[#allocation16_spill] sm:$0xff] %v6470_v5 }
 0x26f   :  { %2379 = vmatpush.msrb.mxu0 %v6434_v62  ;;  %2399 = vmatpush.msrb.mxu1 %v6440_v50  ;;  %8598 = vst [vmem:[#allocation17_spill] sm:$0xff] %v6476_v3 }
 0x270   :  { %2419 = vmatpush.msrb.mxu2 %v6446_v30  ;;  %2439 = vmatpush.msrb.mxu3 %v6452_v59  ;;  %8599 = vst [vmem:[#allocation18_spill] sm:$0xff] %v6482_v22 }
 0x271   :  { %2380 = vmatpush.msrb.mxu0 %v6458_v47  ;;  %2400 = vmatpush.msrb.mxu1 %v6464_v6  ;;  %8600 = vst [vmem:[#allocation19_spill] sm:$0xff] %v6488_v0 }
 0x272   :  { %2420 = vmatpush.msrb.mxu2 %v6470_v5  ;;  %2440 = vmatpush.msrb.mxu3 %v6476_v3  ;;  %8601 = vst [vmem:[#allocation20_spill] sm:$0xff] %v6494_v4 }
 0x273   :  { %2381 = vmatpush.msrb.mxu0 %v6482_v22  ;;  %2401 = vmatpush.msrb.mxu1 %v6488_v0  ;;  %8602 = vst [vmem:[#allocation21_spill] sm:$0xff] %v6500_v27 }
 0x274   :  { %2421 = vmatpush.msrb.mxu2 %v6494_v4  ;;  %2441 = vmatpush.msrb.mxu3 %v6500_v27  ;;  %8603 = vst [vmem:[#allocation22_spill] sm:$0xff] %v6506_v53 }
 0x275   :  { %2382 = vmatpush.msrb.mxu0 %v6506_v53  ;;  %8604 = vst [vmem:[#allocation23_spill] sm:$0xff] %v6512_v31  ;;  %2402 = vmatpush.msrb.mxu1 %v6512_v31 }
 0x276   :  { %8605 = vst [vmem:[#allocation24_spill] sm:$0xff] %v6518_v57  ;;  %2422 = vmatpush.msrb.mxu2 %v6518_v57  ;;  %2442 = vmatpush.msrb.mxu3 %v6524_v7 }
 0x277   :  { %8606 = vst [vmem:[#allocation25_spill] sm:$0xff] %v6524_v7  ;;  %2383 = vmatpush.msrb.mxu0 %v6530_v25  ;;  %2403 = vmatpush.msrb.mxu1 %v6536_v11 }
 0x278   :  { %8607 = vst [vmem:[#allocation26_spill] sm:$0xff] %v6530_v25  ;;  %2423 = vmatpush.msrb.mxu2 %v6542_v2  ;;  %2443 = vmatpush.msrb.mxu3 %v6548_v49 }
 0x279   :  { %8608 = vst [vmem:[#allocation27_spill] sm:$0xff] %v6536_v11  ;;  %2384 = vmatpush.msrb.mxu0 %v6554_v63  ;;  %2404 = vmatpush.msrb.mxu1 %v6560_v17 }
 0x27a   :  { %8609 = vst [vmem:[#allocation28_spill] sm:$0xff] %v6542_v2  ;;  %2424 = vmatpush.msrb.mxu2 %v6566_v26  ;;  %2444 = vmatpush.msrb.mxu3 %v6572_v60  ;;  %v6778_v2 = vld [vmem:[%s8318_s0 + $0x38] sm:$0x22] }
 0x27b   :  { %8610 = vst [vmem:[#allocation29_spill] sm:$0xff] %v6548_v49  ;;  %2385 = vmatpush.msrb.mxu0 %v6578_v23  ;;  %2405 = vmatpush.msrb.mxu1 %v6584_v48  ;;  %v6792_v49 = vld [vmem:[%s8318_s0 + $0x18] sm:$0x22] }
 0x27c   :  { %8611 = vst [vmem:[#allocation30_spill] sm:$0xff] %v6554_v63  ;;  %2425 = vmatpush.msrb.mxu2 %v6590_v14  ;;  %2445 = vmatpush.msrb.mxu3 %v6596_v41  ;;  %v6797_v63 = vld [vmem:[%s8318_s0 + $0x28] sm:$0x22] }
 0x27d   :  { %8612 = vst [vmem:[#allocation31_spill] sm:$0xff] %v6560_v17  ;;  %2386 = vmatpush.msrb.mxu0 %v6602_v19  ;;  %2406 = vmatpush.msrb.mxu1 %v6608_v32  ;;  %v6787_v17 = vld [vmem:[%s8318_s0 + $0x8] sm:$0x22] }
 0x27e   :  { %8613 = vst [vmem:[#allocation32_spill] sm:$0xff] %v6566_v26  ;;  %2426 = vmatpush.msrb.mxu2 %v6614_v44  ;;  %2446 = vmatpush.msrb.mxu3 %v6620_v40 }
 0x27f   :  { %8614 = vst [vmem:[#allocation33_spill] sm:$0xff] %v6572_v60  ;;  %2387 = vmatpush.msrb.mxu0 %v6626_v42  ;;  %2407 = vmatpush.msrb.mxu1 %v6632_v15 }
 0x280   :  { %8615 = vst [vmem:[#allocation34_spill] sm:$0xff] %v6578_v23  ;;  %2427 = vmatpush.msrb.mxu2 %v6638_v20  ;;  %2447 = vmatpush.msrb.mxu3 %v6644_v58 }
 0x281   :  { %8616 = vst [vmem:[#allocation35_spill] sm:$0xff] %v6584_v48  ;;  %2388 = vmatpush.msrb.mxu0 %v6650_v38  ;;  %2408 = vmatpush.msrb.mxu1 %v6656_v52 }
 0x282   :  { %8617 = vst [vmem:[#allocation36_spill] sm:$0xff] %v6590_v14 }
 0x283   :  { %8618 = vst [vmem:[#allocation37_spill] sm:$0xff] %v6596_v41  ;;  %v6762_v41 = vld [vmem:[%s8318_s0 + $0x70] sm:$0x22] }
 0x284   :  { %8619 = vst [vmem:[#allocation38_spill] sm:$0xff] %v6602_v19  ;;  %v6757_v19 = vld [vmem:[%s8318_s0 + $0x60] sm:$0x22]  ;;  %v1442_v11 = vunpack.c.l.bf16 %v6762_v41 }
 0x285   :  { %8620 = vst [vmem:[#allocation39_spill] sm:$0xff] %v6608_v32  ;;  %v1438_v32 = vunpack.c.l.bf16 %v6757_v19  ;;  %v1439_v53 = vunpack.c.h.bf16 %v6757_v19  ;;  %v6814_v19 = vld [vmem:[%s8318_s0 + $0x48] sm:$0x22] }
 0x286   :  { %8621 = vst [vmem:[#allocation40_spill] sm:$0xff] %v6614_v44  ;;  %v6751_v44 = vld [vmem:[%s8318_s0 + $0x50] sm:$0x22]  ;;  %v1432_v54 = vunpack.c.l.bf16 %v6814_v19 }
 0x287   :  { %8622 = vst [vmem:[#allocation41_spill] sm:$0xff] %v6620_v40  ;;  %v1434_v48 = vunpack.c.l.bf16 %v6751_v44  ;;  %v1435_v31 = vunpack.c.h.bf16 %v6751_v44 }
 0x288   :  { %8623 = vst [vmem:[#allocation42_spill] sm:$0xff] %v6626_v42  ;;  %v6745_v42 = vunpack.i.h.bf16 %v6262_v33 }
 0x289   :  { %8624 = vst [vmem:[#allocation43_spill] sm:$0xff] %v6632_v15  ;;  %v6737_v15 = vld [vmem:[%s8318_s0 + $0x30] sm:$0x22] }
 0x28a   :  { %8625 = vst [vmem:[#allocation44_spill] sm:$0xff] %v6638_v20  ;;  %v6662_v20 = vld [vmem:[%s8316_s2 + $0x50] sm:$0xff]  ;;  %v1426_v23 = vunpack.c.l.bf16 %v6737_v15  ;;  %v1427_v25 = vunpack.c.h.bf16 %v6737_v15 }
 0x28b   :  { %8626 = vst [vmem:[#allocation45_spill] sm:$0xff] %v6644_v58  ;;  %2428 = vmatpush.msrb.mxu2 %v6662_v20  ;;  %v6668_v58 = vld [vmem:[%s8316_s2 + $0x58] sm:$0xff] }
 0x28c   :  { %8627 = vst [vmem:[#allocation46_spill] sm:$0xff] %v6650_v38  ;;  %2448 = vmatpush.msrb.mxu3 %v6668_v58  ;;  %v6674_v38 = vld [vmem:[%s8316_s2 + $0x20] sm:$0xff] }
 0x28d   :  { %8628 = vst [vmem:[#allocation47_spill] sm:$0xff] %v6656_v52  ;;  %2389 = vmatpush.msrb.mxu0 %v6674_v38  ;;  %v6680_v52 = vld [vmem:[%s8316_s2 + $0x28] sm:$0xff] }
 0x28e   :  { %8629 = vst [vmem:[#allocation48_spill] sm:$0xff] %v6662_v20  ;;  %2409 = vmatpush.msrb.mxu1 %v6680_v52  ;;  %v6686_v20 = vld [vmem:[%s8316_s2 + $0x30] sm:$0xff] }
 0x28f   :  { %8630 = vst [vmem:[#allocation49_spill] sm:$0xff] %v6668_v58  ;;  %2429 = vmatpush.msrb.mxu2 %v6686_v20  ;;  %v6692_v58 = vld [vmem:[%s8316_s2 + $0x38] sm:$0xff] }
 0x290   :  { %8631 = vst [vmem:[#allocation50_spill] sm:$0xff] %v6674_v38  ;;  %2449 = vmatpush.msrb.mxu3 %v6692_v58  ;;  %v6698_v38 = vld [vmem:[%s8316_s2] sm:$0xff] }
 0x291   :  { %8632 = vst [vmem:[#allocation51_spill] sm:$0xff] %v6680_v52  ;;  %2390 = vmatpush.msrb.mxu0 %v6698_v38  ;;  %v6704_v52 = vld [vmem:[%s8316_s2 + $0x8] sm:$0xff] }
 0x292   :  { %8633 = vst [vmem:[#allocation52_spill] sm:$0xff] %v6686_v20  ;;  %2410 = vmatpush.msrb.mxu1 %v6704_v52  ;;  %v6710_v20 = vld [vmem:[%s8316_s2 + $0x10] sm:$0xff] }
 0x293   :  { %8634 = vst [vmem:[#allocation53_spill] sm:$0xff] %v6692_v58  ;;  %2430 = vmatpush.msrb.mxu2 %v6710_v20  ;;  %v6716_v58 = vld [vmem:[%s8316_s2 + $0x18] sm:$0xff] }
 0x294   :  { %8635 = vst [vmem:[#allocation54_spill] sm:$0xff] %v6698_v38  ;;  %2450 = vmatpush.msrb.mxu3 %v6716_v58  ;;  %v6722_v38 = vld [vmem:[%s8318_s0] sm:$0x22] }
 0x295   :  { %8636 = vst [vmem:[#allocation55_spill] sm:$0xff] %v6704_v52  ;;  %v6727_v52 = vld [vmem:[%s8318_s0 + $0x10] sm:$0x22]  ;;  %v1414_v33 = vunpack.c.l.bf16 %v6722_v38  ;;  %v1415_v26 = vunpack.c.h.bf16 %v6722_v38 }
 0x296   :  { %8637 = vst [vmem:[#allocation56_spill] sm:$0xff] %v6710_v20  ;;  %v6732_v20 = vld [vmem:[%s8318_s0 + $0x20] sm:$0x22]  ;;  %v1418_v40 = vunpack.c.l.bf16 %v6727_v52  ;;  %v1419_v7 = vunpack.c.h.bf16 %v6727_v52 }
 0x297   :  { %8638 = vst [vmem:[#allocation57_spill] sm:$0xff] %v6716_v58  ;;  %v6742_v58 = vld [vmem:[%s8318_s0 + $0x40] sm:$0x22]  ;;  %v1422_v14 = vunpack.c.l.bf16 %v6732_v20  ;;  %v1423_v15 = vunpack.c.h.bf16 %v6732_v20 }
 0x298   :  { %v1430_v60 = vunpack.c.l.bf16 %v6742_v58  ;;  %v1431_v57 = vunpack.c.h.bf16 %v6742_v58 }
 0x2e2   :  { %v1486_v0 = vpop.f32.mrf.mxu0  ;;  %v1506_v62 = vpop.f32.mrf.mxu1 }
 0x2e3   :  { %v1553_v20 = vrot.slane %v1486_v0, 5  ;;  %v1557_v5 = vrot.slane %v1486_v0, 6  ;;  %v1561_v58 = vrot.slane %v1486_v0, 7  ;;  %v1565_v6 = vrot.slane %v1486_v0, 1 }
 0x2e4   :  { %v1569_v44 = vrot.slane %v1486_v0, 2  ;;  %v1573_v4 = vrot.slane %v1486_v0, 3  ;;  %v1577_v27 = vrot.slane %v1486_v0, 4  ;;  %v1625_v47 = vadd.f32 %v1486_v0, %v1426_v23 }
 0x2e5   :  { %v1613_v22 = vadd.f32 %v1553_v20, %v1414_v33  ;;  %v1617_v59 = vadd.f32 %v1557_v5, %v1418_v40  ;;  %v1621_v3 = vadd.f32 %v1561_v58, %v1422_v14  ;;  %v1629_v30 = vadd.f32 %v1565_v6, %v1430_v60 }
 0x2e6   :  { %v1633_v38 = vadd.f32 %v1569_v44, %v1434_v48  ;;  %v1637_v50 = vadd.f32 %v1573_v4, %v1438_v32  ;;  %v1654_v52 = vmul.f32 0.5, %v1625_v47  ;;  %v1641_v13 = vadd.f32 %v1577_v27, %v1442_v11 }
 0x2e7   :  { %v1645_v34 = vmul.f32 0.5, %v1613_v22  ;;  %v1648_v1 = vmul.f32 0.5, %v1617_v59  ;;  %v1651_v8 = vmul.f32 0.5, %v1621_v3  ;;  %v1657_v36 = vmul.f32 0.5, %v1629_v30 }
 0x2e8   :  { %v1660_v51 = vmul.f32 0.5, %v1633_v38  ;;  %v1663_v24 = vmul.f32 0.5, %v1637_v50  ;;  %3939 = vtanh.f32 %v1654_v52  ;;  %v1554_v0 = vrot.slane %v1506_v62, 5  ;;  %v6828_v38 = vld [vmem:[%s8318_s0 + $0x58] sm:$0x22] }
 0x2e9   :  { %3941 = vtanh.f32 %v1645_v34  ;;  %v1558_v23 = vrot.slane %v1506_v62, 6  ;;  %v1562_v5 = vrot.slane %v1506_v62, 7  ;;  %v1566_v6 = vrot.slane %v1506_v62, 1 }
 0x2ea   :  { %3943 = vtanh.f32 %v1648_v1  ;;  %v1570_v60 = vrot.slane %v1506_v62, 2  ;;  %v1574_v4 = vrot.slane %v1506_v62, 3  ;;  %v1666_v47 = vmul.f32 0.5, %v1641_v13  ;;  %v6818_v13 = vpop.f32.mrf.mxu2 }
 0x2eb   :  { %3945 = vtanh.f32 %v1651_v8  ;;  %v1614_v48 = vadd.f32 %v1554_v0, %v1415_v26  ;;  %v1618_v14 = vadd.f32 %v1558_v23, %v1419_v7  ;;  %v1578_v22 = vrot.slane %v1506_v62, 4 }
 0x2ec   :  { %3947 = vtanh.f32 %v1657_v36  ;;  %v1622_v59 = vadd.f32 %v1562_v5, %v1423_v15  ;;  %v1626_v3 = vadd.f32 %v1506_v62, %v1427_v25  ;;  %v1630_v30 = vadd.f32 %v1566_v6, %v1431_v57 }
 0x2ed   :  { %3949 = vtanh.f32 %v1660_v51  ;;  %v1634_v50 = vadd.f32 %v1570_v60, %v1435_v31  ;;  %v1417_v34 = vunpack.c.h.bf16 %v6787_v17  ;;  %v1638_v11 = vadd.f32 %v1574_v4, %v1439_v53 }
 0x2ee   :  { %v3940_v27 = vpop.eup %3939  ;;  %3951 = vtanh.f32 %v1663_v24  ;;  %v1646_v1 = vmul.f32 0.5, %v1614_v48  ;;  %v1649_v32 = vmul.f32 0.5, %v1618_v14  ;;  %v1652_v33 = vmul.f32 0.5, %v1622_v59 }
 0x2ef   :  { %v3942_v40 = vpop.eup %3941  ;;  %v1421_v8 = vunpack.c.h.bf16 %v6792_v49  ;;  %v1425_v36 = vunpack.c.h.bf16 %v6797_v63  ;;  %v1433_v62 = vunpack.c.h.bf16 %v6814_v19  ;;  %3953 = vtanh.f32 %v1666_v47 }
 0x2f0   :  { %v3944_v51 = vpop.eup %3943  ;;  %v1702_v31 = vmul.f32 0.5, %v3940_v27  ;;  %v8639_v57 = vunpack.c.h.bf16 %v6762_v41  ;;  %v1655_v24 = vmul.f32 0.5, %v1626_v3  ;;  %v1693_v25 = vmul.f32 0.5, %v3942_v40 }
 0x2f1   :  { %v3946_v53 = vpop.eup %3945  ;;  %v1658_v26 = vmul.f32 0.5, %v1630_v30  ;;  %v1661_v15 = vmul.f32 0.5, %v1634_v50  ;;  %3955 = vtanh.f32 %v1646_v1  ;;  %v1664_v20 = vmul.f32 0.5, %v1638_v11 }
 0x2f2   :  { %v1642_v7 = vadd.f32 %v1578_v22, %v8639_v57  ;;  %v3948_v52 = vpop.eup %3947  ;;  %3957 = vtanh.f32 %v1649_v32  ;;  %v1555_v58 = vrot.slane %v6818_v13, 5  ;;  %v1559_v44 = vrot.slane %v6818_v13, 6 }
 0x2f3   :  { %v3950_v41 = vpop.eup %3949  ;;  %v1696_v0 = vmul.f32 0.5, %v3944_v51  ;;  %v1699_v23 = vmul.f32 0.5, %v3946_v53  ;;  %3959 = vtanh.f32 %v1652_v33  ;;  %v1563_v5 = vrot.slane %v6818_v13, 7 }
 0x2f4   :  { %v3952_v6 = vpop.eup %3951  ;;  %v1705_v60 = vmul.f32 0.5, %v3948_v52  ;;  %v1667_v4 = vmul.f32 0.5, %v1642_v7  ;;  %3961 = vtanh.f32 %v1655_v24  ;;  %v1708_v48 = vmul.f32 0.5, %v3950_v41 }
 0x2f5   :  { %v6834_v14 = vadd.f32 0.5, %v1693_v25  ;;  %v6836_v22 = vadd.f32 0.5, %v1702_v31  ;;  %3963 = vtanh.f32 %v1658_v26  ;;  %v6838_v59 = vpop.eup %3953  ;;  %v1711_v3 = vmul.f32 0.5, %v3952_v6 }
 0x2f6   :  { %3965 = vtanh.f32 %v1661_v15  ;;  %v8640_v30 = vunpack.c.l.bf16 %v6787_v17  ;;  %v8641_v27 = vunpack.c.l.bf16 %v6792_v49  ;;  %v6844_v32 = vadd.f32 0.5, %v1696_v0 }
 0x2f7   :  { %v3956_v1 = vpop.eup %3955  ;;  %v6846_v40 = vadd.f32 0.5, %v1699_v23  ;;  %3967 = vtanh.f32 %v1664_v20  ;;  %v8642_v33 = vunpack.c.l.bf16 %v6797_v63  ;;  %v6850_v57 = vadd.f32 0.5, %v1705_v60 }
 0x2f8   :  { %v1615_v50 = vadd.f32 %v1555_v58, %v8640_v30  ;;  %v1619_v11 = vadd.f32 %v1559_v44, %v8641_v27  ;;  %v3958_v31 = vpop.eup %3957  ;;  %v1694_v7 = vmul.f32 0.5, %v3956_v1  ;;  %v1567_v24 = vrot.slane %v6818_v13, 1 }
 0x2f9   :  { %v1623_v51 = vadd.f32 %v1563_v5, %v8642_v33  ;;  %v8643_v53 = vunpack.c.l.bf16 %v6778_v2  ;;  %v3960_v26 = vpop.eup %3959  ;;  %v6856_v15 = vadd.f32 0.5, %v1708_v48  ;;  %v1697_v52 = vmul.f32 0.5, %v3958_v31  ;;  %v6861_v5 = vpop.f32.mrf.mxu3 }
 0x2fa   :  { %v1647_v20 = vmul.f32 0.5, %v1615_v50  ;;  %v3962_v44 = vpop.eup %3961  ;;  %v6859_v41 = vadd.f32 0.5, %v1711_v3  ;;  %3969 = vtanh.f32 %v1667_v4  ;;  %v1700_v0 = vmul.f32 0.5, %v3960_v26 }
 0x2fb   :  { %v1627_v25 = vadd.f32 %v6818_v13, %v8643_v53  ;;  %v1650_v23 = vmul.f32 0.5, %v1619_v11  ;;  %v3964_v6 = vpop.eup %3963  ;;  %v1703_v60 = vmul.f32 0.5, %v3962_v44  ;;  %v1718_v30 = vadd.f32 0.5, %v1694_v7 }
 0x2fc   :  { %v1721_v27 = vadd.f32 0.5, %v1697_v52  ;;  %v1653_v1 = vmul.f32 0.5, %v1623_v51  ;;  %v3966_v33 = vpop.eup %3965  ;;  %v1706_v48 = vmul.f32 0.5, %v3964_v6  ;;  %v1724_v53 = vadd.f32 0.5, %v1700_v0 }
 0x2fd   :  { %v1631_v31 = vadd.f32 %v1567_v24, %v1432_v54  ;;  %v1656_v50 = vmul.f32 0.5, %v1627_v25  ;;  %v3968_v58 = vpop.eup %3967  ;;  %v1709_v3 = vmul.f32 0.5, %v3966_v33  ;;  %3971 = vtanh.f32 %v1647_v20 }
 0x2fe   :  { %v1556_v4 = vrot.slane %v6861_v5, 5  ;;  %v1560_v11 = vrot.slane %v6861_v5, 6  ;;  %v1712_v26 = vmul.f32 0.5, %v3968_v58  ;;  %v1727_v47 = vadd.f32 0.5, %v1703_v60 }
 0x2ff   :  { %3973 = vtanh.f32 %v1650_v23  ;;  %v1564_v7 = vrot.slane %v6861_v5, 7  ;;  %v8644_v51 = vrot.slane %v6257_v28, 7  ;;  %v8645_v44 = vrot.slane %v6260_v10, 7  ;;  %v1411_v28 = vld [vmem:[%s8318_s0 + $0x68] sm:$0x22] }
 0x300   :  { %3975 = vtanh.f32 %v1653_v1  ;;  %v1568_v24 = vrot.slane %v6861_v5, 1  ;;  %v3970_v25 = vpop.eup %3969  ;;  %v1730_v20 = vadd.f32 0.5, %v1706_v48  ;;  %v8646_v0 = vrot.slane %v6269_v29, 7  ;;  %v1413_v29 = vld [vmem:[%s8318_s0 + $0x78] sm:$0x22] }
 0x301   :  { %v6870_v52 = vmul.f32 %v8644_v51, %v1718_v30  ;;  %v6874_v54 = vmul.f32 %v8645_v44, %v1721_v27  ;;  %3977 = vtanh.f32 %v1656_v50  ;;  %v1572_v23 = vrot.slane %v6861_v5, 2 }
 0x302   :  { %v6879_v58 = vmul.f32 %v8646_v0, %v1724_v53  ;;  %v1733_v6 = vadd.f32 0.5, %v1709_v3  ;;  %v1616_v10 = vadd.f32 %v1556_v4, %v1417_v34  ;;  %v1620_v60 = vadd.f32 %v1560_v11, %v1421_v8 }
 0x303   :  { %v1624_v30 = vadd.f32 %v1564_v7, %v1425_v36  ;;  %v6894_v27 = vadd.f32 0.5, %v1712_v26  ;;  %v8647_v1 = vrot.slane %v6271_v55, 7  ;;  %v1576_v48 = vrot.slane %v6861_v5, 3  ;;  %v3972_v34 = vpop.eup %3971 }
 0x304   :  { %v8648_v17 = vunpack.c.h.bf16 %v6778_v2  ;;  %v1632_v63 = vadd.f32 %v1568_v24, %v1433_v62  ;;  %3979 = vtanh.f32 %v1616_v10  ;;  %v1436_v8 = vunpack.c.l.bf16 %v6828_v38 }
 0x305   :  { %v6898_v33 = vmul.f32 %v8647_v1, %v1727_v47  ;;  %v1440_v36 = vunpack.c.l.bf16 %v1411_v28  ;;  %v3974_v53 = vpop.eup %3973  ;;  %v1580_v50 = vrot.slane %v6861_v5, 4  ;;  %v8649_v55 = vunpack.c.h.bf16 %v6828_v38 }
 0x306   :  { %v1628_v49 = vadd.f32 %v6861_v5, %v8648_v17  ;;  %3981 = vtanh.f32 %v1620_v60  ;;  %v1444_v3 = vunpack.c.l.bf16 %v1413_v29  ;;  %v3976_v4 = vpop.eup %3975  ;;  %v1441_v2 = vunpack.c.h.bf16 %v1411_v28 }
 0x307   :  { %v1636_v47 = vadd.f32 %v1572_v23, %v8649_v55  ;;  %3983 = vtanh.f32 %v1624_v30  ;;  %v1575_v11 = vrot.slane %v6818_v13, 3  ;;  %v1579_v19 = vrot.slane %v6818_v13, 4  ;;  %v3978_v62 = vpop.eup %3977 }
 0x308   :  { %3985 = vtanh.f32 %v1628_v49  ;;  %v1445_v26 = vunpack.c.h.bf16 %v1413_v29  ;;  %v8650_v7 = vrot.slane %v6818_v13, 2  ;;  %v1659_v44 = vmul.f32 0.5, %v1631_v31 }
 0x309   :  { %v1695_v5 = vmul.f32 0.5, %v3972_v34  ;;  %3987 = vtanh.f32 %v1632_v63  ;;  %v1639_v38 = vadd.f32 %v1575_v11, %v1440_v36  ;;  %v1643_v24 = vadd.f32 %v1579_v19, %v1444_v3 }
 0x30a   :  { %v1635_v51 = vadd.f32 %v8650_v7, %v1436_v8  ;;  %v8651_v0 = vrot.slane %v6273_v21, 7  ;;  %v1698_v10 = vmul.f32 0.5, %v3974_v53  ;;  %3989 = vtanh.f32 %v1636_v47  ;;  %v3980_v60 = vpop.eup %3979 }
 0x30b   :  { %v1640_v30 = vadd.f32 %v1576_v48, %v1441_v2  ;;  %v1665_v1 = vmul.f32 0.5, %v1639_v38  ;;  %v1668_v17 = vmul.f32 0.5, %v1643_v24  ;;  %3991 = vtanh.f32 %v1659_v44 }
 0x30c   :  { %v1777_v23 = vmul.f32 %v8651_v0, %v1730_v20  ;;  %v1662_v28 = vmul.f32 0.5, %v1635_v51  ;;  %v3982_v29 = vpop.eup %3981  ;;  %v1781_v13 = vmul.f32 %v3980_v60, %v6834_v14  ;;  %v1644_v49 = vadd.f32 %v1580_v50, %v1445_v26 }
 0x30d   :  { %v1715_v31 = vmul.f32 0.5, %v3970_v25  ;;  %v3984_v34 = vpop.eup %3983  ;;  %v1719_v63 = vadd.f32 0.5, %v1695_v5  ;;  %v1782_v8 = vmul.f32 %v3982_v29, %v6844_v32  ;;  %v1701_v21 = vmul.f32 0.5, %v3976_v4 }
 0x30e   :  { %3993 = vtanh.f32 %v1662_v28  ;;  %v3986_v20 = vpop.eup %3985  ;;  %v1783_v36 = vmul.f32 %v3984_v34, %v6846_v40  ;;  %v6920_v48 = vadd.f32 %v1781_v13, %v6870_v52  ;;  %v1714_v53 = vmul.f32 0.5, %v6838_v59 }
 0x30f   :  { %3995 = vtanh.f32 %v1665_v1  ;;  %v3988_v55 = vpop.eup %3987  ;;  %v1784_v14 = vmul.f32 %v3986_v20, %v6836_v22  ;;  %v6925_v25 = vadd.f32 %v1782_v8, %v6874_v54  ;;  %v8652_v32 = vrot.slane %v6279_v35, 7  ;;  %v4468_v20 = vld [vmem:[%s8317_s1] sm:$0xff] }
 0x310   :  { %3997 = vtanh.f32 %v1668_v17  ;;  %v3990_v47 = vpop.eup %3989  ;;  %v1704_v3 = vmul.f32 0.5, %v3978_v62  ;;  %v1739_v4 = vadd.f32 0.5, %v1715_v31  ;;  %v1785_v40 = vmul.f32 %v3988_v55, %v6850_v57 }
 0x311   :  { %3999 = vtanh.f32 %v1640_v30  ;;  %v1778_v50 = vmul.f32 %v8652_v32, %v1733_v6  ;;  %v3992_v52 = vpop.eup %3991  ;;  %v1786_v2 = vmul.f32 %v3990_v47, %v6856_v15  ;;  %v6932_v59 = vadd.f32 %v1783_v36, %v6879_v58 }
 0x312   :  { %4001 = vtanh.f32 %v1644_v49  ;;  %v6935_v22 = vadd.f32 %v1784_v14, %v6898_v33  ;;  %v1722_v35 = vadd.f32 0.5, %v1698_v10  ;;  %v1707_v6 = vmul.f32 0.5, %v3992_v52 }
 0x313   :  { %4003 = vtanh.f32 %v6920_v48  ;;  %v6938_v11 = vadd.f32 %v1785_v40, %v1777_v23  ;;  %v1738_v62 = vadd.f32 0.5, %v1714_v53  ;;  %v6941_v26 = vadd.f32 %v1786_v2, %v1778_v50 }
 0x314   :  { %v3994_v54 = vpop.eup %3993  ;;  %4005 = vtanh.f32 %v6925_v25  ;;  %v1725_v33 = vadd.f32 0.5, %v1701_v21  ;;  %v8653_v7 = vrot.slane %v6293_v61, 7  ;;  %v1728_v5 = vadd.f32 0.5, %v1704_v3 }
 0x315   :  { %v3996_v19 = vpop.eup %3995  ;;  %v1710_v57 = vmul.f32 0.5, %v3994_v54  ;;  %4007 = vtanh.f32 %v6932_v59  ;;  %v8654_v38 = vrot.slane %v6295_v45, 7  ;;  %v1820_v0 = vrot.slane %v6745_v42, 5 }
 0x316   :  { %v3998_v15 = vpop.eup %3997  ;;  %v1713_v58 = vmul.f32 0.5, %v3996_v19  ;;  %v1779_v51 = vmul.f32 %v8653_v7, %v6894_v27  ;;  %4009 = vtanh.f32 %v6935_v22  ;;  %v1731_v10 = vadd.f32 0.5, %v1707_v6 }
 0x317   :  { %v4000_v44 = vpop.eup %3999  ;;  %v1780_v24 = vmul.f32 %v8654_v38, %v1739_v4  ;;  %4011 = vtanh.f32 %v6938_v11  ;;  %v1821_v61 = vrot.slane %v6745_v42, 6  ;;  %v1716_v60 = vmul.f32 0.5, %v3998_v15 }
 0x318   :  { %v4002_v23 = vpop.eup %4001  ;;  %v1787_v28 = vmul.f32 %v4000_v44, %v6859_v41  ;;  %4013 = vtanh.f32 %v6941_v26  ;;  %v1734_v30 = vadd.f32 0.5, %v1710_v57  ;;  %v1822_v17 = vrot.slane %v6745_v42, 7 }
 0x319   :  { %v4004_v27 = vpop.eup %4003  ;;  %v1788_v1 = vmul.f32 %v4002_v23, %v1738_v62  ;;  %v1737_v29 = vadd.f32 0.5, %v1713_v58  ;;  %v1823_v31 = vrot.slane %v6745_v42, 1  ;;  %v1824_v21 = vrot.slane %v6745_v42, 2 }
 0x31a   :  { %v4006_v45 = vpop.eup %4005  ;;  %v6956_v13 = vadd.f32 %v1787_v28, %v1779_v51  ;;  %v1805_v49 = vmul.f32 %v4004_v27, %v1719_v63  ;;  %vm2266_vm11 = vcmp.gt.s32.totalorder %v4468_v20, 4  ;;  %vm2719_vm12 = vcmp.gt.s32.totalorder %v4468_v20, 5  ;;  %v8670_v20 = vld [vmem:[#allocation17_spill] sm:$0xff] }
 0x31b   :  { %v4008_v34 = vpop.eup %4007  ;;  %v6959_v8 = vadd.f32 %v1788_v1, %v1780_v24  ;;  %v1806_v41 = vmul.f32 %v4006_v45, %v1722_v35  ;;  %v1825_v54 = vrot.slane %v6745_v42, 3  ;;  %v3671_v15 = vsel %vm2266_vm11, 1.0, %v8527_v37  ;;  %v8655_v45 = vld [vmem:[#allocation2_spill] sm:$0xff] }
 0x31c   :  { %v4010_v36 = vpop.eup %4009  ;;  %4015 = vtanh.f32 %v6956_v13  ;;  %v1807_v53 = vmul.f32 %v4008_v34, %v1725_v33  ;;  %v1835_v55 = vmul.f32 %v1820_v0, %v1805_v49  ;;  %v1907_v14 = vrot.slane %v1805_v49, 3  ;;  %v8657_v49 = vld [vmem:[#allocation4_spill] sm:$0xff]  ;;  %v8667_v34 = vld [vmem:[#allocation14_spill] sm:$0xff] }
 0x31d   :  { %v4012_v63 = vpop.eup %4011  ;;  %4017 = vtanh.f32 %v6959_v8  ;;  %v1808_v32 = vmul.f32 %v4010_v36, %v1728_v5  ;;  %v1836_v50 = vmul.f32 %v1821_v61, %v1806_v41  ;;  %v1908_v47 = vrot.slane %v1806_v41, 2  ;;  %v8668_v41 = vld [vmem:[#allocation15_spill] sm:$0xff]  ;;  %v8671_v36 = vld [vmem:[#allocation18_spill] sm:$0xff] }
 0x31e   :  { %v4014_v3 = vpop.eup %4013  ;;  %v1809_v4 = vmul.f32 %v4012_v63, %v1731_v10  ;;  %v1837_v40 = vmul.f32 %v1822_v17, %v1807_v53  ;;  %1843 = vst [vmem:[%s8319_s3] sm:$0x8] %v1835_v55  ;;  %v1910_v52 = vrot.slane %v1807_v53, 1  ;;  %v3672_v51 = vsel %vm2719_vm12, 1.0, %v8527_v37  ;;  %v8672_v53 = vld [vmem:[#allocation19_spill] sm:$0xff]  ;;  %v8673_v55 = vld [vmem:[#allocation20_spill] sm:$0xff]  ;;  %v8675_v63 = vld [vmem:[#allocation22_spill] sm:$0xff] }
 0x31f   :  { %v1810_v2 = vmul.f32 %v4014_v3, %v1734_v30  ;;  %v1838_v35 = vmul.f32 %v6745_v42, %v1808_v32  ;;  %1844 = vst [vmem:[%s8319_s3 + $0x8] sm:$0x8] %v1836_v50  ;;  %v1909_v6 = vsel %vm542_vm2, %v1908_v47, %v1907_v14  ;;  %v1740_v5 = vadd.f32 0.5, %v1716_v60  ;;  %v8674_v14 = vld [vmem:[#allocation21_spill] sm:$0xff]  ;;  %v8677_v50 = vld [vmem:[#allocation24_spill] sm:$0xff]  ;;  %v8679_v3 = vld [vmem:[#allocation26_spill] sm:$0xff] }
 0x320   :  { %v1839_v19 = vmul.f32 %v1823_v31, %v1809_v4  ;;  %1845 = vst [vmem:[%s8319_s3 + $0x10] sm:$0x8] %v1837_v40  ;;  %v1911_v57 = vsel %vm545_vm3, %v1910_v52, %v1909_v6  ;;  %v1913_v62 = vrot.slane %v1809_v4, 7  ;;  %v1826_v38 = vrot.slane %v6745_v42, 4  ;;  %v8666_v31 = vld [vmem:[#allocation13_spill] sm:$0xff]  ;;  %v8680_v4 = vld [vmem:[#allocation27_spill] sm:$0xff] }
 0x321   :  { %v1840_v58 = vmul.f32 %v1824_v21, %v1810_v2  ;;  %1846 = vst [vmem:[%s8319_s3 + $0x18] sm:$0x8] %v1838_v35  ;;  %v1912_v33 = vsel %vm548_vm4, %v1808_v32, %v1911_v57  ;;  %v1915_v7 = vrot.slane %v1810_v2, 6  ;;  %v3689_v0 = vpack.i.bf16 %v3672_v51, %v3671_v15  ;;  %v8669_v21 = vld [vmem:[#allocation16_spill] sm:$0xff]  ;;  %v8676_v32 = vld [vmem:[#allocation23_spill] sm:$0xff]  ;;  %v8678_v47 = vld [vmem:[#allocation25_spill] sm:$0xff] }
 0x322   :  { %v4016_v44 = vpop.eup %4015  ;;  %1847 = vst [vmem:[%s8319_s3 + $0x20] sm:$0x8] %v1839_v19  ;;  %v1914_v24 = vsel %vm551_vm5, %v1913_v62, %v1912_v33  ;;  %v8681_v40 = vld [vmem:[#allocation28_spill] sm:$0xff]  ;;  %v8682_v52 = vld [vmem:[#allocation29_spill] sm:$0xff]  ;;  %v8683_v2 = vld [vmem:[#allocation30_spill] sm:$0xff] }
 0x323   :  { %v4018_v23 = vpop.eup %4017  ;;  %v1811_v10 = vmul.f32 %v4016_v44, %v1737_v29  ;;  %1848 = vst [vmem:[%s8319_s3 + $0x28] sm:$0x8] %v1840_v58  ;;  %v1916_v28 = vsel %vm554_vm6, %v1915_v7, %v1914_v24  ;;  %3690 = vperm.xlu1 %3688, %v3689_v0   ;;  %v8656_v29 = vld [vmem:[#allocation3_spill] sm:$0xff]  ;;  %v8685_v35 = vld [vmem:[#allocation32_spill] sm:$0xff]  ;;  %v8686_v6 = vld [vmem:[#allocation33_spill] sm:$0xff] }
 0x324   :  { %v1812_v61 = vmul.f32 %v4018_v23, %v1740_v5  ;;  %v8687_v19 = vld [vmem:[#allocation34_spill] sm:$0xff]  ;;  %v8688_v57 = vld [vmem:[#allocation35_spill] sm:$0xff]  ;;  %v8689_v62 = vld [vmem:[#allocation36_spill] sm:$0xff] }
 0x325   :  { %v1841_v27 = vmul.f32 %v1825_v54, %v1811_v10  ;;  %v1917_v60 = vrot.slane %v1811_v10, 5  ;;  %v8684_v54 = vld [vmem:[#allocation31_spill] sm:$0xff]  ;;  %v8690_v15 = vld [vmem:[#allocation37_spill] sm:$0xff]  ;;  %v8691_v58 = vld [vmem:[#allocation38_spill] sm:$0xff] }
 0x326   :  { %v1842_v42 = vmul.f32 %v1826_v38, %v1812_v61  ;;  %v1919_v30 = vrot.slane %v1812_v61, 4  ;;  %v8692_v33 = vld [vmem:[#allocation39_spill] sm:$0xff]  ;;  %v8693_v7 = vld [vmem:[#allocation40_spill] sm:$0xff]  ;;  %v8694_v51 = vld [vmem:[#allocation41_spill] sm:$0xff] }
 0x327   :  { %1849 = vst [vmem:[%s8319_s3 + $0x30] sm:$0x8] %v1841_v27  ;;  %v1918_v1 = vsel %vm557_vm7, %v1917_v60, %v1916_v28  ;;  %v8695_v44 = vld [vmem:[#allocation42_spill] sm:$0xff]  ;;  %v8696_v5 = vld [vmem:[#allocation43_spill] sm:$0xff]  ;;  %v8697_v38 = vld [vmem:[#allocation44_spill] sm:$0xff] }
 0x328   :  { %1850 = vst [vmem:[%s8319_s3 + $0x38] sm:$0x8] %v1842_v42  ;;  %v1920_v17 = vsel %vm560_vm8, %v1919_v30, %v1918_v1  ;;  %v8698_v24 = vld [vmem:[#allocation45_spill] sm:$0xff]  ;;  %v8699_v0 = vld [vmem:[#allocation46_spill] sm:$0xff]  ;;  %v8700_v23 = vld [vmem:[#allocation47_spill] sm:$0xff] }
 0x329   :  { %1938 = vmatmul.f32.vlgmr.msra.gmra.mxu0 %v1920_v17  ;;  %1958 = vmatmul.f32.vlgmr.msra.gmra.mxu1 %v1920_v17  ;;  %v8701_v10 = vld [vmem:[#allocation48_spill] sm:$0xff]  ;;  %v8702_v28 = vld [vmem:[#allocation49_spill] sm:$0xff]  ;;  %v8703_v61 = vld [vmem:[#allocation50_spill] sm:$0xff] }
 0x32a   :  { %1978 = vmatmul.f32.vlgmr.msra.gmra.mxu2 %v1920_v17  ;;  %1998 = vmatmul.f32.vlgmr.msra.gmra.mxu3 %v1920_v17  ;;  %v8704_v27 = vld [vmem:[#allocation51_spill] sm:$0xff]  ;;  %v8705_v60 = vld [vmem:[#allocation52_spill] sm:$0xff]  ;;  %v8706_v42 = vld [vmem:[#allocation53_spill] sm:$0xff] }
 0x32b   :  { %2828 = vmatpush.msra.mxu0 %v6338_v12  ;;  %2848 = vmatpush.msra.mxu1 %v6344_v56  ;;  %v8658_v12 = vld [vmem:[#allocation5_spill] sm:$0xff]  ;;  %v8659_v56 = vld [vmem:[#allocation6_spill] sm:$0xff]  ;;  %v8708_v1 = vld [vmem:[#allocation55_spill] sm:$0xff] }
 0x32c   :  { %2868 = vmatpush.msra.mxu2 %v6350_v16  ;;  %2888 = vmatpush.msra.mxu3 %v6356_v18  ;;  %v8660_v16 = vld [vmem:[#allocation7_spill] sm:$0xff]  ;;  %v8661_v18 = vld [vmem:[#allocation8_spill] sm:$0xff]  ;;  %v8707_v30 = vld [vmem:[#allocation54_spill] sm:$0xff] }
 0x32d   :  { %2829 = vmatpush.msra.mxu0 %v6362_v46  ;;  %2849 = vmatpush.msra.mxu1 %v6368_v9  ;;  %v8662_v46 = vld [vmem:[#allocation9_spill] sm:$0xff]  ;;  %v8663_v9 = vld [vmem:[#allocation10_spill] sm:$0xff]  ;;  %v8709_v17 = vld [vmem:[#allocation56_spill] sm:$0xff] }
 0x32e   :  { %2869 = vmatpush.msra.mxu2 %v6374_v43  ;;  %2889 = vmatpush.msra.mxu3 %v6380_v39  ;;  %v8664_v43 = vld [vmem:[#allocation11_spill] sm:$0xff]  ;;  %v8665_v39 = vld [vmem:[#allocation12_spill] sm:$0xff] }
 0x32f   :  { %2830 = vmatpush.msra.mxu0 %v8655_v45  ;;  %2850 = vmatpush.msra.mxu1 %v8656_v29  ;;  %v8710_v45 = vld [vmem:[#allocation57_spill] sm:$0xff]  ;;  %v7071_v29 = vld [vmem:[%s8318_s0] sm:$0x44] }
 0x330   :  { %2870 = vmatpush.msra.mxu2 %v8657_v49  ;;  %2890 = vmatpush.msra.mxu3 %v8658_v12  ;;  %v7076_v49 = vld [vmem:[%s8318_s0 + $0x10] sm:$0x44]  ;;  %v7081_v12 = vld [vmem:[%s8318_s0 + $0x20] sm:$0x44] }
 0x331   :  { %2831 = vmatpush.msra.mxu0 %v8659_v56  ;;  %2851 = vmatpush.msra.mxu1 %v8660_v16  ;;  %v7086_v56 = vld [vmem:[%s8318_s0 + $0x30] sm:$0x44]  ;;  %v7091_v16 = vld [vmem:[%s8318_s0 + $0x40] sm:$0x44] }
 0x332   :  { %2871 = vmatpush.msra.mxu2 %v8661_v18  ;;  %2891 = vmatpush.msra.mxu3 %v8662_v46  ;;  %v7096_v18 = vld [vmem:[%s8318_s0 + $0x50] sm:$0x44]  ;;  %v7101_v46 = vld [vmem:[%s8318_s0 + $0x60] sm:$0x44] }
 0x333   :  { %2832 = vmatpush.msra.mxu0 %v8663_v9  ;;  %2852 = vmatpush.msra.mxu1 %v8664_v43  ;;  %v7106_v9 = vld [vmem:[%s8318_s0 + $0x70] sm:$0x44]  ;;  %v2213_v43 = vrot.slane %v6935_v22, 7 }
 0x334   :  { %2872 = vmatpush.msra.mxu2 %v8665_v39  ;;  %2892 = vmatpush.msra.mxu3 %v8666_v31  ;;  %v2215_v39 = vrot.slane %v6941_v26, 7  ;;  %v2216_v31 = vrot.slane %v6956_v13, 7 }
 0x335   :  { %2833 = vmatpush.msra.mxu0 %v8667_v34  ;;  %2853 = vmatpush.msra.mxu1 %v8668_v41  ;;  %v1867_v34 = vunpack.c.l.bf16 %v7071_v29  ;;  %v1871_v41 = vunpack.c.l.bf16 %v7076_v49 }
 0x336   :  { %2873 = vmatpush.msra.mxu2 %v8669_v21  ;;  %2893 = vmatpush.msra.mxu3 %v8670_v20  ;;  %v1875_v21 = vunpack.c.l.bf16 %v7081_v12  ;;  %v1879_v20 = vunpack.c.l.bf16 %v7086_v56 }
 0x337   :  { %2834 = vmatpush.msra.mxu0 %v8671_v36  ;;  %2854 = vmatpush.msra.mxu1 %v8672_v53  ;;  %v1883_v36 = vunpack.c.l.bf16 %v7091_v16  ;;  %v1887_v53 = vunpack.c.l.bf16 %v7096_v18 }
 0x338   :  { %2874 = vmatpush.msra.mxu2 %v8673_v55  ;;  %2894 = vmatpush.msra.mxu3 %v8674_v14  ;;  %v1891_v55 = vunpack.c.l.bf16 %v7101_v46  ;;  %v1895_v14 = vunpack.c.l.bf16 %v7106_v9 }
 0x339   :  { %2835 = vmatpush.msra.mxu0 %v8675_v63  ;;  %2855 = vmatpush.msra.mxu1 %v8676_v32  ;;  %v2210_v63 = vrot.slane %v6920_v48, 7  ;;  %v2211_v32 = vrot.slane %v6925_v25, 7  ;;  %v1864_v48 = vld [vmem:[%s8318_s0 + $0x68] sm:$0x44] }
 0x33a   :  { %2875 = vmatpush.msra.mxu2 %v8677_v50  ;;  %2895 = vmatpush.msra.mxu3 %v8678_v47  ;;  %v2212_v50 = vrot.slane %v6932_v59, 7  ;;  %v2214_v47 = vrot.slane %v6938_v11, 7 }
 0x33b   :  { %2836 = vmatpush.msra.mxu0 %v8679_v3  ;;  %2856 = vmatpush.msra.mxu1 %v8680_v4  ;;  %v1868_v3 = vunpack.c.h.bf16 %v7071_v29  ;;  %v1872_v4 = vunpack.c.h.bf16 %v7076_v49 }
 0x33c   :  { %2876 = vmatpush.msra.mxu2 %v8681_v40  ;;  %2896 = vmatpush.msra.mxu3 %v8682_v52  ;;  %v1876_v40 = vunpack.c.h.bf16 %v7081_v12  ;;  %v1884_v52 = vunpack.c.h.bf16 %v7091_v16  ;;  %v7143_v12 = vld [vmem:[%s8318_s0 + $0x8] sm:$0x44] }
 0x33d   :  { %2837 = vmatpush.msra.mxu0 %v8683_v2  ;;  %2857 = vmatpush.msra.mxu1 %v8684_v54  ;;  %v1880_v54 = vunpack.c.h.bf16 %v7086_v56 }
 0x33e   :  { %2877 = vmatpush.msra.mxu2 %v8685_v35  ;;  %2897 = vmatpush.msra.mxu3 %v8686_v6  ;;  %v1888_v35 = vunpack.c.h.bf16 %v7096_v18  ;;  %v1892_v6 = vunpack.c.h.bf16 %v7101_v46 }
 0x33f   :  { %2838 = vmatpush.msra.mxu0 %v8687_v19  ;;  %2858 = vmatpush.msra.mxu1 %v8688_v57  ;;  %v1896_v19 = vunpack.c.h.bf16 %v7106_v9 }
 0x340   :  { %2878 = vmatpush.msra.mxu2 %v8689_v62  ;;  %2898 = vmatpush.msra.mxu3 %v8690_v15 }
 0x341   :  { %2839 = vmatpush.msra.mxu0 %v8691_v58  ;;  %2859 = vmatpush.msra.mxu1 %v8692_v33  ;;  %v7134_v33 = vld [vmem:[%s8318_s0 + $0x48] sm:$0x44] }
 0x342   :  { %2879 = vmatpush.msra.mxu2 %v8693_v7  ;;  %2899 = vmatpush.msra.mxu3 %v8694_v51 }
 0x343   :  { %2840 = vmatpush.msra.mxu0 %v8695_v44  ;;  %2860 = vmatpush.msra.mxu1 %v8696_v5 }
 0x344   :  { %2880 = vmatpush.msra.mxu2 %v8697_v38  ;;  %2900 = vmatpush.msra.mxu3 %v8698_v24 }
 0x345   :  { %2841 = vmatpush.msra.mxu0 %v8699_v0  ;;  %2861 = vmatpush.msra.mxu1 %v8700_v23 }
 0x346   :  { %2881 = vmatpush.msra.mxu2 %v8701_v10  ;;  %2901 = vmatpush.msra.mxu3 %v8702_v28 }
 0x347   :  { %2842 = vmatpush.msra.mxu0 %v8703_v61  ;;  %2862 = vmatpush.msra.mxu1 %v8704_v27 }
 0x348   :  { %2882 = vmatpush.msra.mxu2 %v8705_v60  ;;  %2902 = vmatpush.msra.mxu3 %v8706_v42  ;;  %v1885_v60 = vunpack.c.l.bf16 %v7134_v33 }
 0x349   :  { %2843 = vmatpush.msra.mxu0 %v8707_v30  ;;  %2863 = vmatpush.msra.mxu1 %v8708_v1 }
 0x34a   :  { %2883 = vmatpush.msra.mxu2 %v8709_v17  ;;  %2903 = vmatpush.msra.mxu3 %v8710_v45  ;;  %v1886_v17 = vunpack.c.h.bf16 %v7134_v33 }
 0x3a6   :  { %v1939_v2 = vpop.f32.mrf.mxu0  ;;  %v7136_v27 = vpop.f32.mrf.mxu1 }
 0x3a7   :  { %v2006_v57 = vrot.slane %v1939_v2, 4  ;;  %v2010_v62 = vrot.slane %v1939_v2, 5  ;;  %v2014_v15 = vrot.slane %v1939_v2, 6  ;;  %v2018_v58 = vrot.slane %v1939_v2, 7 }
 0x3a8   :  { %v2022_v7 = vrot.slane %v1939_v2, 1  ;;  %v2026_v51 = vrot.slane %v1939_v2, 2  ;;  %v2030_v44 = vrot.slane %v1939_v2, 3  ;;  %v2082_v5 = vadd.f32 %v1939_v2, %v1883_v36 }
 0x3a9   :  { %v2066_v38 = vadd.f32 %v2006_v57, %v1867_v34  ;;  %v2070_v24 = vadd.f32 %v2010_v62, %v1871_v41  ;;  %v2074_v0 = vadd.f32 %v2014_v15, %v1875_v21  ;;  %v2078_v23 = vadd.f32 %v2018_v58, %v1879_v20  ;;  %v7153_v20 = vld [vmem:[%s8318_s0 + $0x18] sm:$0x44]  ;;  %v7159_v62 = vld [vmem:[%s8318_s0 + $0x28] sm:$0x44] }
 0x3aa   :  { %v2086_v10 = vadd.f32 %v2022_v7, %v1887_v53  ;;  %v2090_v28 = vadd.f32 %v2026_v51, %v1891_v55  ;;  %v2110_v61 = vmul.f32 0.5, %v2082_v5  ;;  %v2094_v45 = vadd.f32 %v2030_v44, %v1895_v14 }
 0x3ab   :  { %v2098_v42 = vmul.f32 0.5, %v2066_v38  ;;  %v2101_v30 = vmul.f32 0.5, %v2070_v24  ;;  %v2104_v1 = vmul.f32 0.5, %v2074_v0  ;;  %v2107_v29 = vmul.f32 0.5, %v2078_v23 }
 0x3ac   :  { %v2113_v49 = vmul.f32 0.5, %v2086_v10  ;;  %4019 = vtanh.f32 %v2110_v61  ;;  %v2007_v56 = vrot.slane %v7136_v27, 4  ;;  %v2011_v16 = vrot.slane %v7136_v27, 5 }
 0x3ad   :  { %4021 = vtanh.f32 %v2098_v42  ;;  %v2015_v18 = vrot.slane %v7136_v27, 6  ;;  %v2116_v34 = vmul.f32 0.5, %v2090_v28  ;;  %v2019_v41 = vrot.slane %v7136_v27, 7  ;;  %v7171_v0 = vpop.f32.mrf.mxu2 }
 0x3ae   :  { %4023 = vtanh.f32 %v2101_v30  ;;  %v2023_v21 = vrot.slane %v7136_v27, 1  ;;  %v2067_v36 = vadd.f32 %v2007_v56, %v1868_v3  ;;  %v2071_v53 = vadd.f32 %v2011_v16, %v1872_v4  ;;  %v7166_v3 = vld [vmem:[%s8318_s0 + $0x38] sm:$0x44] }
 0x3af   :  { %4025 = vtanh.f32 %v2104_v1  ;;  %v1869_v55 = vunpack.c.l.bf16 %v7143_v12  ;;  %v2119_v14 = vmul.f32 0.5, %v2094_v45  ;;  %v2075_v2 = vadd.f32 %v2015_v18, %v1876_v40 }
 0x3b0   :  { %4027 = vtanh.f32 %v2107_v29  ;;  %v2079_v57 = vadd.f32 %v2019_v41, %v1880_v54  ;;  %v2027_v15 = vrot.slane %v7136_v27, 2  ;;  %v2083_v58 = vadd.f32 %v7136_v27, %v1884_v52 }
 0x3b1   :  { %4029 = vtanh.f32 %v2113_v49  ;;  %v1873_v4 = vunpack.c.l.bf16 %v7153_v20  ;;  %v2087_v40 = vadd.f32 %v2023_v21, %v1888_v35  ;;  %v2099_v54 = vmul.f32 0.5, %v2067_v36  ;;  %v7178_v35 = vld [vmem:[%s8318_s0 + $0x58] sm:$0x44] }
 0x3b2   :  { %v4020_v7 = vpop.eup %4019  ;;  %4031 = vtanh.f32 %v2116_v34  ;;  %v2102_v51 = vmul.f32 0.5, %v2071_v53  ;;  %v2031_v5 = vrot.slane %v7136_v27, 3  ;;  %v2105_v38 = vmul.f32 0.5, %v2075_v2 }
 0x3b3   :  { %v4022_v44 = vpop.eup %4021  ;;  %v1877_v24 = vunpack.c.l.bf16 %v7159_v62  ;;  %v1870_v52 = vunpack.c.h.bf16 %v7143_v12  ;;  %4033 = vtanh.f32 %v2119_v14  ;;  %v2108_v10 = vmul.f32 0.5, %v2079_v57 }
 0x3b4   :  { %v4024_v23 = vpop.eup %4023  ;;  %v1881_v28 = vunpack.c.l.bf16 %v7166_v3  ;;  %v1874_v61 = vunpack.c.h.bf16 %v7153_v20  ;;  %v2091_v42 = vadd.f32 %v2027_v15, %v1892_v6  ;;  %v2111_v30 = vmul.f32 0.5, %v2083_v58 }
 0x3b5   :  { %v4026_v27 = vpop.eup %4025  ;;  %4035 = vtanh.f32 %v2099_v54  ;;  %v1878_v1 = vunpack.c.h.bf16 %v7159_v62  ;;  %v2114_v29 = vmul.f32 0.5, %v2087_v40  ;;  %v2008_v49 = vrot.slane %v7171_v0, 4 }
 0x3b6   :  { %v4028_v45 = vpop.eup %4027  ;;  %4037 = vtanh.f32 %v2102_v51  ;;  %v1882_v56 = vunpack.c.h.bf16 %v7166_v3  ;;  %v2095_v18 = vadd.f32 %v2031_v5, %v1896_v19  ;;  %v2012_v34 = vrot.slane %v7171_v0, 5 }
 0x3b7   :  { %v4030_v16 = vpop.eup %4029  ;;  %4039 = vtanh.f32 %v2105_v38  ;;  %v1890_v46 = vunpack.c.h.bf16 %v7178_v35  ;;  %v2146_v41 = vmul.f32 0.5, %v4022_v44  ;;  %v2158_v21 = vmul.f32 0.5, %v4020_v7 }
 0x3b8   :  { %v4032_v6 = vpop.eup %4031  ;;  %4041 = vtanh.f32 %v2108_v10  ;;  %v2016_v36 = vrot.slane %v7171_v0, 6  ;;  %v2149_v53 = vmul.f32 0.5, %v4024_v23  ;;  %v2152_v14 = vmul.f32 0.5, %v4026_v27 }
 0x3b9   :  { %v2117_v2 = vmul.f32 0.5, %v2091_v42  ;;  %4043 = vtanh.f32 %v2111_v30  ;;  %v7191_v57 = vpop.eup %4033  ;;  %v2155_v15 = vmul.f32 0.5, %v4028_v45  ;;  %v2020_v9 = vrot.slane %v7171_v0, 7 }
 0x3ba   :  { %4045 = vtanh.f32 %v2114_v29  ;;  %v2068_v19 = vadd.f32 %v2008_v49, %v1869_v55  ;;  %v2161_v40 = vmul.f32 0.5, %v4030_v16  ;;  %v2164_v54 = vmul.f32 0.5, %v4032_v6 }
 0x3bb   :  { %v4036_v58 = vpop.eup %4035  ;;  %v2120_v51 = vmul.f32 0.5, %v2095_v18  ;;  %v2072_v44 = vadd.f32 %v2012_v34, %v1873_v4  ;;  %v7194_v5 = vadd.f32 0.5, %v2146_v41  ;;  %v7196_v38 = vadd.f32 0.5, %v2158_v21  ;;  %v7205_v18 = vpop.f32.mrf.mxu3 }
 0x3bc   :  { %v4038_v7 = vpop.eup %4037  ;;  %v2147_v23 = vmul.f32 0.5, %v4036_v58  ;;  %v2076_v10 = vadd.f32 %v2016_v36, %v1877_v24  ;;  %v7198_v42 = vadd.f32 0.5, %v2149_v53  ;;  %v7200_v30 = vadd.f32 0.5, %v2152_v14 }
 0x3bd   :  { %v4040_v27 = vpop.eup %4039  ;;  %4047 = vtanh.f32 %v2117_v2  ;;  %v2150_v45 = vmul.f32 0.5, %v4038_v7  ;;  %v7202_v29 = vadd.f32 0.5, %v2155_v15  ;;  %v2024_v49 = vrot.slane %v7171_v0, 1 }
 0x3be   :  { %v4042_v55 = vpop.eup %4041  ;;  %v2080_v4 = vadd.f32 %v2020_v9, %v1881_v28  ;;  %v2100_v16 = vmul.f32 0.5, %v2068_v19  ;;  %v7207_v6 = vadd.f32 0.5, %v2161_v40  ;;  %v7209_v24 = vadd.f32 0.5, %v2164_v54 }
 0x3bf   :  { %v4044_v34 = vpop.eup %4043  ;;  %v2153_v41 = vmul.f32 0.5, %v4040_v27  ;;  %v2103_v21 = vmul.f32 0.5, %v2072_v44  ;;  %4049 = vtanh.f32 %v2120_v51  ;;  %v2156_v53 = vmul.f32 0.5, %v4042_v55 }
 0x3c0   :  { %v4046_v36 = vpop.eup %4045  ;;  %v2171_v14 = vadd.f32 0.5, %v2147_v23  ;;  %v2106_v2 = vmul.f32 0.5, %v2076_v10  ;;  %v2174_v15 = vadd.f32 0.5, %v2150_v45  ;;  %v2084_v28 = vadd.f32 %v7171_v0, %v1885_v60 }
 0x3c1   :  { %v2009_v9 = vrot.slane %v7205_v18, 4  ;;  %v2013_v19 = vrot.slane %v7205_v18, 5  ;;  %v2159_v58 = vmul.f32 0.5, %v4044_v34  ;;  %v2109_v40 = vmul.f32 0.5, %v2080_v4 }
 0x3c2   :  { %4051 = vtanh.f32 %v2100_v16  ;;  %v2017_v54 = vrot.slane %v7205_v18, 6  ;;  %v2162_v7 = vmul.f32 0.5, %v4046_v36  ;;  %v2177_v51 = vadd.f32 0.5, %v2153_v41 }
 0x3c3   :  { %v4048_v44 = vpop.eup %4047  ;;  %4053 = vtanh.f32 %v2103_v21  ;;  %v2021_v23 = vrot.slane %v7205_v18, 7  ;;  %v2180_v10 = vadd.f32 0.5, %v2156_v53  ;;  %v2226_v27 = vmul.f32 %v2210_v63, %v2171_v14 }
 0x3c4   :  { %4055 = vtanh.f32 %v2106_v2  ;;  %v2025_v60 = vrot.slane %v7205_v18, 1  ;;  %v2227_v45 = vmul.f32 %v2211_v32, %v2174_v15  ;;  %v2069_v55 = vadd.f32 %v2009_v9, %v1870_v52  ;;  %v1866_v32 = vld [vmem:[%s8318_s0 + $0x78] sm:$0x44] }
 0x3c5   :  { %v2073_v4 = vadd.f32 %v2013_v19, %v1874_v61  ;;  %v2077_v16 = vadd.f32 %v2017_v54, %v1878_v1  ;;  %v4050_v63 = vpop.eup %4049  ;;  %v2165_v34 = vmul.f32 0.5, %v4048_v44  ;;  %v2183_v41 = vadd.f32 0.5, %v2159_v58 }
 0x3c6   :  { %4057 = vtanh.f32 %v2109_v40  ;;  %v2081_v25 = vadd.f32 %v2021_v23, %v1882_v56  ;;  %v2186_v12 = vadd.f32 0.5, %v2162_v7  ;;  %v2228_v20 = vmul.f32 %v2212_v50, %v2177_v51 }
 0x3c7   :  { %v2085_v62 = vadd.f32 %v7205_v18, %v1886_v17  ;;  %4059 = vtanh.f32 %v2069_v55  ;;  %v2089_v61 = vadd.f32 %v2025_v60, %v1890_v46  ;;  %v1889_v3 = vunpack.c.l.bf16 %v7178_v35 }
 0x3c8   :  { %v4052_v52 = vpop.eup %4051  ;;  %4061 = vtanh.f32 %v2073_v4  ;;  %v1893_v1 = vunpack.c.l.bf16 %v1864_v48  ;;  %v2029_v21 = vrot.slane %v7205_v18, 2  ;;  %v1894_v36 = vunpack.c.h.bf16 %v1864_v48 }
 0x3c9   :  { %v4054_v56 = vpop.eup %4053  ;;  %4063 = vtanh.f32 %v2077_v16  ;;  %v1897_v59 = vunpack.c.l.bf16 %v1866_v32  ;;  %v2028_v33 = vrot.slane %v7171_v0, 2  ;;  %v2032_v17 = vrot.slane %v7171_v0, 3 }
 0x3ca   :  { %v4056_v50 = vpop.eup %4055  ;;  %4065 = vtanh.f32 %v2081_v25  ;;  %v2088_v53 = vadd.f32 %v2024_v49, %v1889_v3  ;;  %v2033_v14 = vrot.slane %v7205_v18, 3  ;;  %v1898_v46 = vunpack.c.h.bf16 %v1866_v32 }
 0x3cb   :  { %4067 = vtanh.f32 %v2085_v62  ;;  %v2112_v2 = vmul.f32 0.5, %v2084_v28  ;;  %v2092_v15 = vadd.f32 %v2028_v33, %v1893_v1  ;;  %v2096_v9 = vadd.f32 %v2032_v17, %v1897_v59 }
 0x3cc   :  { %v4058_v35 = vpop.eup %4057  ;;  %4069 = vtanh.f32 %v2089_v61  ;;  %v2115_v19 = vmul.f32 0.5, %v2088_v53  ;;  %v2189_v40 = vadd.f32 0.5, %v2165_v34  ;;  %v2229_v54 = vmul.f32 %v2213_v43, %v2180_v10 }
 0x3cd   :  { %v4060_v58 = vpop.eup %4059  ;;  %v2093_v44 = vadd.f32 %v2029_v21, %v1894_v36  ;;  %4071 = vtanh.f32 %v2112_v2  ;;  %v2118_v49 = vmul.f32 0.5, %v2092_v15  ;;  %v2121_v18 = vmul.f32 0.5, %v2096_v9 }
 0x3ce   :  { %v4062_v7 = vpop.eup %4061  ;;  %v2234_v0 = vmul.f32 %v4060_v58, %v7194_v5  ;;  %4073 = vtanh.f32 %v2115_v19  ;;  %v2230_v28 = vmul.f32 %v2214_v47, %v2183_v41  ;;  %v2148_v23 = vmul.f32 0.5, %v4052_v52  ;;  %v7261_v47 = vpop.permute.xlu1 %3690 }
 0x3cf   :  { %v4064_v51 = vpop.eup %4063  ;;  %v2235_v60 = vmul.f32 %v4062_v7, %v7198_v42  ;;  %v2097_v55 = vadd.f32 %v2033_v14, %v1898_v46  ;;  %4075 = vtanh.f32 %v2118_v49  ;;  %v2168_v10 = vmul.f32 0.5, %v4050_v63 }
 0x3d0   :  { %v4066_v4 = vpop.eup %4065  ;;  %v2236_v22 = vmul.f32 %v4064_v51, %v7200_v30  ;;  %v7256_v43 = vadd.f32 %v2234_v0, %v2226_v27  ;;  %v2151_v5 = vmul.f32 0.5, %v4054_v56  ;;  %4077 = vtanh.f32 %v2121_v18 }
 0x3d1   :  { %v4068_v16 = vpop.eup %4067  ;;  %v2237_v48 = vmul.f32 %v4066_v4, %v7202_v29  ;;  %v7259_v34 = vadd.f32 %v2235_v60, %v2227_v45  ;;  %v2167_v42 = vmul.f32 0.5, %v7191_v57  ;;  %4079 = vtanh.f32 %v2093_v44 }
 0x3d2   :  { %v4070_v11 = vpop.eup %4069  ;;  %v2231_v30 = vmul.f32 %v2215_v39, %v2186_v12  ;;  %v2238_v27 = vmul.f32 %v4068_v16, %v7196_v38  ;;  %v2154_v63 = vmul.f32 0.5, %v4056_v50  ;;  %4081 = vtanh.f32 %v2097_v55 }
 0x3d3   :  { %v4072_v41 = vpop.eup %4071  ;;  %v2239_v25 = vmul.f32 %v4070_v11, %v7207_v6  ;;  %v7268_v29 = vadd.f32 %v2236_v22, %v2228_v20  ;;  %v2192_v32 = vadd.f32 0.5, %v2168_v10  ;;  %v7270_v62 = vadd.f32 %v2237_v48, %v2229_v54 }
 0x3d4   :  { %v4074_v45 = vpop.eup %4073  ;;  %v7272_v52 = vadd.f32 %v2238_v27, %v2230_v28  ;;  %4083 = vtanh.f32 %v7256_v43  ;;  %v7276_v26 = vunpack.i.l.bf16 %v7261_v47  ;;  %v2157_v39 = vmul.f32 0.5, %v4058_v35 }
 0x3d5   :  { %v7278_v57 = vadd.f32 %v2239_v25, %v2231_v30  ;;  %4085 = vtanh.f32 %v7259_v34  ;;  %v4076_v38 = vpop.eup %4075  ;;  %v2217_v6 = vrot.slane %v6959_v8, 7  ;;  %v2160_v12 = vmul.f32 0.5, %v4072_v41 }
 0x3d6   :  { %v2191_v20 = vadd.f32 0.5, %v2167_v42  ;;  %4087 = vtanh.f32 %v7268_v29  ;;  %v4078_v61 = vpop.eup %4077  ;;  %v2172_v3 = vadd.f32 0.5, %v2148_v23  ;;  %v2163_v1 = vmul.f32 0.5, %v4074_v45 }
 0x3d7   :  { %v2232_v56 = vmul.f32 %v2216_v31, %v2189_v40  ;;  %4089 = vtanh.f32 %v7270_v62  ;;  %v4080_v21 = vpop.eup %4079  ;;  %v2175_v36 = vadd.f32 0.5, %v2151_v5  ;;  %v2178_v59 = vadd.f32 0.5, %v2154_v63 }
 0x3d8   :  { %v2233_v50 = vmul.f32 %v2217_v6, %v2192_v32  ;;  %4091 = vtanh.f32 %v7272_v52  ;;  %v4082_v33 = vpop.eup %4081  ;;  %v2181_v8 = vadd.f32 0.5, %v2157_v39  ;;  %v2240_v17 = vmul.f32 %v4080_v21, %v7209_v24 }
 0x3d9   :  { %4093 = vtanh.f32 %v7278_v57  ;;  %v2273_v53 = vrot.slane %v7276_v26, 4  ;;  %v2184_v46 = vadd.f32 0.5, %v2160_v12  ;;  %v2241_v13 = vmul.f32 %v4082_v33, %v2191_v20 }
 0x3da   :  { %v4084_v14 = vpop.eup %4083  ;;  %v2274_v31 = vrot.slane %v7276_v26, 5  ;;  %v2275_v2 = vrot.slane %v7276_v26, 6  ;;  %v2166_v15 = vmul.f32 0.5, %v4076_v38  ;;  %v2187_v9 = vadd.f32 0.5, %v2163_v1 }
 0x3db   :  { %v4086_v35 = vpop.eup %4085  ;;  %v7292_v19 = vadd.f32 %v2240_v17, %v2232_v56  ;;  %v2258_v58 = vmul.f32 %v4084_v14, %v2172_v3  ;;  %v7294_v54 = vadd.f32 %v2241_v13, %v2233_v50  ;;  %v2276_v44 = vrot.slane %v7276_v26, 7  ;;  %v4470_v17 = vld [vmem:[%s8316_s2 + $0x1e8] sm:$0xff]  ;;  %v4472_v14 = vld [vmem:[%s8316_s2 + $0x1f8] sm:$0xff] }
 0x3dc   :  { %v4088_v40 = vpop.eup %4087  ;;  %v2259_v24 = vmul.f32 %v4086_v35, %v2175_v36  ;;  %v2277_v7 = vrot.slane %v7276_v26, 1  ;;  %v2169_v22 = vmul.f32 0.5, %v4078_v61  ;;  %v2278_v27 = vrot.slane %v7276_v26, 2  ;;  %v4474_v13 = vld [vmem:[%s8316_s2 + $0x1c8] sm:$0xff]  ;;  %v4477_v35 = vld [vmem:[%s8316_s2 + $0x1a0] sm:$0xff] }
 0x3dd   :  { %v4090_v0 = vpop.eup %4089  ;;  %4095 = vtanh.f32 %v7292_v19  ;;  %v2260_v49 = vmul.f32 %v4088_v40, %v2178_v59  ;;  %v2288_v18 = vmul.f32 %v2273_v53, %v2258_v58  ;;  %v2360_v51 = vrot.slane %v2258_v58, 4  ;;  %v4471_v53 = vld [vmem:[%s8316_s2 + $0x1f0] sm:$0xff]  ;;  %v4480_v58 = vld [vmem:[%s8316_s2 + $0x1b8] sm:$0xff]  ;;  %v4481_v40 = vld [vmem:[%s8316_s2 + $0x180] sm:$0xff] }
 0x3de   :  { %v4092_v28 = vpop.eup %4091  ;;  %4097 = vtanh.f32 %v7294_v54  ;;  %v2261_v23 = vmul.f32 %v4090_v0, %v2181_v8  ;;  %v2289_v60 = vmul.f32 %v2274_v31, %v2259_v24  ;;  %v2361_v55 = vrot.slane %v2259_v24, 3  ;;  %v4469_v8 = vld [vmem:[%s8316_s2 + $0x1e0] sm:$0xff]  ;;  %v4475_v31 = vld [vmem:[%s8316_s2 + $0x1d0] sm:$0xff]  ;;  %v4482_v24 = vld [vmem:[%s8316_s2 + $0x188] sm:$0xff] }
 0x3df   :  { %v4094_v4 = vpop.eup %4093  ;;  %v2262_v10 = vmul.f32 %v4092_v28, %v2184_v46  ;;  %v2290_v16 = vmul.f32 %v2275_v2, %v2260_v49  ;;  %2296 = vst [vmem:[%s8319_s3] sm:$0x10] %v2288_v18  ;;  %v2363_v5 = vrot.slane %v2260_v49, 2  ;;  %v2190_v25 = vadd.f32 0.5, %v2166_v15  ;;  %v4473_v46 = vld [vmem:[%s8316_s2 + $0x1c0] sm:$0xff]  ;;  %v4476_v2 = vld [vmem:[%s8316_s2 + $0x1d8] sm:$0xff]  ;;  %v4478_v15 = vld [vmem:[%s8316_s2 + $0x1a8] sm:$0xff] }
 0x3e0   :  { %v2263_v48 = vmul.f32 %v4094_v4, %v2187_v9  ;;  %v2291_v11 = vmul.f32 %v2276_v44, %v2261_v23  ;;  %2297 = vst [vmem:[%s8319_s3 + $0x8] sm:$0x10] %v2289_v60  ;;  %v2362_v42 = vsel %vm542_vm2, %v2361_v55, %v2360_v51  ;;  %v2365_v30 = vrot.slane %v2261_v23, 1  ;;  %v4479_v9 = vld [vmem:[%s8316_s2 + $0x1b0] sm:$0xff]  ;;  %v4485_v0 = vld [vmem:[%s8316_s2 + $0x160] sm:$0xff]  ;;  %v4486_v49 = vld [vmem:[%s8316_s2 + $0x168] sm:$0xff] }
 0x3e1   :  { %v2292_v41 = vmul.f32 %v7276_v26, %v2262_v10  ;;  %2298 = vst [vmem:[%s8319_s3 + $0x10] sm:$0x10] %v2290_v16  ;;  %v2364_v63 = vsel %vm545_vm3, %v2363_v5, %v2362_v42  ;;  %v2193_v6 = vadd.f32 0.5, %v2169_v22  ;;  %v2279_v12 = vrot.slane %v7276_v26, 3  ;;  %v4483_v44 = vld [vmem:[%s8316_s2 + $0x190] sm:$0xff]  ;;  %v4488_v51 = vld [vmem:[%s8316_s2 + $0x178] sm:$0xff] }
 0x3e2   :  { %v2293_v45 = vmul.f32 %v2277_v7, %v2263_v48  ;;  %2299 = vst [vmem:[%s8319_s3 + $0x18] sm:$0x10] %v2291_v11  ;;  %v2366_v32 = vsel %vm548_vm4, %v2365_v30, %v2364_v63  ;;  %v2368_v39 = vrot.slane %v2263_v48, 7  ;;  %v4484_v7 = vld [vmem:[%s8316_s2 + $0x198] sm:$0xff]  ;;  %v4487_v18 = vld [vmem:[%s8316_s2 + $0x170] sm:$0xff]  ;;  %v4489_v28 = vld [vmem:[%s8316_s2 + $0x140] sm:$0xff] }
 0x3e3   :  { %v4096_v38 = vpop.eup %4095  ;;  %2300 = vst [vmem:[%s8319_s3 + $0x20] sm:$0x10] %v2292_v41  ;;  %v2367_v20 = vsel %vm551_vm5, %v2262_v10, %v2366_v32  ;;  %v4490_v23 = vld [vmem:[%s8316_s2 + $0x148] sm:$0xff]  ;;  %v4491_v60 = vld [vmem:[%s8316_s2 + $0x150] sm:$0xff]  ;;  %v4492_v55 = vld [vmem:[%s8316_s2 + $0x158] sm:$0xff] }
 0x3e4   :  { %v4098_v61 = vpop.eup %4097  ;;  %v2264_v3 = vmul.f32 %v4096_v38, %v2190_v25  ;;  %2301 = vst [vmem:[%s8319_s3 + $0x28] sm:$0x10] %v2293_v45  ;;  %v2369_v1 = vsel %vm554_vm6, %v2368_v39, %v2367_v20  ;;  %v4493_v4 = vld [vmem:[%s8316_s2 + $0x120] sm:$0xff]  ;;  %v4494_v22 = vld [vmem:[%s8316_s2 + $0x128] sm:$0xff]  ;;  %v4495_v10 = vld [vmem:[%s8316_s2 + $0x130] sm:$0xff] }
 0x3e5   :  { %v2265_v56 = vmul.f32 %v4098_v61, %v2193_v6  ;;  %v4496_v16 = vld [vmem:[%s8316_s2 + $0x138] sm:$0xff]  ;;  %v4497_v5 = vld [vmem:[%s8316_s2 + $0x100] sm:$0xff]  ;;  %v4498_v48 = vld [vmem:[%s8316_s2 + $0x108] sm:$0xff] }
 0x3e6   :  { %v2294_v21 = vmul.f32 %v2278_v27, %v2264_v3  ;;  %v2370_v36 = vrot.slane %v2264_v3, 6  ;;  %v4499_v11 = vld [vmem:[%s8316_s2 + $0x110] sm:$0xff]  ;;  %v4500_v42 = vld [vmem:[%s8316_s2 + $0x118] sm:$0xff]  ;;  %v4501_v30 = vld [vmem:[%s8316_s2 + $0xe0] sm:$0xff] }
 0x3e7   :  { %v2295_v59 = vmul.f32 %v2279_v12, %v2265_v56  ;;  %v2372_v50 = vrot.slane %v2265_v56, 5  ;;  %v4502_v27 = vld [vmem:[%s8316_s2 + $0xe8] sm:$0xff]  ;;  %v4503_v41 = vld [vmem:[%s8316_s2 + $0xf0] sm:$0xff]  ;;  %v4504_v63 = vld [vmem:[%s8316_s2 + $0xf8] sm:$0xff] }
 0x3e8   :  { %2302 = vst [vmem:[%s8319_s3 + $0x30] sm:$0x10] %v2294_v21  ;;  %v2371_v26 = vsel %vm557_vm7, %v2370_v36, %v2369_v1  ;;  %v4505_v25 = vld [vmem:[%s8316_s2 + $0xc0] sm:$0xff]  ;;  %v4506_v45 = vld [vmem:[%s8316_s2 + $0xc8] sm:$0xff]  ;;  %v4507_v32 = vld [vmem:[%s8316_s2 + $0xd0] sm:$0xff] }
 0x3e9   :  { %2303 = vst [vmem:[%s8319_s3 + $0x38] sm:$0x10] %v2295_v59  ;;  %v2373_v33 = vsel %vm560_vm8, %v2372_v50, %v2371_v26  ;;  %v4508_v39 = vld [vmem:[%s8316_s2 + $0xd8] sm:$0xff]  ;;  %v4509_v38 = vld [vmem:[%s8316_s2 + $0xa0] sm:$0xff]  ;;  %v4510_v6 = vld [vmem:[%s8316_s2 + $0xa8] sm:$0xff] }
 0x3ea   :  { %2391 = vmatmul.f32.vlgmr.msrb.gmra.mxu0 %v2373_v33  ;;  %2411 = vmatmul.f32.vlgmr.msrb.gmra.mxu1 %v2373_v33  ;;  %v4511_v12 = vld [vmem:[%s8316_s2 + $0xb0] sm:$0xff]  ;;  %v4512_v20 = vld [vmem:[%s8316_s2 + $0xb8] sm:$0xff]  ;;  %v4513_v61 = vld [vmem:[%s8316_s2 + $0x80] sm:$0xff] }
 0x3eb   :  { %2431 = vmatmul.f32.vlgmr.msrb.gmra.mxu2 %v2373_v33  ;;  %2451 = vmatmul.f32.vlgmr.msrb.gmra.mxu3 %v2373_v33  ;;  %v4514_v3 = vld [vmem:[%s8316_s2 + $0x88] sm:$0xff]  ;;  %v4515_v1 = vld [vmem:[%s8316_s2 + $0x90] sm:$0xff]  ;;  %v4516_v56 = vld [vmem:[%s8316_s2 + $0x98] sm:$0xff] }
 0x3ec   :  { %3281 = vmatpush.msrb.mxu0 %v4469_v8  ;;  %3301 = vmatpush.msrb.mxu1 %v4470_v17  ;;  %v4517_v21 = vld [vmem:[%s8316_s2 + $0x60] sm:$0xff]  ;;  %v4518_v36 = vld [vmem:[%s8316_s2 + $0x68] sm:$0xff]  ;;  %v4519_v59 = vld [vmem:[%s8316_s2 + $0x70] sm:$0xff] }
 0x3ed   :  { %3321 = vmatpush.msrb.mxu2 %v4471_v53  ;;  %3341 = vmatpush.msrb.mxu3 %v4472_v14  ;;  %v4520_v50 = vld [vmem:[%s8316_s2 + $0x78] sm:$0xff]  ;;  %v4521_v26 = vld [vmem:[%s8316_s2 + $0x40] sm:$0xff]  ;;  %v4522_v33 = vld [vmem:[%s8316_s2 + $0x48] sm:$0xff] }
 0x3ee   :  { %3282 = vmatpush.msrb.mxu0 %v4473_v46  ;;  %3302 = vmatpush.msrb.mxu1 %v4474_v13  ;;  %v4523_v8 = vld [vmem:[%s8316_s2 + $0x50] sm:$0xff]  ;;  %v4524_v17 = vld [vmem:[%s8316_s2 + $0x58] sm:$0xff]  ;;  %v4525_v53 = vld [vmem:[%s8316_s2 + $0x20] sm:$0xff] }
 0x3ef   :  { %3322 = vmatpush.msrb.mxu2 %v4475_v31  ;;  %3342 = vmatpush.msrb.mxu3 %v4476_v2  ;;  %v4526_v14 = vld [vmem:[%s8316_s2 + $0x28] sm:$0xff]  ;;  %v4527_v46 = vld [vmem:[%s8316_s2 + $0x30] sm:$0xff]  ;;  %v4528_v13 = vld [vmem:[%s8316_s2 + $0x38] sm:$0xff] }
 0x3f0   :  { %3283 = vmatpush.msrb.mxu0 %v4477_v35  ;;  %3303 = vmatpush.msrb.mxu1 %v4478_v15  ;;  %v4529_v31 = vld [vmem:[%s8316_s2] sm:$0xff]  ;;  %v4530_v2 = vld [vmem:[%s8316_s2 + $0x8] sm:$0xff]  ;;  %v4531_v35 = vld [vmem:[%s8316_s2 + $0x10] sm:$0xff] }
 0x3f1   :  { %3323 = vmatpush.msrb.mxu2 %v4479_v9  ;;  %3343 = vmatpush.msrb.mxu3 %v4480_v58  ;;  %v4532_v15 = vld [vmem:[%s8316_s2 + $0x18] sm:$0xff]  ;;  %v7529_v9 = vld [vmem:[%s8318_s0] sm:$0x44]  ;;  %v7534_v58 = vld [vmem:[%s8318_s0 + $0x10] sm:$0x44] }
 0x3f2   :  { %3284 = vmatpush.msrb.mxu0 %v4481_v40  ;;  %3304 = vmatpush.msrb.mxu1 %v4482_v24  ;;  %v7539_v40 = vld [vmem:[%s8318_s0 + $0x20] sm:$0x44]  ;;  %v7544_v24 = vld [vmem:[%s8318_s0 + $0x30] sm:$0x44] }
 0x3f3   :  { %3324 = vmatpush.msrb.mxu2 %v4483_v44  ;;  %3344 = vmatpush.msrb.mxu3 %v4484_v7  ;;  %v7549_v44 = vld [vmem:[%s8318_s0 + $0x40] sm:$0x44]  ;;  %v7552_v7 = vunpack.i.h.bf16 %v7261_v47  ;;  %v2320_v47 = vunpack.c.l.bf16 %v7529_v9 }
 0x3f4   :  { %3285 = vmatpush.msrb.mxu0 %v4485_v0  ;;  %3305 = vmatpush.msrb.mxu1 %v4486_v49  ;;  %v7558_v49 = vld [vmem:[%s8318_s0 + $0x50] sm:$0x44] }
 0x3f5   :  { %3325 = vmatpush.msrb.mxu2 %v4487_v18  ;;  %3345 = vmatpush.msrb.mxu3 %v4488_v51  ;;  %v7563_v18 = vld [vmem:[%s8318_s0 + $0x60] sm:$0x44]  ;;  %v7568_v51 = vld [vmem:[%s8318_s0 + $0x70] sm:$0x44] }
 0x3f6   :  { %3286 = vmatpush.msrb.mxu0 %v4489_v28  ;;  %3306 = vmatpush.msrb.mxu1 %v4490_v23  ;;  %v2324_v28 = vunpack.c.l.bf16 %v7534_v58  ;;  %v2328_v23 = vunpack.c.l.bf16 %v7539_v40 }
 0x3f7   :  { %3326 = vmatpush.msrb.mxu2 %v4491_v60  ;;  %3346 = vmatpush.msrb.mxu3 %v4492_v55  ;;  %v2332_v60 = vunpack.c.l.bf16 %v7544_v24 }
 0x3f8   :  { %3287 = vmatpush.msrb.mxu0 %v4493_v4  ;;  %3307 = vmatpush.msrb.mxu1 %v4494_v22  ;;  %v2336_v22 = vunpack.c.l.bf16 %v7549_v44 }
 0x3f9   :  { %3327 = vmatpush.msrb.mxu2 %v4495_v10  ;;  %3347 = vmatpush.msrb.mxu3 %v4496_v16  ;;  %v2663_v10 = vrot.slane %v7256_v43, 7  ;;  %v2664_v16 = vrot.slane %v7259_v34, 7  ;;  %v2317_v43 = vld [vmem:[%s8318_s0 + $0x68] sm:$0x44] }
 0x3fa   :  { %3288 = vmatpush.msrb.mxu0 %v4497_v5  ;;  %3308 = vmatpush.msrb.mxu1 %v4498_v48  ;;  %v2665_v5 = vrot.slane %v7268_v29, 7  ;;  %v2319_v29 = vld [vmem:[%s8318_s0 + $0x78] sm:$0x44] }
 0x3fb   :  { %3328 = vmatpush.msrb.mxu2 %v4499_v11  ;;  %3348 = vmatpush.msrb.mxu3 %v4500_v42  ;;  %v7584_v11 = vld [vmem:[%s8318_s0 + $0x58] sm:$0x44] }
 0x3fc   :  { %3289 = vmatpush.msrb.mxu0 %v4501_v30  ;;  %3309 = vmatpush.msrb.mxu1 %v4502_v27  ;;  %v2340_v30 = vunpack.c.l.bf16 %v7558_v49  ;;  %v2344_v27 = vunpack.c.l.bf16 %v7563_v18 }
 0x3fd   :  { %3329 = vmatpush.msrb.mxu2 %v4503_v41  ;;  %3349 = vmatpush.msrb.mxu3 %v4504_v63  ;;  %v2348_v41 = vunpack.c.l.bf16 %v7568_v51  ;;  %v2341_v63 = vunpack.c.h.bf16 %v7558_v49 }
 0x3fe   :  { %3290 = vmatpush.msrb.mxu0 %v4505_v25  ;;  %3310 = vmatpush.msrb.mxu1 %v4506_v45  ;;  %v7594_v25 = vld [vmem:[%s8318_s0 + $0x8] sm:$0x44]  ;;  %v7599_v45 = vld [vmem:[%s8318_s0 + $0x18] sm:$0x44] }
 0x3ff   :  { %3330 = vmatpush.msrb.mxu2 %v4507_v32  ;;  %3350 = vmatpush.msrb.mxu3 %v4508_v39  ;;  %v7604_v32 = vld [vmem:[%s8318_s0 + $0x28] sm:$0x44]  ;;  %v2321_v39 = vunpack.c.h.bf16 %v7529_v9 }
 0x400   :  { %3291 = vmatpush.msrb.mxu0 %v4509_v38  ;;  %3311 = vmatpush.msrb.mxu1 %v4510_v6  ;;  %v2325_v38 = vunpack.c.h.bf16 %v7534_v58  ;;  %v2329_v6 = vunpack.c.h.bf16 %v7539_v40 }
 0x401   :  { %3331 = vmatpush.msrb.mxu2 %v4511_v12  ;;  %3351 = vmatpush.msrb.mxu3 %v4512_v20  ;;  %v2333_v12 = vunpack.c.h.bf16 %v7544_v24  ;;  %v2337_v20 = vunpack.c.h.bf16 %v7549_v44 }
 0x402   :  { %3292 = vmatpush.msrb.mxu0 %v4513_v61  ;;  %3312 = vmatpush.msrb.mxu1 %v4514_v3  ;;  %v2345_v61 = vunpack.c.h.bf16 %v7563_v18  ;;  %v2349_v3 = vunpack.c.h.bf16 %v7568_v51 }
 0x403   :  { %3332 = vmatpush.msrb.mxu2 %v4515_v1  ;;  %3352 = vmatpush.msrb.mxu3 %v4516_v56 }
 0x404   :  { %3293 = vmatpush.msrb.mxu0 %v4517_v21  ;;  %3313 = vmatpush.msrb.mxu1 %v4518_v36  ;;  %v2322_v21 = vunpack.c.l.bf16 %v7594_v25  ;;  %v2326_v36 = vunpack.c.l.bf16 %v7599_v45 }
 0x405   :  { %3333 = vmatpush.msrb.mxu2 %v4519_v59  ;;  %3353 = vmatpush.msrb.mxu3 %v4520_v50  ;;  %v2330_v59 = vunpack.c.l.bf16 %v7604_v32  ;;  %v2323_v50 = vunpack.c.h.bf16 %v7594_v25 }
 0x406   :  { %3294 = vmatpush.msrb.mxu0 %v4521_v26  ;;  %3314 = vmatpush.msrb.mxu1 %v4522_v33 }
 0x407   :  { %3334 = vmatpush.msrb.mxu2 %v4523_v8  ;;  %3354 = vmatpush.msrb.mxu3 %v4524_v17 }
 0x408   :  { %3295 = vmatpush.msrb.mxu0 %v4525_v53  ;;  %3315 = vmatpush.msrb.mxu1 %v4526_v14  ;;  %v7621_v53 = vld [vmem:[%s8318_s0 + $0x38] sm:$0x44] }
 0x409   :  { %3335 = vmatpush.msrb.mxu2 %v4527_v46  ;;  %3355 = vmatpush.msrb.mxu3 %v4528_v13  ;;  %v2334_v18 = vunpack.c.l.bf16 %v7621_v53 }
 0x40a   :  { %3296 = vmatpush.msrb.mxu0 %v4529_v31  ;;  %3316 = vmatpush.msrb.mxu1 %v4530_v2 }
 0x40b   :  { %3336 = vmatpush.msrb.mxu2 %v4531_v35  ;;  %3356 = vmatpush.msrb.mxu3 %v4532_v15 }
 0x467   :  { %v2392_v56 = vpop.f32.mrf.mxu0  ;;  %v2412_v44 = vpop.f32.mrf.mxu1 }
 0x468   :  { %v2459_v26 = vrot.slane %v2392_v56, 3  ;;  %v2463_v33 = vrot.slane %v2392_v56, 4  ;;  %v2467_v8 = vrot.slane %v2392_v56, 5  ;;  %v2471_v17 = vrot.slane %v2392_v56, 6 }
 0x469   :  { %v2475_v14 = vrot.slane %v2392_v56, 7  ;;  %v2479_v46 = vrot.slane %v2392_v56, 1  ;;  %v2483_v13 = vrot.slane %v2392_v56, 2  ;;  %v2539_v31 = vadd.f32 %v2392_v56, %v2340_v30 }
 0x46a   :  { %v2519_v2 = vadd.f32 %v2459_v26, %v2320_v47  ;;  %v2523_v35 = vadd.f32 %v2463_v33, %v2324_v28  ;;  %v2527_v15 = vadd.f32 %v2467_v8, %v2328_v23  ;;  %v2531_v9 = vadd.f32 %v2471_v17, %v2332_v60 }
 0x46b   :  { %v2535_v58 = vadd.f32 %v2475_v14, %v2336_v22  ;;  %v2543_v40 = vadd.f32 %v2479_v46, %v2344_v27  ;;  %v2566_v24 = vmul.f32 0.5, %v2539_v31  ;;  %v2547_v51 = vadd.f32 %v2483_v13, %v2348_v41  ;;  %v7627_v27 = vld [vmem:[%s8318_s0 + $0x48] sm:$0x44] }
 0x46c   :  { %v2551_v4 = vmul.f32 0.5, %v2519_v2  ;;  %v2554_v55 = vmul.f32 0.5, %v2523_v35  ;;  %v2557_v42 = vmul.f32 0.5, %v2527_v15  ;;  %v2560_v0 = vmul.f32 0.5, %v2531_v9 }
 0x46d   :  { %v2563_v1 = vmul.f32 0.5, %v2535_v58  ;;  %v2569_v48 = vmul.f32 0.5, %v2543_v40  ;;  %4099 = vtanh.f32 %v2566_v24  ;;  %v2460_v30 = vrot.slane %v2412_v44, 3 }
 0x46e   :  { %4101 = vtanh.f32 %v2551_v4  ;;  %v2464_v47 = vrot.slane %v2412_v44, 4  ;;  %v2468_v28 = vrot.slane %v2412_v44, 5  ;;  %v2472_v23 = vrot.slane %v2412_v44, 6 }
 0x46f   :  { %4103 = vtanh.f32 %v2554_v55  ;;  %v2476_v60 = vrot.slane %v2412_v44, 7  ;;  %v2480_v22 = vrot.slane %v2412_v44, 1  ;;  %v2484_v41 = vrot.slane %v2412_v44, 2 }
 0x470   :  { %4105 = vtanh.f32 %v2557_v42  ;;  %v2520_v56 = vadd.f32 %v2460_v30, %v2321_v39  ;;  %v2524_v26 = vadd.f32 %v2464_v47, %v2325_v38  ;;  %v2572_v33 = vmul.f32 0.5, %v2547_v51 }
 0x471   :  { %4107 = vtanh.f32 %v2560_v0  ;;  %v2528_v8 = vadd.f32 %v2468_v28, %v2329_v6  ;;  %v2532_v4 = vadd.f32 %v2472_v23, %v2333_v12  ;;  %v2536_v17 = vadd.f32 %v2476_v60, %v2337_v20  ;;  %v7633_v0 = vpop.f32.mrf.mxu2 }
 0x472   :  { %4109 = vtanh.f32 %v2563_v1  ;;  %v2338_v55 = vunpack.c.l.bf16 %v7627_v27  ;;  %v2327_v14 = vunpack.c.h.bf16 %v7599_v45  ;;  %v2540_v13 = vadd.f32 %v2412_v44, %v2341_v63 }
 0x473   :  { %v4100_v46 = vpop.eup %4099  ;;  %4111 = vtanh.f32 %v2569_v48  ;;  %v2552_v31 = vmul.f32 0.5, %v2520_v56  ;;  %v2555_v42 = vmul.f32 0.5, %v2524_v26  ;;  %v2544_v39 = vadd.f32 %v2480_v22, %v2345_v61 }
 0x474   :  { %v4102_v2 = vpop.eup %4101  ;;  %v2548_v38 = vadd.f32 %v2484_v41, %v2349_v3  ;;  %v2558_v35 = vmul.f32 0.5, %v2528_v8  ;;  %v2331_v6 = vunpack.c.h.bf16 %v7604_v32  ;;  %4113 = vtanh.f32 %v2572_v33 }
 0x475   :  { %v4104_v12 = vpop.eup %4103  ;;  %v2561_v20 = vmul.f32 0.5, %v2532_v4  ;;  %v2335_v1 = vunpack.c.h.bf16 %v7621_v53  ;;  %v2339_v48 = vunpack.c.h.bf16 %v7627_v27  ;;  %v2599_v49 = vmul.f32 0.5, %v4102_v2 }
 0x476   :  { %v4106_v15 = vpop.eup %4105  ;;  %v2614_v63 = vmul.f32 0.5, %v4100_v46  ;;  %v2564_v9 = vmul.f32 0.5, %v2536_v17  ;;  %4115 = vtanh.f32 %v2552_v31  ;;  %v2567_v61 = vmul.f32 0.5, %v2540_v13 }
 0x477   :  { %v4108_v58 = vpop.eup %4107  ;;  %4117 = vtanh.f32 %v2555_v42  ;;  %v2461_v3 = vrot.slane %v7633_v0, 3  ;;  %v2465_v40 = vrot.slane %v7633_v0, 4  ;;  %v2570_v44 = vmul.f32 0.5, %v2544_v39 }
 0x478   :  { %v4110_v24 = vpop.eup %4109  ;;  %v2573_v51 = vmul.f32 0.5, %v2548_v38  ;;  %4119 = vtanh.f32 %v2558_v35  ;;  %v2469_v30 = vrot.slane %v7633_v0, 5  ;;  %v2602_v28 = vmul.f32 0.5, %v4104_v12 }
 0x479   :  { %v4112_v47 = vpop.eup %4111  ;;  %v2605_v23 = vmul.f32 0.5, %v4106_v15  ;;  %4121 = vtanh.f32 %v2561_v20  ;;  %v2473_v60 = vrot.slane %v7633_v0, 6  ;;  %v2608_v22 = vmul.f32 0.5, %v4108_v58  ;;  %v7667_v58 = vpop.f32.mrf.mxu3 }
 0x47a   :  { %v2611_v41 = vmul.f32 0.5, %v4110_v24  ;;  %v7642_v56 = vadd.f32 0.5, %v2614_v63  ;;  %4123 = vtanh.f32 %v2564_v9  ;;  %v7644_v26 = vpop.eup %4113  ;;  %v2617_v33 = vmul.f32 0.5, %v4112_v47 }
 0x47b   :  { %4125 = vtanh.f32 %v2567_v61  ;;  %v2521_v8 = vadd.f32 %v2461_v3, %v2322_v21  ;;  %v2525_v4 = vadd.f32 %v2465_v40, %v2326_v36  ;;  %v7650_v46 = vadd.f32 0.5, %v2599_v49 }
 0x47c   :  { %v4116_v17 = vpop.eup %4115  ;;  %4127 = vtanh.f32 %v2570_v44  ;;  %v2477_v13 = vrot.slane %v7633_v0, 7  ;;  %v2529_v31 = vadd.f32 %v2469_v30, %v2330_v59  ;;  %v7655_v2 = vadd.f32 0.5, %v2602_v28 }
 0x47d   :  { %v4118_v42 = vpop.eup %4117  ;;  %v7657_v39 = vadd.f32 0.5, %v2605_v23  ;;  %v2600_v38 = vmul.f32 0.5, %v4116_v17  ;;  %v2533_v21 = vadd.f32 %v2473_v60, %v2334_v18  ;;  %v7661_v36 = vadd.f32 0.5, %v2608_v22 }
 0x47e   :  { %v4120_v35 = vpop.eup %4119  ;;  %v7663_v12 = vadd.f32 0.5, %v2611_v41  ;;  %v2603_v20 = vmul.f32 0.5, %v4118_v42  ;;  %v2553_v15 = vmul.f32 0.5, %v2521_v8  ;;  %v7665_v63 = vadd.f32 0.5, %v2617_v33 }
 0x47f   :  { %v4122_v49 = vpop.eup %4121  ;;  %4129 = vtanh.f32 %v2573_v51  ;;  %v2606_v59 = vmul.f32 0.5, %v4120_v35  ;;  %v2556_v9 = vmul.f32 0.5, %v2525_v4  ;;  %v2624_v40 = vadd.f32 0.5, %v2600_v38 }
 0x480   :  { %v4124_v61 = vpop.eup %4123  ;;  %v2609_v3 = vmul.f32 0.5, %v4122_v49  ;;  %v2537_v18 = vadd.f32 %v2477_v13, %v2338_v55  ;;  %v2559_v24 = vmul.f32 0.5, %v2529_v31  ;;  %v2627_v47 = vadd.f32 0.5, %v2603_v20 }
 0x481   :  { %v4126_v44 = vpop.eup %4125  ;;  %v2612_v30 = vmul.f32 0.5, %v4124_v61  ;;  %v2630_v28 = vadd.f32 0.5, %v2606_v59  ;;  %v2562_v23 = vmul.f32 0.5, %v2533_v21  ;;  %4131 = vtanh.f32 %v2553_v15 }
 0x482   :  { %v4128_v60 = vpop.eup %4127  ;;  %v2615_v22 = vmul.f32 0.5, %v4126_v44  ;;  %v2462_v51 = vrot.slane %v7667_v58, 3  ;;  %v2466_v41 = vrot.slane %v7667_v58, 4  ;;  %v2633_v8 = vadd.f32 0.5, %v2609_v3 }
 0x483   :  { %v2618_v33 = vmul.f32 0.5, %v4128_v60  ;;  %4133 = vtanh.f32 %v2556_v9  ;;  %v2470_v4 = vrot.slane %v7667_v58, 5  ;;  %v7676_v55 = vmul.f32 %v2663_v10, %v2624_v40 }
 0x484   :  { %4135 = vtanh.f32 %v2559_v24  ;;  %v2474_v17 = vrot.slane %v7667_v58, 6  ;;  %v2478_v13 = vrot.slane %v7667_v58, 7  ;;  %v2636_v42 = vadd.f32 0.5, %v2612_v30 }
 0x485   :  { %v4130_v31 = vpop.eup %4129  ;;  %v7682_v38 = vmul.f32 %v2664_v16, %v2627_v47  ;;  %v7686_v21 = vmul.f32 %v2665_v5, %v2630_v28  ;;  %4137 = vtanh.f32 %v2562_v23  ;;  %v2639_v10 = vadd.f32 0.5, %v2615_v22 }
 0x486   :  { %v2522_v35 = vadd.f32 %v2462_v51, %v2323_v50  ;;  %v2526_v20 = vadd.f32 %v2466_v41, %v2327_v14  ;;  %v2530_v34 = vadd.f32 %v2470_v4, %v2331_v6  ;;  %v7700_v16 = vadd.f32 0.5, %v2618_v33 }
 0x487   :  { %v8711_v5 = vrot.slane %v7270_v62, 7  ;;  %v2482_v49 = vrot.slane %v7667_v58, 1  ;;  %v2534_v25 = vadd.f32 %v2474_v17, %v2335_v1  ;;  %v4132_v45 = vpop.eup %4131  ;;  %v2538_v32 = vadd.f32 %v2478_v13, %v2339_v48 }
 0x488   :  { %4139 = vtanh.f32 %v2522_v35  ;;  %v2342_v50 = vunpack.c.l.bf16 %v7584_v11  ;;  %v2346_v14 = vunpack.c.l.bf16 %v2317_v43  ;;  %v2486_v59 = vrot.slane %v7667_v58, 2 }
 0x489   :  { %v7704_v15 = vmul.f32 %v8711_v5, %v2633_v8  ;;  %v4134_v6 = vpop.eup %4133  ;;  %v8712_v62 = vunpack.c.h.bf16 %v7584_v11  ;;  %4141 = vtanh.f32 %v2526_v20  ;;  %v2350_v61 = vunpack.c.l.bf16 %v2319_v29 }
 0x48a   :  { %v4136_v3 = vpop.eup %4135  ;;  %4143 = vtanh.f32 %v2530_v34  ;;  %v2347_v53 = vunpack.c.h.bf16 %v2317_v43  ;;  %v2481_v1 = vrot.slane %v7633_v0, 1  ;;  %v2485_v27 = vrot.slane %v7633_v0, 2 }
 0x48b   :  { %v2542_v9 = vadd.f32 %v7667_v58, %v8712_v62  ;;  %v4138_v48 = vpop.eup %4137  ;;  %4145 = vtanh.f32 %v2534_v25  ;;  %v2351_v40 = vunpack.c.h.bf16 %v2319_v29  ;;  %v2541_v24 = vadd.f32 %v7633_v0, %v2342_v50 }
 0x48c   :  { %v2565_v44 = vmul.f32 0.5, %v2537_v18  ;;  %v2601_v30 = vmul.f32 0.5, %v4132_v45  ;;  %4147 = vtanh.f32 %v2538_v32  ;;  %v2545_v11 = vadd.f32 %v2481_v1, %v2346_v14 }
 0x48d   :  { %v2549_v47 = vadd.f32 %v2485_v27, %v2350_v61  ;;  %v8713_v58 = vrot.slane %v7272_v52, 7  ;;  %v2604_v23 = vmul.f32 0.5, %v4134_v6  ;;  %4149 = vtanh.f32 %v2542_v9 }
 0x48e   :  { %v2568_v60 = vmul.f32 0.5, %v2541_v24  ;;  %v4140_v22 = vpop.eup %4139  ;;  %v2546_v51 = vadd.f32 %v2482_v49, %v2347_v53  ;;  %v2571_v41 = vmul.f32 0.5, %v2545_v11  ;;  %4151 = vtanh.f32 %v2565_v44 }
 0x48f   :  { %v2683_v28 = vmul.f32 %v8713_v58, %v2636_v42  ;;  %v2574_v33 = vmul.f32 0.5, %v2549_v47  ;;  %v4142_v8 = vpop.eup %4141  ;;  %v2687_v4 = vmul.f32 %v4140_v22, %v7650_v46  ;;  %v2550_v0 = vadd.f32 %v2486_v59, %v2351_v40 }
 0x490   :  { %4153 = vtanh.f32 %v2568_v60  ;;  %v2621_v18 = vmul.f32 0.5, %v4130_v31  ;;  %v4144_v17 = vpop.eup %4143  ;;  %v2625_v13 = vadd.f32 0.5, %v2601_v30  ;;  %v2688_v43 = vmul.f32 %v4142_v8, %v7655_v2 }
 0x491   :  { %4155 = vtanh.f32 %v2571_v41  ;;  %v2607_v52 = vmul.f32 0.5, %v4136_v3  ;;  %v4146_v42 = vpop.eup %4145  ;;  %v2689_v35 = vmul.f32 %v4144_v17, %v7657_v39  ;;  %v7725_v20 = vadd.f32 %v2687_v4, %v7676_v55 }
 0x492   :  { %4157 = vtanh.f32 %v2574_v33  ;;  %v2620_v34 = vmul.f32 0.5, %v7644_v26  ;;  %v4148_v29 = vpop.eup %4147  ;;  %v2690_v46 = vmul.f32 %v4146_v42, %v7661_v36  ;;  %v7730_v31 = vadd.f32 %v2688_v43, %v7682_v38  ;;  %v4533_v33 = vld [vmem:[%s8317_s1] sm:$0xff] }
 0x493   :  { %4159 = vtanh.f32 %v2546_v51  ;;  %v8714_v2 = vrot.slane %v7278_v57, 7  ;;  %v4150_v49 = vpop.eup %4149  ;;  %v2610_v25 = vmul.f32 0.5, %v4138_v48  ;;  %v2645_v45 = vadd.f32 0.5, %v2621_v18 }
 0x494   :  { %4161 = vtanh.f32 %v2550_v0  ;;  %v2691_v39 = vmul.f32 %v4148_v29, %v7663_v12  ;;  %v4152_v55 = vpop.eup %4151  ;;  %v2692_v32 = vmul.f32 %v4150_v49, %v7642_v56  ;;  %v7737_v26 = vadd.f32 %v2689_v35, %v7686_v21 }
 0x495   :  { %v2684_v5 = vmul.f32 %v8714_v2, %v2639_v10  ;;  %v7740_v36 = vadd.f32 %v2690_v46, %v7704_v15  ;;  %4163 = vtanh.f32 %v7725_v20  ;;  %v2628_v57 = vadd.f32 0.5, %v2604_v23 }
 0x496   :  { %v4154_v38 = vpop.eup %4153  ;;  %v2613_v10 = vmul.f32 0.5, %v4152_v55  ;;  %v7743_v50 = vadd.f32 %v2691_v39, %v2683_v28  ;;  %4165 = vtanh.f32 %v7730_v31  ;;  %v2644_v6 = vadd.f32 0.5, %v2620_v34 }
 0x497   :  { %v4156_v14 = vpop.eup %4155  ;;  %v2616_v12 = vmul.f32 0.5, %v4154_v38  ;;  %v7746_v59 = vadd.f32 %v2692_v32, %v2684_v5  ;;  %4167 = vtanh.f32 %v7737_v26  ;;  %v2631_v15 = vadd.f32 0.5, %v2607_v52 }
 0x498   :  { %v4158_v56 = vpop.eup %4157  ;;  %v2619_v21 = vmul.f32 0.5, %v4156_v14  ;;  %v8715_v62 = vrot.slane %v7292_v19, 7  ;;  %4169 = vtanh.f32 %v7740_v36  ;;  %v2634_v3 = vadd.f32 0.5, %v2610_v25 }
 0x499   :  { %v4160_v61 = vpop.eup %4159  ;;  %v8716_v53 = vrot.slane %v7294_v54, 7  ;;  %4171 = vtanh.f32 %v7743_v50  ;;  %v2726_v27 = vrot.slane %v7552_v7, 3  ;;  %v2637_v40 = vadd.f32 0.5, %v2613_v10 }
 0x49a   :  { %v2685_v9 = vmul.f32 %v8715_v62, %v7700_v16  ;;  %v4162_v48 = vpop.eup %4161  ;;  %v2693_v24 = vmul.f32 %v4160_v61, %v7665_v63  ;;  %4173 = vtanh.f32 %v7746_v59  ;;  %v2727_v19 = vrot.slane %v7552_v7, 4 }
 0x49b   :  { %v2686_v1 = vmul.f32 %v8716_v53, %v2645_v45  ;;  %v4164_v16 = vpop.eup %4163  ;;  %v2622_v44 = vmul.f32 0.5, %v4158_v56  ;;  %v2640_v30 = vadd.f32 0.5, %v2616_v12  ;;  %v2694_v11 = vmul.f32 %v4162_v48, %v2644_v6  ;;  %v7812_v48 = vld [vmem:[%s8318_s0] sm:$0x88] }
 0x49c   :  { %v2728_v47 = vrot.slane %v7552_v7, 5  ;;  %v4166_v54 = vpop.eup %4165  ;;  %v2643_v58 = vadd.f32 0.5, %v2619_v21  ;;  %v7761_v28 = vadd.f32 %v2693_v24, %v2685_v9  ;;  %v2711_v23 = vmul.f32 %v4164_v16, %v2625_v13  ;;  %v7822_v24 = vld [vmem:[%s8318_s0 + $0x20] sm:$0x88] }
 0x49d   :  { %v2729_v60 = vrot.slane %v7552_v7, 6  ;;  %v4168_v22 = vpop.eup %4167  ;;  %v7764_v51 = vadd.f32 %v2694_v11, %v2686_v1  ;;  %v2712_v63 = vmul.f32 %v4166_v54, %v2628_v57  ;;  %v2730_v41 = vrot.slane %v7552_v7, 7  ;;  %v7832_v16 = vld [vmem:[%s8318_s0 + $0x40] sm:$0x88]  ;;  %v7847_v11 = vld [vmem:[%s8318_s0 + $0x70] sm:$0x88] }
 0x49e   :  { %vm3172_vm13 = vcmp.gt.s32.totalorder %v4533_v33, 6  ;;  %v4170_v8 = vpop.eup %4169  ;;  %4175 = vtanh.f32 %v7761_v28  ;;  %v2713_v4 = vmul.f32 %v4168_v22, %v2631_v15  ;;  %v2741_v0 = vmul.f32 %v2726_v27, %v2711_v23 }
 0x49f   :  { %v2813_v18 = vrot.slane %v2711_v23, 5  ;;  %v4172_v17 = vpop.eup %4171  ;;  %4177 = vtanh.f32 %v7764_v51  ;;  %v2714_v13 = vmul.f32 %v4170_v8, %v2634_v3  ;;  %v2742_v43 = vmul.f32 %v2727_v19, %v2712_v63  ;;  %v7827_v19 = vld [vmem:[%s8318_s0 + $0x30] sm:$0x88] }
 0x4a0   :  { %v2814_v52 = vrot.slane %v2712_v63, 4  ;;  %v4174_v42 = vpop.eup %4173  ;;  %v2715_v35 = vmul.f32 %v4172_v17, %v2637_v40  ;;  %v2743_v34 = vmul.f32 %v2728_v47, %v2713_v4  ;;  %2749 = vst [vmem:[%s8319_s3] sm:$0x20] %v2741_v0  ;;  %v2816_v29 = vrot.slane %v2713_v4, 3  ;;  %v7817_v40 = vld [vmem:[%s8318_s0 + $0x10] sm:$0x88] }
 0x4a1   :  { %vm3625_vm14 = vcmp.gt.s32.totalorder %v4533_v33, 7  ;;  %v2716_v46 = vmul.f32 %v4174_v42, %v2640_v30  ;;  %v2744_v2 = vmul.f32 %v2729_v60, %v2714_v13  ;;  %2750 = vst [vmem:[%s8319_s3 + $0x8] sm:$0x20] %v2742_v43  ;;  %v2818_v49 = vrot.slane %v2714_v13, 2  ;;  %v7842_v30 = vld [vmem:[%s8318_s0 + $0x60] sm:$0x88] }
 0x4a2   :  { %v2815_v5 = vsel %vm542_vm2, %v2814_v52, %v2813_v18  ;;  %v2745_v25 = vmul.f32 %v2730_v41, %v2715_v35  ;;  %2751 = vst [vmem:[%s8319_s3 + $0x10] sm:$0x20] %v2743_v34  ;;  %v2820_v39 = vrot.slane %v2715_v35, 1  ;;  %v3673_v55 = vsel %vm3172_vm13, 1.0, %v8527_v37 }
 0x4a3   :  { %v2817_v45 = vsel %vm545_vm3, %v2816_v29, %v2815_v5  ;;  %v2731_v32 = vrot.slane %v7552_v7, 1  ;;  %v2746_v38 = vmul.f32 %v7552_v7, %v2716_v46  ;;  %2752 = vst [vmem:[%s8319_s3 + $0x18] sm:$0x20] %v2744_v2  ;;  %v3674_v10 = vsel %vm3625_vm14, 1.0, %v8527_v37 }
 0x4a4   :  { %v2819_v57 = vsel %vm548_vm4, %v2818_v49, %v2817_v45  ;;  %v4176_v14 = vpop.eup %4175  ;;  %v2646_v12 = vadd.f32 0.5, %v2622_v44  ;;  %v2732_v6 = vrot.slane %v7552_v7, 2  ;;  %2753 = vst [vmem:[%s8319_s3 + $0x20] sm:$0x20] %v2745_v25  ;;  %v3694_v21 = vpack.i.bf16 %v3674_v10, %v3673_v55  ;;  %v7837_v44 = vld [vmem:[%s8318_s0 + $0x50] sm:$0x88] }
 0x4a5   :  { %v2821_v56 = vsel %vm551_vm5, %v2820_v39, %v2819_v57  ;;  %v4178_v15 = vpop.eup %4177  ;;  %v2717_v62 = vmul.f32 %v4176_v14, %v2643_v58  ;;  %2754 = vst [vmem:[%s8319_s3 + $0x28] sm:$0x20] %v2746_v38  ;;  %v3120_v47 = vrot.slane %v7743_v50, 7  ;;  %v3121_v54 = vrot.slane %v7746_v59, 7  ;;  %v7873_v14 = vld [vmem:[%s8318_s0 + $0x8] sm:$0x88] }
 0x4a6   :  { %v2822_v9 = vsel %vm554_vm6, %v2716_v46, %v2821_v56  ;;  %v2718_v37 = vmul.f32 %v4178_v15, %v2646_v12  ;;  %3695 = vperm.xlu1 %3688, %v3694_v21   ;;  %v2773_v23 = vunpack.c.l.bf16 %v7812_v48  ;;  %v2777_v60 = vunpack.c.l.bf16 %v7817_v40 }
 0x4a7   :  { %v2747_v61 = vmul.f32 %v2731_v32, %v2717_v62  ;;  %v2823_v3 = vrot.slane %v2717_v62, 7  ;;  %v2781_v22 = vunpack.c.l.bf16 %v7822_v24  ;;  %v2785_v63 = vunpack.c.l.bf16 %v7827_v19 }
 0x4a8   :  { %v2748_v7 = vmul.f32 %v2732_v6, %v2718_v37  ;;  %v2825_v53 = vrot.slane %v2718_v37, 6  ;;  %v2789_v41 = vunpack.c.l.bf16 %v7832_v16  ;;  %v2793_v33 = vunpack.c.l.bf16 %v7837_v44 }
 0x4a9   :  { %2755 = vst [vmem:[%s8319_s3 + $0x30] sm:$0x20] %v2747_v61  ;;  %v2824_v1 = vsel %vm557_vm7, %v2823_v3, %v2822_v9  ;;  %v2797_v8 = vunpack.c.l.bf16 %v7842_v30  ;;  %v2801_v4 = vunpack.c.l.bf16 %v7847_v11  ;;  %v3116_v0 = vrot.slane %v7725_v20, 7  ;;  %v7883_v3 = vld [vmem:[%s8318_s0 + $0x18] sm:$0x88] }
 0x4aa   :  { %2756 = vst [vmem:[%s8319_s3 + $0x38] sm:$0x20] %v2748_v7  ;;  %v2826_v27 = vsel %vm560_vm8, %v2825_v53, %v2824_v1  ;;  %v3117_v18 = vrot.slane %v7730_v31, 7  ;;  %v3118_v17 = vrot.slane %v7737_v26, 7  ;;  %v3119_v13 = vrot.slane %v7740_v36, 7 }
 0x4ab   :  { %2844 = vmatmul.f32.vlgmr.msra.gmra.mxu0 %v2826_v27  ;;  %2864 = vmatmul.f32.vlgmr.msra.gmra.mxu1 %v2826_v27  ;;  %v2774_v42 = vunpack.c.h.bf16 %v7812_v48  ;;  %v2778_v35 = vunpack.c.h.bf16 %v7817_v40  ;;  %v2782_v34 = vunpack.c.h.bf16 %v7822_v24  ;;  %v2798_v29 = vunpack.c.h.bf16 %v7842_v30  ;;  %v7888_v7 = vld [vmem:[%s8318_s0 + $0x28] sm:$0x88] }
 0x4ac   :  { %2884 = vmatmul.f32.vlgmr.msra.gmra.mxu2 %v2826_v27  ;;  %2904 = vmatmul.f32.vlgmr.msra.gmra.mxu3 %v2826_v27  ;;  %v2786_v55 = vunpack.c.h.bf16 %v7827_v19  ;;  %v2790_v56 = vunpack.c.h.bf16 %v7832_v16  ;;  %v2794_v21 = vunpack.c.h.bf16 %v7837_v44  ;;  %v2802_v61 = vunpack.c.h.bf16 %v7847_v11  ;;  %v7897_v44 = vld [vmem:[%s8318_s0 + $0x38] sm:$0x88] }
 0x4ad   :  { %v2775_v48 = vunpack.c.l.bf16 %v7873_v14  ;;  %v2779_v11 = vunpack.c.l.bf16 %v7883_v3 }
 0x528   :  { %v2845_v52 = vpop.f32.mrf.mxu0  ;;  %v7877_v15 = vpop.f32.mrf.mxu1 }
 0x529   :  { %v2912_v46 = vrot.slane %v2845_v52, 2  ;;  %v2916_v2 = vrot.slane %v2845_v52, 3  ;;  %v2920_v5 = vrot.slane %v2845_v52, 4  ;;  %v2924_v49 = vrot.slane %v2845_v52, 5 }
 0x52a   :  { %v2928_v25 = vrot.slane %v2845_v52, 6  ;;  %v2932_v45 = vrot.slane %v2845_v52, 7  ;;  %v2996_v39 = vadd.f32 %v2845_v52, %v2797_v8  ;;  %v2936_v12 = vrot.slane %v2845_v52, 1 }
 0x52b   :  { %v2972_v32 = vadd.f32 %v2912_v46, %v2773_v23  ;;  %v2976_v38 = vadd.f32 %v2916_v2, %v2777_v60  ;;  %v2980_v57 = vadd.f32 %v2920_v5, %v2781_v22  ;;  %v2984_v10 = vadd.f32 %v2924_v49, %v2785_v63 }
 0x52c   :  { %v3022_v6 = vmul.f32 0.5, %v2996_v39  ;;  %v2988_v62 = vadd.f32 %v2928_v25, %v2789_v41  ;;  %v2992_v53 = vadd.f32 %v2932_v45, %v2793_v33  ;;  %v2913_v40 = vrot.slane %v7877_v15, 2  ;;  %v7905_v41 = vld [vmem:[%s8318_s0 + $0x48] sm:$0x88]  ;;  %v7915_v25 = vld [vmem:[%s8318_s0 + $0x58] sm:$0x88] }
 0x52d   :  { %v3004_v9 = vmul.f32 0.5, %v2972_v32  ;;  %v3007_v37 = vmul.f32 0.5, %v2976_v38  ;;  %v3010_v1 = vmul.f32 0.5, %v2980_v57  ;;  %v3013_v27 = vmul.f32 0.5, %v2984_v10  ;;  %v7922_v38 = vld [vmem:[%s8318_s0 + $0x68] sm:$0x88] }
 0x52e   :  { %4179 = vtanh.f32 %v3022_v6  ;;  %v2917_v24 = vrot.slane %v7877_v15, 3  ;;  %v2921_v19 = vrot.slane %v7877_v15, 4  ;;  %v3000_v16 = vadd.f32 %v2936_v12, %v2801_v4 }
 0x52f   :  { %4181 = vtanh.f32 %v3004_v9  ;;  %v2783_v23 = vunpack.c.l.bf16 %v7888_v7  ;;  %v3016_v60 = vmul.f32 0.5, %v2988_v62  ;;  %v2925_v22 = vrot.slane %v7877_v15, 5  ;;  %v7925_v6 = vpop.f32.mrf.mxu2 }
 0x530   :  { %4183 = vtanh.f32 %v3007_v37  ;;  %v2973_v63 = vadd.f32 %v2913_v40, %v2774_v42  ;;  %v3019_v33 = vmul.f32 0.5, %v2992_v53  ;;  %v2977_v8 = vadd.f32 %v2917_v24, %v2778_v35 }
 0x531   :  { %4185 = vtanh.f32 %v3010_v1  ;;  %v2776_v4 = vunpack.c.h.bf16 %v7873_v14  ;;  %v2929_v52 = vrot.slane %v7877_v15, 6  ;;  %v2981_v46 = vadd.f32 %v2921_v19, %v2782_v34 }
 0x532   :  { %4187 = vtanh.f32 %v3013_v27  ;;  %v2787_v2 = vunpack.c.l.bf16 %v7897_v44  ;;  %v2933_v5 = vrot.slane %v7877_v15, 7  ;;  %v3005_v49 = vmul.f32 0.5, %v2973_v63 }
 0x533   :  { %v2791_v42 = vunpack.c.l.bf16 %v7905_v41  ;;  %v2780_v35 = vunpack.c.h.bf16 %v7883_v3  ;;  %v3025_v39 = vmul.f32 0.5, %v3000_v16  ;;  %4189 = vtanh.f32 %v3016_v60  ;;  %v2772_v3 = vld [vmem:[%s8318_s0 + $0x78] sm:$0x88] }
 0x534   :  { %v4180_v45 = vpop.eup %4179  ;;  %v2985_v32 = vadd.f32 %v2925_v22, %v2786_v55  ;;  %v2784_v34 = vunpack.c.h.bf16 %v7888_v7  ;;  %4191 = vtanh.f32 %v3019_v33  ;;  %v2937_v10 = vrot.slane %v7877_v15, 1 }
 0x535   :  { %v4182_v57 = vpop.eup %4181  ;;  %v3008_v12 = vmul.f32 0.5, %v2977_v8  ;;  %v2788_v62 = vunpack.c.h.bf16 %v7897_v44  ;;  %v2989_v37 = vadd.f32 %v2929_v52, %v2790_v56  ;;  %v3011_v53 = vmul.f32 0.5, %v2981_v46 }
 0x536   :  { %v4184_v9 = vpop.eup %4183  ;;  %v2792_v55 = vunpack.c.h.bf16 %v7905_v41  ;;  %v2796_v1 = vunpack.c.h.bf16 %v7915_v25  ;;  %v2993_v40 = vadd.f32 %v2933_v5, %v2794_v21  ;;  %4193 = vtanh.f32 %v3005_v49 }
 0x537   :  { %v4186_v27 = vpop.eup %4185  ;;  %v2799_v24 = vunpack.c.l.bf16 %v7922_v38  ;;  %v2800_v19 = vunpack.c.h.bf16 %v7922_v38  ;;  %4195 = vtanh.f32 %v3025_v39  ;;  %v2997_v60 = vadd.f32 %v7877_v15, %v2798_v29 }
 0x538   :  { %v4188_v16 = vpop.eup %4187  ;;  %v3014_v22 = vmul.f32 0.5, %v2985_v32  ;;  %v2914_v56 = vrot.slane %v7925_v6, 2  ;;  %v3070_v63 = vmul.f32 0.5, %v4180_v45  ;;  %v3001_v33 = vadd.f32 %v2937_v10, %v2802_v61 }
 0x539   :  { %4197 = vtanh.f32 %v3008_v12  ;;  %v2918_v8 = vrot.slane %v7925_v6, 3  ;;  %v4190_v21 = vpop.eup %4189  ;;  %v3052_v52 = vmul.f32 0.5, %v4182_v57  ;;  %v3017_v46 = vmul.f32 0.5, %v2989_v37 }
 0x53a   :  { %4199 = vtanh.f32 %v3011_v53  ;;  %v2922_v5 = vrot.slane %v7925_v6, 4  ;;  %v4192_v49 = vpop.eup %4191  ;;  %v3055_v39 = vmul.f32 0.5, %v4184_v9  ;;  %v3058_v58 = vmul.f32 0.5, %v4186_v27 }
 0x53b   :  { %v3061_v30 = vmul.f32 0.5, %v4188_v16  ;;  %v2926_v29 = vrot.slane %v7925_v6, 5  ;;  %v3020_v15 = vmul.f32 0.5, %v2993_v40  ;;  %v3023_v32 = vmul.f32 0.5, %v2997_v60 }
 0x53c   :  { %4201 = vtanh.f32 %v3014_v22  ;;  %v2974_v61 = vadd.f32 %v2914_v56, %v2775_v48  ;;  %v4194_v45 = vpop.eup %4193  ;;  %v3064_v10 = vmul.f32 0.5, %v4190_v21  ;;  %v7941_v12 = vadd.f32 0.5, %v3070_v63 }
 0x53d   :  { %v3026_v57 = vmul.f32 0.5, %v3001_v33  ;;  %v2978_v37 = vadd.f32 %v2918_v8, %v2779_v11  ;;  %v7945_v53 = vpop.eup %4195  ;;  %v3067_v9 = vmul.f32 0.5, %v4192_v49  ;;  %v7947_v27 = vadd.f32 0.5, %v3052_v52  ;;  %v7959_v11 = vpop.f32.mrf.mxu3 }
 0x53e   :  { %4203 = vtanh.f32 %v3017_v46  ;;  %v2982_v40 = vadd.f32 %v2922_v5, %v2783_v23  ;;  %v7951_v60 = vadd.f32 0.5, %v3055_v39  ;;  %v7953_v48 = vadd.f32 0.5, %v3058_v58 }
 0x53f   :  { %v4198_v16 = vpop.eup %4197  ;;  %v7955_v22 = vadd.f32 0.5, %v3061_v30  ;;  %v2986_v56 = vadd.f32 %v2926_v29, %v2787_v2  ;;  %4205 = vtanh.f32 %v3020_v15  ;;  %v3053_v33 = vmul.f32 0.5, %v4194_v45 }
 0x540   :  { %v4200_v63 = vpop.eup %4199  ;;  %v2930_v8 = vrot.slane %v7925_v6, 6  ;;  %v3006_v21 = vmul.f32 0.5, %v2974_v61  ;;  %v7962_v52 = vadd.f32 0.5, %v3064_v10  ;;  %4207 = vtanh.f32 %v3023_v32 }
 0x541   :  { %v2934_v23 = vrot.slane %v7925_v6, 7  ;;  %v3009_v58 = vmul.f32 0.5, %v2978_v37  ;;  %v7965_v5 = vadd.f32 0.5, %v3067_v9  ;;  %v3012_v49 = vmul.f32 0.5, %v2982_v40 }
 0x542   :  { %v4202_v46 = vpop.eup %4201  ;;  %v2915_v2 = vrot.slane %v7959_v11, 2  ;;  %v2919_v39 = vrot.slane %v7959_v11, 3  ;;  %4209 = vtanh.f32 %v3026_v57  ;;  %v3056_v30 = vmul.f32 0.5, %v4198_v16 }
 0x543   :  { %v3059_v29 = vmul.f32 0.5, %v4200_v63  ;;  %v3015_v15 = vmul.f32 0.5, %v2986_v56  ;;  %v3077_v61 = vadd.f32 0.5, %v3053_v33  ;;  %4211 = vtanh.f32 %v3006_v21 }
 0x544   :  { %v4204_v45 = vpop.eup %4203  ;;  %v2923_v32 = vrot.slane %v7959_v11, 4  ;;  %v2927_v10 = vrot.slane %v7959_v11, 5  ;;  %v3062_v37 = vmul.f32 0.5, %v4202_v46  ;;  %4213 = vtanh.f32 %v3009_v58 }
 0x545   :  { %v2931_v9 = vrot.slane %v7959_v11, 6  ;;  %v2935_v40 = vrot.slane %v7959_v11, 7  ;;  %v4206_v43 = vpop.eup %4205  ;;  %4215 = vtanh.f32 %v3012_v49  ;;  %v2975_v57 = vadd.f32 %v2915_v2, %v2776_v4 }
 0x546   :  { %v2979_v16 = vadd.f32 %v2919_v39, %v2780_v35  ;;  %v2983_v56 = vadd.f32 %v2923_v32, %v2784_v34  ;;  %v4208_v63 = vpop.eup %4207  ;;  %v3065_v33 = vmul.f32 0.5, %v4204_v45  ;;  %v3080_v21 = vadd.f32 0.5, %v3056_v30 }
 0x547   :  { %4217 = vtanh.f32 %v3015_v15  ;;  %v2987_v58 = vadd.f32 %v2927_v10, %v2788_v62  ;;  %v3083_v46 = vadd.f32 0.5, %v3059_v29  ;;  %v2990_v49 = vadd.f32 %v2930_v8, %v2791_v42 }
 0x548   :  { %v2991_v14 = vadd.f32 %v2931_v9, %v2792_v55  ;;  %4219 = vtanh.f32 %v2975_v57  ;;  %v4210_v7 = vpop.eup %4209  ;;  %v3132_v4 = vmul.f32 %v3116_v0, %v3077_v61  ;;  %v2995_v44 = vadd.f32 %v2935_v40, %v2796_v1 }
 0x549   :  { %4221 = vtanh.f32 %v2979_v16  ;;  %v2795_v35 = vunpack.c.l.bf16 %v7915_v25  ;;  %v4212_v34 = vpop.eup %4211  ;;  %v3068_v42 = vmul.f32 0.5, %v4206_v43  ;;  %v3071_v62 = vmul.f32 0.5, %v4208_v63 }
 0x54a   :  { %v3086_v41 = vadd.f32 0.5, %v3062_v37  ;;  %4223 = vtanh.f32 %v2983_v56  ;;  %v4214_v55 = vpop.eup %4213  ;;  %v3089_v8 = vadd.f32 0.5, %v3065_v33  ;;  %v3133_v2 = vmul.f32 %v3117_v18, %v3080_v21 }
 0x54b   :  { %4225 = vtanh.f32 %v2987_v58  ;;  %v2803_v39 = vunpack.c.l.bf16 %v2772_v3  ;;  %v4216_v20 = vpop.eup %4215  ;;  %v3134_v0 = vmul.f32 %v3118_v17, %v3083_v46  ;;  %v2939_v1 = vrot.slane %v7959_v11, 1 }
 0x54c   :  { %4227 = vtanh.f32 %v2991_v14  ;;  %v2804_v25 = vunpack.c.h.bf16 %v2772_v3  ;;  %v2938_v43 = vrot.slane %v7925_v6, 1  ;;  %v2994_v29 = vadd.f32 %v2934_v23, %v2795_v35 }
 0x54d   :  { %v4218_v30 = vpop.eup %4217  ;;  %4229 = vtanh.f32 %v2995_v44  ;;  %v2998_v31 = vadd.f32 %v7925_v6, %v2799_v24  ;;  %v3092_v15 = vadd.f32 0.5, %v3068_v42  ;;  %v3095_v45 = vadd.f32 0.5, %v3071_v62 }
 0x54e   :  { %v4220_v18 = vpop.eup %4219  ;;  %v3135_v26 = vmul.f32 %v3119_v13, %v3086_v41  ;;  %v3018_v17 = vmul.f32 0.5, %v2990_v49  ;;  %v3002_v10 = vadd.f32 %v2938_v43, %v2803_v39  ;;  %v3021_v37 = vmul.f32 0.5, %v2994_v29 }
 0x54f   :  { %v4222_v61 = vpop.eup %4221  ;;  %v3140_v32 = vmul.f32 %v4220_v18, %v7947_v27  ;;  %v3024_v9 = vmul.f32 0.5, %v2998_v31  ;;  %v3136_v23 = vmul.f32 %v3120_v47, %v3089_v8  ;;  %v2999_v6 = vadd.f32 %v7959_v11, %v2800_v19  ;;  %v8017_v19 = vpop.permute.xlu1 %3695 }
 0x550   :  { %v4224_v40 = vpop.eup %4223  ;;  %v3141_v57 = vmul.f32 %v4222_v61, %v7951_v60  ;;  %4231 = vtanh.f32 %v3018_v17  ;;  %v3003_v24 = vadd.f32 %v2939_v1, %v2804_v25  ;;  %v3027_v16 = vmul.f32 0.5, %v3002_v10 }
 0x551   :  { %v4226_v36 = vpop.eup %4225  ;;  %v3142_v13 = vmul.f32 %v4224_v40, %v7953_v48  ;;  %4233 = vtanh.f32 %v3021_v37  ;;  %v8013_v63 = vadd.f32 %v3140_v32, %v3132_v4  ;;  %v3074_v50 = vmul.f32 0.5, %v4210_v7 }
 0x552   :  { %v4228_v27 = vpop.eup %4227  ;;  %v3143_v56 = vmul.f32 %v4226_v36, %v7955_v22  ;;  %4235 = vtanh.f32 %v3024_v9  ;;  %v3054_v60 = vmul.f32 0.5, %v4212_v34  ;;  %v3057_v33 = vmul.f32 0.5, %v4214_v55 }
 0x553   :  { %v4230_v47 = vpop.eup %4229  ;;  %v8015_v38 = vadd.f32 %v3141_v57, %v3133_v2  ;;  %4237 = vtanh.f32 %v3027_v16  ;;  %v3060_v11 = vmul.f32 0.5, %v4216_v20  ;;  %v3073_v48 = vmul.f32 0.5, %v7945_v53 }
 0x554   :  { %4239 = vtanh.f32 %v2999_v6  ;;  %v3137_v21 = vmul.f32 %v3121_v54, %v3092_v15  ;;  %v3144_v22 = vmul.f32 %v4228_v27, %v7962_v52  ;;  %v3145_v58 = vmul.f32 %v4230_v47, %v7965_v5 }
 0x555   :  { %4241 = vtanh.f32 %v3003_v24  ;;  %v8024_v46 = vadd.f32 %v3142_v13, %v3134_v0  ;;  %v3063_v14 = vmul.f32 0.5, %v4218_v30  ;;  %v3098_v3 = vadd.f32 0.5, %v3074_v50 }
 0x556   :  { %v4232_v49 = vpop.eup %4231  ;;  %v8026_v7 = vadd.f32 %v3143_v56, %v3135_v26  ;;  %4243 = vtanh.f32 %v8013_v63  ;;  %v8030_v53 = vunpack.i.l.bf16 %v8017_v19  ;;  %v8032_v59 = vadd.f32 %v3144_v22, %v3136_v23 }
 0x557   :  { %v4234_v4 = vpop.eup %4233  ;;  %v8034_v54 = vadd.f32 %v3145_v58, %v3137_v21  ;;  %4245 = vtanh.f32 %v8015_v38  ;;  %v3078_v5 = vadd.f32 0.5, %v3054_v60  ;;  %v3066_v44 = vmul.f32 0.5, %v4232_v49 }
 0x558   :  { %v4236_v52 = vpop.eup %4235  ;;  %v3097_v35 = vadd.f32 0.5, %v3073_v48  ;;  %4247 = vtanh.f32 %v8024_v46  ;;  %v3081_v42 = vadd.f32 0.5, %v3057_v33  ;;  %v3069_v62 = vmul.f32 0.5, %v4234_v4 }
 0x559   :  { %v4238_v34 = vpop.eup %4237  ;;  %v8717_v41 = vrot.slane %v7761_v28, 7  ;;  %4249 = vtanh.f32 %v8026_v7  ;;  %v3084_v2 = vadd.f32 0.5, %v3060_v11  ;;  %v3087_v39 = vadd.f32 0.5, %v3063_v14 }
 0x55a   :  { %v4240_v8 = vpop.eup %4239  ;;  %v8718_v20 = vrot.slane %v7764_v51, 7  ;;  %4251 = vtanh.f32 %v8032_v59  ;;  %v3179_v30 = vrot.slane %v8030_v53, 2  ;;  %v3180_v28 = vrot.slane %v8030_v53, 3 }
 0x55b   :  { %v3138_v55 = vmul.f32 %v8717_v41, %v3095_v45  ;;  %v4242_v1 = vpop.eup %4241  ;;  %v3146_v25 = vmul.f32 %v4240_v8, %v7941_v12  ;;  %4253 = vtanh.f32 %v8034_v54  ;;  %v3072_v29 = vmul.f32 0.5, %v4236_v52 }
 0x55c   :  { %v3139_v0 = vmul.f32 %v8718_v20, %v3098_v3  ;;  %v4244_v43 = vpop.eup %4243  ;;  %v3090_v31 = vadd.f32 0.5, %v3066_v44  ;;  %v3147_v18 = vmul.f32 %v4242_v1, %v3097_v35  ;;  %v3181_v15 = vrot.slane %v8030_v53, 4  ;;  %v3210_v1 = vld [vmem:[%s8318_s0] sm:$0x88] }
 0x55d   :  { %v4246_v45 = vpop.eup %4245  ;;  %v3093_v51 = vadd.f32 0.5, %v3069_v62  ;;  %v8049_v26 = vadd.f32 %v3146_v25, %v3138_v55  ;;  %v3164_v17 = vmul.f32 %v4244_v43, %v3078_v5  ;;  %v3182_v61 = vrot.slane %v8030_v53, 5  ;;  %v8102_v25 = vld [vmem:[%s8318_s0 + $0x10] sm:$0x88]  ;;  %v8117_v43 = vld [vmem:[%s8318_s0 + $0x40] sm:$0x88] }
 0x55e   :  { %v4248_v12 = vpop.eup %4247  ;;  %v8052_v32 = vadd.f32 %v3147_v18, %v3139_v0  ;;  %v3165_v10 = vmul.f32 %v4246_v45, %v3081_v42  ;;  %v3183_v37 = vrot.slane %v8030_v53, 6  ;;  %v3184_v9 = vrot.slane %v8030_v53, 7  ;;  %v8126_v45 = vld [vmem:[%s8318_s0 + $0x50] sm:$0x88] }
 0x55f   :  { %v4250_v40 = vpop.eup %4249  ;;  %4255 = vtanh.f32 %v8049_v26  ;;  %v3166_v23 = vmul.f32 %v4248_v12, %v3084_v2  ;;  %v3194_v57 = vmul.f32 %v3179_v30, %v3164_v17  ;;  %v3266_v6 = vrot.slane %v3164_v17, 6  ;;  %v8107_v30 = vld [vmem:[%s8318_s0 + $0x20] sm:$0x88] }
 0x560   :  { %v4252_v36 = vpop.eup %4251  ;;  %4257 = vtanh.f32 %v8052_v32  ;;  %v3167_v13 = vmul.f32 %v4250_v40, %v3087_v39  ;;  %v3195_v24 = vmul.f32 %v3180_v28, %v3165_v10  ;;  %v3267_v16 = vrot.slane %v3165_v10, 5  ;;  %v8112_v28 = vld [vmem:[%s8318_s0 + $0x30] sm:$0x88] }
 0x561   :  { %v4254_v27 = vpop.eup %4253  ;;  %v3075_v56 = vmul.f32 0.5, %v4238_v34  ;;  %v3168_v50 = vmul.f32 %v4252_v36, %v3090_v31  ;;  %v3196_v47 = vmul.f32 %v3181_v15, %v3166_v23  ;;  %3202 = vst [vmem:[%s8319_s3] sm:$0x40] %v3194_v57  ;;  %v3269_v60 = vrot.slane %v3166_v23, 4 }
 0x562   :  { %v3169_v33 = vmul.f32 %v4254_v27, %v3093_v51  ;;  %v3197_v11 = vmul.f32 %v3182_v61, %v3167_v13  ;;  %3203 = vst [vmem:[%s8319_s3 + $0x8] sm:$0x40] %v3195_v24  ;;  %v3268_v48 = vsel %vm542_vm2, %v3267_v16, %v3266_v6  ;;  %v3271_v21 = vrot.slane %v3167_v13, 3  ;;  %v8131_v51 = vld [vmem:[%s8318_s0 + $0x60] sm:$0x88] }
 0x563   :  { %v3198_v22 = vmul.f32 %v3183_v37, %v3168_v50  ;;  %3204 = vst [vmem:[%s8319_s3 + $0x10] sm:$0x40] %v3196_v47  ;;  %v3270_v58 = vsel %vm545_vm3, %v3269_v60, %v3268_v48  ;;  %v3273_v49 = vrot.slane %v3168_v50, 2  ;;  %v3096_v14 = vadd.f32 0.5, %v3072_v29 }
 0x564   :  { %v3199_v3 = vmul.f32 %v3184_v9, %v3169_v33  ;;  %3205 = vst [vmem:[%s8319_s3 + $0x18] sm:$0x40] %v3197_v11  ;;  %v3272_v4 = vsel %vm548_vm4, %v3271_v21, %v3270_v58  ;;  %v3275_v52 = vrot.slane %v3169_v33, 1  ;;  %v3099_v44 = vadd.f32 0.5, %v3075_v56 }
 0x565   :  { %v4256_v5 = vpop.eup %4255  ;;  %v3185_v35 = vrot.slane %v8030_v53, 1  ;;  %3206 = vst [vmem:[%s8319_s3 + $0x20] sm:$0x40] %v3198_v22  ;;  %v3274_v34 = vsel %vm551_vm5, %v3273_v49, %v3272_v4  ;;  %v3226_v31 = vunpack.c.l.bf16 %v3210_v1  ;;  %v8121_v15 = vunpack.i.h.bf16 %v8017_v19 }
 0x566   :  { %v4258_v42 = vpop.eup %4257  ;;  %v3170_v62 = vmul.f32 %v4256_v5, %v3096_v14  ;;  %3207 = vst [vmem:[%s8319_s3 + $0x28] sm:$0x40] %v3199_v3  ;;  %v3276_v41 = vsel %vm554_vm6, %v3275_v52, %v3274_v34  ;;  %v3230_v17 = vunpack.c.l.bf16 %v8102_v25  ;;  %v3234_v10 = vunpack.c.l.bf16 %v8107_v30 }
 0x567   :  { %v3171_v55 = vmul.f32 %v4258_v42, %v3099_v44  ;;  %v3238_v37 = vunpack.c.l.bf16 %v8112_v28  ;;  %v3242_v19 = vunpack.c.l.bf16 %v8117_v43  ;;  %v3246_v36 = vunpack.c.l.bf16 %v8126_v45 }
 0x568   :  { %v3200_v8 = vmul.f32 %v8030_v53, %v3170_v62  ;;  %v3277_v2 = vsel %vm557_vm7, %v3170_v62, %v3276_v41  ;;  %v8094_v53 = vld [vmem:[%s8318_s0 + $0x70] sm:$0x88]  ;;  %v3250_v13 = vunpack.c.l.bf16 %v8131_v51  ;;  %v3569_v47 = vrot.slane %v8013_v63, 7 }
 0x569   :  { %v3201_v39 = vmul.f32 %v3185_v35, %v3171_v55  ;;  %v3278_v20 = vrot.slane %v3171_v55, 7  ;;  %v3254_v29 = vunpack.c.l.bf16 %v8094_v53  ;;  %v3570_v60 = vrot.slane %v8015_v38, 7 }
 0x56a   :  { %3208 = vst [vmem:[%s8319_s3 + $0x30] sm:$0x40] %v3200_v8  ;;  %v3571_v48 = vrot.slane %v8024_v46, 7  ;;  %v3227_v52 = vunpack.c.h.bf16 %v3210_v1  ;;  %v3231_v34 = vunpack.c.h.bf16 %v8102_v25  ;;  %v3255_v42 = vunpack.c.h.bf16 %v8094_v53 }
 0x56b   :  { %3209 = vst [vmem:[%s8319_s3 + $0x38] sm:$0x40] %v3201_v39  ;;  %v3279_v0 = vsel %vm560_vm8, %v3278_v20, %v3277_v2  ;;  %v3235_v55 = vunpack.c.h.bf16 %v8107_v30  ;;  %v3239_v39 = vunpack.c.h.bf16 %v8112_v28  ;;  %v3243_v1 = vunpack.c.h.bf16 %v8117_v43  ;;  %v8162_v30 = vld [vmem:[%s8318_s0 + $0x8] sm:$0x88]  ;;  %v8167_v28 = vld [vmem:[%s8318_s0 + $0x78] sm:$0x88] }
 0x56c   :  { %3297 = vmatmul.f32.vlgmr.msrb.gmra.mxu0 %v3279_v0  ;;  %3317 = vmatmul.f32.vlgmr.msrb.gmra.mxu1 %v3279_v0  ;;  %v3247_v53 = vunpack.c.h.bf16 %v8126_v45  ;;  %v8173_v45 = vld [vmem:[%s8318_s0 + $0x18] sm:$0x88]  ;;  %v8719_v63 = vrot.slane %v8026_v7, 7 }
 0x56d   :  { %3337 = vmatmul.f32.vlgmr.msrb.gmra.mxu2 %v3279_v0  ;;  %3357 = vmatmul.f32.vlgmr.msrb.gmra.mxu3 %v3279_v0 }
 0x5e9   :  { %v3298_v18 = vpop.f32.mrf.mxu0  ;;  %v8141_v50 = vpop.f32.mrf.mxu1 }
 0x5ea   :  { %v3365_v61 = vrot.slane %v3298_v18, 1  ;;  %v3369_v12 = vrot.slane %v3298_v18, 2  ;;  %v3373_v9 = vrot.slane %v3298_v18, 3  ;;  %v3377_v57 = vrot.slane %v3298_v18, 4 }
 0x5eb   :  { %v3453_v6 = vadd.f32 %v3298_v18, %v3254_v29  ;;  %v3381_v24 = vrot.slane %v3298_v18, 5  ;;  %v3385_v27 = vrot.slane %v3298_v18, 6  ;;  %v3389_v33 = vrot.slane %v3298_v18, 7 }
 0x5ec   :  { %v3425_v16 = vadd.f32 %v3365_v61, %v3226_v31  ;;  %v3429_v56 = vadd.f32 %v3369_v12, %v3230_v17  ;;  %v3433_v11 = vadd.f32 %v3373_v9, %v3234_v10  ;;  %v3437_v22 = vadd.f32 %v3377_v57, %v3238_v37  ;;  %v8185_v37 = vld [vmem:[%s8318_s0 + $0x38] sm:$0x88]  ;;  %v8191_v57 = vld [vmem:[%s8318_s0 + $0x48] sm:$0x88] }
 0x5ed   :  { %v3478_v58 = vmul.f32 0.5, %v3453_v6  ;;  %v3441_v3 = vadd.f32 %v3381_v24, %v3242_v19  ;;  %v3366_v5 = vrot.slane %v8141_v50, 1  ;;  %v3445_v44 = vadd.f32 %v3385_v27, %v3246_v36  ;;  %v8202_v24 = vld [vmem:[%s8318_s0 + $0x68] sm:$0x88] }
 0x5ee   :  { %v3457_v4 = vmul.f32 0.5, %v3425_v16  ;;  %v3460_v35 = vmul.f32 0.5, %v3429_v56  ;;  %v3449_v62 = vadd.f32 %v3389_v33, %v3250_v13  ;;  %v3463_v41 = vmul.f32 0.5, %v3433_v11  ;;  %v8197_v13 = vld [vmem:[%s8318_s0 + $0x58] sm:$0x88] }
 0x5ef   :  { %v3370_v8 = vrot.slane %v8141_v50, 2  ;;  %v3466_v2 = vmul.f32 0.5, %v3437_v22  ;;  %4259 = vtanh.f32 %v3478_v58  ;;  %v3374_v20 = vrot.slane %v8141_v50, 3 }
 0x5f0   :  { %v3469_v0 = vmul.f32 0.5, %v3441_v3  ;;  %4261 = vtanh.f32 %v3457_v4  ;;  %v3426_v29 = vadd.f32 %v3366_v5, %v3227_v52  ;;  %v3472_v25 = vmul.f32 0.5, %v3445_v44  ;;  %v8208_v3 = vpop.f32.mrf.mxu2 }
 0x5f1   :  { %4263 = vtanh.f32 %v3460_v35  ;;  %v3251_v31 = vunpack.c.h.bf16 %v8131_v51  ;;  %v3475_v18 = vmul.f32 0.5, %v3449_v62  ;;  %v3378_v43 = vrot.slane %v8141_v50, 4  ;;  %v8178_v51 = vld [vmem:[%s8318_s0 + $0x28] sm:$0x88] }
 0x5f2   :  { %4265 = vtanh.f32 %v3463_v41  ;;  %v3430_v17 = vadd.f32 %v3370_v8, %v3231_v34  ;;  %v3382_v61 = vrot.slane %v8141_v50, 5  ;;  %v3386_v12 = vrot.slane %v8141_v50, 6 }
 0x5f3   :  { %4267 = vtanh.f32 %v3466_v2  ;;  %v3434_v10 = vadd.f32 %v3374_v20, %v3235_v55  ;;  %v3390_v19 = vrot.slane %v8141_v50, 7  ;;  %v3458_v9 = vmul.f32 0.5, %v3426_v29 }
 0x5f4   :  { %4269 = vtanh.f32 %v3469_v0  ;;  %v3256_v6 = vunpack.c.l.bf16 %v8167_v28  ;;  %v3228_v16 = vunpack.c.l.bf16 %v8162_v30  ;;  %v3232_v27 = vunpack.c.l.bf16 %v8173_v45 }
 0x5f5   :  { %v4260_v36 = vpop.eup %4259  ;;  %4271 = vtanh.f32 %v3472_v25  ;;  %v3236_v56 = vunpack.c.l.bf16 %v8178_v51  ;;  %v3438_v11 = vadd.f32 %v3378_v43, %v3239_v39  ;;  %v3461_v22 = vmul.f32 0.5, %v3430_v17 }
 0x5f6   :  { %v4262_v33 = vpop.eup %4261  ;;  %4273 = vtanh.f32 %v3475_v18  ;;  %v3240_v58 = vunpack.c.l.bf16 %v8185_v37  ;;  %v3442_v52 = vadd.f32 %v3382_v61, %v3243_v1  ;;  %v3446_v5 = vadd.f32 %v3386_v12, %v3247_v53 }
 0x5f7   :  { %v4264_v4 = vpop.eup %4263  ;;  %v3464_v44 = vmul.f32 0.5, %v3434_v10  ;;  %v3244_v35 = vunpack.c.l.bf16 %v8191_v57  ;;  %v3450_v62 = vadd.f32 %v3390_v19, %v3251_v31  ;;  %4275 = vtanh.f32 %v3458_v9 }
 0x5f8   :  { %v4266_v34 = vpop.eup %4265  ;;  %v3248_v41 = vunpack.c.l.bf16 %v8197_v13  ;;  %v3252_v55 = vunpack.c.l.bf16 %v8202_v24  ;;  %v3526_v2 = vmul.f32 0.5, %v4260_v36  ;;  %v3454_v39 = vadd.f32 %v8141_v50, %v3255_v42 }
 0x5f9   :  { %v4268_v8 = vpop.eup %4267  ;;  %v3367_v20 = vrot.slane %v8208_v3, 1  ;;  %v3257_v0 = vunpack.c.h.bf16 %v8167_v28  ;;  %v3505_v29 = vmul.f32 0.5, %v4262_v33  ;;  %v3467_v25 = vmul.f32 0.5, %v3438_v11 }
 0x5fa   :  { %v4270_v1 = vpop.eup %4269  ;;  %4277 = vtanh.f32 %v3461_v22  ;;  %v3371_v53 = vrot.slane %v8208_v3, 2  ;;  %v3508_v18 = vmul.f32 0.5, %v4264_v4  ;;  %v3470_v43 = vmul.f32 0.5, %v3442_v52 }
 0x5fb   :  { %v4272_v31 = vpop.eup %4271  ;;  %v3473_v17 = vmul.f32 0.5, %v3446_v5  ;;  %4279 = vtanh.f32 %v3464_v44  ;;  %v3511_v12 = vmul.f32 0.5, %v4266_v34  ;;  %v3514_v10 = vmul.f32 0.5, %v4268_v8 }
 0x5fc   :  { %v4274_v61 = vpop.eup %4273  ;;  %v3476_v19 = vmul.f32 0.5, %v3450_v62  ;;  %v3375_v50 = vrot.slane %v8208_v3, 3  ;;  %v3517_v42 = vmul.f32 0.5, %v4270_v1  ;;  %v8218_v9 = vadd.f32 0.5, %v3526_v2 }
 0x5fd   :  { %v3479_v36 = vmul.f32 0.5, %v3454_v39  ;;  %v3427_v33 = vadd.f32 %v3367_v20, %v3228_v16  ;;  %v4276_v11 = vpop.eup %4275  ;;  %v8220_v22 = vadd.f32 0.5, %v3505_v29  ;;  %v3379_v23 = vrot.slane %v8208_v3, 4 }
 0x5fe   :  { %v3383_v4 = vrot.slane %v8208_v3, 5  ;;  %v3431_v52 = vadd.f32 %v3371_v53, %v3232_v27  ;;  %v3520_v5 = vmul.f32 0.5, %v4272_v31  ;;  %v3523_v44 = vmul.f32 0.5, %v4274_v61 }
 0x5ff   :  { %v8224_v34 = vadd.f32 0.5, %v3508_v18  ;;  %4281 = vtanh.f32 %v3467_v25  ;;  %v8226_v8 = vadd.f32 0.5, %v3511_v12  ;;  %v8228_v2 = vadd.f32 0.5, %v3514_v10 }
 0x600   :  { %v4278_v62 = vpop.eup %4277  ;;  %4283 = vtanh.f32 %v3470_v43  ;;  %v3435_v16 = vadd.f32 %v3375_v50, %v3236_v56  ;;  %v8230_v20 = vadd.f32 0.5, %v3517_v42  ;;  %v3506_v1 = vmul.f32 0.5, %v4276_v11  ;;  %v3358_v50 = vpop.f32.mrf.mxu3 }
 0x601   :  { %v4280_v39 = vpop.eup %4279  ;;  %4285 = vtanh.f32 %v3473_v17  ;;  %v3459_v29 = vmul.f32 0.5, %v3427_v33  ;;  %v3387_v27 = vrot.slane %v8208_v3, 6  ;;  %v3439_v53 = vadd.f32 %v3379_v23, %v3240_v58 }
 0x602   :  { %v3443_v31 = vadd.f32 %v3383_v4, %v3244_v35  ;;  %v3462_v18 = vmul.f32 0.5, %v3431_v52  ;;  %v8233_v61 = vadd.f32 0.5, %v3520_v5  ;;  %v8235_v25 = vadd.f32 0.5, %v3523_v44 }
 0x603   :  { %4287 = vtanh.f32 %v3476_v19  ;;  %v3391_v12 = vrot.slane %v8208_v3, 7  ;;  %v3509_v56 = vmul.f32 0.5, %v4278_v62  ;;  %v3512_v43 = vmul.f32 0.5, %v4280_v39 }
 0x604   :  { %4289 = vtanh.f32 %v3479_v36  ;;  %v3465_v10 = vmul.f32 0.5, %v3435_v16  ;;  %v3530_v42 = vadd.f32 0.5, %v3506_v1  ;;  %v3229_v33 = vunpack.c.h.bf16 %v8162_v30 }
 0x605   :  { %v4282_v17 = vpop.eup %4281  ;;  %4291 = vtanh.f32 %v3459_v29  ;;  %v3233_v23 = vunpack.c.h.bf16 %v8173_v45  ;;  %v3468_v35 = vmul.f32 0.5, %v3439_v53  ;;  %v3471_v11 = vmul.f32 0.5, %v3443_v31 }
 0x606   :  { %v4284_v58 = vpop.eup %4283  ;;  %4293 = vtanh.f32 %v3462_v18  ;;  %v3237_v19 = vunpack.c.h.bf16 %v8178_v51  ;;  %v3241_v36 = vunpack.c.h.bf16 %v8185_v37  ;;  %v3368_v52 = vrot.slane %v3358_v50, 1 }
 0x607   :  { %v4286_v4 = vpop.eup %4285  ;;  %v3372_v5 = vrot.slane %v3358_v50, 2  ;;  %v3376_v44 = vrot.slane %v3358_v50, 3  ;;  %4295 = vtanh.f32 %v3465_v10  ;;  %v3245_v62 = vunpack.c.h.bf16 %v8191_v57 }
 0x608   :  { %v3380_v16 = vrot.slane %v3358_v50, 4  ;;  %v3384_v39 = vrot.slane %v3358_v50, 5  ;;  %v3249_v45 = vunpack.c.h.bf16 %v8197_v13  ;;  %v3388_v1 = vrot.slane %v3358_v50, 6 }
 0x609   :  { %v4288_v30 = vpop.eup %4287  ;;  %v3428_v29 = vadd.f32 %v3368_v52, %v3229_v33  ;;  %v3432_v53 = vadd.f32 %v3372_v5, %v3233_v23  ;;  %4297 = vtanh.f32 %v3468_v35  ;;  %v3253_v51 = vunpack.c.h.bf16 %v8202_v24 }
 0x60a   :  { %v4290_v31 = vpop.eup %4289  ;;  %v3392_v18 = vrot.slane %v3358_v50, 7  ;;  %v3436_v37 = vadd.f32 %v3376_v44, %v3237_v19  ;;  %v3447_v10 = vadd.f32 %v3387_v27, %v3248_v41  ;;  %v3451_v57 = vadd.f32 %v3391_v12, %v3252_v55 }
 0x60b   :  { %v8245_v40 = vpop.eup %4291  ;;  %4299 = vtanh.f32 %v3471_v11  ;;  %v3440_v14 = vadd.f32 %v3380_v16, %v3241_v36  ;;  %v3515_v33 = vmul.f32 0.5, %v4282_v17  ;;  %v3518_v23 = vmul.f32 0.5, %v4284_v58 }
 0x60c   :  { %v8251_v49 = vpop.eup %4293  ;;  %v3444_v52 = vadd.f32 %v3384_v39, %v3245_v62  ;;  %4301 = vtanh.f32 %v3428_v29  ;;  %v3521_v35 = vmul.f32 0.5, %v4286_v4  ;;  %v3533_v5 = vadd.f32 0.5, %v3509_v56 }
 0x60d   :  { %v3448_v21 = vadd.f32 %v3388_v1, %v3249_v45  ;;  %4303 = vtanh.f32 %v3432_v53  ;;  %v4296_v19 = vpop.eup %4295  ;;  %v3524_v44 = vmul.f32 0.5, %v4288_v30  ;;  %v3455_v13 = vadd.f32 %v8208_v3, %v3256_v6 }
 0x60e   :  { %v3452_v24 = vadd.f32 %v3392_v18, %v3253_v51  ;;  %4305 = vtanh.f32 %v3436_v37  ;;  %v3527_v41 = vmul.f32 0.5, %v4290_v31  ;;  %v3536_v55 = vadd.f32 0.5, %v3512_v43 }
 0x60f   :  { %v3456_v27 = vadd.f32 %v3358_v50, %v3257_v0  ;;  %4307 = vtanh.f32 %v3440_v14  ;;  %v4298_v12 = vpop.eup %4297  ;;  %v3539_v17 = vadd.f32 0.5, %v3515_v33  ;;  %v3542_v58 = vadd.f32 0.5, %v3518_v23 }
 0x610   :  { %v3474_v56 = vmul.f32 0.5, %v3447_v10  ;;  %4309 = vtanh.f32 %v3444_v52  ;;  %v3545_v4 = vadd.f32 0.5, %v3521_v35  ;;  %v3585_v36 = vmul.f32 %v3569_v47, %v3530_v42 }
 0x611   :  { %v4300_v11 = vpop.eup %4299  ;;  %v3477_v62 = vmul.f32 0.5, %v3451_v57  ;;  %4311 = vtanh.f32 %v3448_v21  ;;  %v3548_v3 = vadd.f32 0.5, %v3524_v44  ;;  %v3586_v43 = vmul.f32 %v3570_v60, %v3533_v5 }
 0x612   :  { %v4302_v6 = vpop.eup %4301  ;;  %v3480_v28 = vmul.f32 0.5, %v3455_v13  ;;  %4313 = vtanh.f32 %v3452_v24  ;;  %v3551_v0 = vadd.f32 0.5, %v3527_v41  ;;  %v3587_v50 = vmul.f32 %v3571_v48, %v3536_v55 }
 0x613   :  { %v4304_v14 = vpop.eup %4303  ;;  %4315 = vtanh.f32 %v3456_v27  ;;  %v3593_v16 = vmul.f32 %v4302_v6, %v8220_v22  ;;  %v3588_v47 = vmul.f32 %v8719_v63, %v3539_v17  ;;  %v8720_v21 = vrot.slane %v8032_v59, 7 }
 0x614   :  { %v4306_v39 = vpop.eup %4305  ;;  %4317 = vtanh.f32 %v3474_v56  ;;  %v3594_v38 = vmul.f32 %v4304_v14, %v8224_v34  ;;  %v8721_v30 = vrot.slane %v8034_v54, 7  ;;  %v8722_v22 = vrot.slane %v8049_v26, 7 }
 0x615   :  { %v3589_v42 = vmul.f32 %v8720_v21, %v3542_v58  ;;  %v4308_v60 = vpop.eup %4307  ;;  %4319 = vtanh.f32 %v3477_v62  ;;  %v3595_v46 = vmul.f32 %v4306_v39, %v8226_v8  ;;  %v3601_v48 = vadd.f32 %v3593_v16, %v3585_v36 }
 0x616   :  { %v3590_v45 = vmul.f32 %v8721_v30, %v3545_v4  ;;  %v4310_v1 = vpop.eup %4309  ;;  %v3591_v29 = vmul.f32 %v8722_v22, %v3548_v3  ;;  %4321 = vtanh.f32 %v3480_v28  ;;  %v3596_v7 = vmul.f32 %v4308_v60, %v8228_v2 }
 0x617   :  { %v3602_v59 = vadd.f32 %v3594_v38, %v3586_v43  ;;  %v4312_v53 = vpop.eup %4311  ;;  %v8723_v31 = vrot.slane %v8052_v32, 7  ;;  %v3597_v51 = vmul.f32 %v4310_v1, %v8230_v20  ;;  %v3603_v54 = vadd.f32 %v3595_v46, %v3587_v50 }
 0x618   :  { %4323 = vtanh.f32 %v3601_v48  ;;  %v4314_v18 = vpop.eup %4313  ;;  %v3507_v8 = vmul.f32 0.5, %v8245_v40  ;;  %v3598_v37 = vmul.f32 %v4312_v53, %v8233_v61  ;;  %v3604_v10 = vadd.f32 %v3596_v7, %v3588_v47 }
 0x619   :  { %v3592_v34 = vmul.f32 %v8723_v31, %v3551_v0  ;;  %4325 = vtanh.f32 %v3602_v59  ;;  %v4316_v26 = vpop.eup %4315  ;;  %v3510_v57 = vmul.f32 0.5, %v8251_v49  ;;  %v3599_v2 = vmul.f32 %v4314_v18, %v8235_v25 }
 0x61a   :  { %v3605_v33 = vadd.f32 %v3597_v51, %v3589_v42  ;;  %4327 = vtanh.f32 %v3603_v54  ;;  %v4318_v32 = vpop.eup %4317  ;;  %v3513_v23 = vmul.f32 0.5, %v4296_v19  ;;  %v3600_v20 = vmul.f32 %v4316_v26, %v8218_v9 }
 0x61b   :  { %v3606_v52 = vadd.f32 %v3598_v37, %v3590_v45  ;;  %4329 = vtanh.f32 %v3604_v10  ;;  %v4320_v35 = vpop.eup %4319  ;;  %v3516_v5 = vmul.f32 0.5, %v4298_v12  ;;  %v3607_v40 = vadd.f32 %v3599_v2, %v3591_v29 }
 0x61c   :  { %4331 = vtanh.f32 %v3605_v33  ;;  %v4322_v61 = vpop.eup %4321  ;;  %v3519_v44 = vmul.f32 0.5, %v4300_v11  ;;  %v3531_v13 = vadd.f32 0.5, %v3507_v8  ;;  %v3608_v24 = vadd.f32 %v3600_v20, %v3592_v34 }
 0x61d   :  { %4333 = vtanh.f32 %v3606_v52  ;;  %v3632_v25 = vrot.slane %v8121_v15, 1  ;;  %v3522_v41 = vmul.f32 0.5, %v4318_v32  ;;  %v3534_v55 = vadd.f32 0.5, %v3510_v57 }
 0x61e   :  { %v4324_v49 = vpop.eup %4323  ;;  %4335 = vtanh.f32 %v3607_v40  ;;  %v3525_v27 = vmul.f32 0.5, %v4320_v35  ;;  %v3537_v9 = vadd.f32 0.5, %v3513_v23  ;;  %v3633_v12 = vrot.slane %v8121_v15, 2 }
 0x61f   :  { %v4326_v19 = vpop.eup %4325  ;;  %4337 = vtanh.f32 %v3608_v24  ;;  %v3617_v17 = vmul.f32 %v4324_v49, %v3531_v13  ;;  %v3528_v56 = vmul.f32 0.5, %v4322_v61  ;;  %v3540_v4 = vadd.f32 0.5, %v3516_v5 }
 0x620   :  { %v4328_v58 = vpop.eup %4327  ;;  %v3618_v11 = vmul.f32 %v4326_v19, %v3534_v55  ;;  %v3634_v62 = vrot.slane %v8121_v15, 3  ;;  %v3543_v6 = vadd.f32 0.5, %v3519_v44  ;;  %v3635_v14 = vrot.slane %v8121_v15, 4 }
 0x621   :  { %v4330_v36 = vpop.eup %4329  ;;  %v3619_v3 = vmul.f32 %v4328_v58, %v3537_v9  ;;  %v3647_v43 = vmul.f32 %v3632_v25, %v3617_v17  ;;  %v3546_v0 = vadd.f32 0.5, %v3522_v41  ;;  %v3636_v63 = vrot.slane %v8121_v15, 5 }
 0x622   :  { %v4332_v28 = vpop.eup %4331  ;;  %v3620_v50 = vmul.f32 %v4330_v36, %v3540_v4  ;;  %v3648_v16 = vmul.f32 %v3633_v12, %v3618_v11  ;;  %v3549_v47 = vadd.f32 0.5, %v3525_v27  ;;  %v3637_v60 = vrot.slane %v8121_v15, 6 }
 0x623   :  { %v4334_v39 = vpop.eup %4333  ;;  %v3621_v21 = vmul.f32 %v4332_v28, %v3543_v6  ;;  %v3649_v42 = vmul.f32 %v3634_v62, %v3619_v3  ;;  %3655 = vst [vmem:[%s8319_s3] sm:$0x80] %v3647_v43  ;;  %v3552_v30 = vadd.f32 0.5, %v3528_v56  ;;  %v3638_v1 = vrot.slane %v8121_v15, 7 }
 0x624   :  { %v4336_v38 = vpop.eup %4335  ;;  %v3622_v45 = vmul.f32 %v4334_v39, %v3546_v0  ;;  %v3650_v46 = vmul.f32 %v3635_v14, %v3620_v50  ;;  %3656 = vst [vmem:[%s8319_s3 + $0x8] sm:$0x80] %v3648_v16 }
 0x625   :  { %v4338_v48 = vpop.eup %4337  ;;  %v3623_v22 = vmul.f32 %v4336_v38, %v3549_v47  ;;  %v3651_v29 = vmul.f32 %v3636_v63, %v3621_v21  ;;  %3657 = vst [vmem:[%s8319_s3 + $0x10] sm:$0x80] %v3649_v42 }
 0x626   :  { %v3624_v7 = vmul.f32 %v4338_v48, %v3552_v30  ;;  %v3652_v59 = vmul.f32 %v3637_v60, %v3622_v45  ;;  %3658 = vst [vmem:[%s8319_s3 + $0x18] sm:$0x80] %v3650_v46 }
 0x627   :  { %v3653_v53 = vmul.f32 %v3638_v1, %v3623_v22  ;;  %3659 = vst [vmem:[%s8319_s3 + $0x20] sm:$0x80] %v3651_v29 }
 0x628   :  { %v3654_v31 = vmul.f32 %v8121_v15, %v3624_v7  ;;  %3660 = vst [vmem:[%s8319_s3 + $0x28] sm:$0x80] %v3652_v59 }
 0x629   :  { %3661 = vst [vmem:[%s8319_s3 + $0x30] sm:$0x80] %v3653_v53 }
 0x62a   :  { %3662 = vst [vmem:[%s8319_s3 + $0x38] sm:$0x80] %v3654_v31 }

</bundles_post_ra>
